<compile_context>
chip_gen: v7x
topology: tpu7x:2x2x1
jax: 0.10.0
libtpu: 0.0.40
codegen_flags: <defaults>
</compile_context>

<pallas_src>
import functools

import jax
import jax.numpy as jnp
from jax.experimental import pallas as pl
from jax.experimental.pallas import tpu as pltpu

LANE = 128
SUBLANE = 8


def _round_up(x, m):
    return (x + m - 1) // m * m


# ------------------------------ Pallas kernel ------------------------------ #
def _unet_up_kernel(x1_ref, x2_ref, u_ref, w1_ref, b1_ref, w2_ref, b2_ref,
                    o_ref, xcat_ref, hpad_ref, acc_ref, *, H, W, C1, C2):
    """Fused upsample + concat + (conv3x3 + bias + ReLU) x2 for one batch elem.

    x1_ref:   (1, H, W, C1)             skip connection
    x2_ref:   (1, H//2, W//2, C2)       coarse features (upsampled x2 here)
    u_ref:    (H*W, (H//2)*(W//2))      bilinear interpolation operator
    w*_ref:   (3, Cin_pad, 3*Cout_pad)  packed weights: [dy, ci, dx*Cout + co]
    b*_ref:   (1, Cout_pad)             zero-padded bias
    o_ref:    (1, H, W, Cout_pad)       lane-dense output block
    xcat_ref: (H+2, Wpad, Cin1_pad)     VMEM: zero-padded concat (conv1 input)
    hpad_ref: (H+2, Wpad, Cout_pad)     VMEM: zero-padded conv1 output
    acc_ref:  (H, W, Cout_pad) f32      VMEM: conv accumulator
    """
    Wpad = xcat_ref.shape[1]
    Cout = acc_ref.shape[2]                    # padded (lane-dense) out channels
    h_in, w_in = x2_ref.shape[1], x2_ref.shape[2]

    # Zero the scratches; only interiors are written below, so the 1-px halo
    # (and the right alignment columns) stay zero -> Conv2d(padding=1)
    # semantics without any host-side jnp.pad.
    xcat_ref[...] = jnp.zeros_like(xcat_ref)
    hpad_ref[...] = jnp.zeros_like(hpad_ref)

    # Skip connection -> lanes [0, C1).
    xcat_ref[1:H + 1, 1:W + 1, 0:C1] = x1_ref[0]

    # Bilinear x2 upsample (align_corners=True) as one MXU matmul with the
    # precomputed operator U = kron(A_h, A_w); result -> lanes [C1, C1+C2).
    x2f = x2_ref[0].reshape(h_in * w_in, C2)
    up = jnp.dot(u_ref[...], x2f, preferred_element_type=jnp.float32)
    xcat_ref[1:H + 1, 1:W + 1, C1:C1 + C2] = (
        up.reshape(H, W, C2).astype(xcat_ref.dtype))

    def conv3x3(src_ref, w_ref):
        # src_ref: (H+2, Wpad, K); w_ref: (3, K, 3*Cout) with the three dx taps
        # packed along the lane axis.  One matmul per dy (cheap leading-axis
        # slab slice, layout-preserving reshape); the dx shift is applied to
        # the lane-dense result instead of re-slicing the input nine times.
        K = src_ref.shape[2]
        acc_ref[...] = jnp.zeros_like(acc_ref)
        for dy in range(3):
            slab = src_ref[dy:dy + H].reshape(H * Wpad, K)
            y = jnp.dot(slab, w_ref[dy], preferred_element_type=jnp.float32)
            y = y.reshape(H, Wpad, 3 * Cout)
            for dx in range(3):
                acc_ref[...] += y[:, dx:dx + W, dx * Cout:(dx + 1) * Cout]

    # conv1 + bias + ReLU; intermediate stays in VMEM (no HBM round trip).
    conv3x3(xcat_ref, w1_ref)
    hpad_ref[1:H + 1, 1:W + 1, :] = jnp.maximum(acc_ref[...] + b1_ref[...], 0.0)

    # conv2 + bias + ReLU; full-lane (Cout_pad) output store.
    conv3x3(hpad_ref, w2_ref)
    o_ref[0] = jnp.maximum(acc_ref[...] + b2_ref[...], 0.0).astype(o_ref.dtype)


# ------------------------------ host helpers ------------------------------- #
def _bilinear_matrix(out_size, in_size):
    """(out_size, in_size) operator for 1-D bilinear resize, align_corners=True
    (the semantics of nn.UpsamplingBilinear2d)."""
    if in_size == 1:
        return jnp.ones((out_size, 1), jnp.float32)
    src = jnp.arange(out_size, dtype=jnp.float32) * (
        (in_size - 1) / (out_size - 1))
    k0 = jnp.floor(src).astype(jnp.int32)
    k1 = jnp.minimum(k0 + 1, in_size - 1)
    t = src - k0.astype(jnp.float32)
    rows = jnp.arange(out_size)
    m = jnp.zeros((out_size, in_size), jnp.float32)
    m = m.at[rows, k0].add(1.0 - t)
    m = m.at[rows, k1].add(t)
    return m


def _pack_conv_weights(w_hwio, cin_pad, cout_pad):
    """(3,3,Cin,Cout) HWIO -> (3, cin_pad, 3*cout_pad):
    packed[dy, ci, dx*cout_pad + co] = w_hwio[dy, dx, ci, co] (zeros elsewhere)."""
    kh, kw, cin, cout = w_hwio.shape
    wp = jnp.zeros((kh, cin_pad, kw, cout_pad), w_hwio.dtype)
    wp = wp.at[:, :cin, :, :cout].set(jnp.transpose(w_hwio, (0, 2, 1, 3)))
    return wp.reshape(kh, cin_pad, kw * cout_pad)


def unet_up_forward(inputs1, inputs2, w1, b1, w2, b2):
    """Matches unetUp.forward. inputs NCHW, weights HWIO, output NCHW."""
    N, C1, H, W = inputs1.shape
    _, C2, h_in, w_in = inputs2.shape
    assert (H, W) == (2 * h_in, 2 * w_in)
    cout = w1.shape[-1]

    k1p = _round_up(C1 + C2, LANE)        # conv1 K (concat channels), padded
    coutp = _round_up(cout, LANE)         # lane-dense output channels
    wpad = _round_up(W + 2, SUBLANE)      # halo'd width, sublane aligned

    # Single layout pass each: NCHW -> NHWC (channels on the lane axis).
    # TODO(synk): keep a full decoder NHWC end-to-end and drop these boundary
    # transposes (kept here because the module's interface is NCHW).
    x1 = jnp.transpose(inputs1, (0, 2, 3, 1))
    x2 = jnp.transpose(inputs2, (0, 2, 3, 1))

    # align_corners=True bilinear x2 operator folded into one matrix.
    u = jnp.kron(_bilinear_matrix(H, h_in), _bilinear_matrix(W, w_in))

    w1p = _pack_conv_weights(w1, k1p, coutp)
    w2p = _pack_conv_weights(w2, coutp, coutp)
    b1p = jnp.zeros((1, coutp), jnp.float32).at[0, :cout].set(b1)
    b2p = jnp.zeros((1, coutp), jnp.float32).at[0, :cout].set(b2)

    kernel = functools.partial(_unet_up_kernel, H=H, W=W, C1=C1, C2=C2)
    out_padded = pl.pallas_call(
        kernel,
        out_shape=jax.ShapeDtypeStruct((N, H, W, coutp), x1.dtype),
        grid=(N,),
        in_specs=[
            pl.BlockSpec((1, H, W, C1), lambda n: (n, 0, 0, 0)),
            pl.BlockSpec((1, h_in, w_in, C2), lambda n: (n, 0, 0, 0)),
            pl.BlockSpec((H * W, h_in * w_in), lambda n: (0, 0)),
            pl.BlockSpec((3, k1p, 3 * coutp), lambda n: (0, 0, 0)),
            pl.BlockSpec((1, coutp), lambda n: (0, 0)),
            pl.BlockSpec((3, coutp, 3 * coutp), lambda n: (0, 0, 0)),
            pl.BlockSpec((1, coutp), lambda n: (0, 0)),
        ],
        out_specs=pl.BlockSpec((1, H, W, coutp), lambda n: (n, 0, 0, 0)),
        scratch_shapes=[
            pltpu.VMEM((H + 2, wpad, k1p), jnp.float32),
            pltpu.VMEM((H + 2, wpad, coutp), jnp.float32),
            pltpu.VMEM((H, W, coutp), jnp.float32),
        ],
        compiler_params=pltpu.CompilerParams(
            dimension_semantics=("parallel",)),
    )(x1, x2, u, w1p, b1p, w2p, b2p)
    # TODO(synk): for production UNet sizes add a spatial row-tile grid axis
    # (2-row halo) so tiles fit v7x's 64 MiB VMEM, and use bf16 activations
    # with f32 accumulation on v6e/v7x.

    # Drop channel padding and go back to NCHW (fuses into one XLA pass).
    return jnp.transpose(out_padded[..., :cout], (0, 3, 1, 2))


# ------------------------- pure-JAX reference check ------------------------ #
def _upsample_bilinear_x2_ref(x):
    """Gather-based align_corners=True bilinear x2 (independent reference)."""
    N, H, W, C = x.shape
    Ho, Wo = 2 * H, 2 * W
    ys = jnp.arange(Ho, dtype=jnp.float32) * ((H - 1) / (Ho - 1))
    xs = jnp.arange(Wo, dtype=jnp.float32) * ((W - 1) / (Wo - 1))
    y0 = jnp.floor(ys).astype(jnp.int32)
    y1 = jnp.minimum(y0 + 1, H - 1)
    x0 = jnp.floor(xs).astype(jnp.int32)
    x1 = jnp.minimum(x0 + 1, W - 1)
    wy = (ys - y0.astype(jnp.float32))[None, :, None, None]
    wx = (xs - x0.astype(jnp.float32))[None, None, :, None]
    xh = x[:, y0] * (1.0 - wy) + x[:, y1] * wy
    return xh[:, :, x0] * (1.0 - wx) + xh[:, :, x1] * wx


def _reference_forward(inputs1, inputs2, w1, b1, w2, b2):
    x1 = jnp.transpose(inputs1, (0, 2, 3, 1))
    x2 = jnp.transpose(inputs2, (0, 2, 3, 1))
    x = jnp.concatenate([x1, _upsample_bilinear_x2_ref(x2)], axis=-1)

    def conv_relu(v, w, b):
        y = jax.lax.conv_general_dilated(
            v, w, window_strides=(1, 1), padding=((1, 1), (1, 1)),
            dimension_numbers=("NHWC", "HWIO", "NHWC"))
        return jnp.maximum(y + b, 0.0)

    h = conv_relu(x, w1, b1)
    h = conv_relu(h, w2, b2)
    return jnp.transpose(h, (0, 3, 1, 2))


# ----------------------------------- main ---------------------------------- #
if __name__ == "__main__":
    key = jax.random.PRNGKey(0)
    k1, k2, k3, k4, k5, k6 = jax.random.split(key, 6)

    # inputs1 is the skip connection; inputs2 is the coarser feature map
    # (half spatial) that gets upsampled.
    N, C1, H, W = 2, 4, 16, 16
    C2 = 8
    in_size = C1 + C2            # conv1 input channels (after concat)
    out_size = 8                 # conv1/conv2 output channels

    inputs1 = jax.random.normal(k1, (N, C1, H, W), jnp.float32)
    inputs2 = jax.random.normal(k2, (N, C2, H // 2, W // 2), jnp.float32)

    def init_w(k, cin, cout):
        bound = 1.0 / (9.0 * cin) ** 0.5
        return jax.random.uniform(k, (3, 3, cin, cout), jnp.float32,
                                  minval=-bound, maxval=bound)

    def init_b(k, cin, cout):
        bound = 1.0 / (9.0 * cin) ** 0.5
        return jax.random.uniform(k, (cout,), jnp.float32,
                                  minval=-bound, maxval=bound)

    w1 = init_w(k3, in_size, out_size)
    b1 = init_b(k4, in_size, out_size)
    w2 = init_w(k5, out_size, out_size)
    b2 = init_b(k6, out_size, out_size)

    out = jax.block_until_ready(
        unet_up_forward(inputs1, inputs2, w1, b1, w2, b2))
    assert out.shape == (N, out_size, H, W), out.shape
    assert out.dtype == jnp.float32

    ref = jax.block_until_ready(
        _reference_forward(inputs1, inputs2, w1, b1, w2, b2))
    max_err = float(jnp.max(jnp.abs(out - ref)))
    assert jnp.allclose(out, ref, rtol=2e-2, atol=2e-2), max_err
    print("KERNEL_OK")
</pallas_src>

<mosaic_0001>
module attributes {stable_mosaic.version = 11 : i64} {
  func.func @_unet_up_kernel(%arg0: i32, %arg1: memref<1x16x16x4xf32, #tpu.memory_space<vmem>>, %arg2: memref<1x8x8x8xf32, #tpu.memory_space<vmem>>, %arg3: memref<256x64xf32, #tpu.memory_space<vmem>>, %arg4: memref<3x128x384xf32, #tpu.memory_space<vmem>>, %arg5: memref<1x128xf32, #tpu.memory_space<vmem>>, %arg6: memref<3x128x384xf32, #tpu.memory_space<vmem>>, %arg7: memref<1x128xf32, #tpu.memory_space<vmem>>, %arg8: memref<1x16x16x128xf32, #tpu.memory_space<vmem>>, %arg9: memref<18x24x128xf32, #tpu.memory_space<vmem>>, %arg10: memref<18x24x128xf32, #tpu.memory_space<vmem>>, %arg11: memref<16x16x128xf32, #tpu.memory_space<vmem>>) attributes {dimension_semantics = [#tpu.dimension_semantics<parallel>], iteration_bounds = array<i64: 2>, scalar_prefetch = 0 : i64, scratch_operands = 3 : i64, tpu.core_type = #tpu.core_type<tc>, window_params = [{transform_indices = @transform_0, window_bounds = array<i64: 1, 16, 16, 4>}, {transform_indices = @transform_1, window_bounds = array<i64: 1, 8, 8, 8>}, {pipeline_mode = #tpu.pipeline_mode<synchronous>, transform_indices = @transform_2, window_bounds = array<i64: 256, 64>}, {pipeline_mode = #tpu.pipeline_mode<synchronous>, transform_indices = @transform_3, window_bounds = array<i64: 3, 128, 384>}, {pipeline_mode = #tpu.pipeline_mode<synchronous>, transform_indices = @transform_4, window_bounds = array<i64: 1, 128>}, {pipeline_mode = #tpu.pipeline_mode<synchronous>, transform_indices = @transform_5, window_bounds = array<i64: 3, 128, 384>}, {pipeline_mode = #tpu.pipeline_mode<synchronous>, transform_indices = @transform_6, window_bounds = array<i64: 1, 128>}, {transform_indices = @transform_7, window_bounds = array<i64: 1, 16, 16, 128>}]} {
    %cst = arith.constant 0.000000e+00 : f32
    %0 = vector.broadcast %cst : f32 to vector<18x24x128xf32>
    %c0 = arith.constant 0 : index
    %c0_0 = arith.constant 0 : index
    %c0_1 = arith.constant 0 : index
    %1 = vector.load %arg9[%c0, %c0_0, %c0_1] : memref<18x24x128xf32, #tpu.memory_space<vmem>>, vector<18x24x128xf32>
    tpu.vector_store %arg9[%c0, %c0_0, %c0_1], %0 {strides = array<i32>} : memref<18x24x128xf32, #tpu.memory_space<vmem>>, vector<18x24x128xf32>,
    %cst_2 = arith.constant 0.000000e+00 : f32
    %2 = vector.broadcast %cst_2 : f32 to vector<18x24x128xf32>
    %c0_3 = arith.constant 0 : index
    %c0_4 = arith.constant 0 : index
    %c0_5 = arith.constant 0 : index
    %3 = vector.load %arg10[%c0_3, %c0_4, %c0_5] : memref<18x24x128xf32, #tpu.memory_space<vmem>>, vector<18x24x128xf32>
    tpu.vector_store %arg10[%c0_3, %c0_4, %c0_5], %2 {strides = array<i32>} : memref<18x24x128xf32, #tpu.memory_space<vmem>>, vector<18x24x128xf32>,
    %c0_6 = arith.constant 0 : index
    %c0_7 = arith.constant 0 : index
    %c0_8 = arith.constant 0 : index
    %c0_9 = arith.constant 0 : index
    %4 = vector.load %arg1[%c0_6, %c0_7, %c0_8, %c0_9] : memref<1x16x16x4xf32, #tpu.memory_space<vmem>>, vector<1x16x16x4xf32>
    %5 = vector.shape_cast %4 : vector<1x16x16x4xf32> to vector<16x16x4xf32>
    %c1 = arith.constant 1 : index
    %c1_10 = arith.constant 1 : index
    %c0_11 = arith.constant 0 : index
    %6 = vector.load %arg9[%c1, %c1_10, %c0_11] : memref<18x24x128xf32, #tpu.memory_space<vmem>>, vector<16x16x4xf32>
    tpu.vector_store %arg9[%c1, %c1_10, %c0_11], %5 {strides = array<i32>} : memref<18x24x128xf32, #tpu.memory_space<vmem>>, vector<16x16x4xf32>,
    %c0_12 = arith.constant 0 : index
    %c0_13 = arith.constant 0 : index
    %c0_14 = arith.constant 0 : index
    %c0_15 = arith.constant 0 : index
    %7 = vector.load %arg2[%c0_12, %c0_13, %c0_14, %c0_15] : memref<1x8x8x8xf32, #tpu.memory_space<vmem>>, vector<1x8x8x8xf32>
    %8 = vector.shape_cast %7 : vector<1x8x8x8xf32> to vector<8x8x8xf32>
    %9 = vector.shape_cast %8 : vector<8x8x8xf32> to vector<64x8xf32>
    %c0_16 = arith.constant 0 : index
    %c0_17 = arith.constant 0 : index
    %10 = vector.load %arg3[%c0_16, %c0_17] : memref<256x64xf32, #tpu.memory_space<vmem>>, vector<256x64xf32>
    %cst_18 = arith.constant dense<0.000000e+00> : vector<256x8xf32>
    %11 = tpu.matmul %10, %9, %cst_18 {dimension_numbers = #tpu.dot_dimension_numbers<[1], [0], [0], [1], [0, 0, 1, 1], [], []>} : vector<256x64xf32>, vector<64x8xf32>, vector<256x8xf32> -> vector<256x8xf32>
    %12 = vector.shape_cast %11 : vector<256x8xf32> to vector<16x16x8xf32>
    %c1_19 = arith.constant 1 : index
    %c1_20 = arith.constant 1 : index
    %c4 = arith.constant 4 : index
    %13 = vector.load %arg9[%c1_19, %c1_20, %c4] : memref<18x24x128xf32, #tpu.memory_space<vmem>>, vector<16x16x8xf32>
    tpu.vector_store %arg9[%c1_19, %c1_20, %c4], %12 {strides = array<i32>} : memref<18x24x128xf32, #tpu.memory_space<vmem>>, vector<16x16x8xf32>,
    %cst_21 = arith.constant 0.000000e+00 : f32
    %14 = vector.broadcast %cst_21 : f32 to vector<16x16x128xf32>
    %c0_22 = arith.constant 0 : index
    %c0_23 = arith.constant 0 : index
    %c0_24 = arith.constant 0 : index
    %15 = vector.load %arg11[%c0_22, %c0_23, %c0_24] : memref<16x16x128xf32, #tpu.memory_space<vmem>>, vector<16x16x128xf32>
    tpu.vector_store %arg11[%c0_22, %c0_23, %c0_24], %14 {strides = array<i32>} : memref<16x16x128xf32, #tpu.memory_space<vmem>>, vector<16x16x128xf32>,
    %c0_25 = arith.constant 0 : index
    %c0_26 = arith.constant 0 : index
    %c0_27 = arith.constant 0 : index
    %16 = vector.load %arg9[%c0_25, %c0_26, %c0_27] : memref<18x24x128xf32, #tpu.memory_space<vmem>>, vector<16x24x128xf32>
    %17 = vector.shape_cast %16 : vector<16x24x128xf32> to vector<384x128xf32>
    %c0_28 = arith.constant 0 : index
    %c0_29 = arith.constant 0 : index
    %c0_30 = arith.constant 0 : index
    %18 = vector.load %arg4[%c0_28, %c0_29, %c0_30] : memref<3x128x384xf32, #tpu.memory_space<vmem>>, vector<1x128x384xf32>
    %19 = vector.shape_cast %18 : vector<1x128x384xf32> to vector<128x384xf32>
    %cst_31 = arith.constant dense<0.000000e+00> : vector<384x384xf32>
    %20 = tpu.matmul %17, %19, %cst_31 {dimension_numbers = #tpu.dot_dimension_numbers<[1], [0], [0], [1], [0, 0, 1, 1], [], []>} : vector<384x128xf32>, vector<128x384xf32>, vector<384x384xf32> -> vector<384x384xf32>
    %21 = vector.shape_cast %20 : vector<384x384xf32> to vector<16x24x384xf32>
    %c0_32 = arith.constant 0 : index
    %c0_33 = arith.constant 0 : index
    %c0_34 = arith.constant 0 : index
    %22 = vector.load %arg11[%c0_32, %c0_33, %c0_34] : memref<16x16x128xf32, #tpu.memory_space<vmem>>, vector<16x16x128xf32>
    %23 = vector.extract_strided_slice %21 {offsets = [0, 0, 0], sizes = [16, 16, 128], strides = [1, 1, 1]} : vector<16x24x384xf32> to vector<16x16x128xf32>
    %24 = arith.addf %22, %23 : vector<16x16x128xf32>
    %c0_35 = arith.constant 0 : index
    %c0_36 = arith.constant 0 : index
    %c0_37 = arith.constant 0 : index
    %25 = vector.load %arg11[%c0_35, %c0_36, %c0_37] : memref<16x16x128xf32, #tpu.memory_space<vmem>>, vector<16x16x128xf32>
    tpu.vector_store %arg11[%c0_35, %c0_36, %c0_37], %24 {strides = array<i32>} : memref<16x16x128xf32, #tpu.memory_space<vmem>>, vector<16x16x128xf32>,
    %c0_38 = arith.constant 0 : index
    %c0_39 = arith.constant 0 : index
    %c0_40 = arith.constant 0 : index
    %26 = vector.load %arg11[%c0_38, %c0_39, %c0_40] : memref<16x16x128xf32, #tpu.memory_space<vmem>>, vector<16x16x128xf32>
    %27 = vector.extract_strided_slice %21 {offsets = [0, 1, 128], sizes = [16, 16, 128], strides = [1, 1, 1]} : vector<16x24x384xf32> to vector<16x16x128xf32>
    %28 = arith.addf %26, %27 : vector<16x16x128xf32>
    %c0_41 = arith.constant 0 : index
    %c0_42 = arith.constant 0 : index
    %c0_43 = arith.constant 0 : index
    %29 = vector.load %arg11[%c0_41, %c0_42, %c0_43] : memref<16x16x128xf32, #tpu.memory_space<vmem>>, vector<16x16x128xf32>
    tpu.vector_store %arg11[%c0_41, %c0_42, %c0_43], %28 {strides = array<i32>} : memref<16x16x128xf32, #tpu.memory_space<vmem>>, vector<16x16x128xf32>,
    %c0_44 = arith.constant 0 : index
    %c0_45 = arith.constant 0 : index
    %c0_46 = arith.constant 0 : index
    %30 = vector.load %arg11[%c0_44, %c0_45, %c0_46] : memref<16x16x128xf32, #tpu.memory_space<vmem>>, vector<16x16x128xf32>
    %31 = vector.extract_strided_slice %21 {offsets = [0, 2, 256], sizes = [16, 16, 128], strides = [1, 1, 1]} : vector<16x24x384xf32> to vector<16x16x128xf32>
    %32 = arith.addf %30, %31 : vector<16x16x128xf32>
    %c0_47 = arith.constant 0 : index
    %c0_48 = arith.constant 0 : index
    %c0_49 = arith.constant 0 : index
    %33 = vector.load %arg11[%c0_47, %c0_48, %c0_49] : memref<16x16x128xf32, #tpu.memory_space<vmem>>, vector<16x16x128xf32>
    tpu.vector_store %arg11[%c0_47, %c0_48, %c0_49], %32 {strides = array<i32>} : memref<16x16x128xf32, #tpu.memory_space<vmem>>, vector<16x16x128xf32>,
    %c1_50 = arith.constant 1 : index
    %c0_51 = arith.constant 0 : index
    %c0_52 = arith.constant 0 : index
    %34 = vector.load %arg9[%c1_50, %c0_51, %c0_52] : memref<18x24x128xf32, #tpu.memory_space<vmem>>, vector<16x24x128xf32>
    %35 = vector.shape_cast %34 : vector<16x24x128xf32> to vector<384x128xf32>
    %c1_53 = arith.constant 1 : index
    %c0_54 = arith.constant 0 : index
    %c0_55 = arith.constant 0 : index
    %36 = vector.load %arg4[%c1_53, %c0_54, %c0_55] : memref<3x128x384xf32, #tpu.memory_space<vmem>>, vector<1x128x384xf32>
    %37 = vector.shape_cast %36 : vector<1x128x384xf32> to vector<128x384xf32>
    %cst_56 = arith.constant dense<0.000000e+00> : vector<384x384xf32>
    %38 = tpu.matmul %35, %37, %cst_56 {dimension_numbers = #tpu.dot_dimension_numbers<[1], [0], [0], [1], [0, 0, 1, 1], [], []>} : vector<384x128xf32>, vector<128x384xf32>, vector<384x384xf32> -> vector<384x384xf32>
    %39 = vector.shape_cast %38 : vector<384x384xf32> to vector<16x24x384xf32>
    %c0_57 = arith.constant 0 : index
    %c0_58 = arith.constant 0 : index
    %c0_59 = arith.constant 0 : index
    %40 = vector.load %arg11[%c0_57, %c0_58, %c0_59] : memref<16x16x128xf32, #tpu.memory_space<vmem>>, vector<16x16x128xf32>
    %41 = vector.extract_strided_slice %39 {offsets = [0, 0, 0], sizes = [16, 16, 128], strides = [1, 1, 1]} : vector<16x24x384xf32> to vector<16x16x128xf32>
    %42 = arith.addf %40, %41 : vector<16x16x128xf32>
    %c0_60 = arith.constant 0 : index
    %c0_61 = arith.constant 0 : index
    %c0_62 = arith.constant 0 : index
    %43 = vector.load %arg11[%c0_60, %c0_61, %c0_62] : memref<16x16x128xf32, #tpu.memory_space<vmem>>, vector<16x16x128xf32>
    tpu.vector_store %arg11[%c0_60, %c0_61, %c0_62], %42 {strides = array<i32>} : memref<16x16x128xf32, #tpu.memory_space<vmem>>, vector<16x16x128xf32>,
    %c0_63 = arith.constant 0 : index
    %c0_64 = arith.constant 0 : index
    %c0_65 = arith.constant 0 : index
    %44 = vector.load %arg11[%c0_63, %c0_64, %c0_65] : memref<16x16x128xf32, #tpu.memory_space<vmem>>, vector<16x16x128xf32>
    %45 = vector.extract_strided_slice %39 {offsets = [0, 1, 128], sizes = [16, 16, 128], strides = [1, 1, 1]} : vector<16x24x384xf32> to vector<16x16x128xf32>
    %46 = arith.addf %44, %45 : vector<16x16x128xf32>
    %c0_66 = arith.constant 0 : index
    %c0_67 = arith.constant 0 : index
    %c0_68 = arith.constant 0 : index
    %47 = vector.load %arg11[%c0_66, %c0_67, %c0_68] : memref<16x16x128xf32, #tpu.memory_space<vmem>>, vector<16x16x128xf32>
    tpu.vector_store %arg11[%c0_66, %c0_67, %c0_68], %46 {strides = array<i32>} : memref<16x16x128xf32, #tpu.memory_space<vmem>>, vector<16x16x128xf32>,
    %c0_69 = arith.constant 0 : index
    %c0_70 = arith.constant 0 : index
    %c0_71 = arith.constant 0 : index
    %48 = vector.load %arg11[%c0_69, %c0_70, %c0_71] : memref<16x16x128xf32, #tpu.memory_space<vmem>>, vector<16x16x128xf32>
    %49 = vector.extract_strided_slice %39 {offsets = [0, 2, 256], sizes = [16, 16, 128], strides = [1, 1, 1]} : vector<16x24x384xf32> to vector<16x16x128xf32>
    %50 = arith.addf %48, %49 : vector<16x16x128xf32>
    %c0_72 = arith.constant 0 : index
    %c0_73 = arith.constant 0 : index
    %c0_74 = arith.constant 0 : index
    %51 = vector.load %arg11[%c0_72, %c0_73, %c0_74] : memref<16x16x128xf32, #tpu.memory_space<vmem>>, vector<16x16x128xf32>
    tpu.vector_store %arg11[%c0_72, %c0_73, %c0_74], %50 {strides = array<i32>} : memref<16x16x128xf32, #tpu.memory_space<vmem>>, vector<16x16x128xf32>,
    %c2 = arith.constant 2 : index
    %c0_75 = arith.constant 0 : index
    %c0_76 = arith.constant 0 : index
    %52 = vector.load %arg9[%c2, %c0_75, %c0_76] : memref<18x24x128xf32, #tpu.memory_space<vmem>>, vector<16x24x128xf32>
    %53 = vector.shape_cast %52 : vector<16x24x128xf32> to vector<384x128xf32>
    %c2_77 = arith.constant 2 : index
    %c0_78 = arith.constant 0 : index
    %c0_79 = arith.constant 0 : index
    %54 = vector.load %arg4[%c2_77, %c0_78, %c0_79] : memref<3x128x384xf32, #tpu.memory_space<vmem>>, vector<1x128x384xf32>
    %55 = vector.shape_cast %54 : vector<1x128x384xf32> to vector<128x384xf32>
    %cst_80 = arith.constant dense<0.000000e+00> : vector<384x384xf32>
    %56 = tpu.matmul %53, %55, %cst_80 {dimension_numbers = #tpu.dot_dimension_numbers<[1], [0], [0], [1], [0, 0, 1, 1], [], []>} : vector<384x128xf32>, vector<128x384xf32>, vector<384x384xf32> -> vector<384x384xf32>
    %57 = vector.shape_cast %56 : vector<384x384xf32> to vector<16x24x384xf32>
    %c0_81 = arith.constant 0 : index
    %c0_82 = arith.constant 0 : index
    %c0_83 = arith.constant 0 : index
    %58 = vector.load %arg11[%c0_81, %c0_82, %c0_83] : memref<16x16x128xf32, #tpu.memory_space<vmem>>, vector<16x16x128xf32>
    %59 = vector.extract_strided_slice %57 {offsets = [0, 0, 0], sizes = [16, 16, 128], strides = [1, 1, 1]} : vector<16x24x384xf32> to vector<16x16x128xf32>
    %60 = arith.addf %58, %59 : vector<16x16x128xf32>
    %c0_84 = arith.constant 0 : index
    %c0_85 = arith.constant 0 : index
    %c0_86 = arith.constant 0 : index
    %61 = vector.load %arg11[%c0_84, %c0_85, %c0_86] : memref<16x16x128xf32, #tpu.memory_space<vmem>>, vector<16x16x128xf32>
    tpu.vector_store %arg11[%c0_84, %c0_85, %c0_86], %60 {strides = array<i32>} : memref<16x16x128xf32, #tpu.memory_space<vmem>>, vector<16x16x128xf32>,
    %c0_87 = arith.constant 0 : index
    %c0_88 = arith.constant 0 : index
    %c0_89 = arith.constant 0 : index
    %62 = vector.load %arg11[%c0_87, %c0_88, %c0_89] : memref<16x16x128xf32, #tpu.memory_space<vmem>>, vector<16x16x128xf32>
    %63 = vector.extract_strided_slice %57 {offsets = [0, 1, 128], sizes = [16, 16, 128], strides = [1, 1, 1]} : vector<16x24x384xf32> to vector<16x16x128xf32>
    %64 = arith.addf %62, %63 : vector<16x16x128xf32>
    %c0_90 = arith.constant 0 : index
    %c0_91 = arith.constant 0 : index
    %c0_92 = arith.constant 0 : index
    %65 = vector.load %arg11[%c0_90, %c0_91, %c0_92] : memref<16x16x128xf32, #tpu.memory_space<vmem>>, vector<16x16x128xf32>
    tpu.vector_store %arg11[%c0_90, %c0_91, %c0_92], %64 {strides = array<i32>} : memref<16x16x128xf32, #tpu.memory_space<vmem>>, vector<16x16x128xf32>,
    %c0_93 = arith.constant 0 : index
    %c0_94 = arith.constant 0 : index
    %c0_95 = arith.constant 0 : index
    %66 = vector.load %arg11[%c0_93, %c0_94, %c0_95] : memref<16x16x128xf32, #tpu.memory_space<vmem>>, vector<16x16x128xf32>
    %67 = vector.extract_strided_slice %57 {offsets = [0, 2, 256], sizes = [16, 16, 128], strides = [1, 1, 1]} : vector<16x24x384xf32> to vector<16x16x128xf32>
    %68 = arith.addf %66, %67 : vector<16x16x128xf32>
    %c0_96 = arith.constant 0 : index
    %c0_97 = arith.constant 0 : index
    %c0_98 = arith.constant 0 : index
    %69 = vector.load %arg11[%c0_96, %c0_97, %c0_98] : memref<16x16x128xf32, #tpu.memory_space<vmem>>, vector<16x16x128xf32>
    tpu.vector_store %arg11[%c0_96, %c0_97, %c0_98], %68 {strides = array<i32>} : memref<16x16x128xf32, #tpu.memory_space<vmem>>, vector<16x16x128xf32>,
    %c0_99 = arith.constant 0 : index
    %c0_100 = arith.constant 0 : index
    %c0_101 = arith.constant 0 : index
    %70 = vector.load %arg11[%c0_99, %c0_100, %c0_101] : memref<16x16x128xf32, #tpu.memory_space<vmem>>, vector<16x16x128xf32>
    %c0_102 = arith.constant 0 : index
    %c0_103 = arith.constant 0 : index
    %71 = vector.load %arg5[%c0_102, %c0_103] : memref<1x128xf32, #tpu.memory_space<vmem>>, vector<1x128xf32>
    %72 = vector.shape_cast %71 : vector<1x128xf32> to vector<1x1x128xf32>
    %73 = vector.broadcast %72 : vector<1x1x128xf32> to vector<16x16x128xf32>
    %74 = arith.addf %70, %73 : vector<16x16x128xf32>
    %cst_104 = arith.constant 0.000000e+00 : f32
    %75 = vector.broadcast %cst_104 : f32 to vector<16x16x128xf32>
    %76 = arith.maximumf %74, %75 : vector<16x16x128xf32>
    %c1_105 = arith.constant 1 : index
    %c1_106 = arith.constant 1 : index
    %c0_107 = arith.constant 0 : index
    %77 = vector.load %arg10[%c1_105, %c1_106, %c0_107] : memref<18x24x128xf32, #tpu.memory_space<vmem>>, vector<16x16x128xf32>
    tpu.vector_store %arg10[%c1_105, %c1_106, %c0_107], %76 {strides = array<i32>} : memref<18x24x128xf32, #tpu.memory_space<vmem>>, vector<16x16x128xf32>,
    %cst_108 = arith.constant 0.000000e+00 : f32
    %78 = vector.broadcast %cst_108 : f32 to vector<16x16x128xf32>
    %c0_109 = arith.constant 0 : index
    %c0_110 = arith.constant 0 : index
    %c0_111 = arith.constant 0 : index
    %79 = vector.load %arg11[%c0_109, %c0_110, %c0_111] : memref<16x16x128xf32, #tpu.memory_space<vmem>>, vector<16x16x128xf32>
    tpu.vector_store %arg11[%c0_109, %c0_110, %c0_111], %78 {strides = array<i32>} : memref<16x16x128xf32, #tpu.memory_space<vmem>>, vector<16x16x128xf32>,
    %c0_112 = arith.constant 0 : index
    %c0_113 = arith.constant 0 : index
    %c0_114 = arith.constant 0 : index
    %80 = vector.load %arg10[%c0_112, %c0_113, %c0_114] : memref<18x24x128xf32, #tpu.memory_space<vmem>>, vector<16x24x128xf32>
    %81 = vector.shape_cast %80 : vector<16x24x128xf32> to vector<384x128xf32>
    %c0_115 = arith.constant 0 : index
    %c0_116 = arith.constant 0 : index
    %c0_117 = arith.constant 0 : index
    %82 = vector.load %arg6[%c0_115, %c0_116, %c0_117] : memref<3x128x384xf32, #tpu.memory_space<vmem>>, vector<1x128x384xf32>
    %83 = vector.shape_cast %82 : vector<1x128x384xf32> to vector<128x384xf32>
    %cst_118 = arith.constant dense<0.000000e+00> : vector<384x384xf32>
    %84 = tpu.matmul %81, %83, %cst_118 {dimension_numbers = #tpu.dot_dimension_numbers<[1], [0], [0], [1], [0, 0, 1, 1], [], []>} : vector<384x128xf32>, vector<128x384xf32>, vector<384x384xf32> -> vector<384x384xf32>
    %85 = vector.shape_cast %84 : vector<384x384xf32> to vector<16x24x384xf32>
    %c0_119 = arith.constant 0 : index
    %c0_120 = arith.constant 0 : index
    %c0_121 = arith.constant 0 : index
    %86 = vector.load %arg11[%c0_119, %c0_120, %c0_121] : memref<16x16x128xf32, #tpu.memory_space<vmem>>, vector<16x16x128xf32>
    %87 = vector.extract_strided_slice %85 {offsets = [0, 0, 0], sizes = [16, 16, 128], strides = [1, 1, 1]} : vector<16x24x384xf32> to vector<16x16x128xf32>
    %88 = arith.addf %86, %87 : vector<16x16x128xf32>
    %c0_122 = arith.constant 0 : index
    %c0_123 = arith.constant 0 : index
    %c0_124 = arith.constant 0 : index
    %89 = vector.load %arg11[%c0_122, %c0_123, %c0_124] : memref<16x16x128xf32, #tpu.memory_space<vmem>>, vector<16x16x128xf32>
    tpu.vector_store %arg11[%c0_122, %c0_123, %c0_124], %88 {strides = array<i32>} : memref<16x16x128xf32, #tpu.memory_space<vmem>>, vector<16x16x128xf32>,
    %c0_125 = arith.constant 0 : index
    %c0_126 = arith.constant 0 : index
    %c0_127 = arith.constant 0 : index
    %90 = vector.load %arg11[%c0_125, %c0_126, %c0_127] : memref<16x16x128xf32, #tpu.memory_space<vmem>>, vector<16x16x128xf32>
    %91 = vector.extract_strided_slice %85 {offsets = [0, 1, 128], sizes = [16, 16, 128], strides = [1, 1, 1]} : vector<16x24x384xf32> to vector<16x16x128xf32>
    %92 = arith.addf %90, %91 : vector<16x16x128xf32>
    %c0_128 = arith.constant 0 : index
    %c0_129 = arith.constant 0 : index
    %c0_130 = arith.constant 0 : index
    %93 = vector.load %arg11[%c0_128, %c0_129, %c0_130] : memref<16x16x128xf32, #tpu.memory_space<vmem>>, vector<16x16x128xf32>
    tpu.vector_store %arg11[%c0_128, %c0_129, %c0_130], %92 {strides = array<i32>} : memref<16x16x128xf32, #tpu.memory_space<vmem>>, vector<16x16x128xf32>,
    %c0_131 = arith.constant 0 : index
    %c0_132 = arith.constant 0 : index
    %c0_133 = arith.constant 0 : index
    %94 = vector.load %arg11[%c0_131, %c0_132, %c0_133] : memref<16x16x128xf32, #tpu.memory_space<vmem>>, vector<16x16x128xf32>
    %95 = vector.extract_strided_slice %85 {offsets = [0, 2, 256], sizes = [16, 16, 128], strides = [1, 1, 1]} : vector<16x24x384xf32> to vector<16x16x128xf32>
    %96 = arith.addf %94, %95 : vector<16x16x128xf32>
    %c0_134 = arith.constant 0 : index
    %c0_135 = arith.constant 0 : index
    %c0_136 = arith.constant 0 : index
    %97 = vector.load %arg11[%c0_134, %c0_135, %c0_136] : memref<16x16x128xf32, #tpu.memory_space<vmem>>, vector<16x16x128xf32>
    tpu.vector_store %arg11[%c0_134, %c0_135, %c0_136], %96 {strides = array<i32>} : memref<16x16x128xf32, #tpu.memory_space<vmem>>, vector<16x16x128xf32>,
    %c1_137 = arith.constant 1 : index
    %c0_138 = arith.constant 0 : index
    %c0_139 = arith.constant 0 : index
    %98 = vector.load %arg10[%c1_137, %c0_138, %c0_139] : memref<18x24x128xf32, #tpu.memory_space<vmem>>, vector<16x24x128xf32>
    %99 = vector.shape_cast %98 : vector<16x24x128xf32> to vector<384x128xf32>
    %c1_140 = arith.constant 1 : index
    %c0_141 = arith.constant 0 : index
    %c0_142 = arith.constant 0 : index
    %100 = vector.load %arg6[%c1_140, %c0_141, %c0_142] : memref<3x128x384xf32, #tpu.memory_space<vmem>>, vector<1x128x384xf32>
    %101 = vector.shape_cast %100 : vector<1x128x384xf32> to vector<128x384xf32>
    %cst_143 = arith.constant dense<0.000000e+00> : vector<384x384xf32>
    %102 = tpu.matmul %99, %101, %cst_143 {dimension_numbers = #tpu.dot_dimension_numbers<[1], [0], [0], [1], [0, 0, 1, 1], [], []>} : vector<384x128xf32>, vector<128x384xf32>, vector<384x384xf32> -> vector<384x384xf32>
    %103 = vector.shape_cast %102 : vector<384x384xf32> to vector<16x24x384xf32>
    %c0_144 = arith.constant 0 : index
    %c0_145 = arith.constant 0 : index
    %c0_146 = arith.constant 0 : index
    %104 = vector.load %arg11[%c0_144, %c0_145, %c0_146] : memref<16x16x128xf32, #tpu.memory_space<vmem>>, vector<16x16x128xf32>
    %105 = vector.extract_strided_slice %103 {offsets = [0, 0, 0], sizes = [16, 16, 128], strides = [1, 1, 1]} : vector<16x24x384xf32> to vector<16x16x128xf32>
    %106 = arith.addf %104, %105 : vector<16x16x128xf32>
    %c0_147 = arith.constant 0 : index
    %c0_148 = arith.constant 0 : index
    %c0_149 = arith.constant 0 : index
    %107 = vector.load %arg11[%c0_147, %c0_148, %c0_149] : memref<16x16x128xf32, #tpu.memory_space<vmem>>, vector<16x16x128xf32>
    tpu.vector_store %arg11[%c0_147, %c0_148, %c0_149], %106 {strides = array<i32>} : memref<16x16x128xf32, #tpu.memory_space<vmem>>, vector<16x16x128xf32>,
    %c0_150 = arith.constant 0 : index
    %c0_151 = arith.constant 0 : index
    %c0_152 = arith.constant 0 : index
    %108 = vector.load %arg11[%c0_150, %c0_151, %c0_152] : memref<16x16x128xf32, #tpu.memory_space<vmem>>, vector<16x16x128xf32>
    %109 = vector.extract_strided_slice %103 {offsets = [0, 1, 128], sizes = [16, 16, 128], strides = [1, 1, 1]} : vector<16x24x384xf32> to vector<16x16x128xf32>
    %110 = arith.addf %108, %109 : vector<16x16x128xf32>
    %c0_153 = arith.constant 0 : index
    %c0_154 = arith.constant 0 : index
    %c0_155 = arith.constant 0 : index
    %111 = vector.load %arg11[%c0_153, %c0_154, %c0_155] : memref<16x16x128xf32, #tpu.memory_space<vmem>>, vector<16x16x128xf32>
    tpu.vector_store %arg11[%c0_153, %c0_154, %c0_155], %110 {strides = array<i32>} : memref<16x16x128xf32, #tpu.memory_space<vmem>>, vector<16x16x128xf32>,
    %c0_156 = arith.constant 0 : index
    %c0_157 = arith.constant 0 : index
    %c0_158 = arith.constant 0 : index
    %112 = vector.load %arg11[%c0_156, %c0_157, %c0_158] : memref<16x16x128xf32, #tpu.memory_space<vmem>>, vector<16x16x128xf32>
    %113 = vector.extract_strided_slice %103 {offsets = [0, 2, 256], sizes = [16, 16, 128], strides = [1, 1, 1]} : vector<16x24x384xf32> to vector<16x16x128xf32>
    %114 = arith.addf %112, %113 : vector<16x16x128xf32>
    %c0_159 = arith.constant 0 : index
    %c0_160 = arith.constant 0 : index
    %c0_161 = arith.constant 0 : index
    %115 = vector.load %arg11[%c0_159, %c0_160, %c0_161] : memref<16x16x128xf32, #tpu.memory_space<vmem>>, vector<16x16x128xf32>
    tpu.vector_store %arg11[%c0_159, %c0_160, %c0_161], %114 {strides = array<i32>} : memref<16x16x128xf32, #tpu.memory_space<vmem>>, vector<16x16x128xf32>,
    %c2_162 = arith.constant 2 : index
    %c0_163 = arith.constant 0 : index
    %c0_164 = arith.constant 0 : index
    %116 = vector.load %arg10[%c2_162, %c0_163, %c0_164] : memref<18x24x128xf32, #tpu.memory_space<vmem>>, vector<16x24x128xf32>
    %117 = vector.shape_cast %116 : vector<16x24x128xf32> to vector<384x128xf32>
    %c2_165 = arith.constant 2 : index
    %c0_166 = arith.constant 0 : index
    %c0_167 = arith.constant 0 : index
    %118 = vector.load %arg6[%c2_165, %c0_166, %c0_167] : memref<3x128x384xf32, #tpu.memory_space<vmem>>, vector<1x128x384xf32>
    %119 = vector.shape_cast %118 : vector<1x128x384xf32> to vector<128x384xf32>
    %cst_168 = arith.constant dense<0.000000e+00> : vector<384x384xf32>
    %120 = tpu.matmul %117, %119, %cst_168 {dimension_numbers = #tpu.dot_dimension_numbers<[1], [0], [0], [1], [0, 0, 1, 1], [], []>} : vector<384x128xf32>, vector<128x384xf32>, vector<384x384xf32> -> vector<384x384xf32>
    %121 = vector.shape_cast %120 : vector<384x384xf32> to vector<16x24x384xf32>
    %c0_169 = arith.constant 0 : index
    %c0_170 = arith.constant 0 : index
    %c0_171 = arith.constant 0 : index
    %122 = vector.load %arg11[%c0_169, %c0_170, %c0_171] : memref<16x16x128xf32, #tpu.memory_space<vmem>>, vector<16x16x128xf32>
    %123 = vector.extract_strided_slice %121 {offsets = [0, 0, 0], sizes = [16, 16, 128], strides = [1, 1, 1]} : vector<16x24x384xf32> to vector<16x16x128xf32>
    %124 = arith.addf %122, %123 : vector<16x16x128xf32>
    %c0_172 = arith.constant 0 : index
    %c0_173 = arith.constant 0 : index
    %c0_174 = arith.constant 0 : index
    %125 = vector.load %arg11[%c0_172, %c0_173, %c0_174] : memref<16x16x128xf32, #tpu.memory_space<vmem>>, vector<16x16x128xf32>
    tpu.vector_store %arg11[%c0_172, %c0_173, %c0_174], %124 {strides = array<i32>} : memref<16x16x128xf32, #tpu.memory_space<vmem>>, vector<16x16x128xf32>,
    %c0_175 = arith.constant 0 : index
    %c0_176 = arith.constant 0 : index
    %c0_177 = arith.constant 0 : index
    %126 = vector.load %arg11[%c0_175, %c0_176, %c0_177] : memref<16x16x128xf32, #tpu.memory_space<vmem>>, vector<16x16x128xf32>
    %127 = vector.extract_strided_slice %121 {offsets = [0, 1, 128], sizes = [16, 16, 128], strides = [1, 1, 1]} : vector<16x24x384xf32> to vector<16x16x128xf32>
    %128 = arith.addf %126, %127 : vector<16x16x128xf32>
    %c0_178 = arith.constant 0 : index
    %c0_179 = arith.constant 0 : index
    %c0_180 = arith.constant 0 : index
    %129 = vector.load %arg11[%c0_178, %c0_179, %c0_180] : memref<16x16x128xf32, #tpu.memory_space<vmem>>, vector<16x16x128xf32>
    tpu.vector_store %arg11[%c0_178, %c0_179, %c0_180], %128 {strides = array<i32>} : memref<16x16x128xf32, #tpu.memory_space<vmem>>, vector<16x16x128xf32>,
    %c0_181 = arith.constant 0 : index
    %c0_182 = arith.constant 0 : index
    %c0_183 = arith.constant 0 : index
    %130 = vector.load %arg11[%c0_181, %c0_182, %c0_183] : memref<16x16x128xf32, #tpu.memory_space<vmem>>, vector<16x16x128xf32>
    %131 = vector.extract_strided_slice %121 {offsets = [0, 2, 256], sizes = [16, 16, 128], strides = [1, 1, 1]} : vector<16x24x384xf32> to vector<16x16x128xf32>
    %132 = arith.addf %130, %131 : vector<16x16x128xf32>
    %c0_184 = arith.constant 0 : index
    %c0_185 = arith.constant 0 : index
    %c0_186 = arith.constant 0 : index
    %133 = vector.load %arg11[%c0_184, %c0_185, %c0_186] : memref<16x16x128xf32, #tpu.memory_space<vmem>>, vector<16x16x128xf32>
    tpu.vector_store %arg11[%c0_184, %c0_185, %c0_186], %132 {strides = array<i32>} : memref<16x16x128xf32, #tpu.memory_space<vmem>>, vector<16x16x128xf32>,
    %c0_187 = arith.constant 0 : index
    %c0_188 = arith.constant 0 : index
    %c0_189 = arith.constant 0 : index
    %134 = vector.load %arg11[%c0_187, %c0_188, %c0_189] : memref<16x16x128xf32, #tpu.memory_space<vmem>>, vector<16x16x128xf32>
    %c0_190 = arith.constant 0 : index
    %c0_191 = arith.constant 0 : index
    %135 = vector.load %arg7[%c0_190, %c0_191] : memref<1x128xf32, #tpu.memory_space<vmem>>, vector<1x128xf32>
    %136 = vector.shape_cast %135 : vector<1x128xf32> to vector<1x1x128xf32>
    %137 = vector.broadcast %136 : vector<1x1x128xf32> to vector<16x16x128xf32>
    %138 = arith.addf %134, %137 : vector<16x16x128xf32>
    %cst_192 = arith.constant 0.000000e+00 : f32
    %139 = vector.broadcast %cst_192 : f32 to vector<16x16x128xf32>
    %140 = arith.maximumf %138, %139 : vector<16x16x128xf32>
    %c0_193 = arith.constant 0 : index
    %c0_194 = arith.constant 0 : index
    %c0_195 = arith.constant 0 : index
    %c0_196 = arith.constant 0 : index
    %141 = vector.load %arg8[%c0_193, %c0_194, %c0_195, %c0_196] : memref<1x16x16x128xf32, #tpu.memory_space<vmem>>, vector<1x16x16x128xf32>
    %142 = vector.shape_cast %141 : vector<1x16x16x128xf32> to vector<16x16x128xf32>
    %143 = vector.shape_cast %140 : vector<16x16x128xf32> to vector<1x16x16x128xf32>
    tpu.vector_store %arg8[%c0_193, %c0_194, %c0_195, %c0_196], %143 {strides = array<i32>} : memref<1x16x16x128xf32, #tpu.memory_space<vmem>>, vector<1x16x16x128xf32>,
    return
  }
  func.func @transform_0(%arg0: i32) -> (i32, i32, i32, i32) {
    %c0_i32 = arith.constant 0 : i32
    %c0_i32_0 = arith.constant 0 : i32
    %c0_i32_1 = arith.constant 0 : i32
    %c0_i32_2 = arith.constant 0 : i32
    return %arg0, %c0_i32, %c0_i32_0, %c0_i32_1 : i32, i32, i32, i32
  }
  func.func @transform_1(%arg0: i32) -> (i32, i32, i32, i32) {
    %c0_i32 = arith.constant 0 : i32
    %c0_i32_0 = arith.constant 0 : i32
    %c0_i32_1 = arith.constant 0 : i32
    %c0_i32_2 = arith.constant 0 : i32
    return %arg0, %c0_i32, %c0_i32_0, %c0_i32_1 : i32, i32, i32, i32
  }
  func.func @transform_2(%arg0: i32) -> (i32, i32) {
    %c0_i32 = arith.constant 0 : i32
    %c0_i32_0 = arith.constant 0 : i32
    %c0_i32_1 = arith.constant 0 : i32
    return %c0_i32, %c0_i32_0 : i32, i32
  }
  func.func @transform_3(%arg0: i32) -> (i32, i32, i32) {
    %c0_i32 = arith.constant 0 : i32
    %c0_i32_0 = arith.constant 0 : i32
    %c0_i32_1 = arith.constant 0 : i32
    %c0_i32_2 = arith.constant 0 : i32
    return %c0_i32, %c0_i32_0, %c0_i32_1 : i32, i32, i32
  }
  func.func @transform_4(%arg0: i32) -> (i32, i32) {
    %c0_i32 = arith.constant 0 : i32
    %c0_i32_0 = arith.constant 0 : i32
    %c0_i32_1 = arith.constant 0 : i32
    return %c0_i32, %c0_i32_0 : i32, i32
  }
  func.func @transform_5(%arg0: i32) -> (i32, i32, i32) {
    %c0_i32 = arith.constant 0 : i32
    %c0_i32_0 = arith.constant 0 : i32
    %c0_i32_1 = arith.constant 0 : i32
    %c0_i32_2 = arith.constant 0 : i32
    return %c0_i32, %c0_i32_0, %c0_i32_1 : i32, i32, i32
  }
  func.func @transform_6(%arg0: i32) -> (i32, i32) {
    %c0_i32 = arith.constant 0 : i32
    %c0_i32_0 = arith.constant 0 : i32
    %c0_i32_1 = arith.constant 0 : i32
    return %c0_i32, %c0_i32_0 : i32, i32
  }
  func.func @transform_7(%arg0: i32) -> (i32, i32, i32, i32) {
    %c0_i32 = arith.constant 0 : i32
    %c0_i32_0 = arith.constant 0 : i32
    %c0_i32_1 = arith.constant 0 : i32
    %c0_i32_2 = arith.constant 0 : i32
    return %arg0, %c0_i32, %c0_i32_0, %c0_i32_1 : i32, i32, i32, i32
  }
}

</mosaic_0001>

<bundles_post_ra>
// kernel: tpu_custom_call.1
= control target key start
LH: loop header
LB: loop body
LE: loop exit
PB: predicated region body
PF: predicated region fallthrough
CT: control target
= control target key end

     0   :  { %12 = vsyncpa [#allocation6], 0  ;;  %s14347_s0 = inlined_call_operand.vmem [shape: f32[2,16,16,4], index: 0, kind: input, shape index: {}]   ;;  %s14348_s1 = inlined_call_operand.vmem [shape: f32[2,8,8,8], index: 1, kind: input, shape index: {}]   ;;  %s14349_s2 = inlined_call_operand.vmem [shape: f32[256,64], index: 2, kind: input, shape index: {}]   ;;  %s14350_s3 = inlined_call_operand.hbm [shape: f32[3,128,384], index: 3, kind: input, shape index: {}]   ;;  %s14351_s4 = inlined_call_operand.vmem [shape: f32[1,128], index: 4, kind: input, shape index: {}]   ;;  %s14352_s5 = inlined_call_operand.hbm [shape: f32[3,128,384], index: 5, kind: input, shape index: {}]   ;;  %s14353_s6 = inlined_call_operand.vmem [shape: f32[1,128], index: 6, kind: input, shape index: {}]   ;;  %s14354_s7 = inlined_call_operand.hbm [shape: f32[2,16,16,128], index: 7, kind: output, shape index: {}]  }
   0x1   :  { %13 = vsyncpa [#allocation9], 0 }
   0x2   :  { %14 = vsyncpa [#allocation7], 0 }
   0x3   :  { %16 = vsyncpa [#allocation7 + $0x1], 0  ;;  %s11424_s24 = smov 0   ;;  %s11426_s25 = smov 0  }
   0x4   :  { %s11428_s26 = smov 0   ;;  %s11430_s27 = smov 0  }
   0x5 LB: > { %s11445_s28 = sadd.s32 4294967295, %s11373_s27   ;;  %s9553_s29 = sadd.s32 4294967294, %s11373_s27   ;;  %s11373_s27 = sphi %s11430_s27, %s14405_s27   ;;  %s11369_s26 = sphi %s11428_s26, %s14404_s26   ;;  %s11365_s25 = sphi %s11426_s25, %s14403_s25   ;;  %s11361_s24 = sphi %s11424_s24, %s14402_s24  }
   0x6   : > { %s11449_s30 = sadd.s32 1, %s11373_s27   ;;  %s186_s8 = sadd.s32 1, %s11369_s26 }
   0x7   : > { %s183_s9 = ssub.s32 %s11373_s27, %s11449_s30  ;;  %p196_p0 = scmp.ne.s32.totalorder %s11369_s26, %s11365_s25 }
   0x8   : > { %p184_p1 = scmp.eq.s32.totalorder %s183_s9, 0  ;;  %p197_p2 = scmp.eq.s32.totalorder %s11445_s28, 1 }
   0x9   : > { %p202_p3 = scmp.ne.s32.totalorder %s11365_s25, %s11361_s24  ;;  %p203_p4 = scmp.eq.s32.totalorder %s9553_s29, 1 }
   0xa   : > { %s11460_s10 = scalar_select %p184_p1, %s11369_s26, %s186_s8  }
   0xb   : > { %p11462_p5 = por %p197_p2, %p196_p0  ;;  %p11466_p6 = por %p203_p4, %p202_p3 }
   0xc   : > { %14359 = sst [smem:[#allocation14_spill]] %s11460_s10  ;;  %p9554_p7 = scmp.ge.s32.totalorder %s11373_s27, 1 }
   0xd   : > { %s14360_s11 = scalar_select %p11462_p5, 1, 0 }
   0xe   : > { %s14361_s12 = scalar_select %p11466_p6, 1, 0 }
   0xf   : > { %p210_p8 = scmp.lt.s32.totalorder %s11373_s27, 3  ;;  %p14355_p9 = scmp.eq.s32.totalorder %s11445_s28, 0 }
  0x10   : > { %s11375_s14 = smov [#allocation5]   ;;  %s11376_s17 = smov [#allocation8]  }
  0x11   : > { %p11473_p10 = pnand %p9554_p7, %p210_p8  ;;  %s225_s15 = sshll.u32 %s11375_s14, 4  ;;  %s226_s15 = int_to_ptr.vmem [resolvable:$true] %s225_s15 }
  0x12   : > { %s241_s18 = sshll.u32 %s11376_s17, 4  ;;  %s11247_s21 = scalar_lea.hbm %s14350_s3, 18432  ;;  %s11485_s18 = int_to_ptr.vmem [resolvable:$true] %s241_s18 }
  0x13   : > { %s14362_s13 = scalar_select %p11473_p10, 1, 0 }
  0x14   : > { %p11138_p11 = pneg %p11473_p10  ;;  %p11248_p13 = scmp.ne.s32.totalorder %s14350_s3, %s11247_s21 }
  0x15   : > { %p11254_p3 = scmp.lt.u32.totalorder %s11247_s21, %s14350_s3 }
  0x16   : > { %p11481_p12 = pnand %p14355_p9, %p11138_p11 }
  0x18   : > { %p11249_p0 = pneg %p11481_p12 }
  0x1a   : > { %p11250_p1 = pnand %p11249_p0, %p11248_p13 }
  0x1c   : > { %p11251_p2 = pneg %p11250_p1 }
  0x1e   : > { %p11256_p4 = pnand %p11254_p3, %p11251_p2 }
  0x20   : > { %11259 = shalt.err (!%p11256_p4)
}
  0x21   : > { %s11260_s9 = scalar_lea.vmem %s226_s15, 18432  ;;  %p11268_p9 = scmp.lt.s32.totalorder %s226_s15, %s226_s15 }
  0x22   : > { %p11261_p7 = scmp.ne.s32.totalorder %s226_s15, %s11260_s9  ;;  %p11269_p6 = scmp.lt.s32.totalorder %s11260_s9, %s11260_s9 }
  0x24   : > { %p11263_p8 = pnand %p11261_p7, %p11249_p0  ;;  %p11270_p5 = por %p11269_p6, %p11268_p9 }
  0x26   : > { %p11264_p11 = pneg %p11263_p8 }
  0x28   : > { %p11271_p10 = pnand %p11270_p5, %p11264_p11 }
  0x2a   : > { %11274 = shalt.err (!%p11271_p10)
}
  0x2b   : > { %s11377_s14 = smov 384   ;;  %s11378_s17 = smov 24  }
  0x2c   : > { %11141 = dma.hbm_to_vmem [thread:$0]  (!%p11481_p12), %s14350_s3, 18432, %s226_s15, [#allocation6], %s11377_s14, %s11377_s14, %s11378_s17  }
  0x2d   : > { %s11275_s23 = scalar_lea.hbm %s14352_s5, 18432 }
  0x2e   : > { %p11276_p13 = scmp.ne.s32.totalorder %s14352_s5, %s11275_s23  ;;  %p11282_p9 = scmp.lt.u32.totalorder %s11275_s23, %s14352_s5 }
  0x30   : > { %p11278_p5 = pnand %p11276_p13, %p11249_p0 }
  0x32   : > { %p11279_p6 = pneg %p11278_p5 }
  0x34   : > { %p11284_p10 = pnand %p11282_p9, %p11279_p6 }
  0x36   : > { %11287 = shalt.err (!%p11284_p10)
}
  0x37   : > { %s11288_s15 = scalar_lea.vmem %s11485_s18, 18432  ;;  %p11296_p4 = scmp.lt.s32.totalorder %s11485_s18, %s11485_s18 }
  0x38   : > { %p11289_p1 = scmp.ne.s32.totalorder %s11485_s18, %s11288_s15  ;;  %p11297_p7 = scmp.lt.s32.totalorder %s11288_s15, %s11288_s15 }
  0x3a   : > { %p11291_p2 = pnand %p11289_p1, %p11249_p0  ;;  %p11298_p8 = por %p11297_p7, %p11296_p4 }
  0x3c   : > { %p11292_p3 = pneg %p11291_p2 }
  0x3e   : > { %p11299_p11 = pnand %p11298_p8, %p11292_p3 }
  0x40   : > { %11302 = shalt.err (!%p11299_p11)
}
  0x41   : > { %11144 = dma.hbm_to_vmem [thread:$0]  (!%p11481_p12), %s14352_s5, 18432, %s11485_s18, [#allocation9], %s11377_s14, %s11377_s14, %s11378_s17  }
  0x42   : > { %p14364_p13 = scmp.ne.s32.totalorder %s14362_s13, 0 }
  0x44   : > { %276 = sbr.rel (%p14364_p13) target bundleno = 1661 (0x67d), region = 48 }
  0x4b   : > { %p14365_p5 = scmp.eq.s32.totalorder %s11445_s28, 0 }
  0x4d   : > { %11348 = dma.done.wait (%p14365_p5), [#allocation6], 18432   ;;  %p14366_p0 = pmov %p14365_p5 }
  0x4f   : > { %11350 = vsyncadd (%p14366_p0), [#allocation6], 4294948864  ;;  %p14367_p6 = pmov %p14366_p0 }
  0x50   : > { %p14368_p9 = pmov %p14366_p0 }
  0x51   : > { %11352 = dma.done.wait (%p14367_p6), [#allocation9], 18432  }
  0x52   : > { %11354 = vsyncadd (%p14368_p9), [#allocation9], 4294948864  ;;  %p317_p10 = scmp.lt.s32.totalorder %s11445_s28, 1  ;;  %vm541_vm0 = vcmask 523264   ;;  %v509_v8 = vld [vmem:[%s14349_s2] sm:$0xff]  ;;  %v510_v14 = vld [vmem:[%s14349_s2 + $0x8] sm:$0xff] }
  0x53   : > { %10048 = vmatprep.mubr.msk.f32.mxu0 %vm541_vm0, %v509_v8  ;;  %v525_v12 = vld [vmem:[%s14349_s2 + $0x80] sm:$0xff]  ;;  %v511_v15 = vld [vmem:[%s14349_s2 + $0x10] sm:$0xff]  ;;  %v526_v16 = vld [vmem:[%s14349_s2 + $0x88] sm:$0xff]  ;;  %vm468_vm1 = vcmask 31744   ;;  %vm991_vm2 = vcmask 97312   ;;  %vm1970_vm3 = vcmask 1046528  }
  0x54   : > { %s11546_s16 = scalar_select %p317_p10, %s11445_s28, 1  ;;  %10072 = vmatprep.mubr.msk.f32.mxu1 %vm541_vm0, %v525_v12  ;;  %v527_v17 = vld [vmem:[%s14349_s2 + $0x90] sm:$0xff]  ;;  %v512_v18 = vld [vmem:[%s14349_s2 + $0x18] sm:$0xff]  ;;  %v513_v19 = vld [vmem:[%s14349_s2 + $0x20] sm:$0xff]  ;;  %vm2227_vm4 = vcmask 1045504  }
  0x55   : > { %v528_v20 = vld [vmem:[%s14349_s2 + $0x98] sm:$0xff]  ;;  %v529_v21 = vld [vmem:[%s14349_s2 + $0xa0] sm:$0xff]  ;;  %v514_v22 = vld [vmem:[%s14349_s2 + $0x28] sm:$0xff]  ;;  %s314_s22 = sand.u32 1, %s11365_s25   ;;  %s9607_s15 = sshll.u32 %s11445_s28, 12 }
  0x56   : > { %s9606_s13 = sshll.u32 %s11546_s16, 6  ;;  %v515_v23 = vld [vmem:[%s14349_s2 + $0x30] sm:$0xff]  ;;  %v530_v24 = vld [vmem:[%s14349_s2 + $0xa8] sm:$0xff]  ;;  %v516_v26 = vld [vmem:[%s14349_s2 + $0x38] sm:$0xff]  ;;  %s9605_s10 = sshll.u32 %s11546_s16, 8 }
  0x57   : > { %s326_s17 = scalar_lea.vmem %s14348_s1, %s9606_s13  ;;  %v531_v25 = vld [vmem:[%s14349_s2 + $0xb0] sm:$0xff]  ;;  %v517_v27 = vld [vmem:[%s14349_s2 + $0x40] sm:$0xff]  ;;  %v532_v28 = vld [vmem:[%s14349_s2 + $0xb8] sm:$0xff]  ;;  %s11825_s18 = scalar_lea.vmem %s14347_s0, %s9605_s10 }
  0x58   : > { %v501_v0 = vld [vmem:[%s326_s17] sm:$0xff]  ;;  %v502_v1 = vld [vmem:[%s326_s17 + $0x8] sm:$0xff]  ;;  %v503_v2 = vld [vmem:[%s326_s17 + $0x10] sm:$0xff]  ;;  %s11380_s16 = smov 4   ;;  %s9561_s8 = sshll.u32 %s314_s22, 8 }
  0x59   : > { %v10720_v3 = vpack.c.bf16 %v502_v1, %v501_v0  ;;  %v504_v4 = vld [vmem:[%s326_s17 + $0x18] sm:$0xff]  ;;  %v505_v6 = vld [vmem:[%s326_s17 + $0x20] sm:$0xff]  ;;  %v506_v7 = vld [vmem:[%s326_s17 + $0x28] sm:$0xff]  ;;  %s14131_s9 = scalar_lea.vmem [#allocation10], %s9561_s8  ;;  %p14399_p1 = scmp.ne.s32.totalorder %s14360_s11, 0 }
  0x5a   : > { %v10724_v5 = vpack.c.bf16 %v504_v4, %v503_v2  ;;  %v10728_v9 = vpack.c.bf16 %v506_v7, %v505_v6  ;;  %v507_v10 = vld [vmem:[%s326_s17 + $0x30] sm:$0xff]  ;;  %v508_v11 = vld [vmem:[%s326_s17 + $0x38] sm:$0xff]  ;;  %v533_v29 = vld [vmem:[%s14349_s2 + $0xc0] sm:$0xff]  ;;  %s9457_s10 = sshll.u32 %s14131_s9, 4  ;;  %s11381_s14 = smov [#allocation10]   ;;  %s14301_s10 = int_to_ptr.vmem [resolvable:$true] %s9457_s10 }
  0x5b   : > { %10721 = vmatprep.subr.bf16.mxu0 %v10720_v3  ;;  %11120 = vmatprep.subr.bf16.mxu1 %v10720_v3  ;;  %v10732_v13 = vpack.c.bf16 %v508_v11, %v507_v10  ;;  %v518_v30 = vld [vmem:[%s14349_s2 + $0x48] sm:$0xff]  ;;  %v519_v31 = vld [vmem:[%s14349_s2 + $0x50] sm:$0xff]  ;;  %v520_v34 = vld [vmem:[%s14349_s2 + $0x58] sm:$0xff]  ;;  %v11379_v11 = vmov 0.0   ;;  %s11303_s28 = scalar_lea.vmem %s14301_s10, 4096  ;;  %s11307_s17 = sshll.u32 %s11381_s14, 4  ;;  %s11308_s17 = int_to_ptr.vmem [resolvable:$false] %s11307_s17 }
  0x5c   : > { %10723 = vmatpush3.bf16.msra.mxu0 %v10720_v3  ;;  %11124 = vmatpush3.bf16.msra.mxu1 %v10720_v3  ;;  %v534_v32 = vld [vmem:[%s14349_s2 + $0xc8] sm:$0xff]  ;;  %v535_v33 = vld [vmem:[%s14349_s2 + $0xd0] sm:$0xff]  ;;  %v521_v35 = vld [vmem:[%s14349_s2 + $0x60] sm:$0xff]  ;;  %327 = vst [vmem:[#allocation2] sm:$0xff] %v11379_v11  ;;  %p11304_p12 = scmp.ne.s32.totalorder %s14301_s10, %s11303_s28  ;;  %s11309_s20 = scalar_lea.vmem %s11308_s17, 8192 }
  0x5d   : > { %10725 = vmatprep.subr.bf16.mxu0 %v10724_v5  ;;  %11121 = vmatprep.subr.bf16.mxu1 %v10724_v5  ;;  %v536_v36 = vld [vmem:[%s14349_s2 + $0xd8] sm:$0xff]  ;;  %v537_v37 = vld [vmem:[%s14349_s2 + $0xe0] sm:$0xff]  ;;  %v522_v38 = vld [vmem:[%s14349_s2 + $0x68] sm:$0xff]  ;;  %330 = vst [vmem:[#allocation2 + $0x18] sm:$0xff] %v11379_v11  ;;  %p11310_p4 = scmp.lt.s32.totalorder %s14301_s10, %s11308_s17  ;;  %p11311_p7 = scmp.lt.s32.totalorder %s11309_s20, %s11303_s28 }
  0x5e   : > { %v523_v39 = vld [vmem:[%s14349_s2 + $0x70] sm:$0xff]  ;;  %v538_v40 = vld [vmem:[%s14349_s2 + $0xe8] sm:$0xff]  ;;  %v524_v41 = vld [vmem:[%s14349_s2 + $0x78] sm:$0xff]  ;;  %331 = vst [vmem:[#allocation2 + $0x20] sm:$0xff] %v11379_v11  ;;  %p11305_p2 = pnand %p11304_p12, %p14399_p1 }
  0x5f   : > { %v539_v42 = vld [vmem:[%s14349_s2 + $0xf0] sm:$0xff]  ;;  %v540_v43 = vld [vmem:[%s14349_s2 + $0xf8] sm:$0xff]  ;;  %v1105_v44 = vld [vmem:[#allocation5 + $0x8] sm:$0xff]  ;;  %332 = vst [vmem:[#allocation2 + $0x28] sm:$0xff] %v11379_v11  ;;  %p11312_p8 = por %p11311_p7, %p11310_p4 }
  0x60   : > { %10727 = vmatpush3.bf16.msra.mxu0 %v10724_v5  ;;  %11125 = vmatpush3.bf16.msra.mxu1 %v10724_v5  ;;  %v1108_v45 = vld [vmem:[#allocation5 + $0x20] sm:$0xff]  ;;  %v1107_v48 = vld [vmem:[#allocation5 + $0x18] sm:$0xff]  ;;  %v1114_v50 = vld [vmem:[#allocation5 + $0x50] sm:$0xff]  ;;  %333 = vst [vmem:[#allocation2 + $0x30] sm:$0xff] %v11379_v11  ;;  %p11306_p3 = pneg %p11305_p2 }
  0x61   : > { %10729 = vmatprep.subr.bf16.mxu0 %v10728_v9  ;;  %11122 = vmatprep.subr.bf16.mxu1 %v10728_v9  ;;  %v1104_v46 = vld [vmem:[#allocation5] sm:$0xff]  ;;  %v10736_v47 = vpack.c.bf16 %v1108_v45, %v1105_v44  ;;  %v1111_v49 = vld [vmem:[#allocation5 + $0x38] sm:$0xff]  ;;  %v1110_v53 = vld [vmem:[#allocation5 + $0x30] sm:$0xff]  ;;  %334 = vst [vmem:[#allocation2 + $0x38] sm:$0xff] %v11379_v11 }
  0x62   : > { %v10738_v51 = vpack.c.bf16 %v1107_v48, %v1104_v46  ;;  %v10740_v52 = vpack.c.bf16 %v1114_v50, %v1111_v49  ;;  %v1113_v54 = vld [vmem:[#allocation5 + $0x48] sm:$0xff]  ;;  %v1106_v56 = vld [vmem:[#allocation5 + $0x10] sm:$0xff]  ;;  %v1120_v60 = vld [vmem:[#allocation5 + $0x80] sm:$0xff]  ;;  %335 = vst [vmem:[#allocation2 + $0x40] sm:$0xff] %v11379_v11  ;;  %p11313_p11 = pnand %p11312_p8, %p11306_p3 }
  0x63   : > { %v10742_v55 = vpack.c.bf16 %v1113_v54, %v1110_v53  ;;  %v1109_v57 = vld [vmem:[#allocation5 + $0x28] sm:$0xff]  ;;  %v11680_v61 = vld [vmem:[#allocation5 + $0x60] sm:$0xff]  ;;  %v11682_v62 = vld [vmem:[#allocation5 + $0x78] sm:$0xff]  ;;  %336 = vst [vmem:[#allocation2 + $0x48] sm:$0xff] %v11379_v11 }
  0x64   : > { %10731 = vmatpush3.bf16.msra.mxu0 %v10728_v9  ;;  %11126 = vmatpush3.bf16.msra.mxu1 %v10728_v9  ;;  %v1117_v58 = vld [vmem:[#allocation5 + $0x68] sm:$0xff]  ;;  %v10768_v59 = vpack.c.bf16 %v1109_v57, %v1106_v56  ;;  %v1112_v0 = vld [vmem:[#allocation5 + $0x40] sm:$0xff]  ;;  %v1115_v1 = vld [vmem:[#allocation5 + $0x58] sm:$0xff]  ;;  %v10746_v3 = vpack.c.bf16 %v11682_v62, %v11680_v61  ;;  %337 = vst [vmem:[#allocation2 + $0x50] sm:$0xff] %v11379_v11 }
  0x65   : > { %10733 = vmatprep.subr.bf16.mxu0 %v10732_v13  ;;  %11123 = vmatprep.subr.bf16.mxu1 %v10732_v13  ;;  %v10744_v63 = vpack.c.bf16 %v1120_v60, %v1117_v58  ;;  %v11684_v2 = vpack.c.bf16 %v1115_v1, %v1112_v0  ;;  %v11688_v4 = vld [vmem:[#allocation5 + $0x98] sm:$0xff]  ;;  %v11690_v5 = vld [vmem:[#allocation5 + $0xb0] sm:$0xff]  ;;  %v11697_v8 = vld [vmem:[#allocation5 + $0xa8] sm:$0xff]  ;;  %338 = vst [vmem:[#allocation2 + $0x58] sm:$0xff] %v11379_v11 }
  0x66   : > { %v11692_v6 = vld [vmem:[#allocation5 + $0x90] sm:$0xff]  ;;  %v10748_v7 = vpack.c.bf16 %v11690_v5, %v11688_v4  ;;  %v11701_v10 = vld [vmem:[#allocation5 + $0x88] sm:$0xff]  ;;  %339 = vst [vmem:[#allocation2 + $0x60] sm:$0xff] %v11379_v11  ;;  %340 = vst [vmem:[#allocation2 + $0x68] sm:$0xff] %v11379_v11 }
  0x67   : > { %v11699_v9 = vld [vmem:[#allocation5 + $0x70] sm:$0xff]  ;;  %341 = vst [vmem:[#allocation2 + $0x70] sm:$0xff] %v11379_v11  ;;  %342 = vst [vmem:[#allocation2 + $0x78] sm:$0xff] %v11379_v11  ;;  %v1148_v49 = vld [vmem:[#allocation5 + $0x160] sm:$0xff] }
  0x68   : > { %10735 = vmatpush3.bf16.msra.mxu0 %v10732_v13  ;;  %11127 = vmatpush3.bf16.msra.mxu1 %v10732_v13  ;;  %343 = vst [vmem:[#allocation2 + $0x80] sm:$0xff] %v11379_v11  ;;  %344 = vst [vmem:[#allocation2 + $0x88] sm:$0xff] %v11379_v11  ;;  %v10776_v12 = vpack.c.bf16 %v11701_v10, %v11699_v9  ;;  %v1129_v13 = vld [vmem:[#allocation5 + $0xc8] sm:$0xff]  ;;  %v1146_v46 = vld [vmem:[#allocation5 + $0x150] sm:$0xff] }
  0x69   : > { %10737 = vmatprep.subr.bf16.mxu1 %v10736_v47  ;;  %10769 = vmatprep.subr.bf16.mxu0 %v10768_v59  ;;  %345 = vst [vmem:[#allocation2 + $0x90] sm:$0xff] %v11379_v11  ;;  %346 = vst [vmem:[#allocation2 + $0x98] sm:$0xff] %v11379_v11  ;;  %v1149_v47 = vld [vmem:[#allocation5 + $0x168] sm:$0xff]  ;;  %v1151_v50 = vld [vmem:[#allocation5 + $0x178] sm:$0xff] }
  0x6a   : > { %347 = vst [vmem:[#allocation2 + $0xa0] sm:$0xff] %v11379_v11  ;;  %348 = vst [vmem:[#allocation2 + $0xa8] sm:$0xff] %v11379_v11  ;;  %v10766_v53 = vpack.c.bf16 %v1149_v47, %v1146_v46  ;;  %v10796_v54 = vpack.c.bf16 %v1151_v50, %v1148_v49  ;;  %v435_v56 = vld [vmem:[%s11825_s18] sm:$0xff]  ;;  %v436_v57 = vld [vmem:[%s11825_s18 + $0x8] sm:$0xff] }
  0x6b   : > { %10049 = vmatmul.mubr.msk.f32.vlgmr.msra.gmra.mrb[0].mxu0 %vm541_vm0, %v510_v14  ;;  %10073 = vmatmul.mubr.msk.f32.vlgmr.msra.gmra.mrb[0].mxu1 %vm541_vm0, %v526_v16  ;;  %349 = vst [vmem:[#allocation2 + $0xb0] sm:$0xff] %v11379_v11  ;;  %350 = vst [vmem:[#allocation2 + $0xb8] sm:$0xff] %v11379_v11  ;;  %v1132_v14 = vld [vmem:[#allocation5 + $0xe0] sm:$0xff]  ;;  %v1127_v16 = vld [vmem:[#allocation5 + $0xb8] sm:$0xff] }
  0x6c   : > { %10051 = vmatprep.mubr.msk.f32.mxu0 %vm541_vm0, %v511_v15  ;;  %10075 = vmatprep.mubr.msk.f32.mxu1 %vm541_vm0, %v527_v17  ;;  %351 = vst [vmem:[#allocation2 + $0xc0] sm:$0xff] %v11379_v11  ;;  %352 = vst [vmem:[#allocation2 + $0xc8] sm:$0xff] %v11379_v11  ;;  %v1124_v15 = vld [vmem:[#allocation5 + $0xa0] sm:$0xff]  ;;  %v10750_v17 = vpack.c.bf16 %v11697_v8, %v11692_v6  ;;  %v437_v58 = vld [vmem:[%s11825_s18 + $0x10] sm:$0xff] }
  0x6d   : > { %10739 = vmatpush1.bf16.msra.mxu1 %v10738_v51  ;;  %10771 = vmatpush3.bf16.msra.mxu0 %v10768_v59  ;;  %353 = vst [vmem:[#allocation2 + $0xd0] sm:$0xff] %v11379_v11  ;;  %354 = vst [vmem:[#allocation2 + $0xd8] sm:$0xff] %v11379_v11  ;;  %v2455_v51 = vld [vmem:[#allocation5 + $0x190] sm:$0xff]  ;;  %v2454_v59 = vld [vmem:[#allocation5 + $0x188] sm:$0xff] }
  0x6e   : > { %10741 = vmatprep.subr.bf16.mxu1 %v10740_v52  ;;  %10773 = vmatprep.subr.bf16.mxu0 %v11684_v2  ;;  %355 = vst [vmem:[#allocation2 + $0xe0] sm:$0xff] %v11379_v11  ;;  %356 = vst [vmem:[#allocation2 + $0xe8] sm:$0xff] %v11379_v11  ;;  %v2458_v52 = vld [vmem:[#allocation5 + $0x1a8] sm:$0xff]  ;;  %v2457_v60 = vld [vmem:[#allocation5 + $0x1a0] sm:$0xff] }
  0x6f   : > { %10052 = vmatmul.mubr.msk.f32.gmra.mrb[2].mxu0 %vm541_vm0, %v512_v18  ;;  %10076 = vmatmul.mubr.msk.f32.gmra.mrb[2].mxu1 %vm541_vm0, %v528_v20  ;;  %357 = vst [vmem:[#allocation2 + $0xf0] sm:$0xff] %v11379_v11  ;;  %358 = vst [vmem:[#allocation2 + $0xf8] sm:$0xff] %v11379_v11  ;;  %v10752_v18 = vpack.c.bf16 %v1132_v14, %v1129_v13  ;;  %v1131_v20 = vld [vmem:[#allocation5 + $0xd8] sm:$0xff]  ;;  %v2453_v61 = vld [vmem:[#allocation5 + $0x180] sm:$0xff]  ;;  %v10800_v62 = vpack.c.bf16 %v2457_v60, %v2454_v59 }
  0x70   : > { %10054 = vmatprep.mubr.msk.f32.mxu0 %vm541_vm0, %v513_v19  ;;  %10078 = vmatprep.mubr.msk.f32.mxu1 %vm541_vm0, %v529_v21  ;;  %359 = vst [vmem:[#allocation2 + $0x100] sm:$0xff] %v11379_v11  ;;  %360 = vst [vmem:[#allocation2 + $0x108] sm:$0xff] %v11379_v11  ;;  %v1128_v19 = vld [vmem:[#allocation5 + $0xc0] sm:$0xff]  ;;  %v10780_v21 = vpack.c.bf16 %v1127_v16, %v1124_v15  ;;  %v438_v1 = vld [vmem:[%s11825_s18 + $0x18] sm:$0xff] }
  0x71   : > { %10743 = vmatpush1.bf16.msra.mxu1 %v10742_v55  ;;  %361 = vst [vmem:[#allocation2 + $0x110] sm:$0xff] %v11379_v11  ;;  %362 = vst [vmem:[#allocation2 + $0x118] sm:$0xff] %v11379_v11  ;;  %10775 = vmatpush3.bf16.msra.mxu0 %v11684_v2  ;;  %v10832_v55 = vpack.c.bf16 %v2458_v52, %v2455_v51  ;;  %v440_v2 = vld [vmem:[%s11825_s18 + $0x28] sm:$0xff]  ;;  %v2463_v13 = vld [vmem:[#allocation5 + $0x1d0] sm:$0xff] }
  0x72   : > { %10745 = vmatprep.subr.bf16.mxu1 %v10744_v63  ;;  %363 = vst [vmem:[#allocation2 + $0x120] sm:$0xff] %v11379_v11  ;;  %364 = vst [vmem:[#allocation2 + $0x128] sm:$0xff] %v11379_v11  ;;  %10777 = vmatprep.subr.bf16.mxu0 %v10776_v12  ;;  %v2456_v63 = vld [vmem:[#allocation5 + $0x198] sm:$0xff]  ;;  %v2459_v16 = vld [vmem:[#allocation5 + $0x1b0] sm:$0xff] }
  0x73   : > { %10055 = vmatmul.mubr.msk.f32.gmra.mrb[4].mxu0 %vm541_vm0, %v514_v22  ;;  %10079 = vmatmul.mubr.msk.f32.gmra.mrb[4].mxu1 %vm541_vm0, %v530_v24  ;;  %365 = vst [vmem:[#allocation2 + $0x130] sm:$0xff] %v11379_v11  ;;  %366 = vst [vmem:[#allocation2 + $0x138] sm:$0xff] %v11379_v11  ;;  %v1135_v22 = vld [vmem:[#allocation5 + $0xf8] sm:$0xff]  ;;  %v1130_v24 = vld [vmem:[#allocation5 + $0xd0] sm:$0xff]  ;;  %v10802_v0 = vpack.c.bf16 %v2456_v63, %v2453_v61 }
  0x74   : > { %10057 = vmatprep.mubr.msk.f32.mxu0 %vm541_vm0, %v515_v23  ;;  %10081 = vmatprep.mubr.msk.f32.mxu1 %vm541_vm0, %v531_v25  ;;  %367 = vst [vmem:[#allocation2 + $0x140] sm:$0xff] %v11379_v11  ;;  %368 = vst [vmem:[#allocation2 + $0x148] sm:$0xff] %v11379_v11  ;;  %v1138_v23 = vld [vmem:[#allocation5 + $0x110] sm:$0xff]  ;;  %v1133_v25 = vld [vmem:[#allocation5 + $0xe8] sm:$0xff] }
  0x75   : > { %369 = vst [vmem:[#allocation2 + $0x150] sm:$0xff] %v11379_v11  ;;  %370 = vst [vmem:[#allocation2 + $0x158] sm:$0xff] %v11379_v11  ;;  %10747 = vmatpush1.bf16.msra.mxu1 %v10746_v3  ;;  %10779 = vmatpush3.bf16.msra.mxu0 %v10776_v12  ;;  %v439_v3 = vld [vmem:[%s11825_s18 + $0x20] sm:$0xff]  ;;  %v2460_v12 = vld [vmem:[#allocation5 + $0x1b8] sm:$0xff] }
  0x76   : > { %371 = vst [vmem:[#allocation2 + $0x160] sm:$0xff] %v11379_v11  ;;  %372 = vst [vmem:[#allocation2 + $0x168] sm:$0xff] %v11379_v11  ;;  %10749 = vmatprep.subr.bf16.mxu1 %v10748_v7  ;;  %10781 = vmatprep.subr.bf16.mxu0 %v10780_v21  ;;  %v10804_v15 = vpack.c.bf16 %v2463_v13, %v2460_v12  ;;  %v448_v50 = vld [vmem:[%s11825_s18 + $0x68] sm:$0xff]  ;;  %v447_v51 = vld [vmem:[%s11825_s18 + $0x60] sm:$0xff] }
  0x77   : > { %10058 = vmatmul.mubr.msk.f32.gmra.mrb[6].mxu0 %vm541_vm0, %v516_v26  ;;  %10082 = vmatmul.mubr.msk.f32.gmra.mrb[6].mxu1 %vm541_vm0, %v532_v28  ;;  %373 = vst [vmem:[#allocation2 + $0x170] sm:$0xff] %v11379_v11  ;;  %374 = vst [vmem:[#allocation2 + $0x178] sm:$0xff] %v11379_v11  ;;  %v10754_v26 = vpack.c.bf16 %v1131_v20, %v1128_v19  ;;  %v1134_v28 = vld [vmem:[#allocation5 + $0xf0] sm:$0xff]  ;;  %v450_v63 = vld [vmem:[%s11825_s18 + $0x78] sm:$0xff] }
  0x78   : > { %10060 = vmatprep.mubr.msk.f32.mxu0 %vm541_vm0, %v517_v27  ;;  %10084 = vmatprep.mubr.msk.f32.mxu1 %vm541_vm0, %v533_v29  ;;  %375 = vst [vmem:[#allocation2 + $0x180] sm:$0xff] %v11379_v11  ;;  %376 = vst [vmem:[#allocation2 + $0x188] sm:$0xff] %v11379_v11  ;;  %v10756_v27 = vpack.c.bf16 %v1138_v23, %v1135_v22  ;;  %v1137_v29 = vld [vmem:[#allocation5 + $0x108] sm:$0xff]  ;;  %v441_v20 = vld [vmem:[%s11825_s18 + $0x30] sm:$0xff] }
  0x79   : > { %377 = vst [vmem:[#allocation2 + $0x190] sm:$0xff] %v11379_v11  ;;  %384 = vst [vmem:[#allocation3 + $0x18] sm:$0xff] %v11379_v11  ;;  %10751 = vmatpush1.bf16.msra.mxu1 %v10750_v17  ;;  %10783 = vmatpush3.bf16.msra.mxu0 %v10780_v21  ;;  %v2462_v17 = vld [vmem:[#allocation5 + $0x1c8] sm:$0xff]  ;;  %v2475_v59 = vld [vmem:[#allocation5 + $0x230] sm:$0xff] }
  0x7a   : > { %385 = vst [vmem:[#allocation3 + $0x20] sm:$0xff] %v11379_v11  ;;  %386 = vst [vmem:[#allocation3 + $0x28] sm:$0xff] %v11379_v11  ;;  %10753 = vmatprep.subr.bf16.mxu1 %v10752_v18  ;;  %v442_v18 = vld [vmem:[%s11825_s18 + $0x38] sm:$0xff]  ;;  %v10806_v19 = vpack.c.bf16 %v2462_v17, %v2459_v16  ;;  %v2471_v61 = vld [vmem:[#allocation5 + $0x210] sm:$0xff] }
  0x7b   : > { %10061 = vmatmul.mubr.msk.f32.gmra.mrb[8].mxu0 %vm541_vm0, %v518_v30  ;;  %10085 = vmatmul.mubr.msk.f32.gmra.mrb[8].mxu1 %vm541_vm0, %v534_v32  ;;  %387 = vst [vmem:[#allocation3 + $0x30] sm:$0xff] %v11379_v11  ;;  %388 = vst [vmem:[#allocation3 + $0x38] sm:$0xff] %v11379_v11  ;;  %v10784_v30 = vpack.c.bf16 %v1133_v25, %v1130_v24  ;;  %v1144_v32 = vld [vmem:[#allocation5 + $0x140] sm:$0xff]  ;;  %v454_v16 = vld [vmem:[%s11825_s18 + $0x98] sm:$0xff] }
  0x7c   : > { %10063 = vmatprep.mubr.msk.f32.mxu0 %vm541_vm0, %v519_v31  ;;  %10087 = vmatprep.mubr.msk.f32.mxu1 %vm541_vm0, %v535_v33  ;;  %389 = vst [vmem:[#allocation3 + $0x40] sm:$0xff] %v11379_v11  ;;  %390 = vst [vmem:[#allocation3 + $0x48] sm:$0xff] %v11379_v11  ;;  %v1141_v31 = vld [vmem:[#allocation5 + $0x128] sm:$0xff]  ;;  %v1136_v33 = vld [vmem:[#allocation5 + $0x100] sm:$0xff] }
  0x7d   : > { %391 = vst [vmem:[#allocation3 + $0x50] sm:$0xff] %v11379_v11  ;;  %392 = vst [vmem:[#allocation3 + $0x58] sm:$0xff] %v11379_v11  ;;  %10755 = vmatpush1.bf16.msra.mxu1 %v10754_v26  ;;  %10785 = vmatprep.subr.bf16.mxu0 %v10784_v30  ;;  %v2461_v25 = vld [vmem:[#allocation5 + $0x1c0] sm:$0xff]  ;;  %v2464_v26 = vld [vmem:[#allocation5 + $0x1d8] sm:$0xff] }
  0x7e   : > { %393 = vst [vmem:[#allocation3 + $0x60] sm:$0xff] %v11379_v11  ;;  %394 = vst [vmem:[#allocation3 + $0x68] sm:$0xff] %v11379_v11  ;;  %10757 = vmatprep.subr.bf16.mxu1 %v10756_v27  ;;  %10787 = vmatpush3.bf16.msra.mxu0 %v10784_v30  ;;  %v444_v27 = vld [vmem:[%s11825_s18 + $0x48] sm:$0xff]  ;;  %v443_v30 = vld [vmem:[%s11825_s18 + $0x40] sm:$0xff] }
  0x7f   : > { %10064 = vmatmul.mubr.msk.f32.gmra.mrb[10].mxu0 %vm541_vm0, %v520_v34  ;;  %10088 = vmatmul.mubr.msk.f32.gmra.mrb[10].mxu1 %vm541_vm0, %v536_v36  ;;  %395 = vst [vmem:[#allocation3 + $0x70] sm:$0xff] %v11379_v11  ;;  %396 = vst [vmem:[#allocation3 + $0x78] sm:$0xff] %v11379_v11  ;;  %v1139_v34 = vld [vmem:[#allocation5 + $0x118] sm:$0xff]  ;;  %v10760_v36 = vpack.c.bf16 %v1144_v32, %v1141_v31  ;;  %v2477_v13 = vld [vmem:[#allocation5 + $0x240] sm:$0xff] }
  0x80   : > { %10066 = vmatprep.mubr.msk.f32.mxu0 %vm541_vm0, %v521_v35  ;;  %10090 = vmatprep.mubr.msk.f32.mxu1 %vm541_vm0, %v537_v37  ;;  %397 = vst [vmem:[#allocation3 + $0x80] sm:$0xff] %v11379_v11  ;;  %398 = vst [vmem:[#allocation3 + $0x88] sm:$0xff] %v11379_v11  ;;  %v10758_v35 = vpack.c.bf16 %v1137_v29, %v1134_v28  ;;  %v1140_v37 = vld [vmem:[#allocation5 + $0x120] sm:$0xff]  ;;  %v10836_v29 = vpack.c.bf16 %v2464_v26, %v2461_v25  ;;  %v457_v25 = vld [vmem:[%s11825_s18 + $0xb0] sm:$0xff] }
  0x81   : > { %399 = vst [vmem:[#allocation3 + $0x90] sm:$0xff] %v11379_v11  ;;  %400 = vst [vmem:[#allocation3 + $0x98] sm:$0xff] %v11379_v11  ;;  %v455_v17 = vld [vmem:[%s11825_s18 + $0xa0] sm:$0xff] }
  0x82   : > { %401 = vst [vmem:[#allocation3 + $0xa0] sm:$0xff] %v11379_v11  ;;  %402 = vst [vmem:[#allocation3 + $0xa8] sm:$0xff] %v11379_v11  ;;  %10759 = vmatpush1.bf16.msra.mxu1 %v10758_v35  ;;  %v2473_v26 = vld [vmem:[#allocation5 + $0x220] sm:$0xff] }
  0x83   : > { %10067 = vmatmul.mubr.msk.f32.gmra.mrb[12].mxu0 %vm541_vm0, %v522_v38  ;;  %10091 = vmatmul.mubr.msk.f32.gmra.mrb[12].mxu1 %vm541_vm0, %v538_v40  ;;  %403 = vst [vmem:[#allocation3 + $0xb0] sm:$0xff] %v11379_v11  ;;  %404 = vst [vmem:[#allocation3 + $0xb8] sm:$0xff] %v11379_v11  ;;  %v1143_v38 = vld [vmem:[#allocation5 + $0x138] sm:$0xff] }
  0x84   : > { %10069 = vmatprep.mubr.msk.f32.mxu0 %vm541_vm0, %v523_v39  ;;  %10093 = vmatprep.mubr.msk.f32.mxu1 %vm541_vm0, %v539_v42  ;;  %405 = vst [vmem:[#allocation3 + $0xc0] sm:$0xff] %v11379_v11  ;;  %406 = vst [vmem:[#allocation3 + $0xc8] sm:$0xff] %v11379_v11  ;;  %v10788_v39 = vpack.c.bf16 %v1139_v34, %v1136_v33  ;;  %v1147_v40 = vld [vmem:[#allocation5 + $0x158] sm:$0xff]  ;;  %v1142_v42 = vld [vmem:[#allocation5 + $0x130] sm:$0xff]  ;;  %v10762_v44 = vpack.c.bf16 %v1143_v38, %v1140_v37 }
  0x85   : > { %407 = vst [vmem:[#allocation3 + $0xd0] sm:$0xff] %v11379_v11  ;;  %408 = vst [vmem:[#allocation3 + $0xd8] sm:$0xff] %v11379_v11  ;;  %10761 = vmatprep.subr.bf16.mxu1 %v10760_v36  ;;  %v2466_v37 = vld [vmem:[#allocation5 + $0x1e8] sm:$0xff]  ;;  %v2469_v38 = vld [vmem:[#allocation5 + $0x200] sm:$0xff] }
  0x86   : > { %409 = vst [vmem:[#allocation3 + $0xe0] sm:$0xff] %v11379_v11  ;;  %410 = vst [vmem:[#allocation3 + $0xe8] sm:$0xff] %v11379_v11  ;;  %10789 = vmatprep.subr.bf16.mxu0 %v10788_v39  ;;  %10763 = vmatpush1.bf16.msra.mxu1 %v10762_v44 }
  0x87   : > { %10070 = vmatmul.mubr.msk.f32.gmra.mrb[14].mxu0 %vm541_vm0, %v524_v41  ;;  %10094 = vmatmul.mubr.msk.f32.gmra.mrb[14].mxu1 %vm541_vm0, %v540_v43  ;;  %411 = vst [vmem:[#allocation3 + $0xf0] sm:$0xff] %v11379_v11  ;;  %412 = vst [vmem:[#allocation3 + $0xf8] sm:$0xff] %v11379_v11  ;;  %v1150_v41 = vld [vmem:[#allocation5 + $0x170] sm:$0xff]  ;;  %v1145_v43 = vld [vmem:[#allocation5 + $0x148] sm:$0xff] }
  0x88   : > { %413 = vst [vmem:[#allocation3 + $0x100] sm:$0xff] %v11379_v11  ;;  %414 = vst [vmem:[#allocation3 + $0x108] sm:$0xff] %v11379_v11  ;;  %1216 = vmatprep.mubr.f32.mxu1 %v11379_v11  ;;  %10128 = vmatprep.mubr.f32.mxu0 %v11379_v11  ;;  %v10764_v45 = vpack.c.bf16 %v1150_v41, %v1147_v40  ;;  %v10792_v48 = vpack.c.bf16 %v1145_v43, %v1142_v42  ;;  %v2465_v41 = vld [vmem:[#allocation5 + $0x1e0] sm:$0xff]  ;;  %v2468_v42 = vld [vmem:[#allocation5 + $0x1f8] sm:$0xff] }
  0x89   : > { %415 = vst [vmem:[#allocation3 + $0x110] sm:$0xff] %v11379_v11  ;;  %416 = vst [vmem:[#allocation3 + $0x118] sm:$0xff] %v11379_v11  ;;  %10791 = vmatpush3.bf16.msra.mxu0 %v10788_v39  ;;  %v10808_v40 = vpack.c.bf16 %v2469_v38, %v2466_v37  ;;  %v446_v43 = vld [vmem:[%s11825_s18 + $0x58] sm:$0xff]  ;;  %v10810_v44 = vpack.c.bf16 %v2468_v42, %v2465_v41  ;;  %v461_v38 = vld [vmem:[%s11825_s18 + $0xd0] sm:$0xff] }
  0x8a   : > { %417 = vst [vmem:[#allocation3 + $0x120] sm:$0xff] %v11379_v11  ;;  %418 = vst [vmem:[#allocation3 + $0x128] sm:$0xff] %v11379_v11  ;;  %10765 = vmatprep.subr.bf16.mxu1 %v10764_v45  ;;  %10793 = vmatprep.subr.bf16.mxu0 %v10792_v48  ;;  %v445_v45 = vld [vmem:[%s11825_s18 + $0x50] sm:$0xff]  ;;  %v2496_v41 = vld [vmem:[#allocation5 + $0x2d8] sm:$0xff] }
  0x8b   : > { %419 = vst [vmem:[#allocation3 + $0x130] sm:$0xff] %v11379_v11  ;;  %420 = vst [vmem:[#allocation3 + $0x138] sm:$0xff] %v11379_v11  ;;  %10767 = vmatpush1.bf16.msra.mxu1 %v10766_v53  ;;  %v2499_v42 = vld [vmem:[#allocation5 + $0x2f0] sm:$0xff] }
  0x8c   : > { %421 = vst [vmem:[#allocation3 + $0x140] sm:$0xff] %v11379_v11  ;;  %422 = vst [vmem:[#allocation3 + $0x148] sm:$0xff] %v11379_v11  ;;  %10833 = vmatprep.subr.bf16.mxu1 %v10832_v55 }
  0x8d   : > { %423 = vst [vmem:[#allocation3 + $0x150] sm:$0xff] %v11379_v11  ;;  %424 = vst [vmem:[#allocation3 + $0x158] sm:$0xff] %v11379_v11  ;;  %10795 = vmatpush3.bf16.msra.mxu0 %v10792_v48 }
  0x8e   : > { %425 = vst [vmem:[#allocation3 + $0x160] sm:$0xff] %v11379_v11  ;;  %426 = vst [vmem:[#allocation3 + $0x168] sm:$0xff] %v11379_v11  ;;  %10797 = vmatprep.subr.bf16.mxu0 %v10796_v54  ;;  %1217 = vmatmul.mubr.f32.vlgmr.msra.gmra.mrb[16].mxu1 %v11379_v11 }
  0x8f   : > { %427 = vst [vmem:[#allocation3 + $0x170] sm:$0xff] %v11379_v11  ;;  %428 = vst [vmem:[#allocation3 + $0x178] sm:$0xff] %v11379_v11  ;;  %1222 = vmatprep.mubr.f32.mxu1 %v11379_v11  ;;  %10835 = vmatpush3.bf16.msra.mxu1 %v10832_v55 }
  0x90   : > { %429 = vst [vmem:[#allocation3 + $0x180] sm:$0xff] %v11379_v11  ;;  %430 = vst [vmem:[#allocation3 + $0x188] sm:$0xff] %v11379_v11  ;;  %10837 = vmatprep.subr.bf16.mxu1 %v10836_v29 }
  0x91   : > { %431 = vst [vmem:[#allocation3 + $0x190] sm:$0xff] %v11379_v11  ;;  %10799 = vmatpush3.bf16.msra.mxu0 %v10796_v54  ;;  %469 = vst.msk [vmem:[#allocation2 + $0x19] sm:$0xff] %vm468_vm1, %v435_v56 }
  0x92   : > { %1223 = vmatmul.mubr.f32.gmra.mrb[18].mxu1 %v11379_v11  ;;  %470 = vst.msk [vmem:[#allocation2 + $0x21] sm:$0xff] %vm468_vm1, %v436_v57  ;;  %471 = vst.msk [vmem:[#allocation2 + $0x31] sm:$0xff] %vm468_vm1, %v437_v58  ;;  %10801 = vmatprep.subr.bf16.mxu0 %v10800_v62  ;;  %v2472_v58 = vld [vmem:[#allocation5 + $0x218] sm:$0xff]  ;;  %v2474_v62 = vld [vmem:[#allocation5 + $0x228] sm:$0xff] }
  0x93   : > { %1228 = vmatprep.mubr.f32.mxu1 %v11379_v11  ;;  %472 = vst.msk [vmem:[#allocation2 + $0x39] sm:$0xff] %vm468_vm1, %v438_v1  ;;  %474 = vst.msk [vmem:[#allocation2 + $0x51] sm:$0xff] %vm468_vm1, %v440_v2  ;;  %10839 = vmatpush3.bf16.msra.mxu1 %v10836_v29  ;;  %v10812_v60 = vpack.c.bf16 %v2475_v59, %v2472_v58  ;;  %v449_v1 = vld [vmem:[%s11825_s18 + $0x70] sm:$0xff] }
  0x94   : > { %10129 = vmatmul.mubr.f32.vlgmr.msra.gmra.mrb[16].mxu0 %v11379_v11  ;;  %473 = vst.msk [vmem:[#allocation2 + $0x49] sm:$0xff] %vm468_vm1, %v439_v3  ;;  %476 = vst.msk [vmem:[#allocation2 + $0x69] sm:$0xff] %vm468_vm1, %v442_v18  ;;  %v2467_v2 = vld [vmem:[#allocation5 + $0x1f0] sm:$0xff]  ;;  %v2470_v3 = vld [vmem:[#allocation5 + $0x208] sm:$0xff] }
  0x95   : > { %10131 = vmatprep.mubr.f32.mxu0 %v11379_v11  ;;  %10803 = vmatpush1.bf16.msra.mxu0 %v10802_v0  ;;  %475 = vst.msk [vmem:[#allocation2 + $0x61] sm:$0xff] %vm468_vm1, %v441_v20  ;;  %478 = vst.msk [vmem:[#allocation2 + $0x81] sm:$0xff] %vm468_vm1, %v444_v27  ;;  %v10814_v0 = vpack.c.bf16 %v2474_v62, %v2471_v61  ;;  %v2484_v18 = vld [vmem:[#allocation5 + $0x278] sm:$0xff] }
  0x96   : > { %1229 = vmatmul.mubr.f32.gmra.mrb[20].mxu1 %v11379_v11  ;;  %10805 = vmatprep.subr.bf16.mxu0 %v10804_v15  ;;  %477 = vst.msk [vmem:[#allocation2 + $0x79] sm:$0xff] %vm468_vm1, %v443_v30  ;;  %480 = vst.msk [vmem:[#allocation2 + $0x99] sm:$0xff] %vm468_vm1, %v446_v43  ;;  %v2480_v15 = vld [vmem:[#allocation5 + $0x258] sm:$0xff]  ;;  %v459_v30 = vld [vmem:[%s11825_s18 + $0xc0] sm:$0xff]  ;;  %v10828_v43 = vpack.c.bf16 %v2499_v42, %v2496_v41 }
  0x97   : > { %1233 = vmatprep.mubr.f32.mxu1 %v11379_v11  ;;  %479 = vst.msk [vmem:[#allocation2 + $0x91] sm:$0xff] %vm468_vm1, %v445_v45  ;;  %482 = vst.msk [vmem:[#allocation2 + $0xb1] sm:$0xff] %vm468_vm1, %v448_v50  ;;  %v2476_v27 = vld [vmem:[#allocation5 + $0x238] sm:$0xff]  ;;  %v2498_v45 = vld [vmem:[#allocation5 + $0x2e8] sm:$0xff] }
  0x98   : > { %481 = vst.msk [vmem:[#allocation2 + $0xa9] sm:$0xff] %vm468_vm1, %v447_v51  ;;  %484 = vst.msk [vmem:[#allocation2 + $0xc9] sm:$0xff] %vm468_vm1, %v450_v63  ;;  %v10844_v29 = vpack.c.bf16 %v2476_v27, %v2473_v26  ;;  %v3803_v50 = vld [vmem:[#allocation5 + $0x310] sm:$0xff]  ;;  %v3806_v51 = vld [vmem:[#allocation5 + $0x328] sm:$0xff] }
  0x99   : > { %10807 = vmatpush1.bf16.msra.mxu0 %v10806_v19  ;;  %483 = vst.msk [vmem:[#allocation2 + $0xc1] sm:$0xff] %vm468_vm1, %v449_v1  ;;  %488 = vst.msk [vmem:[#allocation2 + $0xf9] sm:$0xff] %vm468_vm1, %v454_v16  ;;  %v2487_v19 = vld [vmem:[#allocation5 + $0x290] sm:$0xff] }
  0x9a   : > { %10809 = vmatprep.subr.bf16.mxu0 %v10808_v40  ;;  %489 = vst.msk [vmem:[#allocation2 + $0x109] sm:$0xff] %vm468_vm1, %v455_v17  ;;  %v10820_v20 = vpack.c.bf16 %v2487_v19, %v2484_v18  ;;  %491 = vst.msk [vmem:[#allocation2 + $0x121] sm:$0xff] %vm468_vm1, %v457_v25  ;;  %v463_v40 = vld [vmem:[%s11825_s18 + $0xe0] sm:$0xff] }
  0x9b   : > { %493 = vst.msk [vmem:[#allocation2 + $0x139] sm:$0xff] %vm468_vm1, %v459_v30  ;;  %495 = vst.msk [vmem:[#allocation2 + $0x151] sm:$0xff] %vm468_vm1, %v461_v38 }
  0x9c   : > { %497 = vst.msk [vmem:[#allocation2 + $0x169] sm:$0xff] %vm468_vm1, %v463_v40 }
  0x9d   : > { %10811 = vmatpush1.bf16.msra.mxu0 %v10810_v44  ;;  %v2495_v44 = vld [vmem:[#allocation5 + $0x2d0] sm:$0xff] }
  0x9e   : > { %10813 = vmatprep.subr.bf16.mxu0 %v10812_v60 }
  0xa1   : > { %10815 = vmatpush1.bf16.msra.mxu0 %v10814_v0 }
 0x13e   : > { %v10050_v4 = vpop.f32.mrb[0].mxu0  ;;  %v11839_v6 = vpop.f32.mrb[0].mxu1 }
 0x13f   : > { %v704_v5 = vpop.f32.mrb[1].mxu0  ;;  %v11842_v7 = vpop.f32.mrb[1].mxu1 }
 0x140   : > { %895 = vrot.lane.b32.xlu0 %v704_v5, %s11380_s16  ;;  %v10840_v5 = vpack.c.bf16 %v2470_v3, %v2467_v2  ;;  %v2491_v3 = vld [vmem:[#allocation5 + $0x2b0] sm:$0xff] }
 0x142   : > { %v10053_v8 = vpop.f32.mrb[2].mxu0  ;;  %v11844_v10 = vpop.f32.mrb[2].mxu1  ;;  %10841 = vmatprep.subr.bf16.mxu1 %v10840_v5 }
 0x143   : > { %v714_v9 = vpop.f32.mrb[3].mxu0  ;;  %v11848_v14 = vpop.f32.mrb[3].mxu1  ;;  %10843 = vmatpush3.bf16.msra.mxu1 %v10840_v5 }
 0x144   : > { %897 = vrot.lane.b32.xlu0 %v10050_v4, %s11380_s16  ;;  %899 = vrot.lane.b32.xlu1 %v714_v9, %s11380_s16  ;;  %v452_v4 = vld [vmem:[%s11825_s18 + $0x88] sm:$0xff]  ;;  %v2481_v9 = vld [vmem:[#allocation5 + $0x260] sm:$0xff] }
 0x145   : > { %486 = vst.msk [vmem:[#allocation2 + $0xe1] sm:$0xff] %vm468_vm1, %v452_v4  ;;  %10845 = vmatprep.subr.bf16.mxu1 %v10844_v29  ;;  %v2494_v4 = vld [vmem:[#allocation5 + $0x2c8] sm:$0xff] }
 0x146   : > { %v10056_v21 = vpop.f32.mrb[4].mxu0  ;;  %v11854_v23 = vpop.f32.mrb[4].mxu1  ;;  %v10856_v5 = vpack.c.bf16 %v2494_v4, %v2491_v3 }
 0x147   : > { %v724_v22 = vpop.f32.mrb[5].mxu0  ;;  %v11858_v24 = vpop.f32.mrb[5].mxu1  ;;  %10847 = vmatpush3.bf16.msra.mxu1 %v10844_v29 }
 0x148   : > { %901 = vrot.lane.b32.xlu1 %v10053_v8, %s11380_s16  ;;  %903 = vrot.lane.b32.xlu0 %v724_v22, %s11380_s16  ;;  %v451_v8 = vld [vmem:[%s11825_s18 + $0x80] sm:$0xff]  ;;  %v2486_v22 = vld [vmem:[#allocation5 + $0x288] sm:$0xff] }
 0x149   : > { %485 = vst.msk [vmem:[#allocation2 + $0xd9] sm:$0xff] %vm468_vm1, %v451_v8 }
 0x14a   : > { %v10059_v28 = vpop.f32.mrb[6].mxu0  ;;  %v11863_v32 = vpop.f32.mrb[6].mxu1 }
 0x14b   : > { %v734_v31 = vpop.f32.mrb[7].mxu0  ;;  %v11868_v33 = vpop.f32.mrb[7].mxu1 }
 0x14c   : > { %905 = vrot.lane.b32.xlu1 %v10056_v21, %s11380_s16  ;;  %907 = vrot.lane.b32.xlu0 %v734_v31, %s11380_s16  ;;  %v2483_v21 = vld [vmem:[#allocation5 + $0x270] sm:$0xff]  ;;  %v2490_v31 = vld [vmem:[#allocation5 + $0x2a8] sm:$0xff] }
 0x14e   : > { %v10062_v34 = vpop.f32.mrb[8].mxu0  ;;  %v11870_v36 = vpop.f32.mrb[8].mxu1 }
 0x14f   : > { %v744_v35 = vpop.f32.mrb[9].mxu0  ;;  %v11874_v39 = vpop.f32.mrb[9].mxu1 }
 0x150   : > { %909 = vrot.lane.b32.xlu1 %v10059_v28, %s11380_s16  ;;  %911 = vrot.lane.b32.xlu0 %v744_v35, %s11380_s16  ;;  %v460_v28 = vld [vmem:[%s11825_s18 + $0xc8] sm:$0xff]  ;;  %v2492_v35 = vld [vmem:[#allocation5 + $0x2b8] sm:$0xff] }
 0x151   : > { %494 = vst.msk [vmem:[#allocation2 + $0x141] sm:$0xff] %vm468_vm1, %v460_v28 }
 0x152   : > { %v10065_v46 = vpop.f32.mrb[10].mxu0  ;;  %v11880_v48 = vpop.f32.mrb[10].mxu1 }
 0x153   : > { %v754_v47 = vpop.f32.mrb[11].mxu0  ;;  %v11884_v49 = vpop.f32.mrb[11].mxu1 }
 0x154   : > { %913 = vrot.lane.b32.xlu1 %v10062_v34, %s11380_s16  ;;  %915 = vrot.lane.b32.xlu0 %v754_v47, %s11380_s16  ;;  %v2489_v34 = vld [vmem:[#allocation5 + $0x2a0] sm:$0xff]  ;;  %v2479_v47 = vld [vmem:[#allocation5 + $0x250] sm:$0xff] }
 0x155   : > { %v10826_v37 = vpack.c.bf16 %v2492_v35, %v2489_v34  ;;  %v2500_v34 = vld [vmem:[#allocation5 + $0x2f8] sm:$0xff] }
 0x156   : > { %v10068_v52 = vpop.f32.mrb[12].mxu0  ;;  %v11890_v54 = vpop.f32.mrb[12].mxu1 }
 0x157   : > { %v764_v53 = vpop.f32.mrb[13].mxu0  ;;  %v11894_v55 = vpop.f32.mrb[13].mxu1 }
 0x158   : > { %917 = vrot.lane.b32.xlu1 %v10065_v46, %s11380_s16  ;;  %919 = vrot.lane.b32.xlu0 %v764_v53, %s11380_s16  ;;  %v10830_v46 = vpack.c.bf16 %v2498_v45, %v2495_v44  ;;  %v2485_v53 = vld [vmem:[#allocation5 + $0x280] sm:$0xff] }
 0x15a   : > { %v10071_v56 = vpop.f32.mrb[14].mxu0 }
 0x15b   : > { %v774_v57 = vpop.f32.mrb[15].mxu0 }
 0x15c   : > { %921 = vrot.lane.b32.xlu1 %v10068_v52, %s11380_s16  ;;  %923 = vrot.lane.b32.xlu0 %v774_v57, %s11380_s16  ;;  %v11959_v52 = vpack.c.bf16 %v3806_v51, %v3803_v50 }
 0x160   : > { %925 = vrot.lane.b32.xlu1 %v10071_v56, %s11380_s16  ;;  %927 = vrot.lane.b32.xlu0 %v11842_v7, %s11380_s16  ;;  %v2478_v7 = vld [vmem:[#allocation5 + $0x248] sm:$0xff] }
 0x161   : > { %v10816_v12 = vpack.c.bf16 %v2481_v9, %v2478_v7 }
 0x163   : > { %10817 = vmatprep.subr.bf16.mxu0 %v10816_v12 }
 0x164   : > { %929 = vrot.lane.b32.xlu1 %v11839_v6, %s11380_s16  ;;  %931 = vrot.lane.b32.xlu0 %v11848_v14, %s11380_s16  ;;  %v10818_v6 = vpack.c.bf16 %v2480_v15, %v2477_v13  ;;  %v453_v14 = vld [vmem:[%s11825_s18 + $0x90] sm:$0xff] }
 0x165   : > { %487 = vst.msk [vmem:[#allocation2 + $0xf1] sm:$0xff] %vm468_vm1, %v453_v14  ;;  %v10095_v14 = vpop.f32.mrb[14].mxu1 }
 0x166   : > { %10819 = vmatpush1.bf16.msra.mxu0 %v10818_v6 }
 0x167   : > { %10821 = vmatprep.subr.bf16.mxu0 %v10820_v20 }
 0x168   : > { %933 = vrot.lane.b32.xlu1 %v11844_v10, %s11380_s16  ;;  %935 = vrot.lane.b32.xlu0 %v11858_v24, %s11380_s16  ;;  %v456_v10 = vld [vmem:[%s11825_s18 + $0xa8] sm:$0xff]  ;;  %v10822_v24 = vpack.c.bf16 %v2486_v22, %v2483_v21 }
 0x169   : > { %490 = vst.msk [vmem:[#allocation2 + $0x111] sm:$0xff] %vm468_vm1, %v456_v10  ;;  %v854_v10 = vpop.f32.mrb[15].mxu1 }
 0x16a   : > { %10823 = vmatpush1.bf16.msra.mxu0 %v10822_v24 }
 0x16c   : > { %937 = vrot.lane.b32.xlu1 %v11854_v23, %s11380_s16  ;;  %939 = vrot.lane.b32.xlu0 %v11868_v33, %s11380_s16  ;;  %v458_v23 = vld [vmem:[%s11825_s18 + $0xb8] sm:$0xff] }
 0x16d   : > { %492 = vst.msk [vmem:[#allocation2 + $0x129] sm:$0xff] %vm468_vm1, %v458_v23 }
 0x170   : > { %941 = vrot.lane.b32.xlu1 %v11863_v32, %s11380_s16  ;;  %943 = vrot.lane.b32.xlu0 %v11874_v39, %s11380_s16  ;;  %v2493_v32 = vld [vmem:[#allocation5 + $0x2c0] sm:$0xff]  ;;  %v464_v39 = vld [vmem:[%s11825_s18 + $0xe8] sm:$0xff] }
 0x171   : > { %v10824_v33 = vpack.c.bf16 %v2493_v32, %v2490_v31  ;;  %498 = vst.msk [vmem:[#allocation2 + $0x171] sm:$0xff] %vm468_vm1, %v464_v39 }
 0x173   : > { %10825 = vmatprep.subr.bf16.mxu0 %v10824_v33  ;;  %v2497_v33 = vld [vmem:[#allocation5 + $0x2e0] sm:$0xff] }
 0x174   : > { %945 = vrot.lane.b32.xlu1 %v11870_v36, %s11380_s16  ;;  %947 = vrot.lane.b32.xlu0 %v11884_v49, %s11380_s16  ;;  %v462_v36 = vld [vmem:[%s11825_s18 + $0xd8] sm:$0xff]  ;;  %v10860_v35 = vpack.c.bf16 %v2500_v34, %v2497_v33 }
 0x175   : > { %496 = vst.msk [vmem:[#allocation2 + $0x159] sm:$0xff] %vm468_vm1, %v462_v36  ;;  %10827 = vmatpush1.bf16.msra.mxu0 %v10826_v37 }
 0x176   : > { %10829 = vmatprep.subr.bf16.mxu0 %v10828_v43 }
 0x178   : > { %949 = vrot.lane.b32.xlu1 %v11880_v48, %s11380_s16  ;;  %951 = vrot.lane.b32.xlu0 %v11894_v55, %s11380_s16  ;;  %v2482_v48 = vld [vmem:[#allocation5 + $0x268] sm:$0xff] }
 0x179   : > { %10831 = vmatpush1.bf16.msra.mxu0 %v10830_v46  ;;  %v10848_v49 = vpack.c.bf16 %v2482_v48, %v2479_v47 }
 0x17a   : > { %10897 = vmatprep.subr.bf16.mxu0 %v11959_v52 }
 0x17b   : > { %10849 = vmatprep.subr.bf16.mxu1 %v10848_v49 }
 0x17c   : > { %953 = vrot.lane.b32.xlu1 %v11890_v54, %s11380_s16  ;;  %10851 = vmatpush3.bf16.msra.mxu1 %v10848_v49  ;;  %v2488_v54 = vld [vmem:[#allocation5 + $0x298] sm:$0xff] }
 0x17d   : > { %v10852_v55 = vpack.c.bf16 %v2488_v54, %v2485_v53  ;;  %955 = vrot.lane.b32.xlu0 %v854_v10, %s11380_s16 }
 0x17f   : > { %10853 = vmatprep.subr.bf16.mxu1 %v10852_v55 }
 0x180   : > { %10855 = vmatpush3.bf16.msra.mxu1 %v10852_v55  ;;  %957 = vrot.lane.b32.xlu1 %v10095_v14, %s11380_s16  ;;  %s14306_s16 = scalar_lea.sflag [#allocation7], %s314_s22 }
 0x181   : > { %10857 = vmatprep.subr.bf16.mxu1 %v10856_v5 }
 0x184   : > { %10859 = vmatpush3.bf16.msra.mxu1 %v10856_v5 }
 0x185   : > { %10861 = vmatprep.subr.bf16.mxu1 %v10860_v35 }
 0x188   : > { %10863 = vmatpush3.bf16.msra.mxu1 %v10860_v35 }
 0x1b2   : > { %v896_v56 = vpop.permute.xlu0 %895 }
 0x1b3   : > { %992 = vst.msk [vmem:[#allocation2 + $0x19] sm:$0xff] %vm991_vm2, %v896_v56 }
 0x1b6   : > { %v898_v57 = vpop.permute.xlu0 %897  ;;  %v900_v58 = vpop.permute.xlu1 %899 }
 0x1b7   : > { %993 = vst.msk [vmem:[#allocation2 + $0x21] sm:$0xff] %vm991_vm2, %v898_v57  ;;  %994 = vst.msk [vmem:[#allocation2 + $0x31] sm:$0xff] %vm991_vm2, %v900_v58 }
 0x1ba   : > { %v902_v59 = vpop.permute.xlu1 %901  ;;  %v11965_v60 = vld [vmem:[#allocation2 + $0x18] sm:$0xff]  ;;  %v904_v61 = vpop.permute.xlu0 %903 }
 0x1bb   : > { %995 = vst.msk [vmem:[#allocation2 + $0x39] sm:$0xff] %vm991_vm2, %v902_v59  ;;  %1234 = vmatmul.mubr.f32.gmra.mrb[22].mxu1 %v11965_v60  ;;  %10132 = vmatmul.mubr.f32.gmra.mrb[18].mxu0 %v11965_v60  ;;  %996 = vst.msk [vmem:[#allocation2 + $0x49] sm:$0xff] %vm991_vm2, %v904_v61  ;;  %v3802_v61 = vld [vmem:[#allocation5 + $0x308] sm:$0xff] }
 0x1bc   : > { %1239 = vmatprep.mubr.f32.mxu1 %v11379_v11 }
 0x1be   : > { %v906_v62 = vpop.permute.xlu1 %905  ;;  %v11972_v63 = vld [vmem:[#allocation2 + $0x20] sm:$0xff]  ;;  %v11974_v0 = vld [vmem:[#allocation2 + $0x28] sm:$0xff]  ;;  %v908_v1 = vpop.permute.xlu0 %907  ;;  %v11981_v2 = vld [vmem:[#allocation2 + $0x30] sm:$0xff] }
 0x1bf   : > { %997 = vst.msk [vmem:[#allocation2 + $0x51] sm:$0xff] %vm991_vm2, %v906_v62  ;;  %1240 = vmatmul.mubr.f32.gmra.mrb[24].mxu1 %v11972_v63  ;;  %10134 = vmatprep.mubr.f32.mxu0 %v11972_v63  ;;  %998 = vst.msk [vmem:[#allocation2 + $0x61] sm:$0xff] %vm991_vm2, %v908_v1  ;;  %v3805_v62 = vld [vmem:[#allocation5 + $0x320] sm:$0xff] }
 0x1c0   : > { %10135 = vmatmul.mubr.f32.gmra.mrb[20].mxu0 %v11974_v0  ;;  %1245 = vmatprep.mubr.f32.mxu1 %v11379_v11  ;;  %v10864_v1 = vpack.c.bf16 %v3805_v62, %v3802_v61 }
 0x1c1   : > { %10137 = vmatprep.mubr.f32.mxu0 %v11981_v2 }
 0x1c2   : > { %v11985_v8 = vld [vmem:[#allocation2 + $0x38] sm:$0xff]  ;;  %v910_v7 = vpop.permute.xlu1 %909  ;;  %v912_v9 = vpop.permute.xlu0 %911  ;;  %v11991_v12 = vld [vmem:[#allocation2 + $0x40] sm:$0xff]  ;;  %v11995_v13 = vld [vmem:[#allocation2 + $0x48] sm:$0xff]  ;;  %10865 = vmatprep.subr.bf16.mxu1 %v10864_v1 }
 0x1c3   : > { %1246 = vmatmul.mubr.f32.gmra.mrb[26].mxu1 %v11974_v0  ;;  %999 = vst.msk [vmem:[#allocation2 + $0x69] sm:$0xff] %vm991_vm2, %v910_v7  ;;  %1000 = vst.msk [vmem:[#allocation2 + $0x79] sm:$0xff] %vm991_vm2, %v912_v9 }
 0x1c4   : > { %10138 = vmatmul.mubr.f32.gmra.mrb[22].mxu0 %v11985_v8  ;;  %1250 = vmatprep.mubr.f32.mxu1 %v11379_v11 }
 0x1c5   : > { %10140 = vmatprep.mubr.f32.mxu0 %v11991_v12 }
 0x1c6   : > { %v914_v15 = vpop.permute.xlu1 %913  ;;  %v916_v16 = vpop.permute.xlu0 %915  ;;  %v12001_v6 = vld [vmem:[#allocation2 + $0x50] sm:$0xff]  ;;  %v12006_v17 = vld [vmem:[#allocation2 + $0x60] sm:$0xff]  ;;  %v12010_v20 = vld [vmem:[#allocation2 + $0x58] sm:$0xff] }
 0x1c7   : > { %1251 = vmatmul.mubr.f32.gmra.mrb[28].mxu1 %v11981_v2  ;;  %1001 = vst.msk [vmem:[#allocation2 + $0x81] sm:$0xff] %vm991_vm2, %v914_v15  ;;  %1002 = vst.msk [vmem:[#allocation2 + $0x91] sm:$0xff] %vm991_vm2, %v916_v16  ;;  %v1218_v16 = vpop.f32.mrb[16].mxu1 }
 0x1c8   : > { %10141 = vmatmul.mubr.f32.gmra.mrb[24].mxu0 %v11995_v13  ;;  %1256 = vmatprep.mubr.f32.mxu1 %v11379_v11  ;;  %v1220_v10 = vpop.f32.mrb[17].mxu1 }
 0x1c9   : > { %10143 = vmatprep.mubr.f32.mxu0 %v12001_v6 }
 0x1ca   : > { %v918_v18 = vpop.permute.xlu1 %917  ;;  %v920_v19 = vpop.permute.xlu0 %919  ;;  %v12018_v23 = vld [vmem:[#allocation2 + $0x68] sm:$0xff]  ;;  %v12023_v24 = vld [vmem:[#allocation2 + $0x70] sm:$0xff]  ;;  %v12027_v25 = vld [vmem:[#allocation2 + $0x78] sm:$0xff] }
 0x1cb   : > { %1257 = vmatmul.mubr.f32.gmra.mrb[30].mxu1 %v11985_v8  ;;  %1003 = vst.msk [vmem:[#allocation2 + $0x99] sm:$0xff] %vm991_vm2, %v918_v18  ;;  %1004 = vst.msk [vmem:[#allocation2 + $0xa9] sm:$0xff] %vm991_vm2, %v920_v19  ;;  %v1971_v19 = vrot.slane %v1220_v10, 1 }
 0x1cc   : > { %10144 = vmatmul.mubr.f32.gmra.mrb[26].mxu0 %v12010_v20  ;;  %1262 = vmatprep.mubr.f32.mxu1 %v11379_v11 }
 0x1cd   : > { %10146 = vmatprep.mubr.f32.mxu0 %v12006_v17 }
 0x1ce   : > { %v922_v21 = vpop.permute.xlu1 %921  ;;  %v924_v22 = vpop.permute.xlu0 %923  ;;  %v12033_v28 = vld [vmem:[#allocation2 + $0x80] sm:$0xff]  ;;  %v12037_v29 = vld [vmem:[#allocation2 + $0x90] sm:$0xff]  ;;  %v12040_v32 = vld [vmem:[#allocation2 + $0x88] sm:$0xff] }
 0x1cf   : > { %1263 = vmatmul.mubr.f32.gmra.mrb[32].mxu1 %v11991_v12  ;;  %1005 = vst.msk [vmem:[#allocation2 + $0xb1] sm:$0xff] %vm991_vm2, %v922_v21  ;;  %1006 = vst.msk [vmem:[#allocation2 + $0xc1] sm:$0xff] %vm991_vm2, %v924_v22  ;;  %v1224_v21 = vpop.f32.mrb[18].mxu1  ;;  %v12139_v22 = vpop.f32.mrb[16].mxu0 }
 0x1d0   : > { %10147 = vmatmul.mubr.f32.gmra.mrb[28].mxu0 %v12018_v23  ;;  %1267 = vmatprep.mubr.f32.mxu1 %v11379_v11  ;;  %v1555_v33 = vpop.f32.mrb[17].mxu0 }
 0x1d1   : > { %10149 = vmatprep.mubr.f32.mxu0 %v12023_v24 }
 0x1d2   : > { %v926_v26 = vpop.permute.xlu1 %925  ;;  %v928_v27 = vpop.permute.xlu0 %927  ;;  %v12048_v38 = vld [vmem:[#allocation2 + $0x98] sm:$0xff]  ;;  %v12053_v39 = vld [vmem:[#allocation2 + $0xa0] sm:$0xff]  ;;  %v12059_v40 = vld [vmem:[#allocation2 + $0xa8] sm:$0xff] }
 0x1d3   : > { %1268 = vmatmul.mubr.f32.gmra.mrb[34].mxu1 %v11995_v13  ;;  %1007 = vst.msk [vmem:[#allocation2 + $0xc9] sm:$0xff] %vm991_vm2, %v926_v26  ;;  %1008 = vst.msk [vmem:[#allocation2 + $0xd9] sm:$0xff] %vm991_vm2, %v928_v27  ;;  %v1226_v27 = vpop.f32.mrb[19].mxu1 }
 0x1d4   : > { %10150 = vmatmul.mubr.f32.gmra.mrb[30].mxu0 %v12027_v25  ;;  %1273 = vmatprep.mubr.f32.mxu1 %v11379_v11 }
 0x1d5   : > { %10152 = vmatprep.mubr.f32.mxu0 %v12033_v28 }
 0x1d6   : > { %v930_v30 = vpop.permute.xlu1 %929  ;;  %v932_v31 = vpop.permute.xlu0 %931  ;;  %v12065_v43 = vld [vmem:[#allocation2 + $0xb0] sm:$0xff]  ;;  %v12069_v44 = vld [vmem:[#allocation2 + $0xc0] sm:$0xff]  ;;  %v12072_v47 = vld [vmem:[#allocation2 + $0xb8] sm:$0xff] }
 0x1d7   : > { %1274 = vmatmul.mubr.f32.gmra.mrb[36].mxu1 %v12001_v6  ;;  %1009 = vst.msk [vmem:[#allocation2 + $0xe1] sm:$0xff] %vm991_vm2, %v930_v30  ;;  %1010 = vst.msk [vmem:[#allocation2 + $0xf1] sm:$0xff] %vm991_vm2, %v932_v31  ;;  %v1972_v30 = vrot.slane %v1226_v27, 1  ;;  %v1230_v31 = vpop.f32.mrb[20].mxu1 }
 0x1d8   : > { %10153 = vmatmul.mubr.f32.gmra.mrb[32].mxu0 %v12040_v32  ;;  %1279 = vmatprep.mubr.f32.mxu1 %v11379_v11  ;;  %v12055_v11 = vld [vmem:[#allocation2] sm:$0xff]  ;;  %v3818_v31 = vld [vmem:[#allocation5 + $0x388] sm:$0xff] }
 0x1d9   : > { %10155 = vmatprep.mubr.f32.mxu0 %v12037_v29  ;;  %v1973_v35 = vsel %vm1970_vm3, %v1971_v19, %v1972_v30  ;;  %v3809_v19 = vld [vmem:[#allocation5 + $0x340] sm:$0xff] }
 0x1da   : > { %v934_v36 = vpop.permute.xlu1 %933  ;;  %v936_v37 = vpop.permute.xlu0 %935  ;;  %v12080_v50 = vld [vmem:[#allocation2 + $0xc8] sm:$0xff]  ;;  %v12085_v51 = vld [vmem:[#allocation2 + $0xd0] sm:$0xff]  ;;  %v12089_v53 = vld [vmem:[#allocation2 + $0xd8] sm:$0xff] }
 0x1db   : > { %1280 = vmatmul.mubr.f32.gmra.mrb[38].mxu1 %v12010_v20  ;;  %1011 = vst.msk [vmem:[#allocation2 + $0xf9] sm:$0xff] %vm991_vm2, %v934_v36  ;;  %1012 = vst.msk [vmem:[#allocation2 + $0x109] sm:$0xff] %vm991_vm2, %v936_v37  ;;  %v1231_v36 = vpop.f32.mrb[21].mxu1  ;;  %v2229_v37 = vrot.slane %v12139_v22, 2 }
 0x1dc   : > { %10156 = vmatmul.mubr.f32.gmra.mrb[34].mxu0 %v12048_v38  ;;  %1284 = vmatprep.mubr.f32.mxu1 %v12055_v11 }
 0x1dd   : > { %10158 = vmatprep.mubr.f32.mxu0 %v12053_v39 }
 0x1de   : > { %v938_v41 = vpop.permute.xlu1 %937  ;;  %v940_v42 = vpop.permute.xlu0 %939  ;;  %v12095_v56 = vld [vmem:[#allocation2 + $0xe0] sm:$0xff]  ;;  %v12099_v57 = vld [vmem:[#allocation2 + $0xf0] sm:$0xff]  ;;  %v12102_v59 = vld [vmem:[#allocation2 + $0xe8] sm:$0xff] }
 0x1df   : > { %1285 = vmatmul.mubr.f32.gmra.mrb[40].mxu1 %v12006_v17  ;;  %1013 = vst.msk [vmem:[#allocation2 + $0x111] sm:$0xff] %vm991_vm2, %v938_v41  ;;  %1014 = vst.msk [vmem:[#allocation2 + $0x121] sm:$0xff] %vm991_vm2, %v940_v42  ;;  %v2228_v41 = vrot.slane %v1555_v33, 2  ;;  %v1974_v42 = vrot.slane %v1231_v36, 1  ;;  %v3824_v36 = vld [vmem:[#allocation5 + $0x3b8] sm:$0xff] }
 0x1e0   : > { %10159 = vmatmul.mubr.f32.gmra.mrb[36].mxu0 %v12059_v40  ;;  %1290 = vmatprep.mubr.f32.mxu1 %v12055_v11 }
 0x1e1   : > { %10161 = vmatprep.mubr.f32.mxu0 %v12065_v43 }
 0x1e2   : > { %v942_v45 = vpop.permute.xlu1 %941  ;;  %v944_v46 = vpop.permute.xlu0 %943  ;;  %v12109_v3 = vld [vmem:[#allocation2 + $0xf8] sm:$0xff]  ;;  %v12112_v4 = vld [vmem:[#allocation2 + $0x100] sm:$0xff]  ;;  %v12116_v5 = vld [vmem:[#allocation2 + $0x108] sm:$0xff] }
 0x1e3   : > { %1291 = vmatmul.mubr.f32.gmra.mrb[42].mxu1 %v12018_v23  ;;  %1015 = vst.msk [vmem:[#allocation2 + $0x129] sm:$0xff] %vm991_vm2, %v942_v45  ;;  %1016 = vst.msk [vmem:[#allocation2 + $0x139] sm:$0xff] %vm991_vm2, %v944_v46 }
 0x1e4   : > { %10162 = vmatmul.mubr.f32.gmra.mrb[38].mxu0 %v12072_v47  ;;  %1296 = vmatprep.mubr.f32.mxu1 %v12055_v11 }
 0x1e5   : > { %10164 = vmatprep.mubr.f32.mxu0 %v12069_v44 }
 0x1e6   : > { %v946_v48 = vpop.permute.xlu1 %945  ;;  %v948_v49 = vpop.permute.xlu0 %947  ;;  %v12120_v7 = vld [vmem:[#allocation2 + $0x110] sm:$0xff]  ;;  %v12124_v9 = vld [vmem:[#allocation2 + $0x120] sm:$0xff]  ;;  %v12127_v15 = vld [vmem:[#allocation2 + $0x118] sm:$0xff] }
 0x1e7   : > { %1297 = vmatmul.mubr.f32.gmra.mrb[44].mxu1 %v12023_v24  ;;  %1017 = vst.msk [vmem:[#allocation2 + $0x141] sm:$0xff] %vm991_vm2, %v946_v48  ;;  %1018 = vst.msk [vmem:[#allocation2 + $0x151] sm:$0xff] %vm991_vm2, %v948_v49  ;;  %v1975_v48 = vsel %vm1970_vm3, %v1972_v30, %v1974_v42  ;;  %v2083_v49 = vadd.f32 %v1973_v35, %v1218_v16  ;;  %v3815_v30 = vld [vmem:[#allocation5 + $0x370] sm:$0xff]  ;;  %v3821_v35 = vld [vmem:[#allocation5 + $0x3a0] sm:$0xff] }
 0x1e8   : > { %10165 = vmatmul.mubr.f32.gmra.mrb[40].mxu0 %v12080_v50  ;;  %1301 = vmatprep.mubr.f32.mxu1 %v12055_v11  ;;  %v12173_v62 = vadd.f32 %v1975_v48, %v1224_v21  ;;  %v3812_v21 = vld [vmem:[#allocation5 + $0x358] sm:$0xff]  ;;  %v10904_v33 = vpack.c.bf16 %v3818_v31, %v3815_v30  ;;  %v3830_v42 = vld [vmem:[#allocation5 + $0x3e8] sm:$0xff]  ;;  %v465_v31 = vld [vmem:[%s11825_s18 + $0xf0] sm:$0xff] }
 0x1e9   : > { %10167 = vmatprep.mubr.f32.mxu0 %v12085_v51  ;;  %v10900_v27 = vpack.c.bf16 %v3812_v21, %v3809_v19  ;;  %v3839_v21 = vld [vmem:[#allocation5 + $0x430] sm:$0xff]  ;;  %499 = vst.msk [vmem:[#allocation2 + $0x181] sm:$0xff] %vm468_vm1, %v465_v31  ;;  %v3810_v31 = vld [vmem:[#allocation5 + $0x348] sm:$0xff] }
 0x1ea   : > { %v950_v54 = vpop.permute.xlu1 %949  ;;  %v952_v55 = vpop.permute.xlu0 %951  ;;  %v12133_v14 = vld [vmem:[#allocation2 + $0x128] sm:$0xff]  ;;  %v12136_v18 = vld [vmem:[#allocation2 + $0x130] sm:$0xff]  ;;  %v12142_v26 = vld [vmem:[#allocation2 + $0x138] sm:$0xff] }
 0x1eb   : > { %1302 = vmatmul.mubr.f32.gmra.mrb[46].mxu1 %v12027_v25  ;;  %1019 = vst.msk [vmem:[#allocation2 + $0x159] sm:$0xff] %vm991_vm2, %v950_v54  ;;  %1020 = vst.msk [vmem:[#allocation2 + $0x169] sm:$0xff] %vm991_vm2, %v952_v55  ;;  %v2230_v54 = vsel %vm2227_vm4, %v2228_v41, %v2229_v37  ;;  %v10908_v41 = vpack.c.bf16 %v3824_v36, %v3821_v35  ;;  %v466_v35 = vld [vmem:[%s11825_s18 + $0xf8] sm:$0xff]  ;;  %v3845_v36 = vld [vmem:[#allocation5 + $0x460] sm:$0xff]  ;;  %s14299_s18 = scalar_lea.hbm %s14354_s7, %s9607_s15 }
 0x1ec   : > { %10168 = vmatmul.mubr.f32.gmra.mrb[42].mxu0 %v12089_v53  ;;  %1307 = vmatprep.mubr.f32.mxu1 %v12055_v11  ;;  %v12164_v55 = vadd.f32 %v2230_v54, %v2083_v49  ;;  %v3833_v49 = vld [vmem:[#allocation5 + $0x400] sm:$0xff]  ;;  %v3836_v54 = vld [vmem:[#allocation5 + $0x418] sm:$0xff]  ;;  %500 = vst.msk [vmem:[#allocation2 + $0x189] sm:$0xff] %vm468_vm1, %v466_v35 }
 0x1ed   : > { %10170 = vmatprep.mubr.f32.mxu0 %v12095_v56  ;;  %v10916_v19 = vpack.c.bf16 %v3836_v54, %v3833_v49  ;;  %v3804_v49 = vld [vmem:[#allocation5 + $0x318] sm:$0xff]  ;;  %v3817_v35 = vld [vmem:[#allocation5 + $0x380] sm:$0xff] }
 0x1ee   : > { %v954_v58 = vpop.permute.xlu1 %953  ;;  %v12146_v34 = vld [vmem:[#allocation2 + $0x140] sm:$0xff]  ;;  %v12152_v45 = vld [vmem:[#allocation2 + $0x150] sm:$0xff]  ;;  %v12155_v46 = vld [vmem:[#allocation2 + $0x148] sm:$0xff] }
 0x1ef   : > { %1308 = vmatmul.mubr.f32.gmra.mrb[48].mxu1 %v12033_v28  ;;  %1021 = vst.msk [vmem:[#allocation2 + $0x171] sm:$0xff] %vm991_vm2, %v954_v58  ;;  %v3808_v54 = vld [vmem:[#allocation5 + $0x338] sm:$0xff] }
 0x1f0   : > { %10171 = vmatmul.mubr.f32.gmra.mrb[44].mxu0 %v12102_v59  ;;  %1313 = vmatprep.mubr.f32.mxu1 %v12055_v11 }
 0x1f1   : > { %10173 = vmatprep.mubr.f32.mxu0 %v12099_v57 }
 0x1f2   : > { %v12167_v58 = vld [vmem:[#allocation2 + $0x158] sm:$0xff]  ;;  %v12170_v61 = vld [vmem:[#allocation2 + $0x160] sm:$0xff]  ;;  %v12176_v1 = vld [vmem:[#allocation2 + $0x168] sm:$0xff] }
 0x1f3   : > { %1314 = vmatmul.mubr.f32.gmra.mrb[50].mxu1 %v12040_v32 }
 0x1f4   : > { %10174 = vmatmul.mubr.f32.gmra.mrb[46].mxu0 %v12109_v3  ;;  %1318 = vmatprep.mubr.f32.mxu1 %v12055_v11 }
 0x1f5   : > { %10176 = vmatprep.mubr.f32.mxu0 %v12112_v4 }
 0x1f6   : > { %v12180_v16 = vld [vmem:[#allocation2 + $0x170] sm:$0xff]  ;;  %v12185_v10 = vld [vmem:[#allocation2 + $0x178] sm:$0xff] }
 0x1f7   : > { %1319 = vmatmul.mubr.f32.gmra.mrb[52].mxu1 %v12037_v29 }
 0x1f8   : > { %10177 = vmatmul.mubr.f32.gmra.mrb[48].mxu0 %v12116_v5  ;;  %1324 = vmatprep.mubr.f32.mxu1 %v12055_v11 }
 0x1f9   : > { %10179 = vmatprep.mubr.f32.mxu0 %v12120_v7 }
 0x1fb   : > { %1325 = vmatmul.mubr.f32.gmra.mrb[54].mxu1 %v12048_v38 }
 0x1fc   : > { %10180 = vmatmul.mubr.f32.gmra.mrb[50].mxu0 %v12127_v15  ;;  %1330 = vmatprep.mubr.f32.mxu1 %v12055_v11 }
 0x1fd   : > { %10182 = vmatprep.mubr.f32.mxu0 %v12124_v9 }
 0x1ff   : > { %1331 = vmatmul.mubr.f32.gmra.mrb[56].mxu1 %v12053_v39 }
 0x200   : > { %10183 = vmatmul.mubr.f32.gmra.mrb[52].mxu0 %v12133_v14  ;;  %1335 = vmatprep.mubr.f32.mxu1 %v12055_v11 }
 0x201   : > { %10185 = vmatprep.mubr.f32.mxu0 %v12136_v18 }
 0x203   : > { %1336 = vmatmul.mubr.f32.gmra.mrb[58].mxu1 %v12059_v40 }
 0x204   : > { %10186 = vmatmul.mubr.f32.gmra.mrb[54].mxu0 %v12142_v26  ;;  %1341 = vmatprep.mubr.f32.mxu1 %v12055_v11 }
 0x205   : > { %10188 = vmatprep.mubr.f32.mxu0 %v12146_v34 }
 0x207   : > { %1342 = vmatmul.mubr.f32.gmra.mrb[60].mxu1 %v12065_v43 }
 0x208   : > { %10189 = vmatmul.mubr.f32.gmra.mrb[56].mxu0 %v12155_v46  ;;  %1347 = vmatprep.mubr.f32.mxu1 %v12055_v11 }
 0x209   : > { %10191 = vmatprep.mubr.f32.mxu0 %v12152_v45 }
 0x20b   : > { %1348 = vmatmul.mubr.f32.gmra.mrb[62].mxu1 %v12072_v47 }
 0x20c   : > { %10192 = vmatmul.mubr.f32.gmra.mrb[58].mxu0 %v12167_v58  ;;  %1352 = vmatprep.mubr.f32.mxu1 %v12055_v11 }
 0x20d   : > { %10194 = vmatprep.mubr.f32.mxu0 %v12170_v61 }
 0x20f   : > { %1353 = vmatmul.mubr.f32.gmra.mrb[64].mxu1 %v12069_v44 }
 0x210   : > { %10195 = vmatmul.mubr.f32.gmra.mrb[60].mxu0 %v12176_v1  ;;  %1358 = vmatprep.mubr.f32.mxu1 %v12055_v11 }
 0x211   : > { %10197 = vmatprep.mubr.f32.mxu0 %v12180_v16 }
 0x213   : > { %1359 = vmatmul.mubr.f32.gmra.mrb[66].mxu1 %v12080_v50 }
 0x214   : > { %10198 = vmatmul.mubr.f32.gmra.mrb[62].mxu0 %v12185_v10  ;;  %1364 = vmatprep.mubr.f32.mxu1 %v12055_v11 }
 0x215   : > { %2565 = vmatprep.mubr.f32.mxu0 %v12055_v11 }
 0x217   : > { %1365 = vmatmul.mubr.f32.gmra.mrb[68].mxu1 %v12085_v51 }
 0x218   : > { %2566 = vmatmul.mubr.f32.vlgmr.msra.gmra.mrb[64].mxu0 %v11965_v60  ;;  %1369 = vmatprep.mubr.f32.mxu1 %v12055_v11 }
 0x219   : > { %10899 = vmatpush3.bf16.msra.mxu0 %v11959_v52  ;;  %2571 = vmatprep.mubr.f32.mxu0 %v12055_v11  ;;  %v3827_v52 = vld [vmem:[#allocation5 + $0x3d0] sm:$0xff] }
 0x21a   : > { %10901 = vmatprep.subr.bf16.mxu0 %v10900_v27  ;;  %v10912_v48 = vpack.c.bf16 %v3830_v42, %v3827_v52  ;;  %v958_v52 = vpop.permute.xlu1 %957 }
 0x21b   : > { %1370 = vmatmul.mubr.f32.gmra.mrb[70].mxu1 %v12089_v53  ;;  %1023 = vst.msk [vmem:[#allocation2 + $0x189] sm:$0xff] %vm991_vm2, %v958_v52  ;;  %v3816_v52 = vld [vmem:[#allocation5 + $0x378] sm:$0xff] }
 0x21c   : > { %2572 = vmatmul.mubr.f32.gmra.mrb[66].mxu0 %v11972_v63  ;;  %1375 = vmatprep.mubr.f32.mxu1 %v12055_v11 }
 0x21d   : > { %2577 = vmatprep.mubr.f32.mxu0 %v12055_v11  ;;  %10903 = vmatpush3.bf16.msra.mxu0 %v10900_v27  ;;  %v3842_v27 = vld [vmem:[#allocation5 + $0x448] sm:$0xff] }
 0x21e   : > { %10905 = vmatprep.subr.bf16.mxu0 %v10904_v33  ;;  %v10920_v30 = vpack.c.bf16 %v3842_v27, %v3839_v21 }
 0x21f   : > { %1376 = vmatmul.mubr.f32.gmra.mrb[72].mxu1 %v12095_v56 }
 0x220   : > { %2578 = vmatmul.mubr.f32.gmra.mrb[68].mxu0 %v11974_v0  ;;  %1381 = vmatprep.mubr.f32.mxu1 %v12055_v11 }
 0x221   : > { %2582 = vmatprep.mubr.f32.mxu0 %v12055_v11  ;;  %10907 = vmatpush3.bf16.msra.mxu0 %v10904_v33  ;;  %v956_v33 = vpop.permute.xlu0 %955 }
 0x222   : > { %10909 = vmatprep.subr.bf16.mxu0 %v10908_v41  ;;  %1022 = vst.msk [vmem:[#allocation2 + $0x181] sm:$0xff] %vm991_vm2, %v956_v33  ;;  %v3814_v33 = vld [vmem:[#allocation5 + $0x368] sm:$0xff] }
 0x223   : > { %1382 = vmatmul.mubr.f32.gmra.mrb[74].mxu1 %v12102_v59 }
 0x224   : > { %2583 = vmatmul.mubr.f32.gmra.mrb[70].mxu0 %v11981_v2  ;;  %1386 = vmatprep.mubr.f32.mxu1 %v12055_v11 }
 0x225   : > { %2588 = vmatprep.mubr.f32.mxu0 %v12055_v11  ;;  %10911 = vmatpush3.bf16.msra.mxu0 %v10908_v41  ;;  %v3848_v41 = vld [vmem:[#allocation5 + $0x478] sm:$0xff] }
 0x226   : > { %10913 = vmatprep.subr.bf16.mxu0 %v10912_v48  ;;  %v10924_v42 = vpack.c.bf16 %v3848_v41, %v3845_v36  ;;  %v3813_v41 = vld [vmem:[#allocation5 + $0x360] sm:$0xff] }
 0x227   : > { %1387 = vmatmul.mubr.f32.gmra.mrb[76].mxu1 %v12099_v57 }
 0x228   : > { %2589 = vmatmul.mubr.f32.gmra.mrb[72].mxu0 %v11985_v8  ;;  %1392 = vmatprep.mubr.f32.mxu1 %v12055_v11 }
 0x229   : > { %2594 = vmatprep.mubr.f32.mxu0 %v12055_v11  ;;  %10915 = vmatpush3.bf16.msra.mxu0 %v10912_v48  ;;  %v3801_v48 = vld [vmem:[#allocation5 + $0x300] sm:$0xff] }
 0x22a   : > { %10917 = vmatprep.subr.bf16.mxu0 %v10916_v19  ;;  %v10866_v21 = vpack.c.bf16 %v3804_v49, %v3801_v48  ;;  %v3823_v48 = vld [vmem:[#allocation5 + $0x3b0] sm:$0xff] }
 0x22b   : > { %1393 = vmatmul.mubr.f32.gmra.mrb[78].mxu1 %v12109_v3  ;;  %v3819_v49 = vld [vmem:[#allocation5 + $0x390] sm:$0xff] }
 0x22c   : > { %2595 = vmatmul.mubr.f32.gmra.mrb[74].mxu0 %v11991_v12  ;;  %1398 = vmatprep.mubr.f32.mxu1 %v12055_v11 }
 0x22d   : > { %2599 = vmatprep.mubr.f32.mxu0 %v12055_v11  ;;  %10919 = vmatpush3.bf16.msra.mxu0 %v10916_v19  ;;  %v3811_v19 = vld [vmem:[#allocation5 + $0x350] sm:$0xff] }
 0x22e   : > { %10921 = vmatprep.subr.bf16.mxu0 %v10920_v30  ;;  %v10868_v27 = vpack.c.bf16 %v3811_v19, %v3808_v54  ;;  %v3822_v54 = vld [vmem:[#allocation5 + $0x3a8] sm:$0xff] }
 0x22f   : > { %1399 = vmatmul.mubr.f32.gmra.mrb[80].mxu1 %v12112_v4  ;;  %v3826_v19 = vld [vmem:[#allocation5 + $0x3c8] sm:$0xff] }
 0x230   : > { %2600 = vmatmul.mubr.f32.gmra.mrb[76].mxu0 %v11995_v13  ;;  %1403 = vmatprep.mubr.f32.mxu1 %v12055_v11 }
 0x231   : > { %2605 = vmatprep.mubr.f32.mxu0 %v12055_v11  ;;  %10923 = vmatpush3.bf16.msra.mxu0 %v10920_v30  ;;  %v3807_v30 = vld [vmem:[#allocation5 + $0x330] sm:$0xff] }
 0x232   : > { %10925 = vmatprep.subr.bf16.mxu0 %v10924_v42  ;;  %v10870_v36 = vpack.c.bf16 %v3810_v31, %v3807_v30  ;;  %v3828_v30 = vld [vmem:[#allocation5 + $0x3d8] sm:$0xff] }
 0x233   : > { %1404 = vmatmul.mubr.f32.gmra.mrb[82].mxu1 %v12116_v5  ;;  %v3832_v31 = vld [vmem:[#allocation5 + $0x3f8] sm:$0xff] }
 0x234   : > { %2606 = vmatmul.mubr.f32.gmra.mrb[78].mxu0 %v12001_v6  ;;  %1409 = vmatprep.mubr.f32.mxu1 %v12055_v11 }
 0x235   : > { %2611 = vmatprep.mubr.f32.mxu0 %v12055_v11  ;;  %10927 = vmatpush3.bf16.msra.mxu0 %v10924_v42  ;;  %v3820_v42 = vld [vmem:[#allocation5 + $0x398] sm:$0xff] }
 0x237   : > { %1410 = vmatmul.mubr.f32.gmra.mrb[84].mxu1 %v12120_v7 }
 0x238   : > { %2612 = vmatmul.mubr.f32.gmra.mrb[80].mxu0 %v12010_v20  ;;  %1415 = vmatprep.mubr.f32.mxu1 %v12055_v11 }
 0x239   : > { %2616 = vmatprep.mubr.f32.mxu0 %v12055_v11 }
 0x23b   : > { %1416 = vmatmul.mubr.f32.gmra.mrb[86].mxu1 %v12127_v15 }
 0x23c   : > { %2617 = vmatmul.mubr.f32.gmra.mrb[82].mxu0 %v12006_v17  ;;  %1420 = vmatprep.mubr.f32.mxu1 %v12055_v11 }
 0x23d   : > { %2622 = vmatprep.mubr.f32.mxu0 %v12055_v11 }
 0x23f   : > { %1421 = vmatmul.mubr.f32.gmra.mrb[88].mxu1 %v12124_v9 }
 0x240   : > { %2623 = vmatmul.mubr.f32.gmra.mrb[84].mxu0 %v12018_v23  ;;  %1426 = vmatprep.mubr.f32.mxu1 %v12055_v11 }
 0x241   : > { %2628 = vmatprep.mubr.f32.mxu0 %v12055_v11 }
 0x243   : > { %1427 = vmatmul.mubr.f32.gmra.mrb[90].mxu1 %v12133_v14 }
 0x244   : > { %2629 = vmatmul.mubr.f32.gmra.mrb[86].mxu0 %v12023_v24  ;;  %1432 = vmatprep.mubr.f32.mxu1 %v12055_v11 }
 0x245   : > { %2633 = vmatprep.mubr.f32.mxu0 %v12055_v11 }
 0x247   : > { %1433 = vmatmul.mubr.f32.gmra.mrb[92].mxu1 %v12136_v18 }
 0x248   : > { %2634 = vmatmul.mubr.f32.gmra.mrb[88].mxu0 %v12027_v25  ;;  %1437 = vmatprep.mubr.f32.mxu1 %v12055_v11 }
 0x249   : > { %2639 = vmatprep.mubr.f32.mxu0 %v12055_v11 }
 0x24b   : > { %1438 = vmatmul.mubr.f32.gmra.mrb[94].mxu1 %v12142_v26 }
 0x24c   : > { %2640 = vmatmul.mubr.f32.gmra.mrb[90].mxu0 %v12033_v28  ;;  %1443 = vmatprep.mubr.f32.mxu1 %v12055_v11 }
 0x24d   : > { %2645 = vmatprep.mubr.f32.mxu0 %v12055_v11 }
 0x24f   : > { %1444 = vmatmul.mubr.f32.gmra.mrb[96].mxu1 %v12146_v34 }
 0x250   : > { %2646 = vmatmul.mubr.f32.gmra.mrb[92].mxu0 %v12040_v32  ;;  %1449 = vmatprep.mubr.f32.mxu1 %v12055_v11 }
 0x251   : > { %2650 = vmatprep.mubr.f32.mxu0 %v12055_v11 }
 0x253   : > { %1450 = vmatmul.mubr.f32.gmra.mrb[98].mxu1 %v12155_v46 }
 0x254   : > { %2651 = vmatmul.mubr.f32.gmra.mrb[94].mxu0 %v12037_v29  ;;  %1454 = vmatprep.mubr.f32.mxu1 %v12055_v11 }
 0x255   : > { %2656 = vmatprep.mubr.f32.mxu0 %v12055_v11 }
 0x257   : > { %1455 = vmatmul.mubr.f32.gmra.mrb[100].mxu1 %v12152_v45 }
 0x258   : > { %2657 = vmatmul.mubr.f32.gmra.mrb[96].mxu0 %v12048_v38  ;;  %1460 = vmatprep.mubr.f32.mxu1 %v12055_v11 }
 0x259   : > { %2662 = vmatprep.mubr.f32.mxu0 %v12055_v11 }
 0x25b   : > { %1461 = vmatmul.mubr.f32.gmra.mrb[102].mxu1 %v12167_v58 }
 0x25c   : > { %2663 = vmatmul.mubr.f32.gmra.mrb[98].mxu0 %v12053_v39  ;;  %1466 = vmatprep.mubr.f32.mxu1 %v12055_v11 }
 0x25d   : > { %2667 = vmatprep.mubr.f32.mxu0 %v12055_v11 }
 0x25f   : > { %1467 = vmatmul.mubr.f32.gmra.mrb[104].mxu1 %v12170_v61 }
 0x260   : > { %2668 = vmatmul.mubr.f32.gmra.mrb[100].mxu0 %v12059_v40  ;;  %1471 = vmatprep.mubr.f32.mxu1 %v12055_v11 }
 0x261   : > { %2673 = vmatprep.mubr.f32.mxu0 %v12055_v11 }
 0x263   : > { %1472 = vmatmul.mubr.f32.gmra.mrb[106].mxu1 %v12176_v1 }
 0x264   : > { %2674 = vmatmul.mubr.f32.gmra.mrb[102].mxu0 %v12065_v43  ;;  %1477 = vmatprep.mubr.f32.mxu1 %v12055_v11 }
 0x265   : > { %2679 = vmatprep.mubr.f32.mxu0 %v12055_v11 }
 0x267   : > { %1478 = vmatmul.mubr.f32.gmra.mrb[108].mxu1 %v12180_v16 }
 0x268   : > { %2680 = vmatmul.mubr.f32.gmra.mrb[104].mxu0 %v12072_v47  ;;  %1483 = vmatprep.mubr.f32.mxu1 %v12055_v11 }
 0x269   : > { %2684 = vmatprep.mubr.f32.mxu0 %v12055_v11 }
 0x26b   : > { %1484 = vmatmul.mubr.f32.gmra.mrb[110].mxu1 %v12185_v10 }
 0x26c   : > { %2685 = vmatmul.mubr.f32.gmra.mrb[106].mxu0 %v12069_v44  ;;  %10232 = vmatprep.mubr.f32.mxu1 %v11965_v60  ;;  %v10872_v60 = vpack.c.bf16 %v3817_v35, %v3814_v33  ;;  %v3835_v33 = vld [vmem:[#allocation5 + $0x410] sm:$0xff] }
 0x26d   : > { %2690 = vmatprep.mubr.f32.mxu0 %v12055_v11  ;;  %v3831_v35 = vld [vmem:[#allocation5 + $0x3f0] sm:$0xff] }
 0x26f   : > { %10233 = vmatmul.mubr.f32.vlgmr.msra.gmra.mrb[112].mxu1 %v11972_v63  ;;  %v10874_v63 = vpack.c.bf16 %v3816_v52, %v3813_v41  ;;  %v3841_v41 = vld [vmem:[#allocation5 + $0x440] sm:$0xff] }
 0x270   : > { %2691 = vmatmul.mubr.f32.gmra.mrb[108].mxu0 %v12080_v50  ;;  %10235 = vmatprep.mubr.f32.mxu1 %v11974_v0  ;;  %v10876_v0 = vpack.c.bf16 %v3823_v48, %v3820_v42  ;;  %v3837_v52 = vld [vmem:[#allocation5 + $0x420] sm:$0xff]  ;;  %v3840_v42 = vld [vmem:[#allocation5 + $0x438] sm:$0xff] }
 0x271   : > { %10867 = vmatpush1.bf16.msra.mxu1 %v10866_v21  ;;  %2696 = vmatprep.mubr.f32.mxu0 %v12055_v11  ;;  %v3829_v21 = vld [vmem:[#allocation5 + $0x3e0] sm:$0xff]  ;;  %v3844_v48 = vld [vmem:[#allocation5 + $0x458] sm:$0xff] }
 0x272   : > { %10869 = vmatprep.subr.bf16.mxu1 %v10868_v27  ;;  %v3825_v27 = vld [vmem:[#allocation5 + $0x3c0] sm:$0xff] }
 0x273   : > { %10236 = vmatmul.mubr.f32.gmra.mrb[114].mxu1 %v11981_v2  ;;  %v10878_v2 = vpack.c.bf16 %v3822_v54, %v3819_v49  ;;  %v3846_v49 = vld [vmem:[#allocation5 + $0x468] sm:$0xff] }
 0x274   : > { %2697 = vmatmul.mubr.f32.gmra.mrb[110].mxu0 %v12085_v51  ;;  %10238 = vmatprep.mubr.f32.mxu1 %v11985_v8  ;;  %v10880_v8 = vpack.c.bf16 %v3829_v21, %v3826_v19 }
 0x275   : > { %2701 = vmatprep.mubr.f32.mxu0 %v12055_v11  ;;  %10871 = vmatpush1.bf16.msra.mxu1 %v10870_v36  ;;  %v3834_v36 = vld [vmem:[#allocation5 + $0x408] sm:$0xff] }
 0x276   : > { %10873 = vmatprep.subr.bf16.mxu1 %v10872_v60  ;;  %v3838_v60 = vld [vmem:[#allocation5 + $0x428] sm:$0xff] }
 0x277   : > { %10239 = vmatmul.mubr.f32.gmra.mrb[116].mxu1 %v11991_v12  ;;  %v10882_v12 = vpack.c.bf16 %v3828_v30, %v3825_v27 }
 0x278   : > { %2702 = vmatmul.mubr.f32.gmra.mrb[112].mxu0 %v12089_v53  ;;  %10241 = vmatprep.mubr.f32.mxu1 %v11995_v13  ;;  %v10884_v13 = vpack.c.bf16 %v3835_v33, %v3832_v31 }
 0x279   : > { %2707 = vmatprep.mubr.f32.mxu0 %v12055_v11  ;;  %10875 = vmatpush1.bf16.msra.mxu1 %v10874_v63  ;;  %v3847_v63 = vld [vmem:[#allocation5 + $0x470] sm:$0xff] }
 0x27a   : > { %10877 = vmatprep.subr.bf16.mxu1 %v10876_v0  ;;  %v3843_v0 = vld [vmem:[#allocation5 + $0x450] sm:$0xff] }
 0x27b   : > { %10242 = vmatmul.mubr.f32.gmra.mrb[118].mxu1 %v12001_v6  ;;  %v10886_v6 = vpack.c.bf16 %v3834_v36, %v3831_v35 }
 0x27c   : > { %2708 = vmatmul.mubr.f32.gmra.mrb[114].mxu0 %v12095_v56  ;;  %10244 = vmatprep.mubr.f32.mxu1 %v12010_v20  ;;  %v10888_v20 = vpack.c.bf16 %v3841_v41, %v3838_v60 }
 0x27d   : > { %2713 = vmatprep.mubr.f32.mxu0 %v12055_v11  ;;  %10879 = vmatpush1.bf16.msra.mxu1 %v10878_v2 }
 0x27e   : > { %10881 = vmatprep.subr.bf16.mxu1 %v10880_v8 }
 0x27f   : > { %10245 = vmatmul.mubr.f32.gmra.mrb[120].mxu1 %v12006_v17  ;;  %v10890_v17 = vpack.c.bf16 %v3840_v42, %v3837_v52 }
 0x280   : > { %2714 = vmatmul.mubr.f32.gmra.mrb[116].mxu0 %v12102_v59  ;;  %10247 = vmatprep.mubr.f32.mxu1 %v12018_v23  ;;  %v10892_v23 = vpack.c.bf16 %v3847_v63, %v3844_v48 }
 0x281   : > { %2718 = vmatprep.mubr.f32.mxu0 %v12055_v11  ;;  %10883 = vmatpush1.bf16.msra.mxu1 %v10882_v12 }
 0x282   : > { %10885 = vmatprep.subr.bf16.mxu1 %v10884_v13 }
 0x283   : > { %10248 = vmatmul.mubr.f32.gmra.mrb[122].mxu1 %v12023_v24  ;;  %v10894_v24 = vpack.c.bf16 %v3846_v49, %v3843_v0 }
 0x284   : > { %2719 = vmatmul.mubr.f32.gmra.mrb[118].mxu0 %v12099_v57  ;;  %10250 = vmatprep.mubr.f32.mxu1 %v12027_v25 }
 0x285   : > { %2724 = vmatprep.mubr.f32.mxu0 %v12055_v11  ;;  %10887 = vmatpush1.bf16.msra.mxu1 %v10886_v6 }
 0x286   : > { %10889 = vmatprep.subr.bf16.mxu1 %v10888_v20 }
 0x287   : > { %10251 = vmatmul.mubr.f32.gmra.mrb[124].mxu1 %v12033_v28 }
 0x288   : > { %2725 = vmatmul.mubr.f32.gmra.mrb[120].mxu0 %v12109_v3  ;;  %10253 = vmatprep.mubr.f32.mxu1 %v12040_v32 }
 0x289   : > { %2730 = vmatprep.mubr.f32.mxu0 %v12055_v11  ;;  %10891 = vmatpush1.bf16.msra.mxu1 %v10890_v17 }
 0x28a   : > { %10893 = vmatprep.subr.bf16.mxu1 %v10892_v23 }
 0x28b   : > { %10254 = vmatmul.mubr.f32.gmra.mrb[126].mxu1 %v12037_v29 }
 0x28c   : > { %2731 = vmatmul.mubr.f32.gmra.mrb[122].mxu0 %v12112_v4  ;;  %10256 = vmatprep.mubr.f32.mxu1 %v12048_v38 }
 0x28d   : > { %2735 = vmatprep.mubr.f32.mxu0 %v12055_v11  ;;  %10895 = vmatpush1.bf16.msra.mxu1 %v10894_v24 }
 0x28e   : > { %v1235_v25 = vpop.f32.mrb[22].mxu1  ;;  %v10133_v28 = vpop.f32.mrb[18].mxu0 }
 0x28f   : > { %v1237_v54 = vpop.f32.mrb[23].mxu1  ;;  %v1565_v19 = vpop.f32.mrb[19].mxu0  ;;  %10257 = vmatmul.mubr.f32.gmra.mrb[128].mxu1 %v12053_v39 }
 0x290   : > { %v2231_v32 = vrot.slane %v1565_v19, 2  ;;  %2736 = vmatmul.mubr.f32.gmra.mrb[124].mxu0 %v12116_v5  ;;  %10259 = vmatprep.mubr.f32.mxu1 %v12059_v40  ;;  %v1976_v39 = vrot.slane %v1237_v54, 1  ;;  %v2233_v40 = vrot.slane %v10133_v28, 2 }
 0x291   : > { %2741 = vmatprep.mubr.f32.mxu0 %v12055_v11 }
 0x292   : > { %v1241_v29 = vpop.f32.mrb[24].mxu1  ;;  %v2232_v38 = vsel %vm2227_vm4, %v2229_v37, %v2231_v32 }
 0x293   : > { %v1243_v21 = vpop.f32.mrb[25].mxu1  ;;  %v10136_v2 = vpop.f32.mrb[20].mxu0  ;;  %10260 = vmatmul.mubr.f32.gmra.mrb[130].mxu1 %v12065_v43  ;;  %v12326_v8 = vadd.f32 %v2232_v38, %v12173_v62 }
 0x294   : > { %v1977_v27 = vrot.slane %v1243_v21, 1  ;;  %v2236_v30 = vrot.slane %v10136_v2, 2  ;;  %v1575_v31 = vpop.f32.mrb[21].mxu0  ;;  %2742 = vmatmul.mubr.f32.gmra.mrb[126].mxu0 %v12120_v7  ;;  %10262 = vmatprep.mubr.f32.mxu1 %v12072_v47 }
 0x295   : > { %v2234_v33 = vrot.slane %v1575_v31, 2  ;;  %2747 = vmatprep.mubr.f32.mxu0 %v12055_v11 }
 0x296   : > { %v1978_v22 = vsel %vm1970_vm3, %v1976_v39, %v1977_v27  ;;  %v1247_v37 = vpop.f32.mrb[26].mxu1 }
 0x297   : > { %v1248_v12 = vpop.f32.mrb[27].mxu1  ;;  %v10139_v43 = vpop.f32.mrb[22].mxu0  ;;  %10263 = vmatmul.mubr.f32.gmra.mrb[132].mxu1 %v12069_v44  ;;  %v2085_v62 = vadd.f32 %v1978_v22, %v1235_v25  ;;  %v2235_v13 = vsel %vm2227_vm4, %v2233_v40, %v2234_v33  ;;  %v2237_v35 = vsel %vm2227_vm4, %v2234_v33, %v2236_v30 }
 0x298   : > { %v1979_v36 = vrot.slane %v1248_v12, 1  ;;  %v2239_v60 = vrot.slane %v10139_v43, 2  ;;  %v1585_v41 = vpop.f32.mrb[23].mxu0  ;;  %2748 = vmatmul.mubr.f32.gmra.mrb[128].mxu0 %v12127_v15  ;;  %10265 = vmatprep.mubr.f32.mxu1 %v12080_v50 }
 0x299   : > { %v2238_v47 = vrot.slane %v1585_v41, 2  ;;  %2752 = vmatprep.mubr.f32.mxu0 %v12055_v11  ;;  %v12338_v6 = vadd.f32 %v2235_v13, %v2085_v62 }
 0x29a   : > { %v1980_v20 = vsel %vm1970_vm3, %v1977_v27, %v1979_v36  ;;  %v1252_v44 = vpop.f32.mrb[28].mxu1 }
 0x29b   : > { %v1254_v52 = vpop.f32.mrb[29].mxu1  ;;  %v10142_v42 = vpop.f32.mrb[24].mxu0  ;;  %10266 = vmatmul.mubr.f32.gmra.mrb[134].mxu1 %v12085_v51  ;;  %v2086_v48 = vadd.f32 %v1980_v20, %v1241_v29  ;;  %v2240_v63 = vsel %vm2227_vm4, %v2238_v47, %v2239_v60 }
 0x29c   : > { %v1595_v17 = vpop.f32.mrb[25].mxu0  ;;  %2753 = vmatmul.mubr.f32.gmra.mrb[130].mxu0 %v12124_v9  ;;  %10268 = vmatprep.mubr.f32.mxu1 %v12089_v53  ;;  %v1981_v25 = vrot.slane %v1254_v52, 1  ;;  %v2243_v53 = vrot.slane %v10142_v42, 2 }
 0x29d   : > { %v2241_v50 = vrot.slane %v1595_v17, 2  ;;  %2758 = vmatprep.mubr.f32.mxu0 %v12055_v11  ;;  %v12346_v23 = vadd.f32 %v2237_v35, %v2086_v48 }
 0x29e   : > { %v1258_v0 = vpop.f32.mrb[30].mxu1 }
 0x29f   : > { %v1260_v49 = vpop.f32.mrb[31].mxu1  ;;  %v10145_v24 = vpop.f32.mrb[26].mxu0  ;;  %10269 = vmatmul.mubr.f32.gmra.mrb[136].mxu1 %v12095_v56  ;;  %v2242_v51 = vsel %vm2227_vm4, %v2239_v60, %v2241_v50 }
 0x2a0   : > { %v1982_v28 = vrot.slane %v1260_v49, 1  ;;  %v2246_v54 = vrot.slane %v10145_v24, 2  ;;  %v1605_v19 = vpop.f32.mrb[27].mxu0  ;;  %2759 = vmatmul.mubr.f32.gmra.mrb[132].mxu0 %v12133_v14  ;;  %10271 = vmatprep.mubr.f32.mxu1 %v12102_v59 }
 0x2a1   : > { %v2244_v32 = vrot.slane %v1605_v19, 2  ;;  %2764 = vmatprep.mubr.f32.mxu0 %v12055_v11 }
 0x2a2   : > { %v1983_v29 = vsel %vm1970_vm3, %v1981_v25, %v1982_v28  ;;  %v1264_v38 = vpop.f32.mrb[32].mxu1 }
 0x2a3   : > { %v1265_v21 = vpop.f32.mrb[33].mxu1  ;;  %v10148_v2 = vpop.f32.mrb[28].mxu0  ;;  %10272 = vmatmul.mubr.f32.gmra.mrb[138].mxu1 %v12099_v57  ;;  %v2087_v56 = vadd.f32 %v1983_v29, %v1252_v44  ;;  %v2245_v39 = vsel %vm2227_vm4, %v2243_v53, %v2244_v32  ;;  %v12357_v27 = vsel %vm2227_vm4, %v2244_v32, %v2246_v54 }
 0x2a4   : > { %v1984_v30 = vrot.slane %v1265_v21, 1  ;;  %v2249_v31 = vrot.slane %v10148_v2, 2  ;;  %v1615_v59 = vpop.f32.mrb[29].mxu0  ;;  %2765 = vmatmul.mubr.f32.gmra.mrb[134].mxu0 %v12136_v18  ;;  %10274 = vmatprep.mubr.f32.mxu1 %v12109_v3 }
 0x2a5   : > { %v2248_v40 = vrot.slane %v1615_v59, 2  ;;  %2769 = vmatprep.mubr.f32.mxu0 %v12055_v11  ;;  %v12362_v33 = vadd.f32 %v2240_v63, %v2087_v56 }
 0x2a6   : > { %v1985_v57 = vsel %vm1970_vm3, %v1982_v28, %v1984_v30  ;;  %v1269_v22 = vpop.f32.mrb[34].mxu1 }
 0x2a7   : > { %v1271_v37 = vpop.f32.mrb[35].mxu1  ;;  %v10151_v12 = vpop.f32.mrb[30].mxu0  ;;  %10275 = vmatmul.mubr.f32.gmra.mrb[140].mxu1 %v12112_v4  ;;  %v2088_v43 = vadd.f32 %v1985_v57, %v1258_v0  ;;  %v12367_v62 = vsel %vm2227_vm4, %v2248_v40, %v2249_v31 }
 0x2a8   : > { %v1625_v13 = vpop.f32.mrb[31].mxu0  ;;  %2770 = vmatmul.mubr.f32.gmra.mrb[136].mxu0 %v12142_v26  ;;  %10277 = vmatprep.mubr.f32.mxu1 %v12116_v5  ;;  %v1986_v47 = vrot.slane %v1271_v37, 1  ;;  %v2253_v5 = vrot.slane %v10151_v12, 2 }
 0x2a9   : > { %v2251_v3 = vrot.slane %v1625_v13, 2  ;;  %2775 = vmatprep.mubr.f32.mxu0 %v12055_v11  ;;  %v12372_v35 = vadd.f32 %v2242_v51, %v2088_v43 }
 0x2aa   : > { %v1275_v36 = vpop.f32.mrb[36].mxu1 }
 0x2ab   : > { %v1277_v60 = vpop.f32.mrb[37].mxu1  ;;  %v10154_v41 = vpop.f32.mrb[32].mxu0  ;;  %10278 = vmatmul.mubr.f32.gmra.mrb[142].mxu1 %v12120_v7  ;;  %v12376_v4 = vsel %vm2227_vm4, %v2249_v31, %v2251_v3 }
 0x2ac   : > { %v1987_v20 = vrot.slane %v1277_v60, 1  ;;  %v2256_v44 = vrot.slane %v10154_v41, 2  ;;  %v1635_v52 = vpop.f32.mrb[33].mxu0  ;;  %2776 = vmatmul.mubr.f32.gmra.mrb[138].mxu0 %v12146_v34  ;;  %10280 = vmatprep.mubr.f32.mxu1 %v12127_v15  ;;  %v12422_v60 = vld [vmem:[#allocation2] sm:$0xff] }
 0x2ad   : > { %v2254_v42 = vrot.slane %v1635_v52, 2  ;;  %2781 = vmatprep.mubr.f32.mxu0 %v12055_v11 }
 0x2ae   : > { %v1988_v48 = vsel %vm1970_vm3, %v1986_v47, %v1987_v20  ;;  %v1281_v63 = vpop.f32.mrb[38].mxu1 }
 0x2af   : > { %v1282_v17 = vpop.f32.mrb[39].mxu1  ;;  %v10157_v7 = vpop.f32.mrb[34].mxu0  ;;  %10281 = vmatmul.mubr.f32.gmra.mrb[144].mxu1 %v12124_v9  ;;  %v2089_v50 = vadd.f32 %v1988_v48, %v1269_v22  ;;  %v12384_v0 = vsel %vm2227_vm4, %v2253_v5, %v2254_v42  ;;  %v12387_v49 = vsel %vm2227_vm4, %v2254_v42, %v2256_v44 }
 0x2b0   : > { %v1989_v24 = vrot.slane %v1282_v17, 1  ;;  %v2259_v15 = vrot.slane %v10157_v7, 2  ;;  %v1645_v51 = vpop.f32.mrb[35].mxu0  ;;  %2782 = vmatmul.mubr.f32.gmra.mrb[140].mxu0 %v12155_v46  ;;  %10283 = vmatprep.mubr.f32.mxu1 %v12133_v14 }
 0x2b1   : > { %v2258_v25 = vrot.slane %v1645_v51, 2  ;;  %2786 = vmatprep.mubr.f32.mxu0 %v12055_v11  ;;  %v12392_v28 = vadd.f32 %v2245_v39, %v2089_v50 }
 0x2b2   : > { %v1990_v9 = vsel %vm1970_vm3, %v1987_v20, %v1989_v24  ;;  %v1286_v54 = vpop.f32.mrb[40].mxu1 }
 0x2b3   : > { %v1288_v19 = vpop.f32.mrb[41].mxu1  ;;  %v10160_v53 = vpop.f32.mrb[36].mxu0  ;;  %10284 = vmatmul.mubr.f32.gmra.mrb[146].mxu1 %v12136_v18  ;;  %v2090_v32 = vadd.f32 %v1990_v9, %v1275_v36  ;;  %v12397_v29 = vsel %vm2227_vm4, %v2258_v25, %v2259_v15  ;;  %v12448_v25 = vld [vmem:[#allocation2 + $0x188] sm:$0xff] }
 0x2b4   : > { %v1655_v38 = vpop.f32.mrb[37].mxu0  ;;  %2787 = vmatmul.mubr.f32.gmra.mrb[142].mxu0 %v12152_v45  ;;  %10286 = vmatprep.mubr.f32.mxu1 %v12142_v26  ;;  %v1991_v30 = vrot.slane %v1288_v19, 1  ;;  %v2263_v26 = vrot.slane %v10160_v53, 2 }
 0x2b5   : > { %v2261_v14 = vrot.slane %v1655_v38, 2  ;;  %2792 = vmatprep.mubr.f32.mxu0 %v12055_v11  ;;  %v12403_v21 = vadd.f32 %v12357_v27, %v2090_v32 }
 0x2b6   : > { %v1292_v2 = vpop.f32.mrb[42].mxu1 }
 0x2b7   : > { %v1294_v56 = vpop.f32.mrb[43].mxu1  ;;  %v10163_v39 = vpop.f32.mrb[38].mxu0  ;;  %10287 = vmatmul.mubr.f32.gmra.mrb[148].mxu1 %v12146_v34  ;;  %v12407_v18 = vsel %vm2227_vm4, %v2259_v15, %v2261_v14 }
 0x2b8   : > { %v1992_v31 = vrot.slane %v1294_v56, 1  ;;  %v2266_v59 = vrot.slane %v10163_v39, 2  ;;  %v1665_v40 = vpop.f32.mrb[39].mxu0  ;;  %2793 = vmatmul.mubr.f32.gmra.mrb[144].mxu0 %v12167_v58  ;;  %10289 = vmatprep.mubr.f32.mxu1 %v12155_v46 }
 0x2b9   : > { %v2264_v57 = vrot.slane %v1665_v40, 2  ;;  %2798 = vmatprep.mubr.f32.mxu0 %v12055_v11  ;;  %v12465_v40 = vld [vmem:[#allocation2 + $0x190] sm:$0xff] }
 0x2ba   : > { %v1993_v27 = vsel %vm1970_vm3, %v1991_v30, %v1992_v31  ;;  %v1298_v22 = vpop.f32.mrb[44].mxu1 }
 0x2bb   : > { %v1299_v37 = vpop.f32.mrb[45].mxu1  ;;  %v10166_v34 = vpop.f32.mrb[40].mxu0  ;;  %10290 = vmatmul.mubr.f32.gmra.mrb[150].mxu1 %v12152_v45  ;;  %v2091_v12 = vadd.f32 %v1993_v27, %v1286_v54  ;;  %v12415_v43 = vsel %vm2227_vm4, %v2263_v26, %v2264_v57  ;;  %v12418_v13 = vsel %vm2227_vm4, %v2264_v57, %v2266_v59 }
 0x2bc   : > { %v1994_v3 = vrot.slane %v1299_v37, 1  ;;  %v2269_v46 = vrot.slane %v10166_v34, 2  ;;  %v1675_v36 = vpop.f32.mrb[41].mxu0  ;;  %2799 = vmatmul.mubr.f32.gmra.mrb[146].mxu0 %v12170_v61  ;;  %10292 = vmatprep.mubr.f32.mxu1 %v12167_v58 }
 0x2bd   : > { %v2268_v11 = vrot.slane %v1675_v36, 2  ;;  %2803 = vmatprep.mubr.f32.mxu0 %v12422_v60  ;;  %v12426_v45 = vadd.f32 %v12367_v62, %v2091_v12  ;;  %v3752_v12 = vld [vmem:[#allocation2 + $0x30] sm:$0xff] }
 0x2be   : > { %v1995_v41 = vsel %vm1970_vm3, %v1992_v31, %v1994_v3  ;;  %v1303_v47 = vpop.f32.mrb[46].mxu1 }
 0x2bf   : > { %v1305_v20 = vpop.f32.mrb[47].mxu1  ;;  %v10169_v44 = vpop.f32.mrb[42].mxu0  ;;  %10293 = vmatmul.mubr.f32.gmra.mrb[152].mxu1 %v12170_v61  ;;  %v2092_v52 = vadd.f32 %v1995_v41, %v1292_v2  ;;  %v12431_v5 = vsel %vm2227_vm4, %v2268_v11, %v2269_v46 }
 0x2c0   : > { %v1685_v58 = vpop.f32.mrb[43].mxu0  ;;  %2804 = vmatmul.mubr.f32.gmra.mrb[148].mxu0 %v12176_v1  ;;  %10295 = vmatprep.mubr.f32.mxu1 %v12176_v1  ;;  %v1996_v7 = vrot.slane %v1305_v20, 1  ;;  %v12445_v1 = vld [vmem:[#allocation2 + $0x180] sm:$0xff] }
 0x2c1   : > { %v2271_v42 = vrot.slane %v1685_v58, 2  ;;  %2809 = vmatprep.mubr.f32.mxu0 %v12422_v60  ;;  %v12437_v62 = vadd.f32 %v12376_v4, %v2092_v52  ;;  %v2273_v4 = vrot.slane %v10169_v44, 2  ;;  %v5319_v58 = vld [vmem:[#allocation8 + $0x20] sm:$0xff] }
 0x2c2   : > { %v1309_v48 = vpop.f32.mrb[48].mxu1 }
 0x2c3   : > { %v1311_v63 = vpop.f32.mrb[49].mxu1  ;;  %v10172_v17 = vpop.f32.mrb[44].mxu0  ;;  %10296 = vmatmul.mubr.f32.gmra.mrb[154].mxu1 %v12180_v16  ;;  %v12441_v61 = vsel %vm2227_vm4, %v2269_v46, %v2271_v42 }
 0x2c4   : > { %v1997_v50 = vrot.slane %v1311_v63, 1  ;;  %v2276_v24 = vrot.slane %v10172_v17, 2  ;;  %v1695_v15 = vpop.f32.mrb[45].mxu0  ;;  %2810 = vmatmul.mubr.f32.gmra.mrb[150].mxu0 %v12180_v16  ;;  %10298 = vmatprep.mubr.f32.mxu1 %v12185_v10  ;;  %v3753_v63 = vld [vmem:[#allocation2 + $0x38] sm:$0xff] }
 0x2c5   : > { %v2274_v51 = vrot.slane %v1695_v15, 2  ;;  %2815 = vmatprep.mubr.f32.mxu0 %v12422_v60  ;;  %v5315_v15 = vld [vmem:[#allocation8] sm:$0xff] }
 0x2c6   : > { %v1998_v9 = vsel %vm1970_vm3, %v1996_v7, %v1997_v50  ;;  %v1315_v54 = vpop.f32.mrb[50].mxu1 }
 0x2c7   : > { %v1316_v19 = vpop.f32.mrb[51].mxu1  ;;  %v10175_v53 = vpop.f32.mrb[46].mxu0  ;;  %10299 = vmatmul.mubr.f32.gmra.mrb[156].mxu1 %v12445_v1  ;;  %v2093_v32 = vadd.f32 %v1998_v9, %v1303_v47  ;;  %v12453_v16 = vsel %vm2227_vm4, %v2273_v4, %v2274_v51  ;;  %v12456_v38 = vsel %vm2227_vm4, %v2274_v51, %v2276_v24  ;;  %v5318_v4 = vld [vmem:[#allocation8 + $0x18] sm:$0xff] }
 0x2c8   : > { %v1999_v14 = vrot.slane %v1316_v19, 1  ;;  %v2279_v2 = vrot.slane %v10175_v53, 2  ;;  %v1705_v56 = vpop.f32.mrb[47].mxu0  ;;  %2816 = vmatmul.mubr.f32.gmra.mrb[152].mxu0 %v12185_v10  ;;  %10301 = vmatprep.mubr.f32.mxu1 %v12448_v25 }
 0x2c9   : > { %v2278_v39 = vrot.slane %v1705_v56, 2  ;;  %2820 = vmatprep.mubr.f32.mxu0 %v12422_v60  ;;  %v12462_v30 = vadd.f32 %v12384_v0, %v2093_v32  ;;  %v5317_v32 = vld [vmem:[#allocation8 + $0x10] sm:$0xff] }
 0x2ca   : > { %v2000_v31 = vsel %vm1970_vm3, %v1997_v50, %v1999_v14  ;;  %v1320_v59 = vpop.f32.mrb[52].mxu1  ;;  %v5320_v14 = vld [vmem:[#allocation8 + $0x28] sm:$0xff] }
 0x2cb   : > { %v1322_v26 = vpop.f32.mrb[53].mxu1  ;;  %v10178_v57 = vpop.f32.mrb[48].mxu0  ;;  %10302 = vmatmul.mubr.f32.gmra.mrb[158].mxu1 %v12465_v40  ;;  %v2094_v27 = vadd.f32 %v2000_v31, %v1309_v48  ;;  %v12469_v10 = vsel %vm2227_vm4, %v2278_v39, %v2279_v2  ;;  %v10930_v39 = vpack.c.bf16 %v5318_v4, %v5315_v15  ;;  %v10960_v31 = vpack.c.bf16 %v5320_v14, %v5317_v32  ;;  %v5324_v32 = vld [vmem:[#allocation8 + $0x48] sm:$0xff] }
 0x2cc   : > { %v1715_v22 = vpop.f32.mrb[49].mxu0  ;;  %2821 = vmatmul.mubr.f32.gmra.mrb[154].mxu0 %v12445_v1  ;;  %3913 = vmatprep.mubr.f32.mxu1 %v12422_v60  ;;  %v2001_v11 = vrot.slane %v1322_v26, 1  ;;  %v2283_v44 = vrot.slane %v10178_v57, 2  ;;  %v3754_v57 = vld [vmem:[#allocation2 + $0x40] sm:$0xff] }
 0x2cd   : > { %v2281_v0 = vrot.slane %v1715_v22, 2  ;;  %2826 = vmatprep.mubr.f32.mxu0 %v12422_v60  ;;  %v12475_v37 = vadd.f32 %v12387_v49, %v2094_v27  ;;  %v5316_v49 = vld [vmem:[#allocation8 + $0x8] sm:$0xff]  ;;  %10961 = vmatprep.subr.bf16.mxu1 %v10960_v31 }
 0x2ce   : > { %v1326_v34 = vpop.f32.mrb[54].mxu1  ;;  %v10928_v17 = vpack.c.bf16 %v5319_v58, %v5316_v49 }
 0x2cf   : > { %v1328_v3 = vpop.f32.mrb[55].mxu1  ;;  %v10181_v46 = vpop.f32.mrb[50].mxu0  ;;  %3914 = vmatmul.mubr.f32.vlgmr.msra.gmra.mrb[160].mxu1 %v3752_v12  ;;  %v12478_v36 = vsel %vm2227_vm4, %v2279_v2, %v2281_v0 }
 0x2d0   : > { %v2002_v41 = vrot.slane %v1328_v3, 1  ;;  %v2286_v47 = vrot.slane %v10181_v46, 2  ;;  %v1725_v20 = vpop.f32.mrb[51].mxu0  ;;  %2827 = vmatmul.mubr.f32.gmra.mrb[156].mxu0 %v12448_v25  ;;  %3919 = vmatprep.mubr.f32.mxu1 %v12422_v60 }
 0x2d1   : > { %v2284_v52 = vrot.slane %v1725_v20, 2  ;;  %2832 = vmatprep.mubr.f32.mxu0 %v12422_v60  ;;  %10929 = vmatprep.subr.bf16.mxu0 %v10928_v17  ;;  %v5325_v17 = vld [vmem:[#allocation8 + $0x50] sm:$0xff] }
 0x2d2   : > { %v2003_v42 = vsel %vm1970_vm3, %v2001_v11, %v2002_v41  ;;  %v1332_v48 = vpop.f32.mrb[56].mxu1  ;;  %10963 = vmatpush3.bf16.msra.mxu1 %v10960_v31 }
 0x2d3   : > { %v1333_v7 = vpop.f32.mrb[57].mxu1  ;;  %v10184_v50 = vpop.f32.mrb[52].mxu0  ;;  %3920 = vmatmul.mubr.f32.gmra.mrb[162].mxu1 %v3753_v63  ;;  %v2095_v24 = vadd.f32 %v2003_v42, %v1320_v59  ;;  %v12485_v51 = vsel %vm2227_vm4, %v2283_v44, %v2284_v52  ;;  %v12488_v9 = vsel %vm2227_vm4, %v2284_v52, %v2286_v47  ;;  %v3756_v42 = vld [vmem:[#allocation2 + $0x50] sm:$0xff] }
 0x2d4   : > { %v2004_v54 = vrot.slane %v1333_v7, 1  ;;  %v2289_v19 = vrot.slane %v10184_v50, 2  ;;  %v1735_v53 = vpop.f32.mrb[53].mxu0  ;;  %2833 = vmatmul.mubr.f32.gmra.mrb[158].mxu0 %v12465_v40  ;;  %3925 = vmatprep.mubr.f32.mxu1 %v12422_v60 }
 0x2d5   : > { %v2288_v2 = vrot.slane %v1735_v53, 2  ;;  %10336 = vmatprep.mubr.f32.mxu0 %v3752_v12  ;;  %v12493_v56 = vadd.f32 %v12397_v29, %v2095_v24  ;;  %v5321_v53 = vld [vmem:[#allocation8 + $0x30] sm:$0xff] }
 0x2d6   : > { %v2005_v59 = vsel %vm1970_vm3, %v2002_v41, %v2004_v54  ;;  %v1337_v26 = vpop.f32.mrb[58].mxu1  ;;  %v3755_v41 = vld [vmem:[#allocation2 + $0x48] sm:$0xff]  ;;  %v3757_v54 = vld [vmem:[#allocation2 + $0x58] sm:$0xff] }
 0x2d7   : > { %v1339_v27 = vpop.f32.mrb[59].mxu1  ;;  %v10187_v22 = vpop.f32.mrb[54].mxu0  ;;  %3926 = vmatmul.mubr.f32.gmra.mrb[164].mxu1 %v3754_v57  ;;  %v2096_v0 = vadd.f32 %v2005_v59, %v1326_v34  ;;  %v12497_v3 = vsel %vm2227_vm4, %v2288_v2, %v2289_v19 }
 0x2d8   : > { %v1745_v46 = vpop.f32.mrb[55].mxu0  ;;  %10337 = vmatmul.mubr.f32.vlgmr.msra.gmra.mrb[160].mxu0 %v3753_v63  ;;  %3930 = vmatprep.mubr.f32.mxu1 %v12422_v60  ;;  %v2006_v44 = vrot.slane %v1339_v27, 1  ;;  %v5322_v63 = vld [vmem:[#allocation8 + $0x38] sm:$0xff]  ;;  %v10934_v27 = vpack.c.bf16 %v5324_v32, %v5321_v53 }
 0x2d9   : > { %v2291_v29 = vrot.slane %v1745_v46, 2  ;;  %10339 = vmatprep.mubr.f32.mxu0 %v3754_v57  ;;  %v12501_v12 = vadd.f32 %v12407_v18, %v2096_v0  ;;  %10931 = vmatpush1.bf16.msra.mxu0 %v10930_v39  ;;  %v2293_v18 = vrot.slane %v10187_v22, 2  ;;  %v10932_v24 = vpack.c.bf16 %v5325_v17, %v5322_v63  ;;  %v3758_v57 = vld [vmem:[#allocation2 + $0x60] sm:$0xff]  ;;  %v3761_v63 = vld [vmem:[#allocation2 + $0x78] sm:$0xff] }
 0x2da   : > { %v1343_v11 = vpop.f32.mrb[60].mxu1 }
 0x2db   : > { %v1345_v47 = vpop.f32.mrb[61].mxu1  ;;  %v10190_v20 = vpop.f32.mrb[56].mxu0  ;;  %3931 = vmatmul.mubr.f32.gmra.mrb[166].mxu1 %v3755_v41  ;;  %v12504_v34 = vsel %vm2227_vm4, %v2289_v19, %v2291_v29  ;;  %10933 = vmatprep.subr.bf16.mxu0 %v10932_v24 }
 0x2dc   : > { %v2007_v52 = vrot.slane %v1345_v47, 1  ;;  %v2296_v49 = vrot.slane %v10190_v20, 2  ;;  %v1755_v58 = vpop.f32.mrb[57].mxu0  ;;  %10340 = vmatmul.mubr.f32.gmra.mrb[162].mxu0 %v3755_v41  ;;  %3936 = vmatprep.mubr.f32.mxu1 %v12422_v60  ;;  %v3759_v47 = vld [vmem:[#allocation2 + $0x68] sm:$0xff] }
 0x2dd   : > { %v2294_v48 = vrot.slane %v1755_v58, 2  ;;  %10342 = vmatprep.mubr.f32.mxu0 %v3756_v42  ;;  %10935 = vmatpush1.bf16.msra.mxu0 %v10934_v27  ;;  %v3760_v58 = vld [vmem:[#allocation2 + $0x70] sm:$0xff] }
 0x2de   : > { %v2008_v7 = vsel %vm1970_vm3, %v2006_v44, %v2007_v52  ;;  %v1349_v50 = vpop.f32.mrb[62].mxu1 }
 0x2df   : > { %v1350_v15 = vpop.f32.mrb[63].mxu1  ;;  %v10193_v4 = vpop.f32.mrb[58].mxu0  ;;  %3937 = vmatmul.mubr.f32.gmra.mrb[168].mxu1 %v3756_v42  ;;  %v2097_v19 = vadd.f32 %v2008_v7, %v1337_v26  ;;  %v12509_v14 = vsel %vm2227_vm4, %v2293_v18, %v2294_v48  ;;  %v12512_v2 = vsel %vm2227_vm4, %v2294_v48, %v2296_v49 }
 0x2e0   : > { %v2009_v39 = vrot.slane %v1350_v15, 1  ;;  %v2299_v31 = vrot.slane %v10193_v4, 2  ;;  %v1765_v59 = vpop.f32.mrb[59].mxu0  ;;  %10343 = vmatmul.mubr.f32.gmra.mrb[164].mxu0 %v3757_v54  ;;  %3942 = vmatprep.mubr.f32.mxu1 %v12422_v60  ;;  %v12529_v15 = vld [vmem:[#allocation2 + $0x80] sm:$0xff] }
 0x2e1   : > { %v2298_v22 = vrot.slane %v1765_v59, 2  ;;  %10345 = vmatprep.mubr.f32.mxu0 %v3758_v57  ;;  %v12516_v26 = vadd.f32 %v12415_v43, %v2097_v19  ;;  %v5331_v19 = vld [vmem:[#allocation8 + $0x80] sm:$0xff] }
 0x2e2   : > { %v2010_v0 = vsel %vm1970_vm3, %v2007_v52, %v2009_v39  ;;  %v1354_v46 = vpop.f32.mrb[64].mxu1 }
 0x2e3   : > { %v1356_v29 = vpop.f32.mrb[65].mxu1  ;;  %v10196_v41 = vpop.f32.mrb[60].mxu0  ;;  %3943 = vmatmul.mubr.f32.gmra.mrb[170].mxu1 %v3757_v54  ;;  %v2098_v20 = vadd.f32 %v2010_v0, %v1343_v11  ;;  %v12520_v44 = vsel %vm2227_vm4, %v2298_v22, %v2299_v31  ;;  %v5328_v54 = vld [vmem:[#allocation8 + $0x68] sm:$0xff]  ;;  %v5327_v22 = vld [vmem:[#allocation8 + $0x60] sm:$0xff]  ;;  %v5330_v0 = vld [vmem:[#allocation8 + $0x78] sm:$0xff] }
 0x2e4   : > { %v1775_v49 = vpop.f32.mrb[61].mxu0  ;;  %10346 = vmatmul.mubr.f32.gmra.mrb[166].mxu0 %v3759_v47  ;;  %3947 = vmatprep.mubr.f32.mxu1 %v12422_v60  ;;  %v2011_v17 = vrot.slane %v1356_v29, 1  ;;  %v2303_v4 = vrot.slane %v10196_v41, 2  ;;  %v10936_v39 = vpack.c.bf16 %v5331_v19, %v5328_v54  ;;  %v12552_v54 = vld [vmem:[#allocation2 + $0x98] sm:$0xff] }
 0x2e5   : > { %v2301_v43 = vrot.slane %v1775_v49, 2  ;;  %10348 = vmatprep.mubr.f32.mxu0 %v3760_v58  ;;  %v12524_v42 = vadd.f32 %v12418_v13, %v2098_v20 }
 0x2e6   : > { %v1360_v52 = vpop.f32.mrb[66].mxu1  ;;  %10937 = vmatprep.subr.bf16.mxu0 %v10936_v39 }
 0x2e7   : > { %v1362_v18 = vpop.f32.mrb[67].mxu1  ;;  %v10199_v48 = vpop.f32.mrb[62].mxu0  ;;  %3948 = vmatmul.mubr.f32.gmra.mrb[172].mxu1 %v3758_v57  ;;  %v12527_v11 = vsel %vm2227_vm4, %v2299_v31, %v2301_v43  ;;  %v12534_v57 = vld [vmem:[#allocation2 + $0x88] sm:$0xff] }
 0x2e8   : > { %v2012_v7 = vrot.slane %v1362_v18, 1  ;;  %v2306_v50 = vrot.slane %v10199_v48, 2  ;;  %v1785_v24 = vpop.f32.mrb[63].mxu0  ;;  %10349 = vmatmul.mubr.f32.gmra.mrb[168].mxu0 %v3761_v63  ;;  %3953 = vmatprep.mubr.f32.mxu1 %v12422_v60  ;;  %v12544_v18 = vld [vmem:[#allocation2 + $0x90] sm:$0xff]  ;;  %v5326_v48 = vld [vmem:[#allocation8 + $0x58] sm:$0xff] }
 0x2e9   : > { %v2304_v13 = vrot.slane %v1785_v24, 2  ;;  %10351 = vmatprep.mubr.f32.mxu0 %v12529_v15 }
 0x2ea   : > { %v2013_v53 = vsel %vm1970_vm3, %v2011_v17, %v2012_v7  ;;  %v1366_v32 = vpop.f32.mrb[68].mxu1 }
 0x2eb   : > { %v1367_v31 = vpop.f32.mrb[69].mxu1  ;;  %v2567_v59 = vpop.f32.mrb[64].mxu0  ;;  %3954 = vmatmul.mubr.f32.gmra.mrb[174].mxu1 %v3759_v47  ;;  %v2099_v27 = vadd.f32 %v2013_v53, %v1354_v46  ;;  %v12537_v29 = vsel %vm2227_vm4, %v2303_v4, %v2304_v13  ;;  %v12540_v41 = vsel %vm2227_vm4, %v2304_v13, %v2306_v50  ;;  %v10938_v47 = vpack.c.bf16 %v5330_v0, %v5327_v22  ;;  %v5323_v46 = vld [vmem:[#allocation8 + $0x40] sm:$0xff] }
 0x2ec   : > { %v2014_v20 = vrot.slane %v1367_v31, 1  ;;  %v3175_v49 = vadd.f32 %v2567_v59, %v12164_v55  ;;  %v2569_v43 = vpop.f32.mrb[65].mxu0  ;;  %10352 = vmatmul.mubr.f32.gmra.mrb[170].mxu0 %v12534_v57  ;;  %3959 = vmatprep.mubr.f32.mxu1 %v12422_v60  ;;  %v10964_v50 = vpack.c.bf16 %v5326_v48, %v5323_v46  ;;  %v5334_v46 = vld [vmem:[#allocation8 + $0x98] sm:$0xff]  ;;  %v5337_v48 = vld [vmem:[#allocation8 + $0xb0] sm:$0xff] }
 0x2ed   : > { %10354 = vmatprep.mubr.f32.mxu0 %v12544_v18  ;;  %v12549_v17 = vadd.f32 %v12431_v5, %v2099_v27  ;;  %10939 = vmatpush1.bf16.msra.mxu0 %v10938_v47  ;;  %v12556_v5 = vld [vmem:[#allocation2 + $0xa0] sm:$0xff]  ;;  %v3319_v39 = vrot.slane %v2569_v43, 1  ;;  %v12564_v27 = vld [vmem:[#allocation2 + $0xa8] sm:$0xff]  ;;  %v12567_v43 = vld [vmem:[#allocation2 + $0xb0] sm:$0xff] }
 0x2ee   : > { %v2015_v24 = vsel %vm1970_vm3, %v2012_v7, %v2014_v20  ;;  %v1371_v55 = vpop.f32.mrb[70].mxu1  ;;  %10965 = vmatprep.subr.bf16.mxu1 %v10964_v50 }
 0x2ef   : > { %v1373_v4 = vpop.f32.mrb[71].mxu1  ;;  %v2573_v13 = vpop.f32.mrb[66].mxu0  ;;  %3960 = vmatmul.mubr.f32.gmra.mrb[176].mxu1 %v3760_v58  ;;  %v2100_v19 = vadd.f32 %v2015_v24, %v1360_v52  ;;  %v10940_v24 = vpack.c.bf16 %v5337_v48, %v5334_v46 }
 0x2f0   : > { %v3176_v53 = vadd.f32 %v2573_v13, %v12326_v8  ;;  %v2575_v32 = vpop.f32.mrb[67].mxu0  ;;  %10355 = vmatmul.mubr.f32.gmra.mrb[172].mxu0 %v12552_v54  ;;  %3964 = vmatprep.mubr.f32.mxu1 %v12422_v60  ;;  %v2016_v22 = vrot.slane %v1373_v4, 1 }
 0x2f1   : > { %v3320_v7 = vrot.slane %v2575_v32, 1  ;;  %10357 = vmatprep.mubr.f32.mxu0 %v12556_v5  ;;  %v12561_v31 = vadd.f32 %v12441_v61, %v2100_v19  ;;  %10967 = vmatpush3.bf16.msra.mxu1 %v10964_v50  ;;  %v12576_v32 = vld [vmem:[#allocation2 + $0xb8] sm:$0xff] }
 0x2f2   : > { %v1377_v58 = vpop.f32.mrb[72].mxu1  ;;  %10941 = vmatprep.subr.bf16.mxu0 %v10940_v24 }
 0x2f3   : > { %14369 = vst [vmem:[#allocation15_spill] sm:$0xff] %v12561_v31  ;;  %v3321_v52 = vsel %vm1970_vm3, %v3319_v39, %v3320_v7  ;;  %v1379_v59 = vpop.f32.mrb[73].mxu1  ;;  %v2579_v8 = vpop.f32.mrb[68].mxu0  ;;  %3965 = vmatmul.mubr.f32.gmra.mrb[178].mxu1 %v3761_v63 }
 0x2f4   : > { %v2017_v0 = vrot.slane %v1379_v59, 1  ;;  %v2580_v20 = vpop.f32.mrb[69].mxu0  ;;  %10358 = vmatmul.mubr.f32.gmra.mrb[174].mxu0 %v12564_v27  ;;  %3970 = vmatprep.mubr.f32.mxu1 %v12422_v60  ;;  %v12570_v61 = vadd.f32 %v3321_v52, %v3175_v49  ;;  %v5333_v49 = vld [vmem:[#allocation8 + $0x90] sm:$0xff]  ;;  %v5336_v52 = vld [vmem:[#allocation8 + $0xa8] sm:$0xff] }
 0x2f5   : > { %v3322_v47 = vrot.slane %v2580_v20, 1  ;;  %10360 = vmatprep.mubr.f32.mxu0 %v12567_v43 }
 0x2f6   : > { %v2018_v63 = vsel %vm1970_vm3, %v2016_v22, %v2017_v0  ;;  %v1383_v50 = vpop.f32.mrb[74].mxu1  ;;  %v12580_v22 = vld [vmem:[#allocation2 + $0xc0] sm:$0xff] }
 0x2f7   : > { %v3323_v4 = vsel %vm1970_vm3, %v3320_v7, %v3322_v47  ;;  %v1384_v13 = vpop.f32.mrb[75].mxu1  ;;  %v2584_v19 = vpop.f32.mrb[70].mxu0  ;;  %3971 = vmatmul.mubr.f32.gmra.mrb[180].mxu1 %v12529_v15  ;;  %v2101_v39 = vadd.f32 %v2018_v63, %v1371_v55  ;;  %v10942_v7 = vpack.c.bf16 %v5336_v52, %v5333_v49  ;;  %v12591_v63 = vld [vmem:[#allocation2 + $0xc8] sm:$0xff] }
 0x2f8   : > { %v2019_v59 = vrot.slane %v1384_v13, 1  ;;  %v3177_v8 = vadd.f32 %v2584_v19, %v12338_v6  ;;  %v2586_v20 = vpop.f32.mrb[71].mxu0  ;;  %10361 = vmatmul.mubr.f32.gmra.mrb[176].mxu0 %v12576_v32  ;;  %3976 = vmatprep.mubr.f32.mxu1 %v12422_v60  ;;  %v12583_v47 = vadd.f32 %v3323_v4, %v3176_v53  ;;  %v12595_v13 = vld [vmem:[#allocation2 + $0xd0] sm:$0xff] }
 0x2f9   : > { %10363 = vmatprep.mubr.f32.mxu0 %v12580_v22  ;;  %v12587_v15 = vadd.f32 %v12453_v16, %v2101_v39  ;;  %10943 = vmatpush1.bf16.msra.mxu0 %v10942_v7  ;;  %v3324_v16 = vrot.slane %v2586_v20, 1  ;;  %v12607_v20 = vld [vmem:[#allocation2 + $0xe0] sm:$0xff] }
 0x2fa   : > { %v2020_v55 = vsel %vm1970_vm3, %v2017_v0, %v2019_v59  ;;  %v1388_v46 = vpop.f32.mrb[76].mxu1 }
 0x2fb   : > { %14370 = vst [vmem:[#allocation16_spill] sm:$0xff] %v12587_v15  ;;  %v1390_v6 = vpop.f32.mrb[77].mxu1  ;;  %v2590_v48 = vpop.f32.mrb[72].mxu0  ;;  %3977 = vmatmul.mubr.f32.gmra.mrb[182].mxu1 %v12534_v57  ;;  %v2102_v50 = vadd.f32 %v2020_v55, %v1377_v58  ;;  %v5340_v55 = vld [vmem:[#allocation8 + $0xc8] sm:$0xff] }
 0x2fc   : > { %v3178_v53 = vadd.f32 %v2590_v48, %v12346_v23  ;;  %v2592_v4 = vpop.f32.mrb[73].mxu0  ;;  %10364 = vmatmul.mubr.f32.gmra.mrb[178].mxu0 %v12591_v63  ;;  %3981 = vmatprep.mubr.f32.mxu1 %v12422_v60  ;;  %v12604_v23 = vld [vmem:[#allocation2 + $0xd8] sm:$0xff]  ;;  %v2021_v49 = vrot.slane %v1390_v6, 1  ;;  %v5343_v48 = vld [vmem:[#allocation8 + $0xe0] sm:$0xff] }
 0x2fd   : > { %v3325_v0 = vrot.slane %v2592_v4, 1  ;;  %10366 = vmatprep.mubr.f32.mxu0 %v12595_v13  ;;  %v12600_v24 = vadd.f32 %v12456_v38, %v2102_v50  ;;  %v10944_v4 = vpack.c.bf16 %v5343_v48, %v5340_v55  ;;  %v5332_v55 = vld [vmem:[#allocation8 + $0x88] sm:$0xff] }
 0x2fe   : > { %v1394_v57 = vpop.f32.mrb[78].mxu1 }
 0x2ff   : > { %14371 = vst [vmem:[#allocation17_spill] sm:$0xff] %v12600_v24  ;;  %v3326_v19 = vsel %vm1970_vm3, %v3324_v16, %v3325_v0  ;;  %v1396_v58 = vpop.f32.mrb[79].mxu1  ;;  %v2596_v39 = vpop.f32.mrb[74].mxu0  ;;  %3982 = vmatmul.mubr.f32.gmra.mrb[184].mxu1 %v12544_v18  ;;  %10945 = vmatprep.subr.bf16.mxu0 %v10944_v4 }
 0x300   : > { %v2022_v52 = vrot.slane %v1396_v58, 1  ;;  %v2597_v59 = vpop.f32.mrb[75].mxu0  ;;  %10367 = vmatmul.mubr.f32.gmra.mrb[180].mxu0 %v12604_v23  ;;  %3987 = vmatprep.mubr.f32.mxu1 %v12422_v60  ;;  %v12610_v38 = vadd.f32 %v3326_v19, %v3177_v8  ;;  %v12616_v39 = vld [vmem:[#allocation2 + $0xe8] sm:$0xff]  ;;  %v5339_v8 = vld [vmem:[#allocation8 + $0xc0] sm:$0xff]  ;;  %v5342_v19 = vld [vmem:[#allocation8 + $0xd8] sm:$0xff] }
 0x301   : > { %v3327_v7 = vrot.slane %v2597_v59, 1  ;;  %10369 = vmatprep.mubr.f32.mxu0 %v12607_v20 }
 0x302   : > { %v2023_v18 = vsel %vm1970_vm3, %v2021_v49, %v2022_v52  ;;  %v1400_v50 = vpop.f32.mrb[80].mxu1  ;;  %v12620_v49 = vld [vmem:[#allocation2 + $0xf0] sm:$0xff] }
 0x303   : > { %v3328_v6 = vsel %vm1970_vm3, %v3325_v0, %v3327_v7  ;;  %v1401_v16 = vpop.f32.mrb[81].mxu1  ;;  %v2601_v58 = vpop.f32.mrb[76].mxu0  ;;  %3988 = vmatmul.mubr.f32.gmra.mrb[186].mxu1 %v12552_v54  ;;  %v2103_v24 = vadd.f32 %v2023_v18, %v1388_v46  ;;  %v10946_v0 = vpack.c.bf16 %v5342_v19, %v5339_v8  ;;  %v5329_v7 = vld [vmem:[#allocation8 + $0x70] sm:$0xff] }
 0x304   : > { %v2024_v59 = vrot.slane %v1401_v16, 1  ;;  %v3179_v15 = vadd.f32 %v2601_v58, %v12362_v33  ;;  %v2603_v31 = vpop.f32.mrb[77].mxu0  ;;  %10370 = vmatmul.mubr.f32.gmra.mrb[182].mxu0 %v12616_v39  ;;  %3993 = vmatprep.mubr.f32.mxu1 %v12422_v60  ;;  %v12623_v48 = vadd.f32 %v3328_v6, %v3178_v53  ;;  %v10968_v46 = vpack.c.bf16 %v5332_v55, %v5329_v7  ;;  %v12631_v58 = vld [vmem:[#allocation2 + $0xf8] sm:$0xff] }
 0x305   : > { %10372 = vmatprep.mubr.f32.mxu0 %v12620_v49  ;;  %v12627_v54 = vadd.f32 %v12469_v10, %v2103_v24  ;;  %10947 = vmatpush1.bf16.msra.mxu0 %v10946_v0  ;;  %v12635_v10 = vld [vmem:[#allocation2 + $0x100] sm:$0xff]  ;;  %v3329_v24 = vrot.slane %v2603_v31, 1  ;;  %v12647_v31 = vld [vmem:[#allocation2 + $0x110] sm:$0xff] }
 0x306   : > { %v2025_v33 = vsel %vm1970_vm3, %v2022_v52, %v2024_v59  ;;  %v1405_v18 = vpop.f32.mrb[82].mxu1  ;;  %10969 = vmatprep.subr.bf16.mxu1 %v10968_v46  ;;  %v12644_v59 = vld [vmem:[#allocation2 + $0x108] sm:$0xff] }
 0x307   : > { %14372 = vst [vmem:[#allocation18_spill] sm:$0xff] %v12627_v54  ;;  %v1407_v50 = vpop.f32.mrb[83].mxu1  ;;  %v2607_v16 = vpop.f32.mrb[78].mxu0  ;;  %3994 = vmatmul.mubr.f32.gmra.mrb[188].mxu1 %v12556_v5  ;;  %v2104_v8 = vadd.f32 %v2025_v33, %v1394_v57  ;;  %v5346_v33 = vld [vmem:[#allocation8 + $0xf8] sm:$0xff] }
 0x308   : > { %v3180_v53 = vadd.f32 %v2607_v16, %v12372_v35  ;;  %v2609_v6 = vpop.f32.mrb[79].mxu0  ;;  %10373 = vmatmul.mubr.f32.gmra.mrb[184].mxu0 %v12631_v58  ;;  %3998 = vmatprep.mubr.f32.mxu1 %v12422_v60  ;;  %v2026_v0 = vrot.slane %v1407_v50, 1  ;;  %v5349_v16 = vld [vmem:[#allocation8 + $0x110] sm:$0xff] }
 0x309   : > { %v3330_v52 = vrot.slane %v2609_v6, 1  ;;  %10375 = vmatprep.mubr.f32.mxu0 %v12635_v10  ;;  %v12640_v4 = vadd.f32 %v12478_v36, %v2104_v8  ;;  %10971 = vmatpush3.bf16.msra.mxu1 %v10968_v46  ;;  %v10948_v6 = vpack.c.bf16 %v5349_v16, %v5346_v33 }
 0x30a   : > { %v1411_v5 = vpop.f32.mrb[84].mxu1 }
 0x30b   : > { %14373 = vst [vmem:[#allocation19_spill] sm:$0xff] %v12640_v4  ;;  %v3331_v57 = vsel %vm1970_vm3, %v3329_v24, %v3330_v52  ;;  %v1413_v19 = vpop.f32.mrb[85].mxu1  ;;  %v2613_v35 = vpop.f32.mrb[80].mxu0  ;;  %3999 = vmatmul.mubr.f32.gmra.mrb[190].mxu1 %v12564_v27  ;;  %10949 = vmatprep.subr.bf16.mxu0 %v10948_v6 }
 0x30c   : > { %v2027_v7 = vrot.slane %v1413_v19, 1  ;;  %v2614_v55 = vpop.f32.mrb[81].mxu0  ;;  %10376 = vmatmul.mubr.f32.gmra.mrb[186].mxu0 %v12644_v59  ;;  %4004 = vmatprep.mubr.f32.mxu1 %v12422_v60  ;;  %v12650_v36 = vadd.f32 %v3331_v57, %v3179_v15  ;;  %v12656_v35 = vld [vmem:[#allocation2 + $0x118] sm:$0xff]  ;;  %v5345_v15 = vld [vmem:[#allocation8 + $0xf0] sm:$0xff]  ;;  %v5348_v57 = vld [vmem:[#allocation8 + $0x108] sm:$0xff] }
 0x30d   : > { %v3332_v46 = vrot.slane %v2614_v55, 1  ;;  %10378 = vmatprep.mubr.f32.mxu0 %v12647_v31 }
 0x30e   : > { %14374 = vst [vmem:[#allocation20_spill] sm:$0xff] %v12650_v36  ;;  %v2028_v27 = vsel %vm1970_vm3, %v2026_v0, %v2027_v7  ;;  %v1417_v8 = vpop.f32.mrb[86].mxu1  ;;  %v12660_v0 = vld [vmem:[#allocation2 + $0x120] sm:$0xff] }
 0x30f   : > { %v3333_v50 = vsel %vm1970_vm3, %v3330_v52, %v3332_v46  ;;  %v1418_v24 = vpop.f32.mrb[87].mxu1  ;;  %v2618_v19 = vpop.f32.mrb[82].mxu0  ;;  %4005 = vmatmul.mubr.f32.gmra.mrb[192].mxu1 %v12567_v43  ;;  %v2105_v4 = vadd.f32 %v2028_v27, %v1405_v18  ;;  %v10950_v52 = vpack.c.bf16 %v5348_v57, %v5345_v15  ;;  %v12671_v27 = vld [vmem:[#allocation2 + $0x128] sm:$0xff] }
 0x310   : > { %v2029_v55 = vrot.slane %v1418_v24, 1  ;;  %v3181_v54 = vadd.f32 %v2618_v19, %v12392_v28  ;;  %v2620_v36 = vpop.f32.mrb[83].mxu0  ;;  %10379 = vmatmul.mubr.f32.gmra.mrb[188].mxu0 %v12656_v35  ;;  %4010 = vmatprep.mubr.f32.mxu1 %v12422_v60  ;;  %v12663_v46 = vadd.f32 %v3333_v50, %v3180_v53  ;;  %v12675_v24 = vld [vmem:[#allocation2 + $0x130] sm:$0xff] }
 0x311   : > { %10381 = vmatprep.mubr.f32.mxu0 %v12660_v0  ;;  %v12667_v43 = vadd.f32 %v12485_v51, %v2105_v4  ;;  %10951 = vmatpush1.bf16.msra.mxu0 %v10950_v52  ;;  %v3334_v51 = vrot.slane %v2620_v36, 1  ;;  %v12687_v36 = vld [vmem:[#allocation2 + $0x140] sm:$0xff] }
 0x312   : > { %14375 = vst [vmem:[#allocation21_spill] sm:$0xff] %v12663_v46  ;;  %v2030_v18 = vsel %vm1970_vm3, %v2027_v7, %v2029_v55  ;;  %v1422_v33 = vpop.f32.mrb[88].mxu1 }
 0x313   : > { %14376 = vst [vmem:[#allocation22_spill] sm:$0xff] %v12667_v43  ;;  %v1424_v28 = vpop.f32.mrb[89].mxu1  ;;  %v2624_v16 = vpop.f32.mrb[84].mxu0  ;;  %4011 = vmatmul.mubr.f32.gmra.mrb[194].mxu1 %v12576_v32  ;;  %v2106_v8 = vadd.f32 %v2030_v18, %v1411_v5  ;;  %v5352_v18 = vld [vmem:[#allocation8 + $0x128] sm:$0xff] }
 0x314   : > { %v3182_v53 = vadd.f32 %v2624_v16, %v12403_v21  ;;  %v2626_v50 = vpop.f32.mrb[85].mxu0  ;;  %10382 = vmatmul.mubr.f32.gmra.mrb[190].mxu0 %v12671_v27  ;;  %4015 = vmatprep.mubr.f32.mxu1 %v12422_v60  ;;  %v12684_v21 = vld [vmem:[#allocation2 + $0x138] sm:$0xff]  ;;  %v2031_v15 = vrot.slane %v1424_v28, 1  ;;  %v5355_v16 = vld [vmem:[#allocation8 + $0x140] sm:$0xff] }
 0x315   : > { %v3335_v4 = vrot.slane %v2626_v50, 1  ;;  %10384 = vmatprep.mubr.f32.mxu0 %v12675_v24  ;;  %v12680_v7 = vadd.f32 %v12488_v9, %v2106_v8  ;;  %v12694_v50 = vld [vmem:[#allocation2 + $0x148] sm:$0xff]  ;;  %v10952_v28 = vpack.c.bf16 %v5355_v16, %v5352_v18 }
 0x316   : > { %v1428_v32 = vpop.f32.mrb[90].mxu1 }
 0x317   : > { %14377 = vst [vmem:[#allocation23_spill] sm:$0xff] %v12680_v7  ;;  %v3336_v6 = vsel %vm1970_vm3, %v3334_v51, %v3335_v4  ;;  %v1430_v5 = vpop.f32.mrb[91].mxu1  ;;  %v2630_v19 = vpop.f32.mrb[86].mxu0  ;;  %4016 = vmatmul.mubr.f32.gmra.mrb[196].mxu1 %v12580_v22  ;;  %10953 = vmatprep.subr.bf16.mxu0 %v10952_v28 }
 0x318   : > { %v2032_v57 = vrot.slane %v1430_v5, 1  ;;  %v2631_v55 = vpop.f32.mrb[87].mxu0  ;;  %10385 = vmatmul.mubr.f32.gmra.mrb[192].mxu0 %v12684_v21  ;;  %4021 = vmatprep.mubr.f32.mxu1 %v12422_v60  ;;  %v12690_v9 = vadd.f32 %v3336_v6, %v3181_v54  ;;  %v5351_v54 = vld [vmem:[#allocation8 + $0x120] sm:$0xff]  ;;  %v5354_v6 = vld [vmem:[#allocation8 + $0x138] sm:$0xff] }
 0x319   : > { %v3337_v52 = vrot.slane %v2631_v55, 1  ;;  %10387 = vmatprep.mubr.f32.mxu0 %v12687_v36  ;;  %v5335_v55 = vld [vmem:[#allocation8 + $0xa0] sm:$0xff]  ;;  %v10954_v18 = vpack.c.bf16 %v5354_v6, %v5351_v54 }
 0x31a   : > { %14378 = vst [vmem:[#allocation24_spill] sm:$0xff] %v12690_v9  ;;  %v2033_v22 = vsel %vm1970_vm3, %v2031_v15, %v2032_v57  ;;  %v1434_v8 = vpop.f32.mrb[92].mxu1  ;;  %v12700_v15 = vld [vmem:[#allocation2 + $0x150] sm:$0xff] }
 0x31b   : > { %v3338_v51 = vsel %vm1970_vm3, %v3335_v4, %v3337_v52  ;;  %v1435_v5 = vpop.f32.mrb[93].mxu1  ;;  %v2635_v19 = vpop.f32.mrb[88].mxu0  ;;  %4022 = vmatmul.mubr.f32.gmra.mrb[198].mxu1 %v12591_v63  ;;  %v2107_v7 = vadd.f32 %v2033_v22, %v1422_v33  ;;  %v5338_v4 = vld [vmem:[#allocation8 + $0xb8] sm:$0xff]  ;;  %10955 = vmatpush1.bf16.msra.mxu0 %v10954_v18  ;;  %v12724_v18 = vld [vmem:[#allocation2 + $0x168] sm:$0xff] }
 0x31c   : > { %v2034_v43 = vrot.slane %v1435_v5, 1  ;;  %v3183_v9 = vadd.f32 %v2635_v19, %v12426_v45  ;;  %v2637_v46 = vpop.f32.mrb[89].mxu0  ;;  %10388 = vmatmul.mubr.f32.gmra.mrb[194].mxu0 %v12694_v50  ;;  %4027 = vmatprep.mubr.f32.mxu1 %v12422_v60  ;;  %v12703_v52 = vadd.f32 %v3338_v51, %v3182_v53  ;;  %v10972_v33 = vpack.c.bf16 %v5338_v4, %v5335_v55  ;;  %v12711_v5 = vld [vmem:[#allocation2 + $0x158] sm:$0xff]  ;;  %v5341_v53 = vld [vmem:[#allocation8 + $0xd0] sm:$0xff]  ;;  %v5344_v51 = vld [vmem:[#allocation8 + $0xe8] sm:$0xff] }
 0x31d   : > { %10390 = vmatprep.mubr.f32.mxu0 %v12700_v15  ;;  %v12707_v63 = vadd.f32 %v12497_v3, %v2107_v7  ;;  %v12715_v7 = vld [vmem:[#allocation2 + $0x160] sm:$0xff]  ;;  %14381 = vst [vmem:[#allocation27_spill] sm:$0xff] %v12724_v18 }
 0x31e   : > { %v2035_v45 = vsel %vm1970_vm3, %v2032_v57, %v2034_v43  ;;  %v1439_v16 = vpop.f32.mrb[94].mxu1  ;;  %10973 = vmatprep.subr.bf16.mxu1 %v10972_v33  ;;  %v10976_v43 = vpack.c.bf16 %v5344_v51, %v5341_v53  ;;  %v3339_v57 = vrot.slane %v2637_v46, 1  ;;  %v5347_v4 = vld [vmem:[#allocation8 + $0x100] sm:$0xff] }
 0x31f   : > { %14379 = vst [vmem:[#allocation25_spill] sm:$0xff] %v12707_v63  ;;  %v1441_v22 = vpop.f32.mrb[95].mxu1  ;;  %v2641_v8 = vpop.f32.mrb[90].mxu0  ;;  %4028 = vmatmul.mubr.f32.gmra.mrb[200].mxu1 %v12595_v13  ;;  %v2108_v19 = vadd.f32 %v2035_v45, %v1428_v32  ;;  %v5350_v45 = vld [vmem:[#allocation8 + $0x118] sm:$0xff] }
 0x320   : > { %v3184_v54 = vadd.f32 %v2641_v8, %v12437_v62  ;;  %v2643_v3 = vpop.f32.mrb[91].mxu0  ;;  %10391 = vmatmul.mubr.f32.gmra.mrb[196].mxu0 %v12711_v5  ;;  %4032 = vmatprep.mubr.f32.mxu1 %v12422_v60  ;;  %v2036_v46 = vrot.slane %v1441_v22, 1 }
 0x321   : > { %v3340_v28 = vrot.slane %v2643_v3, 1  ;;  %10393 = vmatprep.mubr.f32.mxu0 %v12715_v7  ;;  %v12720_v13 = vadd.f32 %v12504_v34, %v2108_v19  ;;  %10975 = vmatpush3.bf16.msra.mxu1 %v10972_v33  ;;  %v12727_v34 = vld [vmem:[#allocation2 + $0x170] sm:$0xff]  ;;  %v10980_v33 = vpack.c.bf16 %v5350_v45, %v5347_v4  ;;  %v5356_v45 = vld [vmem:[#allocation8 + $0x148] sm:$0xff] }
 0x322   : > { %v1445_v32 = vpop.f32.mrb[96].mxu1  ;;  %10977 = vmatprep.subr.bf16.mxu1 %v10976_v43  ;;  %v5361_v3 = vld [vmem:[#allocation8 + $0x170] sm:$0xff] }
 0x323   : > { %14380 = vst [vmem:[#allocation26_spill] sm:$0xff] %v12720_v13  ;;  %v3341_v62 = vsel %vm1970_vm3, %v3339_v57, %v3340_v28  ;;  %v1447_v6 = vpop.f32.mrb[97].mxu1  ;;  %v2647_v55 = vpop.f32.mrb[92].mxu0  ;;  %4033 = vmatmul.mubr.f32.gmra.mrb[202].mxu1 %v12604_v23  ;;  %v5358_v23 = vld [vmem:[#allocation8 + $0x158] sm:$0xff]  ;;  %v5360_v13 = vld [vmem:[#allocation8 + $0x168] sm:$0xff] }
 0x324   : > { %v2037_v8 = vrot.slane %v1447_v6, 1  ;;  %v2648_v53 = vpop.f32.mrb[93].mxu0  ;;  %10394 = vmatmul.mubr.f32.gmra.mrb[198].mxu0 %v12724_v18  ;;  %4038 = vmatprep.mubr.f32.mxu1 %v12422_v60  ;;  %v12730_v19 = vadd.f32 %v3341_v62, %v3183_v9  ;;  %v10956_v6 = vpack.c.bf16 %v5361_v3, %v5358_v23  ;;  %v5357_v55 = vld [vmem:[#allocation8 + $0x150] sm:$0xff]  ;;  %v12736_v9 = vld [vmem:[#allocation2 + $0x178] sm:$0xff]  ;;  %v12740_v23 = vld [vmem:[#allocation2] sm:$0xff] }
 0x325   : > { %v3342_v51 = vrot.slane %v2648_v53, 1  ;;  %10396 = vmatprep.mubr.f32.mxu0 %v12727_v34  ;;  %10979 = vmatpush3.bf16.msra.mxu1 %v10976_v43  ;;  %v10958_v4 = vpack.c.bf16 %v5360_v13, %v5357_v55  ;;  %v5353_v43 = vld [vmem:[#allocation8 + $0x130] sm:$0xff] }
 0x326   : > { %v2038_v57 = vsel %vm1970_vm3, %v2036_v46, %v2037_v8  ;;  %v1451_v22 = vpop.f32.mrb[98].mxu1  ;;  %10981 = vmatprep.subr.bf16.mxu1 %v10980_v33  ;;  %10957 = vmatprep.subr.bf16.mxu0 %v10956_v6 }
 0x327   : > { %v3343_v63 = vsel %vm1970_vm3, %v3340_v28, %v3342_v51  ;;  %v1452_v18 = vpop.f32.mrb[99].mxu1  ;;  %v2652_v60 = vpop.f32.mrb[94].mxu0  ;;  %4039 = vmatmul.mubr.f32.gmra.mrb[204].mxu1 %v12607_v20  ;;  %v2109_v62 = vadd.f32 %v2038_v57, %v1439_v16  ;;  %v10984_v28 = vpack.c.bf16 %v5356_v45, %v5353_v43  ;;  %10959 = vmatpush1.bf16.msra.mxu0 %v10958_v4  ;;  %v5359_v57 = vld [vmem:[#allocation8 + $0x160] sm:$0xff] }
 0x328   : > { %v2039_v53 = vrot.slane %v1452_v18, 1  ;;  %v3185_v46 = vadd.f32 %v2652_v60, %v12462_v30  ;;  %v2654_v22 = vpop.f32.mrb[95].mxu0  ;;  %10397 = vmatmul.mubr.f32.gmra.mrb[200].mxu0 %v12736_v9  ;;  %4044 = vmatprep.mubr.f32.mxu1 %v12740_v23  ;;  %v12743_v51 = vadd.f32 %v3343_v63, %v3184_v54  ;;  %v5362_v63 = vld [vmem:[#allocation8 + $0x178] sm:$0xff] }
 0x329   : > { %10399 = vmatprep.mubr.f32.mxu0 %v12445_v1  ;;  %v12747_v20 = vadd.f32 %v12509_v14, %v2109_v62  ;;  %10983 = vmatpush3.bf16.msra.mxu1 %v10980_v33  ;;  %v10988_v14 = vpack.c.bf16 %v5362_v63, %v5359_v57 }
 0x32a   : > { %v2040_v16 = vsel %vm1970_vm3, %v2037_v8, %v2039_v53  ;;  %v1456_v13 = vpop.f32.mrb[100].mxu1  ;;  %10985 = vmatprep.subr.bf16.mxu1 %v10984_v28  ;;  %v3344_v8 = vrot.slane %v2654_v22, 1 }
 0x32b   : > { %v1458_v30 = vpop.f32.mrb[101].mxu1  ;;  %v2658_v18 = vpop.f32.mrb[96].mxu0  ;;  %4045 = vmatmul.mubr.f32.gmra.mrb[206].mxu1 %v12616_v39  ;;  %v2110_v3 = vadd.f32 %v2040_v16, %v1445_v32 }
 0x32c   : > { %v3186_v54 = vadd.f32 %v2658_v18, %v12475_v37  ;;  %v2660_v1 = vpop.f32.mrb[97].mxu0  ;;  %10400 = vmatmul.mubr.f32.gmra.mrb[202].mxu0 %v12448_v25  ;;  %4049 = vmatprep.mubr.f32.mxu1 %v12740_v23  ;;  %v2041_v25 = vrot.slane %v1458_v30, 1 }
 0x32d   : > { %v3345_v6 = vrot.slane %v2660_v1, 1  ;;  %10402 = vmatprep.mubr.f32.mxu0 %v12465_v40  ;;  %v12756_v33 = vadd.f32 %v12512_v2, %v2110_v3  ;;  %10987 = vmatpush3.bf16.msra.mxu1 %v10984_v28 }
 0x32e   : > { %v1462_v39 = vpop.f32.mrb[102].mxu1  ;;  %10989 = vmatprep.subr.bf16.mxu1 %v10988_v14 }
 0x32f   : > { %v3346_v32 = vsel %vm1970_vm3, %v3344_v8, %v3345_v6  ;;  %v1464_v55 = vpop.f32.mrb[103].mxu1  ;;  %v2664_v60 = vpop.f32.mrb[98].mxu0  ;;  %4050 = vmatmul.mubr.f32.gmra.mrb[208].mxu1 %v12620_v49 }
 0x330   : > { %v2042_v37 = vrot.slane %v1464_v55, 1  ;;  %v2665_v62 = vpop.f32.mrb[99].mxu0  ;;  %10403 = vmatmul.mubr.f32.gmra.mrb[204].mxu0 %v12740_v23  ;;  %4055 = vmatprep.mubr.f32.mxu1 %v12740_v23  ;;  %v12762_v40 = vadd.f32 %v3346_v32, %v3185_v46  ;;  %v6667_v32 = vld [vmem:[#allocation8 + $0x1a8] sm:$0xff] }
 0x331   : > { %v3347_v2 = vrot.slane %v2665_v62, 1  ;;  %10405 = vmatprep.mubr.f32.mxu0 %v12740_v23  ;;  %10991 = vmatpush3.bf16.msra.mxu1 %v10988_v14 }
 0x332   : > { %v2043_v4 = vsel %vm1970_vm3, %v2041_v25, %v2042_v37  ;;  %v1468_v43 = vpop.f32.mrb[104].mxu1 }
 0x333   : > { %v1469_v45 = vpop.f32.mrb[105].mxu1  ;;  %v2669_v53 = vpop.f32.mrb[100].mxu0  ;;  %4056 = vmatmul.mubr.f32.gmra.mrb[210].mxu1 %v12631_v58  ;;  %v2111_v49 = vadd.f32 %v2043_v4, %v1456_v13  ;;  %v3348_v22 = vsel %vm1970_vm3, %v3345_v6, %v3347_v2  ;;  %v6664_v6 = vld [vmem:[#allocation8 + $0x190] sm:$0xff] }
 0x334   : > { %v2044_v28 = vrot.slane %v1469_v45, 1  ;;  %v3187_v16 = vadd.f32 %v2669_v53, %v12493_v56  ;;  %v2671_v30 = vpop.f32.mrb[101].mxu0  ;;  %4061 = vmatprep.mubr.f32.mxu1 %v12740_v23  ;;  %10406 = vmatmul.mubr.f32.gmra.mrb[206].mxu0 %v12740_v23  ;;  %v12771_v46 = vadd.f32 %v3348_v22, %v3186_v54 }
 0x335   : > { %v12774_v18 = vadd.f32 %v12520_v44, %v2111_v49  ;;  %5427 = vmatprep.mubr.f32.mxu0 %v12740_v23  ;;  %v3349_v54 = vrot.slane %v2671_v30, 1 }
 0x336   : > { %v2045_v58 = vsel %vm1970_vm3, %v2042_v37, %v2044_v28  ;;  %v1473_v13 = vpop.f32.mrb[106].mxu1 }
 0x337   : > { %v1475_v3 = vpop.f32.mrb[107].mxu1  ;;  %v2675_v57 = vpop.f32.mrb[102].mxu0  ;;  %4062 = vmatmul.mubr.f32.gmra.mrb[212].mxu1 %v12635_v10  ;;  %v2112_v56 = vadd.f32 %v2045_v58, %v1462_v39 }
 0x338   : > { %v3188_v63 = vadd.f32 %v2675_v57, %v12501_v12  ;;  %v2677_v1 = vpop.f32.mrb[103].mxu0  ;;  %4066 = vmatprep.mubr.f32.mxu1 %v12740_v23  ;;  %5428 = vmatmul.mubr.f32.vlgmr.msra.gmra.mrb[208].mxu0 %v12740_v23  ;;  %v11024_v12 = vpack.c.bf16 %v6667_v32, %v6664_v6  ;;  %v2046_v60 = vrot.slane %v1475_v3, 1 }
 0x339   : > { %v3350_v44 = vrot.slane %v2677_v1, 1  ;;  %v12783_v14 = vadd.f32 %v12527_v11, %v2112_v56  ;;  %5433 = vmatprep.mubr.f32.mxu0 %v12740_v23 }
 0x33a   : > { %v1479_v8 = vpop.f32.mrb[108].mxu1  ;;  %11025 = vmatprep.subr.bf16.mxu0 %v11024_v12 }
 0x33b   : > { %v1481_v55 = vpop.f32.mrb[109].mxu1  ;;  %v2681_v10 = vpop.f32.mrb[104].mxu0  ;;  %4067 = vmatmul.mubr.f32.gmra.mrb[214].mxu1 %v12644_v59  ;;  %v3351_v39 = vsel %vm1970_vm3, %v3349_v54, %v3350_v44  ;;  %11027 = vmatpush3.bf16.msra.mxu0 %v11024_v12 }
 0x33c   : > { %v2047_v25 = vrot.slane %v1481_v55, 1  ;;  %v2682_v37 = vpop.f32.mrb[105].mxu0  ;;  %4072 = vmatprep.mubr.f32.mxu1 %v12740_v23  ;;  %5434 = vmatmul.mubr.f32.gmra.mrb[210].mxu0 %v12740_v23  ;;  %v12790_v11 = vadd.f32 %v3351_v39, %v3187_v16 }
 0x33d   : > { %v3352_v62 = vrot.slane %v2682_v37, 1  ;;  %5439 = vmatprep.mubr.f32.mxu0 %v12740_v23 }
 0x33e   : > { %v2048_v2 = vsel %vm1970_vm3, %v2046_v60, %v2047_v25  ;;  %v1485_v4 = vpop.f32.mrb[110].mxu1 }
 0x33f   : > { %v1486_v59 = vpop.f32.mrb[111].mxu1  ;;  %v2686_v43 = vpop.f32.mrb[106].mxu0  ;;  %4073 = vmatmul.mubr.f32.gmra.mrb[216].mxu1 %v12647_v31  ;;  %v2113_v45 = vadd.f32 %v2048_v2, %v1473_v13  ;;  %v3353_v53 = vsel %vm1970_vm3, %v3350_v44, %v3352_v62 }
 0x340   : > { %v2049_v49 = vrot.slane %v1486_v59, 1  ;;  %v3189_v22 = vadd.f32 %v2686_v43, %v12516_v26  ;;  %v2688_v28 = vpop.f32.mrb[107].mxu0  ;;  %4078 = vmatprep.mubr.f32.mxu1 %v12740_v23  ;;  %5440 = vmatmul.mubr.f32.gmra.mrb[212].mxu0 %v12740_v23  ;;  %v12799_v16 = vadd.f32 %v3353_v53, %v3188_v63 }
 0x341   : > { %v12802_v30 = vadd.f32 %v12537_v29, %v2113_v45  ;;  %5444 = vmatprep.mubr.f32.mxu0 %v12740_v23  ;;  %v3354_v63 = vrot.slane %v2688_v28, 1 }
 0x342   : > { %v2050_v31 = vsel %vm1970_vm3, %v2047_v25, %v2049_v49  ;;  %v10234_v58 = vpop.f32.mrb[112].mxu1 }
 0x343   : > { %v3576_v13 = vrot.slane %v10234_v58, 2  ;;  %v2692_v3 = vpop.f32.mrb[108].mxu0  ;;  %v2904_v57 = vpop.f32.mrb[113].mxu1  ;;  %4079 = vmatmul.mubr.f32.gmra.mrb[218].mxu1 %v12656_v35  ;;  %v2114_v26 = vadd.f32 %v2050_v31, %v1479_v8 }
 0x344   : > { %v3190_v56 = vadd.f32 %v2692_v3, %v12524_v42  ;;  %v3575_v1 = vrot.slane %v2904_v57, 2  ;;  %v2694_v54 = vpop.f32.mrb[109].mxu0  ;;  %4083 = vmatprep.mubr.f32.mxu1 %v12740_v23  ;;  %v6673_v3 = vld [vmem:[#allocation8 + $0x1d8] sm:$0xff]  ;;  %v14382_v57 = vld [vmem:[#allocation15_spill] sm:$0xff] }
 0x345   : > { %v3355_v29 = vrot.slane %v2694_v54, 1  ;;  %v12810_v44 = vadd.f32 %v12540_v41, %v2114_v26 }
 0x346   : > { %v10237_v6 = vpop.f32.mrb[114].mxu1  ;;  %v3577_v32 = vsel %vm2227_vm4, %v3575_v1, %v3576_v13 }
 0x347   : > { %v2698_v55 = vpop.f32.mrb[110].mxu0  ;;  %v2914_v10 = vpop.f32.mrb[115].mxu1  ;;  %4084 = vmatmul.mubr.f32.gmra.mrb[220].mxu1 %v12660_v0  ;;  %v12815_v35 = vadd.f32 %v3577_v32, %v12570_v61  ;;  %v3356_v42 = vsel %vm1970_vm3, %v3354_v63, %v3355_v29  ;;  %v3580_v4 = vrot.slane %v10237_v6, 2 }
 0x348   : > { %v3578_v8 = vrot.slane %v2914_v10, 2  ;;  %v2699_v12 = vpop.f32.mrb[111].mxu0  ;;  %4089 = vmatprep.mubr.f32.mxu1 %v12740_v23  ;;  %v12819_v39 = vadd.f32 %v3356_v42, %v3189_v22 }
 0x349   : > { %v3357_v41 = vrot.slane %v2699_v12, 1 }
 0x34a   : > { %v10240_v60 = vpop.f32.mrb[116].mxu1  ;;  %v3579_v25 = vsel %vm2227_vm4, %v3576_v13, %v3578_v8  ;;  %v6670_v13 = vld [vmem:[#allocation8 + $0x1c0] sm:$0xff] }
 0x34b   : > { %v3583_v37 = vrot.slane %v10240_v60, 2  ;;  %v2703_v62 = vpop.f32.mrb[112].mxu0  ;;  %v2924_v2 = vpop.f32.mrb[117].mxu1  ;;  %4090 = vmatmul.mubr.f32.gmra.mrb[222].mxu1 %v12671_v27  ;;  %v12824_v61 = vadd.f32 %v3579_v25, %v12583_v47  ;;  %v3358_v0 = vsel %vm1970_vm3, %v3355_v29, %v3357_v41  ;;  %v11028_v54 = vpack.c.bf16 %v6673_v3, %v6670_v13 }
 0x34c   : > { %v3191_v59 = vadd.f32 %v2703_v62, %v12549_v17  ;;  %v3581_v43 = vrot.slane %v2924_v2, 2  ;;  %v2705_v45 = vpop.f32.mrb[113].mxu0  ;;  %4095 = vmatprep.mubr.f32.mxu1 %v12740_v23  ;;  %v12829_v53 = vadd.f32 %v3358_v0, %v3190_v56 }
 0x34d   : > { %v3359_v63 = vrot.slane %v2705_v45, 1  ;;  %11029 = vmatprep.subr.bf16.mxu0 %v11028_v54  ;;  %v14385_v45 = vld [vmem:[#allocation16_spill] sm:$0xff] }
 0x34e   : > { %v10243_v49 = vpop.f32.mrb[118].mxu1  ;;  %v3582_v22 = vsel %vm2227_vm4, %v3580_v4, %v3581_v43  ;;  %v3584_v28 = vsel %vm2227_vm4, %v3581_v43, %v3583_v37  ;;  %11031 = vmatpush3.bf16.msra.mxu0 %v11028_v54  ;;  %v14387_v54 = vld [vmem:[#allocation17_spill] sm:$0xff] }
 0x34f   : > { %v3586_v27 = vrot.slane %v10243_v49, 2  ;;  %v2709_v31 = vpop.f32.mrb[114].mxu0  ;;  %v2934_v47 = vpop.f32.mrb[119].mxu1  ;;  %4096 = vmatmul.mubr.f32.gmra.mrb[224].mxu1 %v12675_v24  ;;  %v12835_v58 = vadd.f32 %v3582_v22, %v12610_v38  ;;  %v12838_v17 = vadd.f32 %v3584_v28, %v12623_v48  ;;  %v14383_v48 = vld [vmem:[#allocation20_spill] sm:$0xff] }
 0x350   : > { %v3192_v26 = vadd.f32 %v2709_v31, %v14382_v57  ;;  %v3585_v56 = vrot.slane %v2934_v47, 2  ;;  %v2711_v1 = vpop.f32.mrb[115].mxu0  ;;  %4100 = vmatprep.mubr.f32.mxu1 %v12740_v23  ;;  %v14386_v57 = vld [vmem:[#allocation24_spill] sm:$0xff] }
 0x351   : > { %v3360_v29 = vrot.slane %v2711_v1, 1 }
 0x352   : > { %v10246_v6 = vpop.f32.mrb[120].mxu1  ;;  %v3587_v24 = vsel %vm2227_vm4, %v3585_v56, %v3586_v27 }
 0x353   : > { %v2715_v38 = vpop.f32.mrb[116].mxu0  ;;  %v2944_v32 = vpop.f32.mrb[121].mxu1  ;;  %4101 = vmatmul.mubr.f32.gmra.mrb[226].mxu1 %v12684_v21  ;;  %v12845_v55 = vadd.f32 %v3587_v24, %v14383_v48  ;;  %v3361_v10 = vsel %vm1970_vm3, %v3359_v63, %v3360_v29  ;;  %v14384_v21 = vld [vmem:[#allocation21_spill] sm:$0xff]  ;;  %v3590_v43 = vrot.slane %v10246_v6, 2 }
 0x354   : > { %v3588_v42 = vrot.slane %v2944_v32, 2  ;;  %v2716_v8 = vpop.f32.mrb[117].mxu0  ;;  %4106 = vmatprep.mubr.f32.mxu1 %v12740_v23  ;;  %v12849_v12 = vadd.f32 %v3361_v10, %v3191_v59 }
 0x355   : > { %v3362_v41 = vrot.slane %v2716_v8, 1 }
 0x356   : > { %v10249_v60 = vpop.f32.mrb[122].mxu1  ;;  %v3589_v25 = vsel %vm2227_vm4, %v3586_v27, %v3588_v42 }
 0x357   : > { %v3593_v37 = vrot.slane %v10249_v60, 2  ;;  %v2720_v62 = vpop.f32.mrb[118].mxu0  ;;  %v2954_v2 = vpop.f32.mrb[123].mxu1  ;;  %4107 = vmatmul.mubr.f32.gmra.mrb[228].mxu1 %v12687_v36  ;;  %v12854_v0 = vadd.f32 %v3589_v25, %v14384_v21  ;;  %v3363_v4 = vsel %vm1970_vm3, %v3360_v29, %v3362_v41 }
 0x358   : > { %v3193_v49 = vadd.f32 %v2720_v62, %v14385_v45  ;;  %v3591_v22 = vrot.slane %v2954_v2, 2  ;;  %v2722_v59 = vpop.f32.mrb[119].mxu0  ;;  %4112 = vmatprep.mubr.f32.mxu1 %v12740_v23  ;;  %v12859_v28 = vadd.f32 %v3363_v4, %v3192_v26 }
 0x359   : > { %v3364_v6 = vrot.slane %v2722_v59, 1 }
 0x35a   : > { %v10252_v27 = vpop.f32.mrb[124].mxu1  ;;  %v3592_v31 = vsel %vm2227_vm4, %v3590_v43, %v3591_v22  ;;  %v3594_v47 = vsel %vm2227_vm4, %v3591_v22, %v3593_v37  ;;  %v14388_v43 = vld [vmem:[#allocation18_spill] sm:$0xff] }
 0x35b   : > { %v3596_v36 = vrot.slane %v10252_v27, 2  ;;  %v2726_v13 = vpop.f32.mrb[120].mxu0  ;;  %v2964_v3 = vpop.f32.mrb[125].mxu1  ;;  %4113 = vmatmul.mubr.f32.gmra.mrb[230].mxu1 %v12694_v50  ;;  %v12865_v56 = vadd.f32 %v3592_v31, %v14386_v57  ;;  %v12868_v1 = vadd.f32 %v3594_v47, %v12703_v52  ;;  %v6679_v57 = vld [vmem:[#allocation8 + $0x208] sm:$0xff] }
 0x35c   : > { %v3194_v63 = vadd.f32 %v2726_v13, %v14387_v54  ;;  %v3595_v26 = vrot.slane %v2964_v3, 2  ;;  %v2728_v29 = vpop.f32.mrb[121].mxu0  ;;  %4117 = vmatprep.mubr.f32.mxu1 %v12740_v23  ;;  %v6676_v3 = vld [vmem:[#allocation8 + $0x1f0] sm:$0xff] }
 0x35d   : > { %v3365_v24 = vrot.slane %v2728_v29, 1 }
 0x35e   : > { %v10255_v38 = vpop.f32.mrb[126].mxu1  ;;  %v3597_v32 = vsel %vm2227_vm4, %v3595_v26, %v3596_v36 }
 0x35f   : > { %v2732_v48 = vpop.f32.mrb[122].mxu0  ;;  %v2974_v10 = vpop.f32.mrb[127].mxu1  ;;  %4118 = vmatmul.mubr.f32.gmra.mrb[232].mxu1 %v12700_v15  ;;  %v12875_v50 = vadd.f32 %v3597_v32, %v12730_v19  ;;  %v3366_v52 = vsel %vm1970_vm3, %v3364_v6, %v3365_v24  ;;  %v3600_v4 = vrot.slane %v10255_v38, 2 }
 0x360   : > { %v3598_v42 = vrot.slane %v2974_v10, 2  ;;  %v2733_v8 = vpop.f32.mrb[123].mxu0  ;;  %4123 = vmatprep.mubr.f32.mxu1 %v12740_v23  ;;  %v12879_v41 = vadd.f32 %v3366_v52, %v3193_v49  ;;  %v14390_v52 = vld [vmem:[#allocation27_spill] sm:$0xff] }
 0x361   : > { %v3367_v60 = vrot.slane %v2733_v8, 1 }
 0x362   : > { %v10258_v25 = vpop.f32.mrb[128].mxu1  ;;  %v3599_v37 = vsel %vm2227_vm4, %v3596_v36, %v3598_v42 }
 0x363   : > { %v3603_v62 = vrot.slane %v10258_v25, 2  ;;  %v2737_v2 = vpop.f32.mrb[124].mxu0  ;;  %v2984_v21 = vpop.f32.mrb[129].mxu1  ;;  %4124 = vmatmul.mubr.f32.gmra.mrb[234].mxu1 %v12711_v5  ;;  %v12884_v15 = vadd.f32 %v3599_v37, %v12743_v51  ;;  %v3368_v19 = vsel %vm1970_vm3, %v3365_v24, %v3367_v60  ;;  %v11032_v24 = vpack.c.bf16 %v6679_v57, %v6676_v3 }
 0x364   : > { %v3195_v45 = vadd.f32 %v2737_v2, %v14388_v43  ;;  %v3601_v22 = vrot.slane %v2984_v21, 2  ;;  %v2739_v49 = vpop.f32.mrb[125].mxu0  ;;  %4129 = vmatprep.mubr.f32.mxu1 %v12740_v23  ;;  %v12889_v59 = vadd.f32 %v3368_v19, %v3194_v63  ;;  %v14389_v63 = vld [vmem:[#allocation19_spill] sm:$0xff] }
 0x365   : > { %v3369_v38 = vrot.slane %v2739_v49, 1  ;;  %11033 = vmatprep.subr.bf16.mxu0 %v11032_v24  ;;  %v14391_v49 = vld [vmem:[#allocation22_spill] sm:$0xff] }
 0x366   : > { %v10261_v27 = vpop.f32.mrb[130].mxu1  ;;  %v3602_v31 = vsel %vm2227_vm4, %v3600_v4, %v3601_v22  ;;  %v3604_v47 = vsel %vm2227_vm4, %v3601_v22, %v3603_v62  ;;  %11035 = vmatpush3.bf16.msra.mxu0 %v11032_v24 }
 0x367   : > { %v3606_v5 = vrot.slane %v10261_v27, 2  ;;  %v2743_v36 = vpop.f32.mrb[126].mxu0  ;;  %v2994_v51 = vpop.f32.mrb[131].mxu1  ;;  %4130 = vmatmul.mubr.f32.gmra.mrb[236].mxu1 %v12715_v7  ;;  %v12895_v13 = vadd.f32 %v3602_v31, %v12762_v40  ;;  %v12898_v54 = vadd.f32 %v3604_v47, %v12771_v46 }
 0x368   : > { %v3196_v26 = vadd.f32 %v2743_v36, %v14389_v63  ;;  %v3605_v29 = vrot.slane %v2994_v51, 2  ;;  %v2745_v6 = vpop.f32.mrb[127].mxu0  ;;  %4134 = vmatprep.mubr.f32.mxu1 %v12740_v23 }
 0x369   : > { %v3370_v32 = vrot.slane %v2745_v6, 1 }
 0x36a   : > { %v10264_v48 = vpop.f32.mrb[132].mxu1  ;;  %v3607_v7 = vsel %vm2227_vm4, %v3605_v29, %v3606_v5  ;;  %v14392_v29 = vld [vmem:[#allocation23_spill] sm:$0xff] }
 0x36b   : > { %v2749_v40 = vpop.f32.mrb[128].mxu0  ;;  %v3004_v10 = vpop.f32.mrb[133].mxu1  ;;  %4135 = vmatmul.mubr.f32.gmra.mrb[238].mxu1 %v14390_v52  ;;  %v12905_v46 = vadd.f32 %v3607_v7, %v12790_v11  ;;  %v3371_v42 = vsel %vm1970_vm3, %v3369_v38, %v3370_v32  ;;  %v3610_v22 = vrot.slane %v10264_v48, 2 }
 0x36c   : > { %v3608_v8 = vrot.slane %v3004_v10, 2  ;;  %v2750_v60 = vpop.f32.mrb[129].mxu0  ;;  %4140 = vmatprep.mubr.f32.mxu1 %v12740_v23  ;;  %v12909_v25 = vadd.f32 %v3371_v42, %v3195_v45 }
 0x36d   : > { %v3372_v37 = vrot.slane %v2750_v60, 1 }
 0x36e   : > { %v10267_v62 = vpop.f32.mrb[134].mxu1  ;;  %v3609_v2 = vsel %vm2227_vm4, %v3606_v5, %v3608_v8 }
 0x36f   : > { %v3613_v21 = vrot.slane %v10267_v62, 2  ;;  %v2754_v19 = vpop.f32.mrb[130].mxu0  ;;  %v3014_v4 = vpop.f32.mrb[135].mxu1  ;;  %4141 = vmatmul.mubr.f32.gmra.mrb[240].mxu1 %v12727_v34  ;;  %v12914_v11 = vadd.f32 %v3609_v2, %v12799_v16  ;;  %v3373_v43 = vsel %vm1970_vm3, %v3370_v32, %v3372_v37 }
 0x370   : > { %v3197_v27 = vadd.f32 %v2754_v19, %v14391_v49  ;;  %v3611_v31 = vrot.slane %v3014_v4, 2  ;;  %v2756_v45 = vpop.f32.mrb[131].mxu0  ;;  %4146 = vmatprep.mubr.f32.mxu1 %v12740_v23  ;;  %v12919_v47 = vadd.f32 %v3373_v43, %v3196_v26  ;;  %v11198_v4 = vld [vmem:[#allocation2 + $0x188] sm:$0xff]  ;;  %v14393_v49 = vld [vmem:[#allocation25_spill] sm:$0xff] }
 0x371   : > { %v3374_v38 = vrot.slane %v2756_v45, 1 }
 0x372   : > { %v10270_v5 = vpop.f32.mrb[136].mxu1  ;;  %v3612_v36 = vsel %vm2227_vm4, %v3610_v22, %v3611_v31  ;;  %v3614_v51 = vsel %vm2227_vm4, %v3611_v31, %v3613_v21 }
 0x373   : > { %v3616_v34 = vrot.slane %v10270_v5, 2  ;;  %v2760_v3 = vpop.f32.mrb[132].mxu0  ;;  %v3024_v16 = vpop.f32.mrb[137].mxu1  ;;  %4147 = vmatmul.mubr.f32.gmra.mrb[242].mxu1 %v12736_v9  ;;  %v12925_v57 = vadd.f32 %v3612_v36, %v12819_v39  ;;  %v12928_v63 = vadd.f32 %v3614_v51, %v12829_v53  ;;  %v11197_v9 = vld [vmem:[#allocation2 + $0x180] sm:$0xff] }
 0x374   : > { %v3198_v6 = vadd.f32 %v2760_v3, %v14392_v29  ;;  %v3615_v26 = vrot.slane %v3024_v16, 2  ;;  %v2762_v24 = vpop.f32.mrb[133].mxu0  ;;  %4151 = vmatprep.mubr.f32.mxu1 %v12740_v23 }
 0x375   : > { %v3375_v32 = vrot.slane %v2762_v24, 1  ;;  %v6685_v24 = vld [vmem:[#allocation8 + $0x238] sm:$0xff] }
 0x376   : > { %v10273_v48 = vpop.f32.mrb[138].mxu1  ;;  %v3617_v7 = vsel %vm2227_vm4, %v3615_v26, %v3616_v34  ;;  %v6682_v26 = vld [vmem:[#allocation8 + $0x220] sm:$0xff] }
 0x377   : > { %v2766_v40 = vpop.f32.mrb[134].mxu0  ;;  %v3034_v10 = vpop.f32.mrb[139].mxu1  ;;  %4152 = vmatmul.mubr.f32.gmra.mrb[244].mxu1 %v11197_v9  ;;  %v12934_v39 = vadd.f32 %v3617_v7, %v12849_v12  ;;  %v3376_v53 = vsel %vm1970_vm3, %v3374_v38, %v3375_v32  ;;  %v3620_v22 = vrot.slane %v10273_v48, 2  ;;  %v14394_v48 = vld [vmem:[#allocation26_spill] sm:$0xff] }
 0x378   : > { %v3618_v52 = vrot.slane %v3034_v10, 2  ;;  %v2767_v42 = vpop.f32.mrb[135].mxu0  ;;  %4157 = vmatprep.mubr.f32.mxu1 %v12740_v23  ;;  %v12938_v8 = vadd.f32 %v3376_v53, %v3197_v27  ;;  %v11036_v10 = vpack.c.bf16 %v6685_v24, %v6682_v26 }
 0x379   : > { %v3377_v60 = vrot.slane %v2767_v42, 1 }
 0x37a   : > { %v10276_v37 = vpop.f32.mrb[140].mxu1  ;;  %v3619_v62 = vsel %vm2227_vm4, %v3616_v34, %v3618_v52  ;;  %11037 = vmatprep.subr.bf16.mxu0 %v11036_v10 }
 0x37b   : > { %v3623_v2 = vrot.slane %v10276_v37, 2  ;;  %v2771_v21 = vpop.f32.mrb[136].mxu0  ;;  %v3044_v19 = vpop.f32.mrb[141].mxu1  ;;  %4158 = vmatmul.mubr.f32.gmra.mrb[246].mxu1 %v11198_v4  ;;  %v12942_v12 = vadd.f32 %v3619_v62, %v12859_v28  ;;  %v3378_v43 = vsel %vm1970_vm3, %v3375_v32, %v3377_v60  ;;  %v11199_v28 = vld [vmem:[#allocation2 + $0x190] sm:$0xff]  ;;  %11039 = vmatpush3.bf16.msra.mxu0 %v11036_v10 }
 0x37c   : > { %v3199_v31 = vadd.f32 %v2771_v21, %v14393_v49  ;;  %v3621_v45 = vrot.slane %v3044_v19, 2  ;;  %v2773_v27 = vpop.f32.mrb[137].mxu0  ;;  %4163 = vmatprep.mubr.f32.mxu1 %v12740_v23  ;;  %v3454_v5 = vadd.f32 %v3378_v43, %v3198_v6 }
 0x37d   : > { %v3379_v9 = vrot.slane %v2773_v27, 1 }
 0x37e   : > { %v10279_v36 = vpop.f32.mrb[142].mxu1  ;;  %v3622_v51 = vsel %vm2227_vm4, %v3620_v22, %v3621_v45  ;;  %v3624_v34 = vsel %vm2227_vm4, %v3621_v45, %v3623_v2 }
 0x37f   : > { %v3626_v3 = vrot.slane %v10279_v36, 2  ;;  %v2777_v16 = vpop.f32.mrb[138].mxu0  ;;  %v3054_v29 = vpop.f32.mrb[143].mxu1  ;;  %4164 = vmatmul.mubr.f32.gmra.mrb[248].mxu1 %v11199_v28  ;;  %v12950_v38 = vadd.f32 %v3622_v51, %v12879_v41  ;;  %v12953_v32 = vadd.f32 %v3624_v34, %v12889_v59 }
 0x380   : > { %v3200_v6 = vadd.f32 %v2777_v16, %v14394_v48  ;;  %v3625_v7 = vrot.slane %v3054_v29, 2  ;;  %v2779_v40 = vpop.f32.mrb[139].mxu0  ;;  %4168 = vmatprep.mubr.f32.mxu1 %v12740_v23 }
 0x381   : > { %v3380_v53 = vrot.slane %v2779_v40, 1 }
 0x382   : > { %v10282_v52 = vpop.f32.mrb[144].mxu1  ;;  %v3627_v42 = vsel %vm2227_vm4, %v3625_v7, %v3626_v3 }
 0x383   : > { %v2783_v60 = vpop.f32.mrb[140].mxu0  ;;  %v3064_v37 = vpop.f32.mrb[145].mxu1  ;;  %4169 = vmatmul.mubr.f32.gmra.mrb[250].mxu1 %v12740_v23  ;;  %v12960_v41 = vadd.f32 %v3627_v42, %v12909_v25  ;;  %v3381_v59 = vsel %vm1970_vm3, %v3379_v9, %v3380_v53  ;;  %v3630_v36 = vrot.slane %v10282_v52, 2 }
 0x384   : > { %v3628_v62 = vrot.slane %v3064_v37, 2  ;;  %v2784_v2 = vpop.f32.mrb[141].mxu0  ;;  %4174 = vmatprep.mubr.f32.mxu1 %v12740_v23  ;;  %v3455_v21 = vadd.f32 %v3381_v59, %v3199_v31 }
 0x385   : > { %v3382_v19 = vrot.slane %v2784_v2, 1 }
 0x386   : > { %v10285_v4 = vpop.f32.mrb[146].mxu1  ;;  %v3629_v43 = vsel %vm2227_vm4, %v3626_v3, %v3628_v62 }
 0x387   : > { %v3633_v22 = vrot.slane %v10285_v4, 2  ;;  %v2788_v49 = vpop.f32.mrb[142].mxu0  ;;  %v3074_v45 = vpop.f32.mrb[147].mxu1  ;;  %4175 = vmatmul.mubr.f32.gmra.mrb[252].mxu1 %v12740_v23  ;;  %v12967_v27 = vadd.f32 %v3629_v43, %v12919_v47  ;;  %v3383_v25 = vsel %vm1970_vm3, %v3380_v53, %v3382_v19 }
 0x388   : > { %v3201_v51 = vadd.f32 %v2788_v49, %v12747_v20  ;;  %v3631_v34 = vrot.slane %v3074_v45, 2  ;;  %v2790_v16 = vpop.f32.mrb[143].mxu0  ;;  %4180 = vmatprep.mubr.f32.mxu1 %v12740_v23  ;;  %v3456_v31 = vadd.f32 %v3383_v25, %v3200_v6 }
 0x389   : > { %v3384_v6 = vrot.slane %v2790_v16, 1 }
 0x38a   : > { %v10288_v29 = vpop.f32.mrb[148].mxu1  ;;  %v3632_v3 = vsel %vm2227_vm4, %v3630_v36, %v3631_v34  ;;  %v3634_v28 = vsel %vm2227_vm4, %v3631_v34, %v3633_v22 }
 0x38b   : > { %v3636_v26 = vrot.slane %v10288_v29, 2  ;;  %v2794_v24 = vpop.f32.mrb[144].mxu0  ;;  %v3084_v48 = vpop.f32.mrb[149].mxu1  ;;  %4181 = vmatmul.mubr.f32.gmra.mrb[254].mxu1 %v12740_v23  ;;  %v12976_v47 = vadd.f32 %v3632_v3, %v12938_v8  ;;  %v12978_v7 = vadd.f32 %v3634_v28, %v3454_v5 }
 0x38c   : > { %v3202_v20 = vadd.f32 %v2794_v24, %v12756_v33  ;;  %v3635_v40 = vrot.slane %v3084_v48, 2  ;;  %v2796_v10 = vpop.f32.mrb[145].mxu0  ;;  %10440 = vmatprep.mubr.f32.mxu1 %v12740_v23  ;;  %v6688_v24 = vld [vmem:[#allocation8 + $0x250] sm:$0xff]  ;;  %v6691_v48 = vld [vmem:[#allocation8 + $0x268] sm:$0xff] }
 0x38d   : > { %v3385_v9 = vrot.slane %v2796_v10, 1 }
 0x38e   : > { %v10291_v53 = vpop.f32.mrb[150].mxu1  ;;  %v3637_v52 = vsel %vm2227_vm4, %v3635_v40, %v3636_v26 }
 0x38f   : > { %v2800_v42 = vpop.f32.mrb[146].mxu0  ;;  %v3094_v60 = vpop.f32.mrb[151].mxu1  ;;  %10441 = vmatmul.mubr.f32.vlgmr.msra.gmra.mrb[0].mxu1 %v12740_v23  ;;  %v12984_v37 = vadd.f32 %v3637_v52, %v3455_v21  ;;  %v3386_v8 = vsel %vm1970_vm3, %v3384_v6, %v3385_v9  ;;  %v3640_v21 = vrot.slane %v10291_v53, 2 }
 0x390   : > { %v3638_v5 = vrot.slane %v3094_v60, 2  ;;  %v2801_v59 = vpop.f32.mrb[147].mxu0  ;;  %10443 = vmatprep.mubr.f32.mxu1 %v12740_v23  ;;  %v3457_v33 = vadd.f32 %v3386_v8, %v3201_v51 }
 0x391   : > { %v3387_v62 = vrot.slane %v2801_v59, 1 }
 0x392   : > { %v10294_v2 = vpop.f32.mrb[152].mxu1  ;;  %v3639_v19 = vsel %vm2227_vm4, %v3636_v26, %v3638_v5 }
 0x393   : > { %v3643_v4 = vrot.slane %v10294_v2, 2  ;;  %v2805_v43 = vpop.f32.mrb[148].mxu0  ;;  %v3104_v22 = vpop.f32.mrb[153].mxu1  ;;  %v12989_v49 = vadd.f32 %v3639_v19, %v3456_v31  ;;  %v3388_v45 = vsel %vm1970_vm3, %v3385_v9, %v3387_v62  ;;  %v11040_v9 = vpack.c.bf16 %v6691_v48, %v6688_v24 }
 0x394   : > { %v3203_v25 = vadd.f32 %v2805_v43, %v12774_v18  ;;  %v3641_v36 = vrot.slane %v3104_v22, 2  ;;  %v2807_v34 = vpop.f32.mrb[149].mxu0  ;;  %v3458_v16 = vadd.f32 %v3388_v45, %v3202_v20 }
 0x395   : > { %v3389_v20 = vrot.slane %v2807_v34, 1  ;;  %11041 = vmatprep.subr.bf16.mxu0 %v11040_v9  ;;  %v6666_v34 = vld [vmem:[#allocation8 + $0x1a0] sm:$0xff] }
 0x396   : > { %v10297_v29 = vpop.f32.mrb[154].mxu1  ;;  %v3642_v23 = vsel %vm2227_vm4, %v3640_v21, %v3641_v36  ;;  %v3644_v51 = vsel %vm2227_vm4, %v3641_v36, %v3643_v4  ;;  %11043 = vmatpush3.bf16.msra.mxu0 %v11040_v9  ;;  %v6663_v36 = vld [vmem:[#allocation8 + $0x188] sm:$0xff] }
 0x397   : > { %v3646_v3 = vrot.slane %v10297_v29, 2  ;;  %v2811_v28 = vpop.f32.mrb[150].mxu0  ;;  %v3114_v26 = vpop.f32.mrb[155].mxu1  ;;  %v12995_v31 = vadd.f32 %v3642_v23, %v3457_v33  ;;  %v12997_v40 = vadd.f32 %v3644_v51, %v3458_v16  ;;  %v6662_v16 = vld [vmem:[#allocation8 + $0x180] sm:$0xff] }
 0x398   : > { %v3204_v10 = vadd.f32 %v2811_v28, %v12783_v14  ;;  %v3645_v18 = vrot.slane %v3114_v26, 2  ;;  %v2813_v6 = vpop.f32.mrb[151].mxu0  ;;  %v6665_v26 = vld [vmem:[#allocation8 + $0x198] sm:$0xff] }
 0x399   : > { %v3390_v53 = vrot.slane %v2813_v6, 1  ;;  %v10994_v48 = vpack.c.bf16 %v6665_v26, %v6662_v16  ;;  %v6669_v16 = vld [vmem:[#allocation8 + $0x1b8] sm:$0xff] }
 0x39a   : > { %v10300_v52 = vpop.f32.mrb[156].mxu1  ;;  %v3647_v42 = vsel %vm2227_vm4, %v3645_v18, %v3646_v3 }
 0x39b   : > { %v2817_v60 = vpop.f32.mrb[152].mxu0  ;;  %v3124_v8 = vpop.f32.mrb[157].mxu1  ;;  %v3391_v5 = vsel %vm1970_vm3, %v3389_v20, %v3390_v53  ;;  %v3650_v19 = vrot.slane %v10300_v52, 2 }
 0x39c   : > { %v3648_v59 = vrot.slane %v3124_v8, 2  ;;  %v2818_v33 = vpop.f32.mrb[153].mxu0  ;;  %v3459_v62 = vadd.f32 %v3391_v5, %v3203_v25  ;;  %v10992_v25 = vpack.c.bf16 %v6666_v34, %v6663_v36 }
 0x39d   : > { %v3392_v2 = vrot.slane %v2818_v33, 1 }
 0x39e   : > { %v10303_v14 = vpop.f32.mrb[158].mxu1  ;;  %v13002_v4 = vadd.f32 %v3647_v42, %v3459_v62  ;;  %v3649_v43 = vsel %vm2227_vm4, %v3646_v3, %v3648_v59  ;;  %10993 = vmatprep.subr.bf16.mxu1 %v10992_v25 }
 0x39f   : > { %v3653_v22 = vrot.slane %v10303_v14, 2  ;;  %v2822_v45 = vpop.f32.mrb[154].mxu0  ;;  %v3134_v21 = vpop.f32.mrb[159].mxu1  ;;  %v3393_v29 = vsel %vm1970_vm3, %v3390_v53, %v3392_v2  ;;  %10995 = vmatpush1.bf16.msra.mxu1 %v10994_v48  ;;  %v6671_v48 = vld [vmem:[#allocation8 + $0x1c8] sm:$0xff] }
 0x3a0   : > { %v3205_v23 = vadd.f32 %v2822_v45, %v12802_v30  ;;  %v3651_v51 = vrot.slane %v3134_v21, 2  ;;  %v2824_v28 = vpop.f32.mrb[155].mxu0  ;;  %v3460_v24 = vadd.f32 %v3393_v29, %v3204_v10  ;;  %v6672_v29 = vld [vmem:[#allocation8 + $0x1d0] sm:$0xff] }
 0x3a1   : > { %v3394_v60 = vrot.slane %v2824_v28, 1 }
 0x3a2   : > { %v3915_v18 = vpop.f32.mrb[160].mxu1  ;;  %v13007_v6 = vadd.f32 %v3649_v43, %v3460_v24  ;;  %v3652_v3 = vsel %vm2227_vm4, %v3650_v19, %v3651_v51  ;;  %v3654_v9 = vsel %vm2227_vm4, %v3651_v51, %v3653_v22  ;;  %v10996_v24 = vpack.c.bf16 %v6672_v29, %v6669_v16 }
 0x3a3   : > { %v4523_v20 = vadd.f32 %v3915_v18, %v12815_v35  ;;  %v2828_v52 = vpop.f32.mrb[156].mxu0  ;;  %v3917_v53 = vpop.f32.mrb[161].mxu1 }
 0x3a4   : > { %v3206_v30 = vadd.f32 %v2828_v52, %v12810_v44  ;;  %v2830_v42 = vpop.f32.mrb[157].mxu0  ;;  %v4667_v2 = vrot.slane %v3917_v53, 1  ;;  %10997 = vmatprep.subr.bf16.mxu1 %v10996_v24 }
 0x3a5   : > { %v3395_v8 = vrot.slane %v2830_v42, 1 }
 0x3a6   : > { %v3921_v10 = vpop.f32.mrb[162].mxu1 }
 0x3a7   : > { %v4524_v5 = vadd.f32 %v3921_v10, %v12824_v61  ;;  %v2834_v59 = vpop.f32.mrb[158].mxu0  ;;  %v3923_v33 = vpop.f32.mrb[163].mxu1  ;;  %v3396_v62 = vsel %vm1970_vm3, %v3394_v60, %v3395_v8  ;;  %v6668_v61 = vld [vmem:[#allocation8 + $0x1b0] sm:$0xff] }
 0x3a8   : > { %v4668_v19 = vrot.slane %v3923_v33, 1  ;;  %v2835_v14 = vpop.f32.mrb[159].mxu0  ;;  %v3461_v43 = vadd.f32 %v3396_v62, %v3205_v23  ;;  %v10998_v52 = vpack.c.bf16 %v6671_v48, %v6668_v61  ;;  %v6694_v33 = vld [vmem:[#allocation8 + $0x280] sm:$0xff]  ;;  %v6697_v62 = vld [vmem:[#allocation8 + $0x298] sm:$0xff] }
 0x3a9   : > { %v3397_v35 = vrot.slane %v2835_v14, 1  ;;  %v11044_v14 = vpack.c.bf16 %v6697_v62, %v6694_v33 }
 0x3aa   : > { %v4669_v22 = vsel %vm1970_vm3, %v4667_v2, %v4668_v19  ;;  %v3927_v45 = vpop.f32.mrb[164].mxu1  ;;  %v13016_v21 = vadd.f32 %v3652_v3, %v3461_v43  ;;  %10999 = vmatpush1.bf16.msra.mxu1 %v10998_v52 }
 0x3ab   : > { %v4779_v44 = vadd.f32 %v4669_v22, %v4523_v20  ;;  %v3928_v36 = vpop.f32.mrb[165].mxu1  ;;  %v10338_v34 = vpop.f32.mrb[160].mxu0  ;;  %v3398_v51 = vsel %vm1970_vm3, %v3395_v8, %v3397_v35  ;;  %v13026_v8 = vld [vmem:[%s14351_s4] ss:$0 sm:$0xff]  ;;  %11045 = vmatprep.subr.bf16.mxu0 %v11044_v14 }
 0x3ac   : > { %v4670_v28 = vrot.slane %v3928_v36, 1  ;;  %v4924_v25 = vrot.slane %v10338_v34, 2  ;;  %v4252_v26 = vpop.f32.mrb[161].mxu0  ;;  %v3462_v23 = vadd.f32 %v3398_v51, %v3206_v30  ;;  %11047 = vmatpush3.bf16.msra.mxu0 %v11044_v14 }
 0x3ad   : > { %v4923_v18 = vrot.slane %v4252_v26, 2 }
 0x3ae   : > { %v4671_v53 = vsel %vm1970_vm3, %v4668_v19, %v4670_v28  ;;  %v3932_v3 = vpop.f32.mrb[166].mxu1  ;;  %v13020_v20 = vadd.f32 %v3654_v9, %v3462_v23 }
 0x3af   : > { %v4780_v42 = vadd.f32 %v4671_v53, %v4524_v5  ;;  %v4925_v60 = vsel %vm2227_vm4, %v4923_v18, %v4924_v25  ;;  %v4525_v10 = vadd.f32 %v3932_v3, %v12835_v58  ;;  %v3934_v59 = vpop.f32.mrb[167].mxu1  ;;  %v10341_v30 = vpop.f32.mrb[162].mxu0  ;;  %v6675_v53 = vld [vmem:[#allocation8 + $0x1e8] sm:$0xff]  ;;  %v6678_v3 = vld [vmem:[#allocation8 + $0x200] sm:$0xff] }
 0x3b0   : > { %v5035_v2 = vadd.f32 %v4925_v60, %v4779_v44  ;;  %v4262_v19 = vpop.f32.mrb[163].mxu0  ;;  %v4672_v35 = vrot.slane %v3934_v59, 1  ;;  %v4928_v51 = vrot.slane %v10341_v30, 2  ;;  %v11000_v62 = vpack.c.bf16 %v6678_v3, %v6675_v53 }
 0x3b1   : > { %v4926_v9 = vrot.slane %v4262_v19, 2 }
 0x3b2   : > { %v5138_v5 = vadd.f32 %v13026_v8, %v5035_v2  ;;  %v3938_v43 = vpop.f32.mrb[168].mxu1  ;;  %v6677_v2 = vld [vmem:[#allocation8 + $0x1f8] sm:$0xff]  ;;  %11001 = vmatprep.subr.bf16.mxu1 %v11000_v62 }
 0x3b3   : > { %v4927_v22 = vsel %vm2227_vm4, %v4924_v25, %v4926_v9  ;;  %v4526_v45 = vadd.f32 %v3938_v43, %v12838_v17  ;;  %v3940_v36 = vpop.f32.mrb[169].mxu1  ;;  %v10344_v58 = vpop.f32.mrb[164].mxu0 }
 0x3b4   : > { %v5170_v34 = vmax.f32 %v5138_v5, 0.0  ;;  %v5036_v16 = vadd.f32 %v4927_v22, %v4780_v42  ;;  %v4673_v29 = vrot.slane %v3940_v36, 1  ;;  %v4931_v61 = vrot.slane %v10344_v58, 2  ;;  %v4272_v44 = vpop.f32.mrb[165].mxu0  ;;  %v6674_v42 = vld [vmem:[#allocation8 + $0x1e0] sm:$0xff] }
 0x3b5   : > { %v4929_v28 = vrot.slane %v4272_v44, 2  ;;  %v11002_v9 = vpack.c.bf16 %v6677_v2, %v6674_v42 }
 0x3b6   : > { %5203 = vst [vmem:[#allocation3 + $0x19] sm:$0xff] %v5170_v34  ;;  %v5139_v26 = vadd.f32 %v13026_v8, %v5036_v16  ;;  %v4674_v24 = vsel %vm1970_vm3, %v4672_v35, %v4673_v29  ;;  %v3944_v48 = vpop.f32.mrb[170].mxu1 }
 0x3b7   : > { %v4781_v23 = vadd.f32 %v4674_v24, %v4525_v10  ;;  %v4930_v25 = vsel %vm2227_vm4, %v4928_v51, %v4929_v28  ;;  %v4932_v17 = vsel %vm2227_vm4, %v4929_v28, %v4931_v61  ;;  %v3945_v18 = vpop.f32.mrb[171].mxu1  ;;  %v10347_v52 = vpop.f32.mrb[166].mxu0  ;;  %11003 = vmatpush1.bf16.msra.mxu1 %v11002_v9  ;;  %v6681_v9 = vld [vmem:[#allocation8 + $0x218] sm:$0xff] }
 0x3b8   : > { %v5171_v60 = vmax.f32 %v5139_v26, 0.0  ;;  %v4675_v59 = vrot.slane %v3945_v18, 1  ;;  %v4934_v30 = vrot.slane %v10347_v52, 2  ;;  %v4282_v33 = vpop.f32.mrb[167].mxu0 }
 0x3b9   : > { %v5037_v19 = vadd.f32 %v4930_v25, %v4781_v23  ;;  %v4933_v14 = vrot.slane %v4282_v33, 2  ;;  %v13043_v23 = vld [vmem:[#allocation2] sm:$0xff] }
 0x3ba   : > { %5204 = vst [vmem:[#allocation3 + $0x21] sm:$0xff] %v5171_v60  ;;  %v4676_v10 = vsel %vm1970_vm3, %v4673_v29, %v4675_v59  ;;  %v3949_v5 = vpop.f32.mrb[172].mxu1 }
 0x3bb   : > { %v5140_v43 = vadd.f32 %v13026_v8, %v5037_v19  ;;  %v4782_v35 = vadd.f32 %v4676_v10, %v4526_v45  ;;  %v4935_v22 = vsel %vm2227_vm4, %v4933_v14, %v4934_v30  ;;  %v4527_v36 = vadd.f32 %v3949_v5, %v12845_v55  ;;  %v3951_v58 = vpop.f32.mrb[173].mxu1  ;;  %v10350_v34 = vpop.f32.mrb[168].mxu0  ;;  %v6684_v10 = vld [vmem:[#allocation8 + $0x230] sm:$0xff] }
 0x3bc   : > { %v4292_v16 = vpop.f32.mrb[169].mxu0  ;;  %v4677_v25 = vrot.slane %v3951_v58, 1  ;;  %v4938_v3 = vrot.slane %v10350_v34, 2  ;;  %v6680_v5 = vld [vmem:[#allocation8 + $0x210] sm:$0xff]  ;;  %v11004_v34 = vpack.c.bf16 %v6684_v10, %v6681_v9 }
 0x3bd   : > { %v5172_v61 = vmax.f32 %v5140_v43, 0.0  ;;  %v5038_v44 = vadd.f32 %v4932_v17, %v4782_v35  ;;  %v4936_v51 = vrot.slane %v4292_v16, 2  ;;  %v5270_v28 = vld [vmem:[#allocation3 + $0x18] sm:$0xff] }
 0x3be   : > { %v3955_v26 = vpop.f32.mrb[174].mxu1  ;;  %5445 = vmatmul.mubr.f32.gmra.mrb[214].mxu0 %v5270_v28  ;;  %10444 = vmatmul.mubr.f32.gmra.mrb[2].mxu1 %v5270_v28  ;;  %v6683_v16 = vld [vmem:[#allocation8 + $0x228] sm:$0xff] }
 0x3bf   : > { %5205 = vst [vmem:[#allocation3 + $0x31] sm:$0xff] %v5172_v61  ;;  %v5141_v29 = vadd.f32 %v13026_v8, %v5038_v44  ;;  %v4937_v45 = vsel %vm2227_vm4, %v4934_v30, %v4936_v51  ;;  %v4528_v24 = vadd.f32 %v3955_v26, %v12854_v0  ;;  %v3957_v48 = vpop.f32.mrb[175].mxu1  ;;  %v10353_v55 = vpop.f32.mrb[170].mxu0  ;;  %5450 = vmatprep.mubr.f32.mxu0 %v13043_v23 }
 0x3c0   : > { %v4678_v17 = vrot.slane %v3957_v48, 1  ;;  %v4941_v18 = vrot.slane %v10353_v55, 2  ;;  %v4302_v52 = vpop.f32.mrb[171].mxu0  ;;  %v11006_v44 = vpack.c.bf16 %v6683_v16, %v6680_v5  ;;  %11005 = vmatprep.subr.bf16.mxu1 %v11004_v34 }
 0x3c1   : > { %v5173_v53 = vmax.f32 %v5141_v29, 0.0  ;;  %v4939_v42 = vrot.slane %v4302_v52, 2  ;;  %v5271_v60 = vld [vmem:[#allocation3 + $0x20] sm:$0xff]  ;;  %v5272_v59 = vld [vmem:[#allocation3 + $0x28] sm:$0xff] }
 0x3c2   : > { %v4679_v33 = vsel %vm1970_vm3, %v4677_v25, %v4678_v17  ;;  %v3961_v30 = vpop.f32.mrb[176].mxu1  ;;  %5451 = vmatmul.mubr.f32.gmra.mrb[216].mxu0 %v5271_v60  ;;  %10446 = vmatprep.mubr.f32.mxu1 %v5271_v60 }
 0x3c3   : > { %5206 = vst [vmem:[#allocation3 + $0x39] sm:$0xff] %v5173_v53  ;;  %v4783_v0 = vadd.f32 %v4679_v33, %v4527_v36  ;;  %v13048_v62 = vsel %vm2227_vm4, %v4938_v3, %v4939_v42  ;;  %v13051_v2 = vsel %vm2227_vm4, %v4939_v42, %v4941_v18  ;;  %v3962_v19 = vpop.f32.mrb[177].mxu1  ;;  %v10356_v14 = vpop.f32.mrb[172].mxu0  ;;  %10447 = vmatmul.mubr.f32.gmra.mrb[4].mxu1 %v5272_v59  ;;  %v6703_v53 = vld [vmem:[#allocation8 + $0x2c8] sm:$0xff] }
 0x3c4   : > { %5456 = vmatprep.mubr.f32.mxu0 %v13043_v23  ;;  %v4680_v43 = vrot.slane %v3962_v19, 1  ;;  %v4944_v35 = vrot.slane %v10356_v14, 2  ;;  %v4312_v58 = vpop.f32.mrb[173].mxu0  ;;  %11007 = vmatpush1.bf16.msra.mxu1 %v11006_v44 }
 0x3c5   : > { %v5039_v36 = vadd.f32 %v4935_v22, %v4783_v0  ;;  %v4943_v61 = vrot.slane %v4312_v58, 2  ;;  %v6700_v22 = vld [vmem:[#allocation8 + $0x2b0] sm:$0xff] }
 0x3c6   : > { %v4681_v51 = vsel %vm1970_vm3, %v4678_v17, %v4680_v43  ;;  %v3966_v28 = vpop.f32.mrb[178].mxu1  ;;  %5457 = vmatmul.mubr.f32.gmra.mrb[218].mxu0 %v5272_v59  ;;  %v5273_v26 = vld [vmem:[#allocation3 + $0x30] sm:$0xff]  ;;  %v11048_v17 = vpack.c.bf16 %v6703_v53, %v6700_v22 }
 0x3c7   : > { %v5142_v29 = vadd.f32 %v13026_v8, %v5039_v36  ;;  %v4784_v48 = vadd.f32 %v4681_v51, %v4528_v24  ;;  %v13057_v55 = vsel %vm2227_vm4, %v4943_v61, %v4944_v35  ;;  %v4529_v25 = vadd.f32 %v3966_v28, %v12865_v56  ;;  %v3968_v18 = vpop.f32.mrb[179].mxu1  ;;  %v10359_v52 = vpop.f32.mrb[174].mxu0  ;;  %10449 = vmatprep.mubr.f32.mxu1 %v5273_v26 }
 0x3c8   : > { %v4322_v3 = vpop.f32.mrb[175].mxu0  ;;  %5461 = vmatprep.mubr.f32.mxu0 %v13043_v23  ;;  %11049 = vmatprep.subr.bf16.mxu0 %v11048_v17  ;;  %v4948_v34 = vrot.slane %v10359_v52, 2 }
 0x3c9   : > { %v5174_v42 = vmax.f32 %v5142_v29, 0.0  ;;  %v5040_v60 = vadd.f32 %v4937_v45, %v4784_v48  ;;  %v4946_v59 = vrot.slane %v4322_v3, 2  ;;  %v4682_v45 = vrot.slane %v3968_v18, 1  ;;  %11051 = vmatpush3.bf16.msra.mxu0 %v11048_v17  ;;  %v6690_v29 = vld [vmem:[#allocation8 + $0x260] sm:$0xff]  ;;  %v6689_v3 = vld [vmem:[#allocation8 + $0x258] sm:$0xff] }
 0x3ca   : > { %v3972_v33 = vpop.f32.mrb[180].mxu1  ;;  %5462 = vmatmul.mubr.f32.gmra.mrb[220].mxu0 %v5273_v26  ;;  %v5274_v24 = vld [vmem:[#allocation3 + $0x38] sm:$0xff]  ;;  %v5275_v30 = vld [vmem:[#allocation3 + $0x40] sm:$0xff]  ;;  %v6686_v48 = vld [vmem:[#allocation8 + $0x240] sm:$0xff] }
 0x3cb   : > { %5207 = vst [vmem:[#allocation3 + $0x49] sm:$0xff] %v5174_v42  ;;  %v5143_v56 = vadd.f32 %v13026_v8, %v5040_v60  ;;  %v13063_v0 = vsel %vm2227_vm4, %v4944_v35, %v4946_v59  ;;  %v4530_v19 = vadd.f32 %v3972_v33, %v12868_v1  ;;  %v3974_v14 = vpop.f32.mrb[181].mxu1  ;;  %v10362_v9 = vpop.f32.mrb[176].mxu0  ;;  %10450 = vmatmul.mubr.f32.gmra.mrb[6].mxu1 %v5274_v24  ;;  %v6687_v26 = vld [vmem:[#allocation8 + $0x248] sm:$0xff] }
 0x3cc   : > { %5467 = vmatprep.mubr.f32.mxu0 %v13043_v23  ;;  %v4683_v10 = vrot.slane %v3974_v14, 1  ;;  %v4951_v5 = vrot.slane %v10362_v9, 2  ;;  %v4332_v43 = vpop.f32.mrb[177].mxu0  ;;  %10452 = vmatprep.mubr.f32.mxu1 %v5275_v30  ;;  %v11008_v53 = vpack.c.bf16 %v6690_v29, %v6687_v26  ;;  %v11010_v42 = vpack.c.bf16 %v6689_v3, %v6686_v48 }
 0x3cd   : > { %v5175_v58 = vmax.f32 %v5143_v56, 0.0  ;;  %v4949_v16 = vrot.slane %v4332_v43, 2 }
 0x3ce   : > { %v4684_v36 = vsel %vm1970_vm3, %v4682_v45, %v4683_v10  ;;  %v3978_v35 = vpop.f32.mrb[182].mxu1  ;;  %5468 = vmatmul.mubr.f32.gmra.mrb[222].mxu0 %v5274_v24  ;;  %11009 = vmatprep.subr.bf16.mxu1 %v11008_v53 }
 0x3cf   : > { %5208 = vst [vmem:[#allocation3 + $0x51] sm:$0xff] %v5175_v58  ;;  %v4785_v1 = vadd.f32 %v4684_v36, %v4529_v25  ;;  %v13069_v61 = vsel %vm2227_vm4, %v4948_v34, %v4949_v16  ;;  %v13072_v44 = vsel %vm2227_vm4, %v4949_v16, %v4951_v5  ;;  %v3979_v51 = vpop.f32.mrb[183].mxu1  ;;  %v10365_v28 = vpop.f32.mrb[178].mxu0  ;;  %5473 = vmatprep.mubr.f32.mxu0 %v13043_v23 }
 0x3d0   : > { %v4685_v18 = vrot.slane %v3979_v51, 1  ;;  %v4954_v52 = vrot.slane %v10365_v28, 2  ;;  %v4342_v22 = vpop.f32.mrb[179].mxu0  ;;  %11011 = vmatpush1.bf16.msra.mxu1 %v11010_v42  ;;  %v6693_v42 = vld [vmem:[#allocation8 + $0x278] sm:$0xff] }
 0x3d1   : > { %v5041_v25 = vadd.f32 %v13048_v62, %v4785_v1  ;;  %v4953_v17 = vrot.slane %v4342_v22, 2 }
 0x3d2   : > { %v4686_v60 = vsel %vm1970_vm3, %v4683_v10, %v4685_v18  ;;  %v3983_v59 = vpop.f32.mrb[184].mxu1  ;;  %5474 = vmatmul.mubr.f32.gmra.mrb[224].mxu0 %v5275_v30  ;;  %v5276_v33 = vld [vmem:[#allocation3 + $0x48] sm:$0xff] }
 0x3d3   : > { %v5144_v24 = vadd.f32 %v13026_v8, %v5041_v25  ;;  %v4786_v56 = vadd.f32 %v4686_v60, %v4530_v19  ;;  %v13079_v14 = vsel %vm2227_vm4, %v4953_v17, %v4954_v52  ;;  %v4531_v9 = vadd.f32 %v3983_v59, %v12875_v50  ;;  %v3985_v45 = vpop.f32.mrb[185].mxu1  ;;  %v10368_v5 = vpop.f32.mrb[180].mxu0  ;;  %10453 = vmatmul.mubr.f32.gmra.mrb[8].mxu1 %v5276_v33  ;;  %v6696_v60 = vld [vmem:[#allocation8 + $0x290] sm:$0xff] }
 0x3d4   : > { %v4352_v62 = vpop.f32.mrb[181].mxu0  ;;  %5478 = vmatprep.mubr.f32.mxu0 %v13043_v23  ;;  %v4687_v51 = vrot.slane %v3985_v45, 1  ;;  %v4958_v48 = vrot.slane %v10368_v5, 2  ;;  %v6692_v59 = vld [vmem:[#allocation8 + $0x270] sm:$0xff]  ;;  %v11012_v45 = vpack.c.bf16 %v6696_v60, %v6693_v42  ;;  %v6695_v5 = vld [vmem:[#allocation8 + $0x288] sm:$0xff]  ;;  %v6702_v60 = vld [vmem:[#allocation8 + $0x2c0] sm:$0xff] }
 0x3d5   : > { %v5176_v10 = vmax.f32 %v5144_v24, 0.0  ;;  %v5042_v30 = vadd.f32 %v13051_v2, %v4786_v56  ;;  %v4956_v43 = vrot.slane %v4352_v62, 2 }
 0x3d6   : > { %v3989_v58 = vpop.f32.mrb[186].mxu1  ;;  %5479 = vmatmul.mubr.f32.gmra.mrb[226].mxu0 %v5276_v33  ;;  %v5277_v34 = vld [vmem:[#allocation3 + $0x50] sm:$0xff]  ;;  %v5278_v19 = vld [vmem:[#allocation3 + $0x58] sm:$0xff]  ;;  %11013 = vmatprep.subr.bf16.mxu1 %v11012_v45 }
 0x3d7   : > { %5209 = vst [vmem:[#allocation3 + $0x61] sm:$0xff] %v5176_v10  ;;  %v5145_v16 = vadd.f32 %v13026_v8, %v5042_v30  ;;  %v13086_v50 = vsel %vm2227_vm4, %v4954_v52, %v4956_v43  ;;  %v4532_v36 = vadd.f32 %v3989_v58, %v12884_v15  ;;  %v3991_v35 = vpop.f32.mrb[187].mxu1  ;;  %v10371_v1 = vpop.f32.mrb[182].mxu0  ;;  %10455 = vmatprep.mubr.f32.mxu1 %v5277_v34 }
 0x3d8   : > { %5484 = vmatprep.mubr.f32.mxu0 %v13043_v23  ;;  %v4688_v2 = vrot.slane %v3991_v35, 1  ;;  %v4961_v28 = vrot.slane %v10371_v1, 2  ;;  %v4362_v26 = vpop.f32.mrb[183].mxu0  ;;  %10456 = vmatmul.mubr.f32.gmra.mrb[10].mxu1 %v5278_v19  ;;  %v11014_v10 = vpack.c.bf16 %v6695_v5, %v6692_v59 }
 0x3d9   : > { %v5177_v29 = vmax.f32 %v5145_v16, 0.0  ;;  %v4959_v18 = vrot.slane %v4362_v26, 2  ;;  %v6709_v26 = vld [vmem:[#allocation8 + $0x2f8] sm:$0xff] }
 0x3da   : > { %v4689_v22 = vsel %vm1970_vm3, %v4687_v51, %v4688_v2  ;;  %v3995_v53 = vpop.f32.mrb[188].mxu1  ;;  %5485 = vmatmul.mubr.f32.gmra.mrb[228].mxu0 %v5277_v34  ;;  %11015 = vmatpush1.bf16.msra.mxu1 %v11014_v10 }
 0x3db   : > { %5210 = vst [vmem:[#allocation3 + $0x69] sm:$0xff] %v5177_v29  ;;  %v4787_v52 = vadd.f32 %v4689_v22, %v4531_v9  ;;  %v13092_v15 = vsel %vm2227_vm4, %v4958_v48, %v4959_v18  ;;  %v13095_v3 = vsel %vm2227_vm4, %v4959_v18, %v4961_v28  ;;  %v3996_v25 = vpop.f32.mrb[189].mxu1  ;;  %v10374_v17 = vpop.f32.mrb[184].mxu0  ;;  %5490 = vmatprep.mubr.f32.mxu0 %v13043_v23 }
 0x3dc   : > { %v4690_v33 = vrot.slane %v3996_v25, 1  ;;  %v4964_v24 = vrot.slane %v10374_v17, 2  ;;  %v4372_v56 = vpop.f32.mrb[185].mxu0 }
 0x3dd   : > { %v5043_v9 = vadd.f32 %v13057_v55, %v4787_v52  ;;  %v4963_v62 = vrot.slane %v4372_v56, 2  ;;  %v6706_v55 = vld [vmem:[#allocation8 + $0x2e0] sm:$0xff] }
 0x3de   : > { %v4691_v30 = vsel %vm1970_vm3, %v4688_v2, %v4690_v33  ;;  %v4000_v43 = vpop.f32.mrb[190].mxu1  ;;  %5491 = vmatmul.mubr.f32.gmra.mrb[230].mxu0 %v5278_v19  ;;  %v5279_v58 = vld [vmem:[#allocation3 + $0x60] sm:$0xff]  ;;  %v11052_v19 = vpack.c.bf16 %v6709_v26, %v6706_v55 }
 0x3df   : > { %v5146_v34 = vadd.f32 %v13026_v8, %v5043_v9  ;;  %v4788_v16 = vadd.f32 %v4691_v30, %v4532_v36  ;;  %v13102_v35 = vsel %vm2227_vm4, %v4963_v62, %v4964_v24  ;;  %v4533_v1 = vadd.f32 %v4000_v43, %v12895_v13  ;;  %v4002_v51 = vpop.f32.mrb[191].mxu1  ;;  %v10377_v28 = vpop.f32.mrb[186].mxu0  ;;  %10458 = vmatprep.mubr.f32.mxu1 %v5279_v58  ;;  %v6698_v9 = vld [vmem:[#allocation8 + $0x2a0] sm:$0xff]  ;;  %v6701_v62 = vld [vmem:[#allocation8 + $0x2b8] sm:$0xff] }
 0x3e0   : > { %v4382_v29 = vpop.f32.mrb[187].mxu0  ;;  %5495 = vmatprep.mubr.f32.mxu0 %v13043_v23  ;;  %11053 = vmatprep.subr.bf16.mxu0 %v11052_v19  ;;  %v4692_v59 = vrot.slane %v4002_v51, 1  ;;  %v4968_v10 = vrot.slane %v10377_v28, 2  ;;  %v6705_v28 = vld [vmem:[#allocation8 + $0x2d8] sm:$0xff] }
 0x3e1   : > { %v5178_v2 = vmax.f32 %v5146_v34, 0.0  ;;  %v5044_v48 = vadd.f32 %v13063_v0, %v4788_v16  ;;  %v4966_v18 = vrot.slane %v4382_v29, 2  ;;  %v6699_v0 = vld [vmem:[#allocation8 + $0x2a8] sm:$0xff]  ;;  %11055 = vmatpush3.bf16.msra.mxu0 %v11052_v19  ;;  %v6708_v29 = vld [vmem:[#allocation8 + $0x2f0] sm:$0xff] }
 0x3e2   : > { %v4006_v36 = vpop.f32.mrb[192].mxu1  ;;  %5496 = vmatmul.mubr.f32.gmra.mrb[232].mxu0 %v5279_v58  ;;  %v5280_v22 = vld [vmem:[#allocation3 + $0x68] sm:$0xff]  ;;  %v5281_v53 = vld [vmem:[#allocation3 + $0x70] sm:$0xff]  ;;  %v11016_v5 = vpack.c.bf16 %v6702_v60, %v6699_v0 }
 0x3e3   : > { %5211 = vst [vmem:[#allocation3 + $0x79] sm:$0xff] %v5178_v2  ;;  %v5147_v13 = vadd.f32 %v13026_v8, %v5044_v48  ;;  %v13109_v52 = vsel %vm2227_vm4, %v4964_v24, %v4966_v18  ;;  %v4534_v25 = vadd.f32 %v4006_v36, %v12898_v54  ;;  %v4008_v17 = vpop.f32.mrb[193].mxu1  ;;  %v10380_v42 = vpop.f32.mrb[188].mxu0  ;;  %10459 = vmatmul.mubr.f32.gmra.mrb[12].mxu1 %v5280_v22  ;;  %v6704_v36 = vld [vmem:[#allocation8 + $0x2d0] sm:$0xff] }
 0x3e4   : > { %5501 = vmatprep.mubr.f32.mxu0 %v13043_v23  ;;  %v4693_v33 = vrot.slane %v4008_v17, 1  ;;  %v4971_v56 = vrot.slane %v10380_v42, 2  ;;  %v4392_v45 = vpop.f32.mrb[189].mxu0  ;;  %10461 = vmatprep.mubr.f32.mxu1 %v5281_v53  ;;  %v11018_v54 = vpack.c.bf16 %v6701_v62, %v6698_v9  ;;  %v11020_v18 = vpack.c.bf16 %v6708_v29, %v6705_v28  ;;  %v8011_v29 = vld [vmem:[#allocation8 + $0x308] sm:$0xff] }
 0x3e5   : > { %v5179_v24 = vmax.f32 %v5147_v13, 0.0  ;;  %v4969_v30 = vrot.slane %v4392_v45, 2  ;;  %11017 = vmatprep.subr.bf16.mxu1 %v11016_v5 }
 0x3e6   : > { %v4694_v43 = vsel %vm1970_vm3, %v4692_v59, %v4693_v33  ;;  %v4012_v58 = vpop.f32.mrb[194].mxu1  ;;  %5502 = vmatmul.mubr.f32.gmra.mrb[234].mxu0 %v5280_v22  ;;  %11019 = vmatpush1.bf16.msra.mxu1 %v11018_v54  ;;  %v6707_v22 = vld [vmem:[#allocation8 + $0x2e8] sm:$0xff] }
 0x3e7   : > { %5212 = vst [vmem:[#allocation3 + $0x81] sm:$0xff] %v5179_v24  ;;  %v4789_v34 = vadd.f32 %v4694_v43, %v4533_v1  ;;  %v13115_v16 = vsel %vm2227_vm4, %v4968_v10, %v4969_v30  ;;  %v13118_v51 = vsel %vm2227_vm4, %v4969_v30, %v4971_v56  ;;  %v4013_v55 = vpop.f32.mrb[195].mxu1  ;;  %v10383_v26 = vpop.f32.mrb[190].mxu0  ;;  %5507 = vmatprep.mubr.f32.mxu0 %v13043_v23 }
 0x3e8   : > { %v4695_v19 = vrot.slane %v4013_v55, 1  ;;  %v4974_v2 = vrot.slane %v10383_v26, 2  ;;  %v4402_v48 = vpop.f32.mrb[191].mxu0  ;;  %v11022_v17 = vpack.c.bf16 %v6707_v22, %v6704_v36  ;;  %11021 = vmatprep.subr.bf16.mxu1 %v11020_v18 }
 0x3e9   : > { %v5045_v1 = vadd.f32 %v13069_v61, %v4789_v34  ;;  %v4973_v13 = vrot.slane %v4402_v48, 2 }
 0x3ea   : > { %v4696_v42 = vsel %vm1970_vm3, %v4693_v33, %v4695_v19  ;;  %v4017_v0 = vpop.f32.mrb[196].mxu1  ;;  %5508 = vmatmul.mubr.f32.gmra.mrb[236].mxu0 %v5281_v53  ;;  %v5282_v60 = vld [vmem:[#allocation3 + $0x78] sm:$0xff]  ;;  %11023 = vmatpush1.bf16.msra.mxu1 %v11022_v17  ;;  %v8014_v19 = vld [vmem:[#allocation8 + $0x320] sm:$0xff] }
 0x3eb   : > { %v5148_v59 = vadd.f32 %v13026_v8, %v5045_v1  ;;  %v4790_v56 = vadd.f32 %v4696_v42, %v4534_v25  ;;  %v13125_v45 = vsel %vm2227_vm4, %v4973_v13, %v4974_v2  ;;  %v4535_v5 = vadd.f32 %v4017_v0, %v12905_v46  ;;  %v4019_v9 = vpop.f32.mrb[197].mxu1  ;;  %v10386_v62 = vpop.f32.mrb[192].mxu0  ;;  %10462 = vmatmul.mubr.f32.gmra.mrb[14].mxu1 %v5282_v60 }
 0x3ec   : > { %v4412_v61 = vpop.f32.mrb[193].mxu0  ;;  %5512 = vmatprep.mubr.f32.mxu0 %v13043_v23  ;;  %v4697_v55 = vrot.slane %v4019_v9, 1  ;;  %v4978_v18 = vrot.slane %v10386_v62, 2  ;;  %v11056_v22 = vpack.c.bf16 %v8014_v19, %v8011_v29 }
 0x3ed   : > { %v5180_v33 = vmax.f32 %v5148_v59, 0.0  ;;  %v5046_v53 = vadd.f32 %v13072_v44, %v4790_v56  ;;  %v4976_v24 = vrot.slane %v4412_v61, 2  ;;  %v8015_v59 = vld [vmem:[#allocation8 + $0x328] sm:$0xff] }
 0x3ee   : > { %v4023_v10 = vpop.f32.mrb[198].mxu1  ;;  %5513 = vmatmul.mubr.f32.gmra.mrb[238].mxu0 %v5282_v60  ;;  %v5283_v30 = vld [vmem:[#allocation3 + $0x80] sm:$0xff]  ;;  %v5284_v25 = vld [vmem:[#allocation3 + $0x88] sm:$0xff]  ;;  %11057 = vmatprep.subr.bf16.mxu0 %v11056_v22 }
 0x3ef   : > { %5213 = vst [vmem:[#allocation3 + $0x91] sm:$0xff] %v5180_v33  ;;  %v5149_v54 = vadd.f32 %v13026_v8, %v5046_v53  ;;  %v13132_v46 = vsel %vm2227_vm4, %v4974_v2, %v4976_v24  ;;  %v4536_v43 = vadd.f32 %v4023_v10, %v12914_v11  ;;  %v4025_v58 = vpop.f32.mrb[199].mxu1  ;;  %v10389_v34 = vpop.f32.mrb[194].mxu0  ;;  %10464 = vmatprep.mubr.f32.mxu1 %v5283_v30  ;;  %v8012_v60 = vld [vmem:[#allocation8 + $0x310] sm:$0xff] }
 0x3f0   : > { %5518 = vmatprep.mubr.f32.mxu0 %v13043_v23  ;;  %v4698_v44 = vrot.slane %v4025_v58, 1  ;;  %v4981_v26 = vrot.slane %v10389_v34, 2  ;;  %v4422_v28 = vpop.f32.mrb[195].mxu0  ;;  %10465 = vmatmul.mubr.f32.gmra.mrb[16].mxu1 %v5284_v25  ;;  %v13144_v61 = vpack.c.bf16 %v8015_v59, %v8012_v60 }
 0x3f1   : > { %v5181_v48 = vmax.f32 %v5149_v54, 0.0  ;;  %v4979_v36 = vrot.slane %v4422_v28, 2 }
 0x3f2   : > { %v4699_v2 = vsel %vm1970_vm3, %v4697_v55, %v4698_v44  ;;  %v4029_v1 = vpop.f32.mrb[200].mxu1  ;;  %5519 = vmatmul.mubr.f32.gmra.mrb[240].mxu0 %v5283_v30  ;;  %11089 = vmatprep.subr.bf16.mxu1 %v13144_v61 }
 0x3f3   : > { %5214 = vst [vmem:[#allocation3 + $0x99] sm:$0xff] %v5181_v48  ;;  %v4791_v11 = vadd.f32 %v4699_v2, %v4535_v5  ;;  %v13138_v13 = vsel %vm2227_vm4, %v4978_v18, %v4979_v36  ;;  %v13141_v17 = vsel %vm2227_vm4, %v4979_v36, %v4981_v26  ;;  %v4030_v42 = vpop.f32.mrb[201].mxu1  ;;  %v10392_v0 = vpop.f32.mrb[196].mxu0  ;;  %5524 = vmatprep.mubr.f32.mxu0 %v13043_v23 }
 0x3f4   : > { %v4700_v56 = vrot.slane %v4030_v42, 1  ;;  %v4984_v9 = vrot.slane %v10392_v0, 2  ;;  %v4432_v62 = vpop.f32.mrb[197].mxu0 }
 0x3f5   : > { %v5047_v5 = vadd.f32 %v13079_v14, %v4791_v11  ;;  %v4983_v33 = vrot.slane %v4432_v62, 2 }
 0x3f6   : > { %v4701_v53 = vsel %vm1970_vm3, %v4698_v44, %v4700_v56  ;;  %v4034_v24 = vpop.f32.mrb[202].mxu1  ;;  %5525 = vmatmul.mubr.f32.gmra.mrb[242].mxu0 %v5284_v25  ;;  %v5285_v10 = vld [vmem:[#allocation3 + $0x90] sm:$0xff] }
 0x3f7   : > { %v5150_v30 = vadd.f32 %v13026_v8, %v5047_v5  ;;  %v4792_v54 = vadd.f32 %v4701_v53, %v4536_v43  ;;  %v13151_v58 = vsel %vm2227_vm4, %v4983_v33, %v4984_v9  ;;  %v4537_v34 = vadd.f32 %v4034_v24, %v12925_v57  ;;  %v4036_v55 = vpop.f32.mrb[203].mxu1  ;;  %v10395_v26 = vpop.f32.mrb[198].mxu0  ;;  %10467 = vmatprep.mubr.f32.mxu1 %v5285_v10 }
 0x3f8   : > { %v4442_v14 = vpop.f32.mrb[199].mxu0  ;;  %5529 = vmatprep.mubr.f32.mxu0 %v13043_v23  ;;  %v4702_v2 = vrot.slane %v4036_v55, 1  ;;  %v4988_v0 = vrot.slane %v10395_v26, 2 }
 0x3f9   : > { %v5182_v44 = vmax.f32 %v5150_v30, 0.0  ;;  %v5048_v25 = vadd.f32 %v13086_v50, %v4792_v54  ;;  %v4986_v28 = vrot.slane %v4442_v14, 2 }
 0x3fa   : > { %v4040_v29 = vpop.f32.mrb[204].mxu1  ;;  %5530 = vmatmul.mubr.f32.gmra.mrb[244].mxu0 %v5285_v10  ;;  %v5286_v19 = vld [vmem:[#allocation3 + $0x98] sm:$0xff]  ;;  %v5287_v48 = vld [vmem:[#allocation3 + $0xa0] sm:$0xff] }
 0x3fb   : > { %5215 = vst [vmem:[#allocation3 + $0xa9] sm:$0xff] %v5182_v44  ;;  %v5151_v43 = vadd.f32 %v13026_v8, %v5048_v25  ;;  %v13158_v18 = vsel %vm2227_vm4, %v4984_v9, %v4986_v28  ;;  %v4538_v57 = vadd.f32 %v4040_v29, %v12928_v63  ;;  %v4042_v36 = vpop.f32.mrb[205].mxu1  ;;  %v10398_v22 = vpop.f32.mrb[200].mxu0  ;;  %10468 = vmatmul.mubr.f32.gmra.mrb[18].mxu1 %v5286_v19 }
 0x3fc   : > { %5535 = vmatprep.mubr.f32.mxu0 %v13043_v23  ;;  %v4703_v50 = vrot.slane %v4042_v36, 1  ;;  %v4991_v1 = vrot.slane %v10398_v22, 2  ;;  %v4452_v11 = vpop.f32.mrb[201].mxu0  ;;  %10470 = vmatprep.mubr.f32.mxu1 %v5287_v48 }
 0x3fd   : > { %v5183_v42 = vmax.f32 %v5151_v43, 0.0  ;;  %v4989_v60 = vrot.slane %v4452_v11, 2 }
 0x3fe   : > { %v4704_v59 = vsel %vm1970_vm3, %v4702_v2, %v4703_v50  ;;  %v4046_v56 = vpop.f32.mrb[206].mxu1  ;;  %5536 = vmatmul.mubr.f32.gmra.mrb[246].mxu0 %v5286_v19 }
 0x3ff   : > { %5216 = vst [vmem:[#allocation3 + $0xb1] sm:$0xff] %v5183_v42  ;;  %v4793_v9 = vadd.f32 %v4704_v59, %v4537_v34  ;;  %v13164_v63 = vsel %vm2227_vm4, %v4988_v0, %v4989_v60  ;;  %v13167_v62 = vsel %vm2227_vm4, %v4989_v60, %v4991_v1  ;;  %v4047_v5 = vpop.f32.mrb[207].mxu1  ;;  %v10401_v33 = vpop.f32.mrb[202].mxu0  ;;  %5541 = vmatprep.mubr.f32.mxu0 %v13043_v23 }
 0x400   : > { %v4705_v53 = vrot.slane %v4047_v5, 1  ;;  %v4994_v24 = vrot.slane %v10401_v33, 2  ;;  %v4462_v10 = vpop.f32.mrb[203].mxu0 }
 0x401   : > { %v5049_v30 = vadd.f32 %v13092_v15, %v4793_v9  ;;  %v4993_v54 = vrot.slane %v4462_v10, 2 }
 0x402   : > { %v4706_v55 = vsel %vm1970_vm3, %v4703_v50, %v4705_v53  ;;  %v4051_v26 = vpop.f32.mrb[208].mxu1  ;;  %5542 = vmatmul.mubr.f32.gmra.mrb[248].mxu0 %v5287_v48  ;;  %v5288_v34 = vld [vmem:[#allocation3 + $0xa8] sm:$0xff] }
 0x403   : > { %v5152_v14 = vadd.f32 %v13026_v8, %v5049_v30  ;;  %v4794_v44 = vadd.f32 %v4706_v55, %v4538_v57  ;;  %v13174_v25 = vsel %vm2227_vm4, %v4993_v54, %v4994_v24  ;;  %v4539_v28 = vadd.f32 %v4051_v26, %v12934_v39  ;;  %v4053_v29 = vpop.f32.mrb[209].mxu1  ;;  %v10404_v19 = vpop.f32.mrb[204].mxu0  ;;  %10471 = vmatmul.mubr.f32.gmra.mrb[20].mxu1 %v5288_v34 }
 0x404   : > { %v4472_v43 = vpop.f32.mrb[205].mxu0  ;;  %5546 = vmatprep.mubr.f32.mxu0 %v13043_v23  ;;  %v4998_v1 = vrot.slane %v10404_v19, 2 }
 0x405   : > { %v5184_v15 = vmax.f32 %v5152_v14, 0.0  ;;  %v5050_v36 = vadd.f32 %v13095_v3, %v4794_v44  ;;  %v4996_v22 = vrot.slane %v4472_v43, 2  ;;  %v4707_v3 = vrot.slane %v4053_v29, 1 }
 0x406   : > { %v4057_v48 = vpop.f32.mrb[210].mxu1  ;;  %5547 = vmatmul.mubr.f32.gmra.mrb[250].mxu0 %v5288_v34  ;;  %v5289_v2 = vld [vmem:[#allocation3 + $0xb0] sm:$0xff]  ;;  %v5290_v50 = vld [vmem:[#allocation3 + $0xb8] sm:$0xff] }
 0x407   : > { %5217 = vst [vmem:[#allocation3 + $0xc1] sm:$0xff] %v5184_v15  ;;  %v5153_v57 = vadd.f32 %v13026_v8, %v5050_v36  ;;  %v13181_v39 = vsel %vm2227_vm4, %v4994_v24, %v4996_v22  ;;  %v4540_v11 = vadd.f32 %v4057_v48, %v12942_v12  ;;  %v4059_v42 = vpop.f32.mrb[211].mxu1  ;;  %10473 = vmatprep.mubr.f32.mxu1 %v5289_v2  ;;  %v10407_v0 = vpop.f32.mrb[206].mxu0 }
 0x408   : > { %5552 = vmatprep.mubr.f32.mxu0 %v13043_v23  ;;  %v4708_v60 = vrot.slane %v4059_v42, 1  ;;  %10474 = vmatmul.mubr.f32.gmra.mrb[22].mxu1 %v5290_v50  ;;  %v5001_v59 = vrot.slane %v10407_v0, 2  ;;  %v4482_v56 = vpop.f32.mrb[207].mxu0 }
 0x409   : > { %v5185_v9 = vmax.f32 %v5153_v57, 0.0  ;;  %v4999_v5 = vrot.slane %v4482_v56, 2 }
 0x40a   : > { %v4709_v33 = vsel %vm1970_vm3, %v4707_v3, %v4708_v60  ;;  %v4063_v53 = vpop.f32.mrb[212].mxu1  ;;  %5553 = vmatmul.mubr.f32.gmra.mrb[252].mxu0 %v5289_v2 }
 0x40b   : > { %5218 = vst [vmem:[#allocation3 + $0xc9] sm:$0xff] %v5185_v9  ;;  %v4795_v24 = vadd.f32 %v4709_v33, %v4539_v28  ;;  %v4064_v10 = vpop.f32.mrb[213].mxu1  ;;  %5558 = vmatprep.mubr.f32.mxu0 %v13043_v23  ;;  %v13188_v12 = vsel %vm2227_vm4, %v4998_v1, %v4999_v5  ;;  %v13191_v30 = vsel %vm2227_vm4, %v4999_v5, %v5001_v59  ;;  %v5429_v54 = vpop.f32.mrb[208].mxu0 }
 0x40c   : > { %v4710_v55 = vrot.slane %v4064_v10, 1  ;;  %v5431_v26 = vpop.f32.mrb[209].mxu0 }
 0x40d   : > { %v5051_v34 = vadd.f32 %v13102_v35, %v4795_v24  ;;  %v6181_v36 = vrot.slane %v5431_v26, 1 }
 0x40e   : > { %v4711_v14 = vsel %vm1970_vm3, %v4708_v60, %v4710_v55  ;;  %v4068_v44 = vpop.f32.mrb[214].mxu1  ;;  %5559 = vmatmul.mubr.f32.gmra.mrb[254].mxu0 %v5290_v50  ;;  %v5291_v29 = vld [vmem:[#allocation3 + $0xc0] sm:$0xff] }
 0x40f   : > { %v5154_v28 = vadd.f32 %v13026_v8, %v5051_v34  ;;  %v4796_v19 = vadd.f32 %v4711_v14, %v4540_v11  ;;  %v4541_v43 = vadd.f32 %v4068_v44, %v12950_v38  ;;  %v4070_v15 = vpop.f32.mrb[215].mxu1  ;;  %10476 = vmatprep.mubr.f32.mxu1 %v5291_v29  ;;  %5563 = vmatprep.mubr.f32.mxu0 %v13043_v23  ;;  %v5435_v22 = vpop.f32.mrb[210].mxu0 }
 0x410   : > { %v5437_v48 = vpop.f32.mrb[211].mxu0  ;;  %v4712_v59 = vrot.slane %v4070_v15, 1 }
 0x411   : > { %v5186_v2 = vmax.f32 %v5154_v28, 0.0  ;;  %v5052_v35 = vadd.f32 %v13109_v52, %v4796_v19  ;;  %v6182_v57 = vrot.slane %v5437_v48, 1 }
 0x412   : > { %v4074_v1 = vpop.f32.mrb[216].mxu1  ;;  %5564 = vmatmul.mubr.f32.gmra.mrb[0].mxu0 %v5291_v29  ;;  %v5292_v50 = vld [vmem:[#allocation3 + $0xc8] sm:$0xff]  ;;  %v5293_v42 = vld [vmem:[#allocation3 + $0xd0] sm:$0xff] }
 0x413   : > { %5219 = vst [vmem:[#allocation3 + $0xd9] sm:$0xff] %v5186_v2  ;;  %v5155_v11 = vadd.f32 %v13026_v8, %v5052_v35  ;;  %v4542_v38 = vadd.f32 %v4074_v1, %v12953_v32  ;;  %v4076_v0 = vpop.f32.mrb[217].mxu1  ;;  %10477 = vmatmul.mubr.f32.gmra.mrb[24].mxu1 %v5292_v50  ;;  %5569 = vmatprep.mubr.f32.mxu0 %v13043_v23  ;;  %v5441_v60 = vpop.f32.mrb[212].mxu0  ;;  %v13217_v29 = vld [vmem:[%s14351_s4] ss:$0 sm:$0xff] }
 0x414   : > { %v6183_v3 = vsel %vm1970_vm3, %v6181_v36, %v6182_v57  ;;  %v4713_v56 = vrot.slane %v4076_v0, 1  ;;  %10479 = vmatprep.mubr.f32.mxu1 %v5293_v42  ;;  %v5442_v52 = vpop.f32.mrb[213].mxu0 }
 0x415   : > { %v13203_v9 = vadd.f32 %v6183_v3, %v5429_v54  ;;  %v5187_v5 = vmax.f32 %v5155_v11, 0.0  ;;  %v6184_v33 = vrot.slane %v5442_v52, 1 }
 0x416   : > { %v4714_v53 = vsel %vm1970_vm3, %v4712_v59, %v4713_v56  ;;  %v4080_v8 = vpop.f32.mrb[218].mxu1  ;;  %5570 = vmatmul.mubr.f32.gmra.mrb[2].mxu0 %v5292_v50 }
 0x417   : > { %5220 = vst [vmem:[#allocation3 + $0xe1] sm:$0xff] %v5187_v5  ;;  %v4797_v32 = vadd.f32 %v4714_v53, %v4541_v43  ;;  %v4081_v24 = vpop.f32.mrb[219].mxu1  ;;  %5575 = vmatprep.mubr.f32.mxu0 %v13043_v23  ;;  %v6185_v10 = vsel %vm1970_vm3, %v6182_v57, %v6184_v33 }
 0x418   : > { %v4715_v55 = vrot.slane %v4081_v24, 1  ;;  %v13208_v26 = vadd.f32 %v6185_v10, %v5435_v22 }
 0x419   : > { %v5053_v34 = vadd.f32 %v13115_v16, %v4797_v32 }
 0x41a   : > { %v4716_v54 = vsel %vm1970_vm3, %v4713_v56, %v4715_v55  ;;  %v4085_v14 = vpop.f32.mrb[220].mxu1  ;;  %5576 = vmatmul.mubr.f32.gmra.mrb[4].mxu0 %v5293_v42  ;;  %v13212_v44 = vld [vmem:[#allocation3 + $0xd8] sm:$0xff] }
 0x41b   : > { %v5156_v28 = vadd.f32 %v13217_v29, %v5053_v34  ;;  %v4798_v19 = vadd.f32 %v4716_v54, %v4542_v38  ;;  %v4543_v43 = vadd.f32 %v4085_v14, %v12960_v41  ;;  %v4087_v15 = vpop.f32.mrb[221].mxu1  ;;  %10480 = vmatmul.mubr.f32.gmra.mrb[26].mxu1 %v13212_v44  ;;  %5580 = vmatprep.mubr.f32.mxu0 %v13043_v23 }
 0x41c   : > { %v4717_v1 = vrot.slane %v4087_v15, 1 }
 0x41d   : > { %v5188_v16 = vmax.f32 %v5156_v28, 0.0  ;;  %v5054_v36 = vadd.f32 %v13118_v51, %v4798_v19 }
 0x41e   : > { %v4091_v22 = vpop.f32.mrb[222].mxu1  ;;  %5581 = vmatmul.mubr.f32.gmra.mrb[6].mxu0 %v13212_v44  ;;  %v13225_v48 = vld [vmem:[#allocation3 + $0xe0] sm:$0xff]  ;;  %v13227_v2 = vld [vmem:[#allocation3 + $0xe8] sm:$0xff] }
 0x41f   : > { %5221 = vst [vmem:[#allocation3 + $0xf1] sm:$0xff] %v5188_v16  ;;  %v5157_v35 = vadd.f32 %v13217_v29, %v5054_v36  ;;  %v4544_v41 = vadd.f32 %v4091_v22, %v12967_v27  ;;  %v4093_v57 = vpop.f32.mrb[223].mxu1  ;;  %10482 = vmatprep.mubr.f32.mxu1 %v13225_v48  ;;  %5586 = vmatprep.mubr.f32.mxu0 %v13043_v23 }
 0x420   : > { %v4718_v50 = vrot.slane %v4093_v57, 1  ;;  %10483 = vmatmul.mubr.f32.gmra.mrb[28].mxu1 %v13227_v2 }
 0x421   : > { %v5189_v51 = vmax.f32 %v5157_v35, 0.0 }
 0x422   : > { %v4719_v42 = vsel %vm1970_vm3, %v4717_v1, %v4718_v50  ;;  %v4097_v11 = vpop.f32.mrb[224].mxu1  ;;  %5587 = vmatmul.mubr.f32.gmra.mrb[8].mxu0 %v13225_v48 }
 0x423   : > { %5222 = vst [vmem:[#allocation3 + $0xf9] sm:$0xff] %v5189_v51  ;;  %v4799_v38 = vadd.f32 %v4719_v42, %v4543_v43  ;;  %v4098_v0 = vpop.f32.mrb[225].mxu1  ;;  %5592 = vmatprep.mubr.f32.mxu0 %v13043_v23  ;;  %v13268_v51 = vld [vmem:[#allocation2] sm:$0xff] }
 0x424   : > { %v4720_v27 = vrot.slane %v4098_v0, 1 }
 0x425   : > { %v5055_v3 = vadd.f32 %v13125_v45, %v4799_v38 }
 0x426   : > { %v4721_v60 = vsel %vm1970_vm3, %v4718_v50, %v4720_v27  ;;  %v4102_v59 = vpop.f32.mrb[226].mxu1  ;;  %5593 = vmatmul.mubr.f32.gmra.mrb[10].mxu0 %v13227_v2  ;;  %v13240_v56 = vld [vmem:[#allocation3 + $0xf0] sm:$0xff] }
 0x427   : > { %v5158_v52 = vadd.f32 %v13217_v29, %v5055_v3  ;;  %v4800_v5 = vadd.f32 %v4721_v60, %v4544_v41  ;;  %v4545_v33 = vadd.f32 %v4102_v59, %v12976_v47  ;;  %v4104_v53 = vpop.f32.mrb[227].mxu1  ;;  %10485 = vmatprep.mubr.f32.mxu1 %v13240_v56  ;;  %5597 = vmatprep.mubr.f32.mxu0 %v13043_v23 }
 0x428   : > { %v4722_v54 = vrot.slane %v4104_v53, 1 }
 0x429   : > { %v5190_v8 = vmax.f32 %v5158_v52, 0.0  ;;  %v5056_v45 = vadd.f32 %v13132_v46, %v4800_v5 }
 0x42a   : > { %v4108_v32 = vpop.f32.mrb[228].mxu1  ;;  %5598 = vmatmul.mubr.f32.gmra.mrb[12].mxu0 %v13240_v56  ;;  %v13248_v24 = vld [vmem:[#allocation3 + $0xf8] sm:$0xff]  ;;  %v13250_v10 = vld [vmem:[#allocation3 + $0x100] sm:$0xff] }
 0x42b   : > { %5223 = vst [vmem:[#allocation3 + $0x109] sm:$0xff] %v5190_v8  ;;  %v5159_v55 = vadd.f32 %v13217_v29, %v5056_v45  ;;  %v4546_v47 = vadd.f32 %v4108_v32, %v12978_v7  ;;  %v4110_v34 = vpop.f32.mrb[229].mxu1  ;;  %10486 = vmatmul.mubr.f32.gmra.mrb[30].mxu1 %v13248_v24  ;;  %5603 = vmatprep.mubr.f32.mxu0 %v13043_v23 }
 0x42c   : > { %v4723_v14 = vrot.slane %v4110_v34, 1  ;;  %10488 = vmatprep.mubr.f32.mxu1 %v13250_v10 }
 0x42d   : > { %v5191_v46 = vmax.f32 %v5159_v55, 0.0 }
 0x42e   : > { %v4724_v28 = vsel %vm1970_vm3, %v4722_v54, %v4723_v14  ;;  %v4114_v19 = vpop.f32.mrb[230].mxu1  ;;  %5604 = vmatmul.mubr.f32.gmra.mrb[14].mxu0 %v13248_v24 }
 0x42f   : > { %5224 = vst [vmem:[#allocation3 + $0x111] sm:$0xff] %v5191_v46  ;;  %v4801_v43 = vadd.f32 %v4724_v28, %v4545_v33  ;;  %v4115_v15 = vpop.f32.mrb[231].mxu1  ;;  %5609 = vmatprep.mubr.f32.mxu0 %v13043_v23 }
 0x430   : > { %v4725_v7 = vrot.slane %v4115_v15, 1 }
 0x431   : > { %v5057_v16 = vadd.f32 %v13138_v13, %v4801_v43 }
 0x432   : > { %v4726_v36 = vsel %vm1970_vm3, %v4723_v14, %v4725_v7  ;;  %v4119_v22 = vpop.f32.mrb[232].mxu1  ;;  %5610 = vmatmul.mubr.f32.gmra.mrb[16].mxu0 %v13250_v10  ;;  %v13263_v35 = vld [vmem:[#allocation3 + $0x108] sm:$0xff] }
 0x433   : > { %v5160_v41 = vadd.f32 %v13217_v29, %v5057_v16  ;;  %v4802_v57 = vadd.f32 %v4726_v36, %v4546_v47  ;;  %v4547_v1 = vadd.f32 %v4119_v22, %v12984_v37  ;;  %v4121_v50 = vpop.f32.mrb[233].mxu1  ;;  %10489 = vmatmul.mubr.f32.gmra.mrb[32].mxu1 %v13263_v35  ;;  %5614 = vmatprep.mubr.f32.mxu0 %v13268_v51 }
 0x434   : > { %v4727_v3 = vrot.slane %v4121_v50, 1 }
 0x435   : > { %v5192_v23 = vmax.f32 %v5160_v41, 0.0  ;;  %v5058_v13 = vadd.f32 %v13141_v17, %v4802_v57 }
 0x436   : > { %v4125_v42 = vpop.f32.mrb[234].mxu1  ;;  %5615 = vmatmul.mubr.f32.gmra.mrb[18].mxu0 %v13263_v35  ;;  %v13273_v11 = vld [vmem:[#allocation3 + $0x110] sm:$0xff]  ;;  %v13275_v38 = vld [vmem:[#allocation3 + $0x118] sm:$0xff] }
 0x437   : > { %5225 = vst [vmem:[#allocation3 + $0x121] sm:$0xff] %v5192_v23  ;;  %v5161_v37 = vadd.f32 %v13217_v29, %v5058_v13  ;;  %v4548_v0 = vadd.f32 %v4125_v42, %v12989_v49  ;;  %v4127_v27 = vpop.f32.mrb[235].mxu1  ;;  %10491 = vmatprep.mubr.f32.mxu1 %v13273_v11  ;;  %5620 = vmatprep.mubr.f32.mxu0 %v13268_v51 }
 0x438   : > { %v4728_v60 = vrot.slane %v4127_v27, 1  ;;  %10492 = vmatmul.mubr.f32.gmra.mrb[34].mxu1 %v13275_v38 }
 0x439   : > { %v5193_v17 = vmax.f32 %v5161_v37, 0.0 }
 0x43a   : > { %v4729_v59 = vsel %vm1970_vm3, %v4727_v3, %v4728_v60  ;;  %v4131_v52 = vpop.f32.mrb[236].mxu1  ;;  %5621 = vmatmul.mubr.f32.gmra.mrb[20].mxu0 %v13273_v11 }
 0x43b   : > { %5226 = vst [vmem:[#allocation3 + $0x129] sm:$0xff] %v5193_v17  ;;  %v4803_v5 = vadd.f32 %v4729_v59, %v4547_v1  ;;  %v4132_v33 = vpop.f32.mrb[237].mxu1  ;;  %5626 = vmatprep.mubr.f32.mxu0 %v13268_v51 }
 0x43c   : > { %v4730_v49 = vrot.slane %v4132_v33, 1 }
 0x43d   : > { %v5059_v53 = vadd.f32 %v13151_v58, %v4803_v5 }
 0x43e   : > { %v4731_v8 = vsel %vm1970_vm3, %v4728_v60, %v4730_v49  ;;  %v4136_v45 = vpop.f32.mrb[238].mxu1  ;;  %5627 = vmatmul.mubr.f32.gmra.mrb[22].mxu0 %v13275_v38  ;;  %v13288_v32 = vld [vmem:[#allocation3 + $0x120] sm:$0xff] }
 0x43f   : > { %v5162_v55 = vadd.f32 %v13217_v29, %v5059_v53  ;;  %v4804_v47 = vadd.f32 %v4731_v8, %v4548_v0  ;;  %v4549_v34 = vadd.f32 %v4136_v45, %v12995_v31  ;;  %v4138_v54 = vpop.f32.mrb[239].mxu1  ;;  %10494 = vmatprep.mubr.f32.mxu1 %v13288_v32  ;;  %5631 = vmatprep.mubr.f32.mxu0 %v13268_v51 }
 0x440   : > { %v4732_v7 = vrot.slane %v4138_v54, 1 }
 0x441   : > { %v5194_v14 = vmax.f32 %v5162_v55, 0.0  ;;  %v5060_v58 = vadd.f32 %v13158_v18, %v4804_v47 }
 0x442   : > { %v4142_v46 = vpop.f32.mrb[240].mxu1  ;;  %5632 = vmatmul.mubr.f32.gmra.mrb[24].mxu0 %v13288_v32  ;;  %v13296_v28 = vld [vmem:[#allocation3 + $0x128] sm:$0xff]  ;;  %v13298_v19 = vld [vmem:[#allocation3 + $0x130] sm:$0xff] }
 0x443   : > { %5227 = vst [vmem:[#allocation3 + $0x139] sm:$0xff] %v5194_v14  ;;  %v5163_v43 = vadd.f32 %v13217_v29, %v5060_v58  ;;  %v4550_v31 = vadd.f32 %v4142_v46, %v12997_v40  ;;  %v4144_v15 = vpop.f32.mrb[241].mxu1  ;;  %10495 = vmatmul.mubr.f32.gmra.mrb[36].mxu1 %v13296_v28  ;;  %5637 = vmatprep.mubr.f32.mxu0 %v13268_v51 }
 0x444   : > { %v4733_v16 = vrot.slane %v4144_v15, 1  ;;  %10497 = vmatprep.mubr.f32.mxu1 %v13298_v19 }
 0x445   : > { %v5195_v18 = vmax.f32 %v5163_v43, 0.0 }
 0x446   : > { %v4734_v36 = vsel %vm1970_vm3, %v4732_v7, %v4733_v16  ;;  %v4148_v22 = vpop.f32.mrb[242].mxu1  ;;  %5638 = vmatmul.mubr.f32.gmra.mrb[26].mxu0 %v13296_v28 }
 0x447   : > { %5228 = vst [vmem:[#allocation3 + $0x141] sm:$0xff] %v5195_v18  ;;  %v4805_v41 = vadd.f32 %v4734_v36, %v4549_v34  ;;  %v4149_v57 = vpop.f32.mrb[243].mxu1  ;;  %5643 = vmatprep.mubr.f32.mxu0 %v13268_v51 }
 0x448   : > { %v4735_v40 = vrot.slane %v4149_v57, 1 }
 0x449   : > { %v5061_v1 = vadd.f32 %v13164_v63, %v4805_v41 }
 0x44a   : > { %v4736_v50 = vsel %vm1970_vm3, %v4733_v16, %v4735_v40  ;;  %v4153_v23 = vpop.f32.mrb[244].mxu1  ;;  %5644 = vmatmul.mubr.f32.gmra.mrb[28].mxu0 %v13298_v19  ;;  %v13311_v13 = vld [vmem:[#allocation3 + $0x138] sm:$0xff] }
 0x44b   : > { %v5164_v42 = vadd.f32 %v13217_v29, %v5061_v1  ;;  %v4806_v37 = vadd.f32 %v4736_v50, %v4550_v31  ;;  %v4551_v0 = vadd.f32 %v4153_v23, %v13002_v4  ;;  %v4155_v27 = vpop.f32.mrb[245].mxu1  ;;  %10498 = vmatmul.mubr.f32.gmra.mrb[38].mxu1 %v13311_v13  ;;  %5648 = vmatprep.mubr.f32.mxu0 %v13268_v51 }
 0x44c   : > { %v4737_v33 = vrot.slane %v4155_v27, 1 }
 0x44d   : > { %v5196_v3 = vmax.f32 %v5164_v42, 0.0  ;;  %v5062_v63 = vadd.f32 %v13167_v62, %v4806_v37 }
 0x44e   : > { %v4159_v60 = vpop.f32.mrb[246].mxu1  ;;  %5649 = vmatmul.mubr.f32.gmra.mrb[30].mxu0 %v13311_v13  ;;  %v13319_v17 = vld [vmem:[#allocation3 + $0x140] sm:$0xff]  ;;  %v13321_v59 = vld [vmem:[#allocation3 + $0x148] sm:$0xff] }
 0x44f   : > { %5229 = vst [vmem:[#allocation3 + $0x151] sm:$0xff] %v5196_v3  ;;  %v5165_v52 = vadd.f32 %v13217_v29, %v5062_v63  ;;  %v4552_v4 = vadd.f32 %v4159_v60, %v13007_v6  ;;  %v4161_v5 = vpop.f32.mrb[247].mxu1  ;;  %10500 = vmatprep.mubr.f32.mxu1 %v13319_v17  ;;  %5654 = vmatprep.mubr.f32.mxu0 %v13268_v51 }
 0x450   : > { %v4738_v49 = vrot.slane %v4161_v5, 1  ;;  %10501 = vmatmul.mubr.f32.gmra.mrb[40].mxu1 %v13321_v59 }
 0x451   : > { %v5197_v62 = vmax.f32 %v5165_v52, 0.0 }
 0x452   : > { %v4739_v53 = vsel %vm1970_vm3, %v4737_v33, %v4738_v49  ;;  %v4165_v8 = vpop.f32.mrb[248].mxu1  ;;  %5655 = vmatmul.mubr.f32.gmra.mrb[32].mxu0 %v13319_v17 }
 0x453   : > { %5230 = vst [vmem:[#allocation3 + $0x159] sm:$0xff] %v5197_v62  ;;  %v4807_v45 = vadd.f32 %v4739_v53, %v4551_v0  ;;  %v4166_v55 = vpop.f32.mrb[249].mxu1  ;;  %5660 = vmatprep.mubr.f32.mxu0 %v13268_v51  ;;  %v8018_v8 = vld [vmem:[#allocation8 + $0x340] sm:$0xff] }
 0x454   : > { %v4740_v6 = vrot.slane %v4166_v55, 1 }
 0x455   : > { %v5063_v47 = vadd.f32 %v13174_v25, %v4807_v45  ;;  %v8021_v45 = vld [vmem:[#allocation8 + $0x358] sm:$0xff] }
 0x456   : > { %v4741_v34 = vsel %vm1970_vm3, %v4738_v49, %v4740_v6  ;;  %v4170_v54 = vpop.f32.mrb[250].mxu1  ;;  %5661 = vmatmul.mubr.f32.gmra.mrb[34].mxu0 %v13321_v59  ;;  %v13334_v14 = vld [vmem:[#allocation3 + $0x150] sm:$0xff]  ;;  %v11092_v6 = vpack.c.bf16 %v8021_v45, %v8018_v8  ;;  %v8028_v8 = vld [vmem:[#allocation8 + $0x390] sm:$0xff]  ;;  %v8031_v45 = vld [vmem:[#allocation8 + $0x3a8] sm:$0xff] }
 0x457   : > { %v5166_v58 = vadd.f32 %v13217_v29, %v5063_v47  ;;  %v4808_v46 = vadd.f32 %v4741_v34, %v4552_v4  ;;  %v4553_v43 = vadd.f32 %v4170_v54, %v13016_v21  ;;  %10503 = vmatprep.mubr.f32.mxu1 %v13334_v14  ;;  %v4172_v31 = vpop.f32.mrb[251].mxu1  ;;  %5665 = vmatprep.mubr.f32.mxu0 %v13268_v51  ;;  %v6613_v47 = vld [vmem:[#allocation3 + $0x18] sm:$0xff]  ;;  %v8010_v54 = vld [vmem:[#allocation8 + $0x300] sm:$0xff] }
 0x458   : > { %v4742_v7 = vrot.slane %v4172_v31, 1  ;;  %v8027_v34 = vld [vmem:[#allocation8 + $0x388] sm:$0xff]  ;;  %v6614_v31 = vld [vmem:[#allocation3 + $0x20] sm:$0xff] }
 0x459   : > { %v5198_v15 = vmax.f32 %v5166_v58, 0.0  ;;  %v5064_v25 = vadd.f32 %v13181_v39, %v4808_v46  ;;  %v8013_v58 = vld [vmem:[#allocation8 + $0x318] sm:$0xff]  ;;  %v8020_v46 = vld [vmem:[#allocation8 + $0x350] sm:$0xff] }
 0x45a   : > { %v4176_v16 = vpop.f32.mrb[252].mxu1  ;;  %5666 = vmatmul.mubr.f32.gmra.mrb[36].mxu0 %v13334_v14  ;;  %v13342_v18 = vld [vmem:[#allocation3 + $0x158] sm:$0xff]  ;;  %v13344_v36 = vld [vmem:[#allocation3 + $0x160] sm:$0xff] }
 0x45b   : > { %5231 = vst [vmem:[#allocation3 + $0x169] sm:$0xff] %v5198_v15  ;;  %v5167_v22 = vadd.f32 %v13217_v29, %v5064_v25  ;;  %v4554_v21 = vadd.f32 %v4176_v16, %v13020_v20  ;;  %v4178_v41 = vpop.f32.mrb[253].mxu1  ;;  %10504 = vmatmul.mubr.f32.gmra.mrb[42].mxu1 %v13342_v18  ;;  %5671 = vmatprep.mubr.f32.mxu0 %v13268_v51  ;;  %v8030_v25 = vld [vmem:[#allocation8 + $0x3a0] sm:$0xff] }
 0x45c   : > { %v4743_v57 = vrot.slane %v4178_v41, 1  ;;  %10506 = vmatprep.mubr.f32.mxu1 %v13344_v36  ;;  %v11058_v15 = vpack.c.bf16 %v8013_v58, %v8010_v54  ;;  %v8023_v41 = vld [vmem:[#allocation8 + $0x368] sm:$0xff]  ;;  %v11070_v54 = vpack.c.bf16 %v8031_v45, %v8028_v8  ;;  %v8052_v8 = vld [vmem:[#allocation8 + $0x450] sm:$0xff] }
 0x45d   : > { %v5199_v39 = vmax.f32 %v5167_v22, 0.0  ;;  %v8016_v22 = vld [vmem:[#allocation8 + $0x330] sm:$0xff]  ;;  %v8055_v45 = vld [vmem:[#allocation8 + $0x468] sm:$0xff] }
 0x45e   : > { %v4744_v40 = vsel %vm1970_vm3, %v4742_v7, %v4743_v57  ;;  %v4182_v1 = vpop.f32.mrb[254].mxu1  ;;  %5672 = vmatmul.mubr.f32.gmra.mrb[38].mxu0 %v13342_v18  ;;  %v8033_v7 = vld [vmem:[#allocation8 + $0x3b8] sm:$0xff] }
 0x45f   : > { %5232 = vst [vmem:[#allocation3 + $0x171] sm:$0xff] %v5199_v39  ;;  %v4809_v50 = vadd.f32 %v4744_v40, %v4553_v43  ;;  %v4183_v23 = vpop.f32.mrb[255].mxu1  ;;  %5677 = vmatprep.mubr.f32.mxu0 %v13268_v51  ;;  %v11100_v39 = vpack.c.bf16 %v8033_v7, %v8030_v25  ;;  %v8036_v1 = vld [vmem:[#allocation8 + $0x3d0] sm:$0xff]  ;;  %v13408_v25 = vld [vmem:[#allocation3 + $0x58] sm:$0xff] }
 0x460   : > { %v4745_v20 = vrot.slane %v4183_v23, 1 }
 0x461   : > { %v5065_v42 = vadd.f32 %v13188_v12, %v4809_v50  ;;  %v8039_v50 = vld [vmem:[#allocation8 + $0x3e8] sm:$0xff] }
 0x462   : > { %v4746_v37 = vsel %vm1970_vm3, %v4743_v57, %v4745_v20  ;;  %5678 = vmatmul.mubr.f32.gmra.mrb[40].mxu0 %v13344_v36  ;;  %v13357_v0 = vld [vmem:[#allocation3 + $0x168] sm:$0xff]  ;;  %v13359_v27 = vpop.f32.mrb[0].mxu1  ;;  %v8026_v57 = vld [vmem:[#allocation8 + $0x380] sm:$0xff] }
 0x463   : > { %v5168_v3 = vadd.f32 %v13217_v29, %v5065_v42  ;;  %v4810_v63 = vadd.f32 %v4746_v37, %v4554_v21  ;;  %10507 = vmatmul.mubr.f32.gmra.mrb[44].mxu1 %v13357_v0  ;;  %5682 = vmatprep.mubr.f32.mxu0 %v13268_v51  ;;  %v6438_v60 = vrot.slane %v13359_v27, 2  ;;  %v5766_v52 = vpop.f32.mrb[1].mxu1  ;;  %v8019_v21 = vld [vmem:[#allocation8 + $0x348] sm:$0xff]  ;;  %v11064_v23 = vpack.c.bf16 %v8026_v57, %v8023_v41  ;;  %v8022_v20 = vld [vmem:[#allocation8 + $0x360] sm:$0xff]  ;;  %v8025_v42 = vld [vmem:[#allocation8 + $0x378] sm:$0xff] }
 0x464   : > { %v6437_v4 = vrot.slane %v5766_v52, 2  ;;  %v11062_v40 = vpack.c.bf16 %v8019_v21, %v8016_v22  ;;  %v13388_v37 = vld [vmem:[#allocation3 + $0x30] sm:$0xff]  ;;  %v13392_v52 = vld [vmem:[#allocation3 + $0x38] sm:$0xff]  ;;  %v8040_v22 = vld [vmem:[#allocation8 + $0x3f0] sm:$0xff] }
 0x465   : > { %v5200_v12 = vmax.f32 %v5168_v3, 0.0  ;;  %v5066_v5 = vadd.f32 %v13191_v30, %v4810_v63  ;;  %v8029_v3 = vld [vmem:[#allocation8 + $0x398] sm:$0xff]  ;;  %v8032_v63 = vld [vmem:[#allocation8 + $0x3b0] sm:$0xff]  ;;  %v8043_v21 = vld [vmem:[#allocation8 + $0x408] sm:$0xff] }
 0x466   : > { %5683 = vmatmul.mubr.f32.gmra.mrb[42].mxu0 %v13357_v0  ;;  %v13367_v33 = vld [vmem:[#allocation3 + $0x170] sm:$0xff]  ;;  %v13369_v49 = vld [vmem:[#allocation3 + $0x178] sm:$0xff]  ;;  %v6439_v62 = vsel %vm2227_vm4, %v6437_v4, %v6438_v60  ;;  %v11104_v4 = vpack.c.bf16 %v8039_v50, %v8036_v1  ;;  %v13412_v41 = vld [vmem:[#allocation3 + $0x60] sm:$0xff]  ;;  %v11078_v1 = vpack.c.bf16 %v8043_v21, %v8040_v22 }
 0x467   : > { %5233 = vst [vmem:[#allocation3 + $0x181] sm:$0xff] %v5200_v12  ;;  %v5169_v53 = vadd.f32 %v13217_v29, %v5066_v5  ;;  %10509 = vmatprep.mubr.f32.mxu1 %v13367_v33  ;;  %5688 = vmatprep.mubr.f32.mxu0 %v13268_v51  ;;  %v13378_v30 = vadd.f32 %v6439_v62, %v13203_v9  ;;  %v8024_v29 = vld [vmem:[#allocation8 + $0x370] sm:$0xff]  ;;  %v8017_v9 = vld [vmem:[#allocation8 + $0x338] sm:$0xff]  ;;  %v8042_v5 = vld [vmem:[#allocation8 + $0x400] sm:$0xff] }
 0x468   : > { %10510 = vmatmul.mubr.f32.gmra.mrb[46].mxu1 %v13369_v49  ;;  %v11096_v43 = vpack.c.bf16 %v8027_v34, %v8024_v29  ;;  %v11060_v16 = vpack.c.bf16 %v8020_v46, %v8017_v9  ;;  %v11066_v12 = vpack.c.bf16 %v8025_v42, %v8022_v20  ;;  %v8045_v62 = vld [vmem:[#allocation8 + $0x418] sm:$0xff]  ;;  %v8034_v9 = vld [vmem:[#allocation8 + $0x3c0] sm:$0xff]  ;;  %v8047_v57 = vld [vmem:[#allocation8 + $0x428] sm:$0xff] }
 0x469   : > { %v5201_v55 = vmax.f32 %v5169_v53, 0.0  ;;  %6774 = vmatprep.mubr.f32.mxu1 %v13268_v51  ;;  %v11068_v53 = vpack.c.bf16 %v8032_v63, %v8029_v3  ;;  %v13400_v29 = vld [vmem:[#allocation3 + $0x48] sm:$0xff]  ;;  %v11108_v34 = vpack.c.bf16 %v8045_v62, %v8042_v5  ;;  %v8056_v3 = vld [vmem:[#allocation8 + $0x470] sm:$0xff] }
 0x46a   : > { %5689 = vmatmul.mubr.f32.gmra.mrb[44].mxu0 %v13367_v33  ;;  %v8037_v46 = vld [vmem:[#allocation8 + $0x3d8] sm:$0xff]  ;;  %v8048_v63 = vld [vmem:[#allocation8 + $0x430] sm:$0xff] }
 0x46b   : > { %5234 = vst [vmem:[#allocation3 + $0x189] sm:$0xff] %v5201_v55  ;;  %5694 = vmatprep.mubr.f32.mxu0 %v13268_v51  ;;  %v13396_v55 = vld [vmem:[#allocation3 + $0x40] sm:$0xff]  ;;  %v11074_v7 = vpack.c.bf16 %v8037_v46, %v8034_v9  ;;  %v8049_v20 = vld [vmem:[#allocation8 + $0x438] sm:$0xff] }
 0x46c   : > { %6775 = vmatmul.mubr.f32.vlgmr.msra.gmra.mrb[48].mxu1 %v6613_v47  ;;  %v8053_v42 = vld [vmem:[#allocation8 + $0x458] sm:$0xff] }
 0x46d   : > { %6780 = vmatprep.mubr.f32.mxu1 %v13268_v51  ;;  %11091 = vmatpush3.bf16.msra.mxu1 %v13144_v61  ;;  %v6615_v61 = vld [vmem:[#allocation3 + $0x28] sm:$0xff] }
 0x46e   : > { %5695 = vmatmul.mubr.f32.gmra.mrb[46].mxu0 %v13369_v49  ;;  %11093 = vmatprep.subr.bf16.mxu1 %v11092_v6 }
 0x46f   : > { %10544 = vmatprep.mubr.f32.mxu0 %v6613_v47  ;;  %v8038_v47 = vld [vmem:[#allocation8 + $0x3e0] sm:$0xff] }
 0x470   : > { %6781 = vmatmul.mubr.f32.gmra.mrb[50].mxu1 %v6614_v31 }
 0x471   : > { %6786 = vmatprep.mubr.f32.mxu1 %v13268_v51  ;;  %11095 = vmatpush3.bf16.msra.mxu1 %v11092_v6  ;;  %v8035_v6 = vld [vmem:[#allocation8 + $0x3c8] sm:$0xff] }
 0x472   : > { %10545 = vmatmul.mubr.f32.vlgmr.msra.gmra.mrb[48].mxu0 %v6614_v31  ;;  %11097 = vmatprep.subr.bf16.mxu1 %v11096_v43  ;;  %v11072_v58 = vpack.c.bf16 %v8038_v47, %v8035_v6  ;;  %v8041_v31 = vld [vmem:[#allocation8 + $0x3f8] sm:$0xff]  ;;  %v13428_v6 = vld [vmem:[#allocation3 + $0x80] sm:$0xff] }
 0x473   : > { %11059 = vmatpush1.bf16.msra.mxu0 %v11058_v15  ;;  %10547 = vmatprep.mubr.f32.mxu0 %v6615_v61  ;;  %v8044_v15 = vld [vmem:[#allocation8 + $0x410] sm:$0xff]  ;;  %v13432_v47 = vld [vmem:[#allocation3 + $0x88] sm:$0xff] }
 0x474   : > { %6787 = vmatmul.mubr.f32.gmra.mrb[52].mxu1 %v6615_v61  ;;  %11061 = vmatprep.subr.bf16.mxu0 %v11060_v16  ;;  %v11076_v16 = vpack.c.bf16 %v8044_v15, %v8041_v31  ;;  %v8050_v61 = vld [vmem:[#allocation8 + $0x440] sm:$0xff]  ;;  %v13444_v31 = vld [vmem:[#allocation3 + $0xa0] sm:$0xff] }
 0x475   : > { %6791 = vmatprep.mubr.f32.mxu1 %v13268_v51  ;;  %11099 = vmatpush3.bf16.msra.mxu1 %v11096_v43  ;;  %v13404_v43 = vld [vmem:[#allocation3 + $0x50] sm:$0xff]  ;;  %v11080_v50 = vpack.c.bf16 %v8050_v61, %v8047_v57 }
 0x476   : > { %10548 = vmatmul.mubr.f32.gmra.mrb[50].mxu0 %v13388_v37  ;;  %11101 = vmatprep.subr.bf16.mxu1 %v11100_v39  ;;  %v13452_v57 = vld [vmem:[#allocation3 + $0xb0] sm:$0xff] }
 0x477   : > { %10550 = vmatprep.mubr.f32.mxu0 %v13392_v52  ;;  %11063 = vmatpush1.bf16.msra.mxu0 %v11062_v40  ;;  %v13419_v40 = vld [vmem:[#allocation3 + $0x70] sm:$0xff] }
 0x478   : > { %6792 = vmatmul.mubr.f32.gmra.mrb[54].mxu1 %v13388_v37  ;;  %11065 = vmatprep.subr.bf16.mxu0 %v11064_v23  ;;  %v8046_v23 = vld [vmem:[#allocation8 + $0x420] sm:$0xff] }
 0x479   : > { %6797 = vmatprep.mubr.f32.mxu1 %v13268_v51  ;;  %11103 = vmatpush3.bf16.msra.mxu1 %v11100_v39  ;;  %v13416_v39 = vld [vmem:[#allocation3 + $0x68] sm:$0xff]  ;;  %v11082_v62 = vpack.c.bf16 %v8049_v20, %v8046_v23  ;;  %v13459_v23 = vld [vmem:[#allocation3 + $0xb8] sm:$0xff] }
 0x47a   : > { %10551 = vmatmul.mubr.f32.gmra.mrb[52].mxu0 %v13396_v55  ;;  %11105 = vmatprep.subr.bf16.mxu1 %v11104_v4 }
 0x47b   : > { %10553 = vmatprep.mubr.f32.mxu0 %v13400_v29  ;;  %11067 = vmatpush1.bf16.msra.mxu0 %v11066_v12  ;;  %v13424_v12 = vld [vmem:[#allocation3 + $0x78] sm:$0xff] }
 0x47c   : > { %6798 = vmatmul.mubr.f32.gmra.mrb[56].mxu1 %v13392_v52  ;;  %11069 = vmatprep.subr.bf16.mxu0 %v11068_v53  ;;  %v11084_v53 = vpack.c.bf16 %v8056_v3, %v8053_v42 }
 0x47d   : > { %6803 = vmatprep.mubr.f32.mxu1 %v13268_v51  ;;  %11107 = vmatpush3.bf16.msra.mxu1 %v11104_v4  ;;  %v8051_v4 = vld [vmem:[#allocation8 + $0x448] sm:$0xff] }
 0x47e   : > { %10554 = vmatmul.mubr.f32.gmra.mrb[54].mxu0 %v13404_v43  ;;  %11109 = vmatprep.subr.bf16.mxu1 %v11108_v34  ;;  %v11112_v5 = vpack.c.bf16 %v8051_v4, %v8048_v63 }
 0x47f   : > { %10556 = vmatprep.mubr.f32.mxu0 %v13408_v25  ;;  %11071 = vmatpush1.bf16.msra.mxu0 %v11070_v54  ;;  %v13436_v54 = vld [vmem:[#allocation3 + $0x90] sm:$0xff] }
 0x480   : > { %6804 = vmatmul.mubr.f32.gmra.mrb[58].mxu1 %v13396_v55  ;;  %11073 = vmatprep.subr.bf16.mxu0 %v11072_v58  ;;  %v13440_v58 = vld [vmem:[#allocation3 + $0x98] sm:$0xff] }
 0x481   : > { %6808 = vmatprep.mubr.f32.mxu1 %v13268_v51  ;;  %11111 = vmatpush3.bf16.msra.mxu1 %v11108_v34  ;;  %v11086_v34 = vpack.c.bf16 %v8055_v45, %v8052_v8 }
 0x482   : > { %10557 = vmatmul.mubr.f32.gmra.mrb[56].mxu0 %v13412_v41  ;;  %11113 = vmatprep.subr.bf16.mxu1 %v11112_v5 }
 0x483   : > { %10559 = vmatprep.mubr.f32.mxu0 %v13416_v39  ;;  %11075 = vmatpush1.bf16.msra.mxu0 %v11074_v7 }
 0x484   : > { %6809 = vmatmul.mubr.f32.gmra.mrb[60].mxu1 %v13400_v29  ;;  %11077 = vmatprep.subr.bf16.mxu0 %v11076_v16  ;;  %v13448_v16 = vld [vmem:[#allocation3 + $0xa8] sm:$0xff] }
 0x485   : > { %6814 = vmatprep.mubr.f32.mxu1 %v13268_v51  ;;  %11115 = vmatpush3.bf16.msra.mxu1 %v11112_v5 }
 0x486   : > { %10560 = vmatmul.mubr.f32.gmra.mrb[58].mxu0 %v13419_v40 }
 0x487   : > { %10562 = vmatprep.mubr.f32.mxu0 %v13424_v12  ;;  %11079 = vmatpush1.bf16.msra.mxu0 %v11078_v1 }
 0x488   : > { %6815 = vmatmul.mubr.f32.gmra.mrb[62].mxu1 %v13404_v43  ;;  %11081 = vmatprep.subr.bf16.mxu0 %v11080_v50 }
 0x489   : > { %6820 = vmatprep.mubr.f32.mxu1 %v13268_v51 }
 0x48a   : > { %10563 = vmatmul.mubr.f32.gmra.mrb[60].mxu0 %v13428_v6 }
 0x48b   : > { %10565 = vmatprep.mubr.f32.mxu0 %v13432_v47  ;;  %11083 = vmatpush1.bf16.msra.mxu0 %v11082_v62 }
 0x48c   : > { %6821 = vmatmul.mubr.f32.gmra.mrb[64].mxu1 %v13408_v25  ;;  %11085 = vmatprep.subr.bf16.mxu0 %v11084_v53  ;;  %v13467_v53 = vld [vmem:[#allocation3 + $0xc0] sm:$0xff] }
 0x48d   : > { %6825 = vmatprep.mubr.f32.mxu1 %v13268_v51 }
 0x48e   : > { %10566 = vmatmul.mubr.f32.gmra.mrb[62].mxu0 %v13436_v54 }
 0x48f   : > { %10568 = vmatprep.mubr.f32.mxu0 %v13440_v58  ;;  %11087 = vmatpush1.bf16.msra.mxu0 %v11086_v34 }
 0x490   : > { %6826 = vmatmul.mubr.f32.gmra.mrb[66].mxu1 %v13412_v41 }
 0x491   : > { %v5446_v9 = vpop.f32.mrb[214].mxu0  ;;  %v10445_v46 = vpop.f32.mrb[2].mxu1  ;;  %6831 = vmatprep.mubr.f32.mxu1 %v13268_v51 }
 0x492   : > { %v5448_v15 = vpop.f32.mrb[215].mxu0  ;;  %v5776_v7 = vpop.f32.mrb[3].mxu1  ;;  %10569 = vmatmul.mubr.f32.gmra.mrb[64].mxu0 %v13444_v31  ;;  %v6442_v5 = vrot.slane %v10445_v46, 2 }
 0x493   : > { %v6440_v22 = vrot.slane %v5776_v7, 2  ;;  %10571 = vmatprep.mubr.f32.mxu0 %v13448_v16  ;;  %v6186_v42 = vrot.slane %v5448_v15, 1 }
 0x494   : > { %6832 = vmatmul.mubr.f32.gmra.mrb[68].mxu1 %v13416_v39 }
 0x495   : > { %v5452_v21 = vpop.f32.mrb[216].mxu0  ;;  %6837 = vmatprep.mubr.f32.mxu1 %v13268_v51  ;;  %v6441_v61 = vsel %vm2227_vm4, %v6438_v60, %v6440_v22 }
 0x496   : > { %v5454_v1 = vpop.f32.mrb[217].mxu0  ;;  %v10448_v50 = vpop.f32.mrb[4].mxu1  ;;  %10572 = vmatmul.mubr.f32.gmra.mrb[66].mxu0 %v13452_v57  ;;  %v13462_v20 = vadd.f32 %v6441_v61, %v13208_v26  ;;  %v13471_v26 = vld [vmem:[#allocation3 + $0xc8] sm:$0xff] }
 0x497   : > { %v6187_v3 = vrot.slane %v5454_v1, 1  ;;  %v6445_v63 = vrot.slane %v10448_v50, 2  ;;  %v5786_v4 = vpop.f32.mrb[5].mxu1  ;;  %10574 = vmatprep.mubr.f32.mxu0 %v13459_v23  ;;  %v13480_v1 = vld [vmem:[#allocation3 + $0xd0] sm:$0xff] }
 0x498   : > { %v6443_v62 = vrot.slane %v5786_v4, 2  ;;  %6838 = vmatmul.mubr.f32.gmra.mrb[70].mxu1 %v13419_v40  ;;  %v8054_v50 = vld [vmem:[#allocation8 + $0x460] sm:$0xff] }
 0x499   : > { %v6188_v27 = vsel %vm1970_vm3, %v6186_v42, %v6187_v3  ;;  %v5458_v60 = vpop.f32.mrb[218].mxu0  ;;  %6842 = vmatprep.mubr.f32.mxu1 %v13268_v51 }
 0x49a   : > { %v5459_v8 = vpop.f32.mrb[219].mxu0  ;;  %10575 = vmatmul.mubr.f32.gmra.mrb[68].mxu0 %v13467_v53  ;;  %v6295_v45 = vadd.f32 %v6188_v27, %v5446_v9  ;;  %v6444_v34 = vsel %vm2227_vm4, %v6442_v5, %v6443_v62  ;;  %v6446_v46 = vsel %vm2227_vm4, %v6443_v62, %v6445_v63  ;;  %v8057_v9 = vld [vmem:[#allocation8 + $0x478] sm:$0xff] }
 0x49b   : > { %v6189_v15 = vrot.slane %v5459_v8, 1  ;;  %10577 = vmatprep.mubr.f32.mxu0 %v13471_v26  ;;  %v11116_v63 = vpack.c.bf16 %v8057_v9, %v8054_v50 }
 0x49c   : > { %6843 = vmatmul.mubr.f32.gmra.mrb[72].mxu1 %v13424_v12  ;;  %v13477_v7 = vadd.f32 %v6444_v34, %v6295_v45 }
 0x49d   : > { %v6190_v22 = vsel %vm1970_vm3, %v6187_v3, %v6189_v15  ;;  %v5463_v61 = vpop.f32.mrb[220].mxu0  ;;  %6848 = vmatprep.mubr.f32.mxu1 %v13268_v51  ;;  %11117 = vmatprep.subr.bf16.mxu1 %v11116_v63 }
 0x49e   : > { %v5465_v42 = vpop.f32.mrb[221].mxu0  ;;  %v10451_v4 = vpop.f32.mrb[6].mxu1  ;;  %10578 = vmatmul.mubr.f32.gmra.mrb[70].mxu0 %v13480_v1  ;;  %v6296_v5 = vadd.f32 %v6190_v22, %v5452_v21  ;;  %11119 = vmatpush3.bf16.msra.mxu1 %v11116_v63 }
 0x49f   : > { %v6448_v62 = vrot.slane %v10451_v4, 2  ;;  %v5796_v27 = vpop.f32.mrb[7].mxu1  ;;  %10580 = vmatprep.mubr.f32.mxu0 %v13212_v44  ;;  %v6191_v21 = vrot.slane %v5465_v42, 1 }
 0x4a0   : > { %v6447_v60 = vrot.slane %v5796_v27, 2  ;;  %6849 = vmatmul.mubr.f32.gmra.mrb[74].mxu1 %v13428_v6  ;;  %v13486_v3 = vadd.f32 %v6446_v46, %v6296_v5 }
 0x4a1   : > { %v5469_v8 = vpop.f32.mrb[222].mxu0  ;;  %6854 = vmatprep.mubr.f32.mxu1 %v13268_v51 }
 0x4a2   : > { %v5471_v45 = vpop.f32.mrb[223].mxu0  ;;  %10581 = vmatmul.mubr.f32.gmra.mrb[72].mxu0 %v13225_v48  ;;  %v6449_v34 = vsel %vm2227_vm4, %v6447_v60, %v6448_v62 }
 0x4a3   : > { %v6192_v15 = vrot.slane %v5471_v45, 1  ;;  %10583 = vmatprep.mubr.f32.mxu0 %v13227_v2 }
 0x4a4   : > { %6855 = vmatmul.mubr.f32.gmra.mrb[76].mxu1 %v13432_v47 }
 0x4a5   : > { %v6193_v44 = vsel %vm1970_vm3, %v6191_v21, %v6192_v15  ;;  %v5475_v22 = vpop.f32.mrb[224].mxu0  ;;  %6859 = vmatprep.mubr.f32.mxu1 %v13268_v51 }
 0x4a6   : > { %v5476_v46 = vpop.f32.mrb[225].mxu0  ;;  %v10454_v50 = vpop.f32.mrb[8].mxu1  ;;  %10584 = vmatmul.mubr.f32.gmra.mrb[74].mxu0 %v13240_v56  ;;  %v6297_v9 = vadd.f32 %v6193_v44, %v5463_v61 }
 0x4a7   : > { %v6194_v4 = vrot.slane %v5476_v46, 1  ;;  %v5806_v48 = vpop.f32.mrb[9].mxu1  ;;  %10586 = vmatprep.mubr.f32.mxu0 %v13248_v24  ;;  %v6452_v21 = vrot.slane %v10454_v50, 2 }
 0x4a8   : > { %v6450_v42 = vrot.slane %v5806_v48, 2  ;;  %6860 = vmatmul.mubr.f32.gmra.mrb[78].mxu1 %v13436_v54  ;;  %v13498_v2 = vadd.f32 %v6449_v34, %v6297_v9 }
 0x4a9   : > { %v6195_v63 = vsel %vm1970_vm3, %v6192_v15, %v6194_v4  ;;  %v5480_v5 = vpop.f32.mrb[226].mxu0  ;;  %6865 = vmatprep.mubr.f32.mxu1 %v13268_v51 }
 0x4aa   : > { %v5482_v27 = vpop.f32.mrb[227].mxu0  ;;  %10587 = vmatmul.mubr.f32.gmra.mrb[76].mxu0 %v13250_v10  ;;  %v6298_v60 = vadd.f32 %v6195_v63, %v5469_v8  ;;  %v6451_v56 = vsel %vm2227_vm4, %v6448_v62, %v6450_v42 }
 0x4ab   : > { %v10457_v61 = vpop.f32.mrb[10].mxu1  ;;  %10589 = vmatprep.mubr.f32.mxu0 %v13263_v35  ;;  %v6196_v10 = vrot.slane %v5482_v27, 1 }
 0x4ac   : > { %v6455_v24 = vrot.slane %v10457_v61, 2  ;;  %v5816_v45 = vpop.f32.mrb[11].mxu1  ;;  %6866 = vmatmul.mubr.f32.gmra.mrb[80].mxu1 %v13440_v58  ;;  %v13506_v34 = vadd.f32 %v6451_v56, %v6298_v60 }
 0x4ad   : > { %v6453_v15 = vrot.slane %v5816_v45, 2  ;;  %v5486_v44 = vpop.f32.mrb[228].mxu0  ;;  %6871 = vmatprep.mubr.f32.mxu1 %v13268_v51 }
 0x4ae   : > { %v5488_v22 = vpop.f32.mrb[229].mxu0  ;;  %10590 = vmatmul.mubr.f32.gmra.mrb[78].mxu0 %v13273_v11 }
 0x4af   : > { %v6197_v8 = vrot.slane %v5488_v22, 1  ;;  %10592 = vmatprep.mubr.f32.mxu0 %v13275_v38  ;;  %v6454_v35 = vsel %vm2227_vm4, %v6452_v21, %v6453_v15  ;;  %v6456_v62 = vsel %vm2227_vm4, %v6453_v15, %v6455_v24 }
 0x4b0   : > { %6872 = vmatmul.mubr.f32.gmra.mrb[82].mxu1 %v13444_v31 }
 0x4b1   : > { %v6198_v46 = vsel %vm1970_vm3, %v6196_v10, %v6197_v8  ;;  %v5492_v50 = vpop.f32.mrb[230].mxu0  ;;  %6876 = vmatprep.mubr.f32.mxu1 %v13268_v51 }
 0x4b2   : > { %v5493_v9 = vpop.f32.mrb[231].mxu0  ;;  %10593 = vmatmul.mubr.f32.gmra.mrb[80].mxu0 %v13288_v32  ;;  %v6299_v4 = vadd.f32 %v6198_v46, %v5480_v5 }
 0x4b3   : > { %v6199_v11 = vrot.slane %v5493_v9, 1  ;;  %10595 = vmatprep.mubr.f32.mxu0 %v13296_v28 }
 0x4b4   : > { %6877 = vmatmul.mubr.f32.gmra.mrb[84].mxu1 %v13448_v16  ;;  %v13519_v38 = vadd.f32 %v6454_v35, %v6299_v4 }
 0x4b5   : > { %v6200_v48 = vsel %vm1970_vm3, %v6197_v8, %v6199_v11  ;;  %v5497_v42 = vpop.f32.mrb[232].mxu0  ;;  %6882 = vmatprep.mubr.f32.mxu1 %v13268_v51 }
 0x4b6   : > { %v5499_v63 = vpop.f32.mrb[233].mxu0  ;;  %v10460_v27 = vpop.f32.mrb[12].mxu1  ;;  %10596 = vmatmul.mubr.f32.gmra.mrb[82].mxu0 %v13298_v19  ;;  %v6300_v60 = vadd.f32 %v6200_v48, %v5486_v44 }
 0x4b7   : > { %v6458_v56 = vrot.slane %v10460_v27, 2  ;;  %v5826_v32 = vpop.f32.mrb[13].mxu1  ;;  %10598 = vmatprep.mubr.f32.mxu0 %v13311_v13  ;;  %v6201_v21 = vrot.slane %v5499_v63, 1 }
 0x4b8   : > { %v6457_v5 = vrot.slane %v5826_v32, 2  ;;  %6883 = vmatmul.mubr.f32.gmra.mrb[86].mxu1 %v13452_v57  ;;  %v13526_v28 = vadd.f32 %v6456_v62, %v6300_v60 }
 0x4b9   : > { %v5503_v61 = vpop.f32.mrb[234].mxu0  ;;  %6888 = vmatprep.mubr.f32.mxu1 %v13268_v51 }
 0x4ba   : > { %v5505_v24 = vpop.f32.mrb[235].mxu0  ;;  %10599 = vmatmul.mubr.f32.gmra.mrb[84].mxu0 %v13319_v17  ;;  %v6459_v45 = vsel %vm2227_vm4, %v6457_v5, %v6458_v56 }
 0x4bb   : > { %v6202_v19 = vrot.slane %v5505_v24, 1  ;;  %10601 = vmatprep.mubr.f32.mxu0 %v13321_v59  ;;  %v13555_v24 = vld [vmem:[#allocation3 + $0x180] sm:$0xff] }
 0x4bc   : > { %6889 = vmatmul.mubr.f32.gmra.mrb[88].mxu1 %v13459_v23 }
 0x4bd   : > { %v6203_v13 = vsel %vm1970_vm3, %v6201_v21, %v6202_v19  ;;  %v5509_v15 = vpop.f32.mrb[236].mxu0  ;;  %6893 = vmatprep.mubr.f32.mxu1 %v13268_v51 }
 0x4be   : > { %v5510_v44 = vpop.f32.mrb[237].mxu0  ;;  %v10463_v22 = vpop.f32.mrb[14].mxu1  ;;  %10602 = vmatmul.mubr.f32.gmra.mrb[86].mxu0 %v13334_v14  ;;  %v6301_v10 = vadd.f32 %v6203_v13, %v5497_v42 }
 0x4bf   : > { %v6204_v8 = vrot.slane %v5510_v44, 1  ;;  %v5836_v17 = vpop.f32.mrb[15].mxu1  ;;  %10604 = vmatprep.mubr.f32.mxu0 %v13342_v18  ;;  %v6462_v42 = vrot.slane %v10463_v22, 2  ;;  %v13565_v22 = vld [vmem:[#allocation3 + $0x190] sm:$0xff] }
 0x4c0   : > { %v6460_v35 = vrot.slane %v5836_v17, 2  ;;  %6894 = vmatmul.mubr.f32.gmra.mrb[90].mxu1 %v13467_v53  ;;  %v13538_v59 = vadd.f32 %v6459_v45, %v6301_v10 }
 0x4c1   : > { %v6205_v62 = vsel %vm1970_vm3, %v6202_v19, %v6204_v8  ;;  %v5514_v46 = vpop.f32.mrb[238].mxu0  ;;  %6899 = vmatprep.mubr.f32.mxu1 %v13268_v51  ;;  %v11203_v19 = vld [vmem:[#allocation3 + $0xd8] sm:$0xff] }
 0x4c2   : > { %v5516_v50 = vpop.f32.mrb[239].mxu0  ;;  %10605 = vmatmul.mubr.f32.gmra.mrb[88].mxu0 %v13344_v36  ;;  %v6302_v9 = vadd.f32 %v6205_v62, %v5503_v61  ;;  %v6461_v14 = vsel %vm2227_vm4, %v6458_v56, %v6460_v35 }
 0x4c3   : > { %v10466_v4 = vpop.f32.mrb[16].mxu1  ;;  %10607 = vmatprep.mubr.f32.mxu0 %v13357_v0  ;;  %v6206_v36 = vrot.slane %v5516_v50, 1  ;;  %v11204_v50 = vld [vmem:[#allocation3 + $0xe0] sm:$0xff] }
 0x4c4   : > { %v6465_v18 = vrot.slane %v10466_v4, 2  ;;  %v5846_v11 = vpop.f32.mrb[17].mxu1  ;;  %6900 = vmatmul.mubr.f32.gmra.mrb[92].mxu1 %v13471_v26  ;;  %v13546_v48 = vadd.f32 %v6461_v14, %v6302_v9 }
 0x4c5   : > { %v6463_v63 = vrot.slane %v5846_v11, 2  ;;  %v5520_v27 = vpop.f32.mrb[240].mxu0  ;;  %6905 = vmatprep.mubr.f32.mxu1 %v13268_v51 }
 0x4c6   : > { %v5522_v60 = vpop.f32.mrb[241].mxu0  ;;  %10608 = vmatmul.mubr.f32.gmra.mrb[90].mxu0 %v13367_v33  ;;  %v13559_v33 = vld [vmem:[#allocation3 + $0x188] sm:$0xff] }
 0x4c7   : > { %v6207_v32 = vrot.slane %v5522_v60, 1  ;;  %10610 = vmatprep.mubr.f32.mxu0 %v13369_v49  ;;  %v6464_v0 = vsel %vm2227_vm4, %v6462_v42, %v6463_v63  ;;  %v6466_v56 = vsel %vm2227_vm4, %v6463_v63, %v6465_v18  ;;  %v13575_v63 = vld [vmem:[#allocation2] sm:$0xff] }
 0x4c8   : > { %6906 = vmatmul.mubr.f32.gmra.mrb[94].mxu1 %v13480_v1 }
 0x4c9   : > { %v6208_v5 = vsel %vm1970_vm3, %v6206_v36, %v6207_v32  ;;  %v5526_v61 = vpop.f32.mrb[242].mxu0  ;;  %6910 = vmatprep.mubr.f32.mxu1 %v13268_v51 }
 0x4ca   : > { %v5527_v45 = vpop.f32.mrb[243].mxu0  ;;  %10611 = vmatmul.mubr.f32.gmra.mrb[92].mxu0 %v13555_v24  ;;  %v6303_v21 = vadd.f32 %v6208_v5, %v5514_v46  ;;  %v11207_v61 = vld [vmem:[#allocation3 + $0xf0] sm:$0xff] }
 0x4cb   : > { %v6209_v49 = vrot.slane %v5527_v45, 1  ;;  %10613 = vmatprep.mubr.f32.mxu0 %v13559_v33 }
 0x4cc   : > { %6911 = vmatmul.mubr.f32.gmra.mrb[96].mxu1 %v11203_v19  ;;  %v13562_v13 = vadd.f32 %v6464_v0, %v6303_v21 }
 0x4cd   : > { %v6210_v15 = vsel %vm1970_vm3, %v6207_v32, %v6209_v49  ;;  %v5531_v44 = vpop.f32.mrb[244].mxu0  ;;  %6916 = vmatprep.mubr.f32.mxu1 %v13268_v51 }
 0x4ce   : > { %v5533_v10 = vpop.f32.mrb[245].mxu0  ;;  %v10469_v8 = vpop.f32.mrb[18].mxu1  ;;  %10614 = vmatmul.mubr.f32.gmra.mrb[94].mxu0 %v13565_v22  ;;  %v6304_v17 = vadd.f32 %v6210_v15, %v5520_v27  ;;  %v11206_v27 = vld [vmem:[#allocation3 + $0xe8] sm:$0xff] }
 0x4cf   : > { %v6468_v35 = vrot.slane %v10469_v8, 2  ;;  %v5856_v62 = vpop.f32.mrb[19].mxu1  ;;  %8122 = vmatprep.mubr.f32.mxu0 %v13268_v51  ;;  %v6211_v11 = vrot.slane %v5533_v10, 1 }
 0x4d0   : > { %v6467_v46 = vrot.slane %v5856_v62, 2  ;;  %6917 = vmatmul.mubr.f32.gmra.mrb[98].mxu1 %v11204_v50  ;;  %v13570_v9 = vadd.f32 %v6466_v56, %v6304_v17  ;;  %v11208_v17 = vld [vmem:[#allocation3 + $0xf8] sm:$0xff] }
 0x4d1   : > { %v5537_v14 = vpop.f32.mrb[246].mxu0  ;;  %6922 = vmatprep.mubr.f32.mxu1 %v13268_v51 }
 0x4d2   : > { %v5539_v4 = vpop.f32.mrb[247].mxu0  ;;  %8123 = vmatmul.mubr.f32.vlgmr.msra.gmra.mrb[96].mxu0 %v13388_v37  ;;  %v6469_v18 = vsel %vm2227_vm4, %v6467_v46, %v6468_v35 }
 0x4d3   : > { %v6212_v42 = vrot.slane %v5539_v4, 1  ;;  %8128 = vmatprep.mubr.f32.mxu0 %v13575_v63 }
 0x4d4   : > { %6923 = vmatmul.mubr.f32.gmra.mrb[100].mxu1 %v11206_v27 }
 0x4d5   : > { %v6213_v60 = vsel %vm1970_vm3, %v6211_v11, %v6212_v42  ;;  %v5543_v36 = vpop.f32.mrb[248].mxu0  ;;  %6927 = vmatprep.mubr.f32.mxu1 %v13575_v63 }
 0x4d6   : > { %v5544_v32 = vpop.f32.mrb[249].mxu0  ;;  %v10472_v51 = vpop.f32.mrb[20].mxu1  ;;  %8129 = vmatmul.mubr.f32.gmra.mrb[98].mxu0 %v13392_v52  ;;  %v6305_v37 = vadd.f32 %v6213_v60, %v5531_v44 }
 0x4d7   : > { %v6214_v0 = vrot.slane %v5544_v32, 1  ;;  %v5866_v56 = vpop.f32.mrb[21].mxu1  ;;  %8134 = vmatprep.mubr.f32.mxu0 %v13575_v63  ;;  %v6472_v46 = vrot.slane %v10472_v51, 2  ;;  %v11210_v51 = vld [vmem:[#allocation3 + $0x108] sm:$0xff] }
 0x4d8   : > { %v6470_v5 = vrot.slane %v5866_v56, 2  ;;  %6928 = vmatmul.mubr.f32.gmra.mrb[102].mxu1 %v11207_v61  ;;  %v13582_v45 = vadd.f32 %v6469_v18, %v6305_v37 }
 0x4d9   : > { %v6215_v21 = vsel %vm1970_vm3, %v6212_v42, %v6214_v0  ;;  %v5548_v49 = vpop.f32.mrb[250].mxu0  ;;  %6933 = vmatprep.mubr.f32.mxu1 %v13575_v63  ;;  %v11209_v42 = vld [vmem:[#allocation3 + $0x100] sm:$0xff] }
 0x4da   : > { %v5550_v19 = vpop.f32.mrb[251].mxu0  ;;  %8135 = vmatmul.mubr.f32.gmra.mrb[100].mxu0 %v13396_v55  ;;  %v6306_v15 = vadd.f32 %v6215_v21, %v5537_v14  ;;  %v6471_v52 = vsel %vm2227_vm4, %v6468_v35, %v6470_v5 }
 0x4db   : > { %v10475_v44 = vpop.f32.mrb[22].mxu1  ;;  %8139 = vmatprep.mubr.f32.mxu0 %v13575_v63  ;;  %v6216_v55 = vrot.slane %v5550_v19, 1 }
 0x4dc   : > { %v6475_v10 = vrot.slane %v10475_v44, 2  ;;  %v5876_v8 = vpop.f32.mrb[23].mxu1  ;;  %6934 = vmatmul.mubr.f32.gmra.mrb[104].mxu1 %v11208_v17  ;;  %v13589_v62 = vadd.f32 %v6471_v52, %v6306_v15  ;;  %v11211_v15 = vld [vmem:[#allocation3 + $0x110] sm:$0xff] }
 0x4dd   : > { %v6473_v50 = vrot.slane %v5876_v8, 2  ;;  %v5554_v4 = vpop.f32.mrb[252].mxu0  ;;  %6939 = vmatprep.mubr.f32.mxu1 %v13575_v63 }
 0x4de   : > { %v5556_v18 = vpop.f32.mrb[253].mxu0  ;;  %8140 = vmatmul.mubr.f32.gmra.mrb[102].mxu0 %v13400_v29 }
 0x4df   : > { %v6217_v14 = vrot.slane %v5556_v18, 1  ;;  %8145 = vmatprep.mubr.f32.mxu0 %v13575_v63  ;;  %v6474_v35 = vsel %vm2227_vm4, %v6472_v46, %v6473_v50  ;;  %v6476_v11 = vsel %vm2227_vm4, %v6473_v50, %v6475_v10  ;;  %v11212_v46 = vld [vmem:[#allocation3 + $0x118] sm:$0xff] }
 0x4e0   : > { %6940 = vmatmul.mubr.f32.gmra.mrb[106].mxu1 %v11209_v42  ;;  %v11213_v42 = vld [vmem:[#allocation3 + $0x120] sm:$0xff] }
 0x4e1   : > { %v6218_v27 = vsel %vm1970_vm3, %v6216_v55, %v6217_v14  ;;  %v5560_v60 = vpop.f32.mrb[254].mxu0  ;;  %6944 = vmatprep.mubr.f32.mxu1 %v13575_v63 }
 0x4e2   : > { %v5561_v36 = vpop.f32.mrb[255].mxu0  ;;  %8146 = vmatmul.mubr.f32.gmra.mrb[104].mxu0 %v13404_v43  ;;  %v6307_v32 = vadd.f32 %v6218_v27, %v5548_v49 }
 0x4e3   : > { %v6219_v29 = vrot.slane %v5561_v36, 1  ;;  %8151 = vmatprep.mubr.f32.mxu0 %v13575_v63 }
 0x4e4   : > { %6945 = vmatmul.mubr.f32.gmra.mrb[108].mxu1 %v11210_v51  ;;  %v13600_v37 = vadd.f32 %v6474_v35, %v6307_v32 }
 0x4e5   : > { %v6220_v0 = vsel %vm1970_vm3, %v6217_v14, %v6219_v29  ;;  %v5565_v56 = vpop.f32.mrb[0].mxu0  ;;  %6950 = vmatprep.mubr.f32.mxu1 %v13575_v63 }
 0x4e6   : > { %v5567_v5 = vpop.f32.mrb[1].mxu0  ;;  %v10478_v61 = vpop.f32.mrb[24].mxu1  ;;  %8152 = vmatmul.mubr.f32.gmra.mrb[106].mxu0 %v13408_v25  ;;  %v6308_v21 = vadd.f32 %v6220_v0, %v5554_v4 }
 0x4e7   : > { %v6478_v19 = vrot.slane %v10478_v61, 2  ;;  %v5886_v43 = vpop.f32.mrb[25].mxu1  ;;  %8156 = vmatprep.mubr.f32.mxu0 %v13575_v63  ;;  %v6221_v17 = vrot.slane %v5567_v5, 1  ;;  %v11214_v5 = vld [vmem:[#allocation3 + $0x128] sm:$0xff] }
 0x4e8   : > { %v6477_v49 = vrot.slane %v5886_v43, 2  ;;  %6951 = vmatmul.mubr.f32.gmra.mrb[110].mxu1 %v11211_v15  ;;  %v13606_v52 = vadd.f32 %v6476_v11, %v6308_v21 }
 0x4e9   : > { %v5571_v44 = vpop.f32.mrb[2].mxu0  ;;  %6956 = vmatprep.mubr.f32.mxu1 %v13575_v63 }
 0x4ea   : > { %v5573_v10 = vpop.f32.mrb[3].mxu0  ;;  %8157 = vmatmul.mubr.f32.gmra.mrb[108].mxu0 %v13412_v41  ;;  %v6479_v8 = vsel %vm2227_vm4, %v6477_v49, %v6478_v19 }
 0x4eb   : > { %v6222_v25 = vrot.slane %v5573_v10, 1  ;;  %8162 = vmatprep.mubr.f32.mxu0 %v13575_v63 }
 0x4ec   : > { %6957 = vmatmul.mubr.f32.gmra.mrb[112].mxu1 %v11212_v46 }
 0x4ed   : > { %v6223_v50 = vsel %vm1970_vm3, %v6221_v17, %v6222_v25  ;;  %v5577_v4 = vpop.f32.mrb[4].mxu0  ;;  %6961 = vmatprep.mubr.f32.mxu1 %v13575_v63 }
 0x4ee   : > { %v5578_v18 = vpop.f32.mrb[5].mxu0  ;;  %v10481_v55 = vpop.f32.mrb[26].mxu1  ;;  %8163 = vmatmul.mubr.f32.gmra.mrb[110].mxu0 %v13416_v39  ;;  %v6309_v14 = vadd.f32 %v6223_v50, %v5565_v56  ;;  %v11216_v4 = vld [vmem:[#allocation3 + $0x138] sm:$0xff] }
 0x4ef   : > { %v6224_v35 = vrot.slane %v5578_v18, 1  ;;  %v5896_v41 = vpop.f32.mrb[27].mxu1  ;;  %8168 = vmatprep.mubr.f32.mxu0 %v13575_v63  ;;  %v6482_v21 = vrot.slane %v10481_v55, 2 }
 0x4f0   : > { %v6480_v11 = vrot.slane %v5896_v41, 2  ;;  %6962 = vmatmul.mubr.f32.gmra.mrb[114].mxu1 %v11213_v42  ;;  %v13616_v27 = vadd.f32 %v6479_v8, %v6309_v14  ;;  %v11215_v8 = vld [vmem:[#allocation3 + $0x130] sm:$0xff] }
 0x4f1   : > { %v6225_v60 = vsel %vm1970_vm3, %v6222_v25, %v6224_v35  ;;  %v5582_v36 = vpop.f32.mrb[6].mxu0  ;;  %6967 = vmatprep.mubr.f32.mxu1 %v13575_v63 }
 0x4f2   : > { %v5584_v32 = vpop.f32.mrb[7].mxu0  ;;  %8169 = vmatmul.mubr.f32.gmra.mrb[112].mxu0 %v13419_v40  ;;  %v6310_v29 = vadd.f32 %v6225_v60, %v5571_v44  ;;  %v6481_v39 = vsel %vm2227_vm4, %v6478_v19, %v6480_v11 }
 0x4f3   : > { %v10484_v51 = vpop.f32.mrb[28].mxu1  ;;  %8173 = vmatprep.mubr.f32.mxu0 %v13575_v63  ;;  %v6226_v40 = vrot.slane %v5584_v32, 1 }
 0x4f4   : > { %v6485_v0 = vrot.slane %v10484_v51, 2  ;;  %v5906_v56 = vpop.f32.mrb[29].mxu1  ;;  %6968 = vmatmul.mubr.f32.gmra.mrb[116].mxu1 %v11214_v5  ;;  %v13623_v61 = vadd.f32 %v6481_v39, %v6310_v29 }
 0x4f5   : > { %v6483_v43 = vrot.slane %v5906_v56, 2  ;;  %v5588_v49 = vpop.f32.mrb[8].mxu0  ;;  %6973 = vmatprep.mubr.f32.mxu1 %v13575_v63  ;;  %v11218_v56 = vld [vmem:[#allocation3 + $0x148] sm:$0xff] }
 0x4f6   : > { %v5590_v15 = vpop.f32.mrb[9].mxu0  ;;  %8174 = vmatmul.mubr.f32.gmra.mrb[114].mxu0 %v13424_v12 }
 0x4f7   : > { %v6227_v44 = vrot.slane %v5590_v15, 1  ;;  %8179 = vmatprep.mubr.f32.mxu0 %v13575_v63  ;;  %v6484_v19 = vsel %vm2227_vm4, %v6482_v21, %v6483_v43  ;;  %v6486_v10 = vsel %vm2227_vm4, %v6483_v43, %v6485_v0 }
 0x4f8   : > { %6974 = vmatmul.mubr.f32.gmra.mrb[118].mxu1 %v11215_v8 }
 0x4f9   : > { %v6228_v17 = vsel %vm1970_vm3, %v6226_v40, %v6227_v44  ;;  %v5594_v25 = vpop.f32.mrb[10].mxu0  ;;  %6978 = vmatprep.mubr.f32.mxu1 %v13575_v63 }
 0x4fa   : > { %v5595_v46 = vpop.f32.mrb[11].mxu0  ;;  %8180 = vmatmul.mubr.f32.gmra.mrb[116].mxu0 %v13428_v6  ;;  %v6311_v50 = vadd.f32 %v6228_v17, %v5582_v36  ;;  %v11217_v36 = vld [vmem:[#allocation3 + $0x140] sm:$0xff] }
 0x4fb   : > { %v6229_v12 = vrot.slane %v5595_v46, 1  ;;  %8185 = vmatprep.mubr.f32.mxu0 %v13575_v63 }
 0x4fc   : > { %6979 = vmatmul.mubr.f32.gmra.mrb[120].mxu1 %v11216_v4  ;;  %v13634_v18 = vadd.f32 %v6484_v19, %v6311_v50  ;;  %v11219_v19 = vld [vmem:[#allocation3 + $0x150] sm:$0xff] }
 0x4fd   : > { %v6230_v55 = vsel %vm1970_vm3, %v6227_v44, %v6229_v12  ;;  %v5599_v14 = vpop.f32.mrb[12].mxu0  ;;  %6984 = vmatprep.mubr.f32.mxu1 %v13575_v63 }
 0x4fe   : > { %v5601_v35 = vpop.f32.mrb[13].mxu0  ;;  %v10487_v41 = vpop.f32.mrb[30].mxu1  ;;  %8186 = vmatmul.mubr.f32.gmra.mrb[118].mxu0 %v13432_v47  ;;  %v6312_v11 = vadd.f32 %v6230_v55, %v5588_v49  ;;  %v11220_v55 = vld [vmem:[#allocation3 + $0x158] sm:$0xff] }
 0x4ff   : > { %v6488_v42 = vrot.slane %v10487_v41, 2  ;;  %v5916_v6 = vpop.f32.mrb[31].mxu1  ;;  %8190 = vmatprep.mubr.f32.mxu0 %v13575_v63  ;;  %v6231_v0 = vrot.slane %v5601_v35, 1 }
 0x500   : > { %v6487_v60 = vrot.slane %v5916_v6, 2  ;;  %6985 = vmatmul.mubr.f32.gmra.mrb[122].mxu1 %v11217_v36  ;;  %v13640_v32 = vadd.f32 %v6486_v10, %v6312_v11 }
 0x501   : > { %v5605_v29 = vpop.f32.mrb[14].mxu0  ;;  %6990 = vmatprep.mubr.f32.mxu1 %v13575_v63 }
 0x502   : > { %v5607_v39 = vpop.f32.mrb[15].mxu0  ;;  %8191 = vmatmul.mubr.f32.gmra.mrb[120].mxu0 %v13436_v54  ;;  %v6489_v51 = vsel %vm2227_vm4, %v6487_v60, %v6488_v42 }
 0x503   : > { %v6232_v47 = vrot.slane %v5607_v39, 1  ;;  %8196 = vmatprep.mubr.f32.mxu0 %v13575_v63 }
 0x504   : > { %6991 = vmatmul.mubr.f32.gmra.mrb[124].mxu1 %v11218_v56  ;;  %v11222_v56 = vld [vmem:[#allocation3 + $0x168] sm:$0xff] }
 0x505   : > { %v6233_v5 = vsel %vm1970_vm3, %v6231_v0, %v6232_v47  ;;  %v5611_v21 = vpop.f32.mrb[16].mxu0  ;;  %6995 = vmatprep.mubr.f32.mxu1 %v13575_v63 }
 0x506   : > { %v5612_v43 = vpop.f32.mrb[17].mxu0  ;;  %v10490_v49 = vpop.f32.mrb[32].mxu1  ;;  %8197 = vmatmul.mubr.f32.gmra.mrb[122].mxu0 %v13440_v58  ;;  %v6313_v15 = vadd.f32 %v6233_v5, %v5599_v14 }
 0x507   : > { %v6234_v40 = vrot.slane %v5612_v43, 1  ;;  %v5926_v54 = vpop.f32.mrb[33].mxu1  ;;  %8202 = vmatprep.mubr.f32.mxu0 %v13575_v63  ;;  %v6492_v35 = vrot.slane %v10490_v49, 2 }
 0x508   : > { %v6490_v44 = vrot.slane %v5926_v54, 2  ;;  %6996 = vmatmul.mubr.f32.gmra.mrb[126].mxu1 %v11219_v19  ;;  %v13650_v10 = vadd.f32 %v6489_v51, %v6313_v15  ;;  %v11223_v19 = vld [vmem:[#allocation3 + $0x170] sm:$0xff] }
 0x509   : > { %v6235_v8 = vsel %vm1970_vm3, %v6232_v47, %v6234_v40  ;;  %v5616_v17 = vpop.f32.mrb[18].mxu0  ;;  %7001 = vmatprep.mubr.f32.mxu1 %v13575_v63 }
 0x50a   : > { %v5618_v25 = vpop.f32.mrb[19].mxu0  ;;  %8203 = vmatmul.mubr.f32.gmra.mrb[124].mxu0 %v13444_v31  ;;  %v6314_v46 = vadd.f32 %v6235_v8, %v5605_v29  ;;  %v6491_v58 = vsel %vm2227_vm4, %v6488_v42, %v6490_v44  ;;  %v11221_v29 = vld [vmem:[#allocation3 + $0x160] sm:$0xff] }
 0x50b   : > { %v10493_v50 = vpop.f32.mrb[34].mxu1  ;;  %8207 = vmatprep.mubr.f32.mxu0 %v13575_v63  ;;  %v6236_v31 = vrot.slane %v5618_v25, 1 }
 0x50c   : > { %v6495_v12 = vrot.slane %v10493_v50, 2  ;;  %v5936_v4 = vpop.f32.mrb[35].mxu1  ;;  %7002 = vmatmul.mubr.f32.gmra.mrb[128].mxu1 %v11220_v55  ;;  %v13657_v14 = vadd.f32 %v6491_v58, %v6314_v46  ;;  %v11224_v50 = vld [vmem:[#allocation3 + $0x178] sm:$0xff] }
 0x50d   : > { %v6493_v41 = vrot.slane %v5936_v4, 2  ;;  %v5622_v11 = vpop.f32.mrb[20].mxu0  ;;  %7007 = vmatprep.mubr.f32.mxu1 %v13575_v63 }
 0x50e   : > { %v5624_v6 = vpop.f32.mrb[21].mxu0  ;;  %8208 = vmatmul.mubr.f32.gmra.mrb[126].mxu0 %v13448_v16 }
 0x50f   : > { %v6237_v60 = vrot.slane %v5624_v6, 1  ;;  %8213 = vmatprep.mubr.f32.mxu0 %v13575_v63  ;;  %v6494_v42 = vsel %vm2227_vm4, %v6492_v35, %v6493_v41  ;;  %v6496_v36 = vsel %vm2227_vm4, %v6493_v41, %v6495_v12 }
 0x510   : > { %7008 = vmatmul.mubr.f32.gmra.mrb[130].mxu1 %v11221_v29 }
 0x511   : > { %v6238_v39 = vsel %vm1970_vm3, %v6236_v31, %v6237_v60  ;;  %v5628_v51 = vpop.f32.mrb[22].mxu0  ;;  %7012 = vmatprep.mubr.f32.mxu1 %v13575_v63 }
 0x512   : > { %v5629_v0 = vpop.f32.mrb[23].mxu0  ;;  %8214 = vmatmul.mubr.f32.gmra.mrb[128].mxu0 %v13452_v57  ;;  %v6315_v47 = vadd.f32 %v6238_v39, %v5616_v17 }
 0x513   : > { %v6239_v16 = vrot.slane %v5629_v0, 1  ;;  %8219 = vmatprep.mubr.f32.mxu0 %v13575_v63 }
 0x514   : > { %7013 = vmatmul.mubr.f32.gmra.mrb[132].mxu1 %v11222_v56  ;;  %v13668_v5 = vadd.f32 %v6494_v42, %v6315_v47 }
 0x515   : > { %v6240_v21 = vsel %vm1970_vm3, %v6237_v60, %v6239_v16  ;;  %v5633_v43 = vpop.f32.mrb[24].mxu0  ;;  %7018 = vmatprep.mubr.f32.mxu1 %v13575_v63 }
 0x516   : > { %v5635_v49 = vpop.f32.mrb[25].mxu0  ;;  %v10496_v15 = vpop.f32.mrb[36].mxu1  ;;  %8220 = vmatmul.mubr.f32.gmra.mrb[130].mxu0 %v13459_v23  ;;  %v6316_v40 = vadd.f32 %v6240_v21, %v5622_v11  ;;  %v13695_v21 = vld [vmem:[#allocation3 + $0xd8] sm:$0xff] }
 0x517   : > { %v6498_v54 = vrot.slane %v10496_v15, 2  ;;  %v5946_v57 = vpop.f32.mrb[37].mxu1  ;;  %8224 = vmatprep.mubr.f32.mxu0 %v13575_v63  ;;  %v6241_v58 = vrot.slane %v5635_v49, 1 }
 0x518   : > { %v6497_v44 = vrot.slane %v5946_v57, 2  ;;  %7019 = vmatmul.mubr.f32.gmra.mrb[134].mxu1 %v11223_v19  ;;  %v13674_v8 = vadd.f32 %v6496_v36, %v6316_v40  ;;  %v11225_v57 = vld [vmem:[#allocation3 + $0x30] sm:$0xff] }
 0x519   : > { %v5639_v17 = vpop.f32.mrb[26].mxu0  ;;  %7024 = vmatprep.mubr.f32.mxu1 %v13575_v63 }
 0x51a   : > { %v5641_v25 = vpop.f32.mrb[27].mxu0  ;;  %8225 = vmatmul.mubr.f32.gmra.mrb[132].mxu0 %v13467_v53  ;;  %v6499_v46 = vsel %vm2227_vm4, %v6497_v44, %v6498_v54  ;;  %v13704_v44 = vld [vmem:[#allocation3 + $0xe0] sm:$0xff] }
 0x51b   : > { %v6242_v23 = vrot.slane %v5641_v25, 1  ;;  %8230 = vmatprep.mubr.f32.mxu0 %v13575_v63 }
 0x51c   : > { %7025 = vmatmul.mubr.f32.gmra.mrb[136].mxu1 %v11224_v50  ;;  %v11227_v50 = vld [vmem:[#allocation3 + $0x40] sm:$0xff] }
 0x51d   : > { %v6243_v12 = vsel %vm1970_vm3, %v6241_v58, %v6242_v23  ;;  %v5645_v4 = vpop.f32.mrb[28].mxu0  ;;  %7029 = vmatprep.mubr.f32.mxu1 %v13575_v63 }
 0x51e   : > { %v5646_v55 = vpop.f32.mrb[29].mxu0  ;;  %v10499_v35 = vpop.f32.mrb[38].mxu1  ;;  %8231 = vmatmul.mubr.f32.gmra.mrb[134].mxu0 %v13471_v26  ;;  %v6317_v41 = vadd.f32 %v6243_v12, %v5633_v43  ;;  %v13711_v12 = vld [vmem:[#allocation3 + $0xe8] sm:$0xff] }
 0x51f   : > { %v6244_v11 = vrot.slane %v5646_v55, 1  ;;  %v5956_v53 = vpop.f32.mrb[39].mxu1  ;;  %8236 = vmatprep.mubr.f32.mxu0 %v13575_v63  ;;  %v6502_v47 = vrot.slane %v10499_v35, 2 }
 0x520   : > { %v6500_v6 = vrot.slane %v5956_v53, 2  ;;  %7030 = vmatmul.mubr.f32.gmra.mrb[138].mxu1 %v13555_v24  ;;  %v13685_v31 = vadd.f32 %v6499_v46, %v6317_v41  ;;  %v11226_v46 = vld [vmem:[#allocation3 + $0x38] sm:$0xff] }
 0x521   : > { %v6245_v60 = vsel %vm1970_vm3, %v6242_v23, %v6244_v11  ;;  %v5650_v42 = vpop.f32.mrb[30].mxu0  ;;  %7035 = vmatprep.mubr.f32.mxu1 %v13575_v63 }
 0x522   : > { %v5652_v36 = vpop.f32.mrb[31].mxu0  ;;  %8237 = vmatmul.mubr.f32.gmra.mrb[136].mxu0 %v13480_v1  ;;  %v6318_v29 = vadd.f32 %v6245_v60, %v5639_v17  ;;  %v6501_v26 = vsel %vm2227_vm4, %v6498_v54, %v6500_v6  ;;  %v11228_v6 = vld [vmem:[#allocation3 + $0x48] sm:$0xff] }
 0x523   : > { %v10502_v39 = vpop.f32.mrb[40].mxu1  ;;  %8241 = vmatprep.mubr.f32.mxu0 %v13575_v63  ;;  %v6246_v43 = vrot.slane %v5652_v36, 1  ;;  %v11229_v36 = vld [vmem:[#allocation3 + $0x50] sm:$0xff] }
 0x524   : > { %v6505_v51 = vrot.slane %v10502_v39, 2  ;;  %v5966_v0 = vpop.f32.mrb[41].mxu1  ;;  %7036 = vmatmul.mubr.f32.gmra.mrb[140].mxu1 %v13559_v33  ;;  %v13693_v24 = vadd.f32 %v6501_v26, %v6318_v29  ;;  %v13717_v29 = vld [vmem:[#allocation3 + $0xf0] sm:$0xff] }
 0x525   : > { %v6503_v16 = vrot.slane %v5966_v0, 2  ;;  %v5656_v56 = vpop.f32.mrb[32].mxu0  ;;  %7041 = vmatprep.mubr.f32.mxu1 %v13575_v63 }
 0x526   : > { %v5658_v1 = vpop.f32.mrb[33].mxu0  ;;  %8242 = vmatmul.mubr.f32.gmra.mrb[138].mxu0 %v13695_v21 }
 0x527   : > { %v6247_v49 = vrot.slane %v5658_v1, 1  ;;  %8247 = vmatprep.mubr.f32.mxu0 %v13575_v63  ;;  %v6504_v15 = vsel %vm2227_vm4, %v6502_v47, %v6503_v16  ;;  %v6506_v33 = vsel %vm2227_vm4, %v6503_v16, %v6505_v51  ;;  %v11230_v47 = vld [vmem:[#allocation3 + $0x58] sm:$0xff]  ;;  %v11231_v1 = vld [vmem:[#allocation3 + $0x60] sm:$0xff] }
 0x528   : > { %7042 = vmatmul.mubr.f32.gmra.mrb[142].mxu1 %v13565_v22 }
 0x529   : > { %v6248_v40 = vsel %vm1970_vm3, %v6246_v43, %v6247_v49  ;;  %v5662_v54 = vpop.f32.mrb[34].mxu0  ;;  %10648 = vmatprep.mubr.f32.mxu1 %v11225_v57  ;;  %v13723_v43 = vld [vmem:[#allocation3 + $0xf8] sm:$0xff] }
 0x52a   : > { %v5663_v19 = vpop.f32.mrb[35].mxu0  ;;  %8248 = vmatmul.mubr.f32.gmra.mrb[140].mxu0 %v13704_v44  ;;  %v6319_v17 = vadd.f32 %v6248_v40, %v5650_v42 }
 0x52b   : > { %v6249_v25 = vrot.slane %v5663_v19, 1  ;;  %8253 = vmatprep.mubr.f32.mxu0 %v13575_v63  ;;  %v11232_v19 = vld [vmem:[#allocation3 + $0x68] sm:$0xff] }
 0x52c   : > { %10649 = vmatmul.mubr.f32.vlgmr.msra.gmra.mrb[144].mxu1 %v11226_v46  ;;  %v13708_v58 = vadd.f32 %v6504_v15, %v6319_v17 }
 0x52d   : > { %v6250_v22 = vsel %vm1970_vm3, %v6247_v49, %v6249_v25  ;;  %v5667_v23 = vpop.f32.mrb[36].mxu0  ;;  %10651 = vmatprep.mubr.f32.mxu1 %v11227_v50  ;;  %v13730_v50 = vld [vmem:[#allocation3 + $0x100] sm:$0xff] }
 0x52e   : > { %v5669_v4 = vpop.f32.mrb[37].mxu0  ;;  %v10505_v55 = vpop.f32.mrb[42].mxu1  ;;  %8254 = vmatmul.mubr.f32.gmra.mrb[142].mxu0 %v13711_v12  ;;  %v6320_v35 = vadd.f32 %v6250_v22, %v5656_v56  ;;  %v11233_v22 = vld [vmem:[#allocation3 + $0x70] sm:$0xff] }
 0x52f   : > { %v6508_v41 = vrot.slane %v10505_v55, 2  ;;  %v5976_v11 = vpop.f32.mrb[43].mxu1  ;;  %8258 = vmatprep.mubr.f32.mxu0 %v13575_v63  ;;  %v6251_v51 = vrot.slane %v5669_v4, 1 }
 0x530   : > { %v6507_v53 = vrot.slane %v5976_v11, 2  ;;  %10652 = vmatmul.mubr.f32.gmra.mrb[146].mxu1 %v11228_v6  ;;  %v13715_v60 = vadd.f32 %v6506_v33, %v6320_v35  ;;  %v11234_v6 = vld [vmem:[#allocation3 + $0x78] sm:$0xff] }
 0x531   : > { %v5673_v42 = vpop.f32.mrb[38].mxu0  ;;  %10654 = vmatprep.mubr.f32.mxu1 %v11229_v36 }
 0x532   : > { %v5675_v26 = vpop.f32.mrb[39].mxu0  ;;  %8259 = vmatmul.mubr.f32.gmra.mrb[144].mxu0 %v13717_v29  ;;  %v6509_v39 = vsel %vm2227_vm4, %v6507_v53, %v6508_v41 }
 0x533   : > { %v6252_v0 = vrot.slane %v5675_v26, 1  ;;  %8264 = vmatprep.mubr.f32.mxu0 %v13575_v63 }
 0x534   : > { %10655 = vmatmul.mubr.f32.gmra.mrb[148].mxu1 %v11230_v47  ;;  %v13737_v47 = vld [vmem:[#allocation3 + $0x108] sm:$0xff] }
 0x535   : > { %v6253_v16 = vsel %vm1970_vm3, %v6251_v51, %v6252_v0  ;;  %v5679_v56 = vpop.f32.mrb[40].mxu0  ;;  %10657 = vmatprep.mubr.f32.mxu1 %v11231_v1 }
 0x536   : > { %v5680_v49 = vpop.f32.mrb[41].mxu0  ;;  %v10508_v15 = vpop.f32.mrb[44].mxu1  ;;  %8265 = vmatmul.mubr.f32.gmra.mrb[146].mxu0 %v13723_v43  ;;  %v6321_v33 = vadd.f32 %v6253_v16, %v5667_v23 }
 0x537   : > { %v6254_v40 = vrot.slane %v5680_v49, 1  ;;  %v5986_v54 = vpop.f32.mrb[45].mxu1  ;;  %8270 = vmatprep.mubr.f32.mxu0 %v13575_v63  ;;  %v6512_v26 = vrot.slane %v10508_v15, 2 }
 0x538   : > { %v6510_v57 = vrot.slane %v5986_v54, 2  ;;  %10658 = vmatmul.mubr.f32.gmra.mrb[150].mxu1 %v11232_v19  ;;  %v13727_v17 = vadd.f32 %v6509_v39, %v6321_v33  ;;  %v11237_v19 = vld [vmem:[#allocation3 + $0x90] sm:$0xff] }
 0x539   : > { %v6255_v25 = vsel %vm1970_vm3, %v6252_v0, %v6254_v40  ;;  %v5684_v46 = vpop.f32.mrb[42].mxu0  ;;  %10660 = vmatprep.mubr.f32.mxu1 %v11233_v22  ;;  %v11235_v0 = vld [vmem:[#allocation3 + $0x80] sm:$0xff]  ;;  %v11236_v40 = vld [vmem:[#allocation3 + $0x88] sm:$0xff] }
 0x53a   : > { %v5686_v4 = vpop.f32.mrb[43].mxu0  ;;  %8271 = vmatmul.mubr.f32.gmra.mrb[148].mxu0 %v13730_v50  ;;  %v6322_v23 = vadd.f32 %v6255_v25, %v5673_v42  ;;  %v6511_v55 = vsel %vm2227_vm4, %v6508_v41, %v6510_v57  ;;  %v13745_v25 = vld [vmem:[#allocation3 + $0x110] sm:$0xff] }
 0x53b   : > { %v10511_v35 = vpop.f32.mrb[46].mxu1  ;;  %8275 = vmatprep.mubr.f32.mxu0 %v13575_v63  ;;  %v6256_v41 = vrot.slane %v5686_v4, 1 }
 0x53c   : > { %v6515_v11 = vrot.slane %v10511_v35, 2  ;;  %v5996_v53 = vpop.f32.mrb[47].mxu1  ;;  %10661 = vmatmul.mubr.f32.gmra.mrb[152].mxu1 %v11234_v6  ;;  %v13735_v36 = vadd.f32 %v6511_v55, %v6322_v23 }
 0x53d   : > { %v6513_v39 = vrot.slane %v5996_v53, 2  ;;  %v5690_v51 = vpop.f32.mrb[44].mxu0  ;;  %10663 = vmatprep.mubr.f32.mxu1 %v11235_v0 }
 0x53e   : > { %v5692_v16 = vpop.f32.mrb[45].mxu0  ;;  %8276 = vmatmul.mubr.f32.gmra.mrb[150].mxu0 %v13737_v47 }
 0x53f   : > { %v6257_v42 = vrot.slane %v5692_v16, 1  ;;  %v6776_v56 = vpop.f32.mrb[48].mxu1  ;;  %8281 = vmatprep.mubr.f32.mxu0 %v13575_v63  ;;  %v6514_v1 = vsel %vm2227_vm4, %v6512_v26, %v6513_v39  ;;  %v6516_v49 = vsel %vm2227_vm4, %v6513_v39, %v6515_v11  ;;  %v11238_v11 = vld [vmem:[#allocation3 + $0x98] sm:$0xff]  ;;  %v11239_v16 = vld [vmem:[#allocation3 + $0xa0] sm:$0xff] }
 0x540   : > { %v7384_v15 = vadd.f32 %v6776_v56, %v13378_v30  ;;  %v6778_v33 = vpop.f32.mrb[49].mxu1  ;;  %10664 = vmatmul.mubr.f32.gmra.mrb[154].mxu1 %v11236_v40 }
 0x541   : > { %v6258_v54 = vsel %vm1970_vm3, %v6256_v41, %v6257_v42  ;;  %v5696_v57 = vpop.f32.mrb[46].mxu0  ;;  %10666 = vmatprep.mubr.f32.mxu1 %v11237_v19  ;;  %v7528_v6 = vrot.slane %v6778_v33, 1  ;;  %v13753_v41 = vld [vmem:[#allocation3 + $0x118] sm:$0xff]  ;;  %v11240_v33 = vld [vmem:[#allocation3 + $0xa8] sm:$0xff] }
 0x542   : > { %v5697_v22 = vpop.f32.mrb[47].mxu0  ;;  %8282 = vmatmul.mubr.f32.gmra.mrb[152].mxu0 %v13745_v25  ;;  %v6323_v4 = vadd.f32 %v6258_v54, %v5684_v46 }
 0x543   : > { %v6259_v23 = vrot.slane %v5697_v22, 1  ;;  %v6782_v55 = vpop.f32.mrb[50].mxu1  ;;  %8287 = vmatprep.mubr.f32.mxu0 %v13575_v63 }
 0x544   : > { %v7385_v30 = vadd.f32 %v6782_v55, %v13462_v20  ;;  %v6784_v35 = vpop.f32.mrb[51].mxu1  ;;  %10667 = vmatmul.mubr.f32.gmra.mrb[156].mxu1 %v11238_v11  ;;  %v13750_v53 = vadd.f32 %v6514_v1, %v6323_v4  ;;  %v13760_v55 = vld [vmem:[#allocation3 + $0x120] sm:$0xff] }
 0x545   : > { %v6260_v26 = vsel %vm1970_vm3, %v6257_v42, %v6259_v23  ;;  %v7529_v39 = vrot.slane %v6784_v35, 1  ;;  %v10546_v0 = vpop.f32.mrb[48].mxu0  ;;  %10669 = vmatprep.mubr.f32.mxu1 %v11239_v16  ;;  %v11241_v23 = vld [vmem:[#allocation3 + $0xb0] sm:$0xff]  ;;  %v11242_v16 = vld [vmem:[#allocation3 + $0xb8] sm:$0xff] }
 0x546   : > { %v7785_v46 = vrot.slane %v10546_v0, 2  ;;  %v7113_v56 = vpop.f32.mrb[49].mxu0  ;;  %8288 = vmatmul.mubr.f32.gmra.mrb[154].mxu0 %v13753_v41  ;;  %v6324_v40 = vadd.f32 %v6260_v26, %v5690_v51 }
 0x547   : > { %v7530_v20 = vsel %vm1970_vm3, %v7528_v6, %v7529_v39  ;;  %v7784_v54 = vrot.slane %v7113_v56, 2  ;;  %v6788_v57 = vpop.f32.mrb[52].mxu1  ;;  %8292 = vmatprep.mubr.f32.mxu0 %v13575_v63 }
 0x548   : > { %v6789_v1 = vpop.f32.mrb[53].mxu1  ;;  %10670 = vmatmul.mubr.f32.gmra.mrb[158].mxu1 %v11240_v33  ;;  %v7640_v42 = vadd.f32 %v7530_v20, %v7384_v15  ;;  %v13758_v19 = vadd.f32 %v6516_v49, %v6324_v40  ;;  %v11243_v20 = vld [vmem:[#allocation3 + $0xc0] sm:$0xff] }
 0x549   : > { %v7531_v22 = vrot.slane %v6789_v1, 1  ;;  %v10549_v4 = vpop.f32.mrb[50].mxu0  ;;  %10672 = vmatprep.mubr.f32.mxu1 %v11241_v23  ;;  %v7786_v51 = vsel %vm2227_vm4, %v7784_v54, %v7785_v46  ;;  %v13769_v54 = vld [vmem:[#allocation3 + $0x128] sm:$0xff] }
 0x54a   : > { %14395 = vst [vmem:[#allocation15_spill] sm:$0xff] %v13758_v19  ;;  %v7123_v35 = vpop.f32.mrb[51].mxu0  ;;  %8293 = vmatmul.mubr.f32.gmra.mrb[156].mxu0 %v13760_v55  ;;  %v13764_v11 = vadd.f32 %v7786_v51, %v7640_v42  ;;  %v7789_v42 = vrot.slane %v10549_v4, 2  ;;  %v11244_v51 = vld [vmem:[#allocation3 + $0xc8] sm:$0xff] }
 0x54b   : > { %v7532_v6 = vsel %vm1970_vm3, %v7529_v39, %v7531_v22  ;;  %v7787_v26 = vrot.slane %v7123_v35, 2  ;;  %v6793_v0 = vpop.f32.mrb[54].mxu1  ;;  %8298 = vmatprep.mubr.f32.mxu0 %v13575_v63 }
 0x54c   : > { %v7386_v49 = vadd.f32 %v6793_v0, %v13477_v7  ;;  %v6795_v15 = vpop.f32.mrb[55].mxu1  ;;  %10673 = vmatmul.mubr.f32.gmra.mrb[160].mxu1 %v11242_v16  ;;  %v7641_v56 = vadd.f32 %v7532_v6, %v7385_v30 }
 0x54d   : > { %v10552_v40 = vpop.f32.mrb[52].mxu0  ;;  %10675 = vmatprep.mubr.f32.mxu1 %v11243_v20  ;;  %v7788_v57 = vsel %vm2227_vm4, %v7785_v46, %v7787_v26  ;;  %v7533_v35 = vrot.slane %v6795_v15, 1  ;;  %v11245_v46 = vld [vmem:[#allocation3 + $0xd0] sm:$0xff] }
 0x54e   : > { %v7792_v1 = vrot.slane %v10552_v40, 2  ;;  %v7133_v33 = vpop.f32.mrb[53].mxu0  ;;  %8299 = vmatmul.mubr.f32.gmra.mrb[158].mxu0 %v13769_v54  ;;  %v13773_v39 = vadd.f32 %v7788_v57, %v7641_v56  ;;  %v13777_v26 = vld [vmem:[#allocation3 + $0x130] sm:$0xff] }
 0x54f   : > { %v7790_v22 = vrot.slane %v7133_v33, 2  ;;  %v6799_v7 = vpop.f32.mrb[56].mxu1  ;;  %8304 = vmatprep.mubr.f32.mxu0 %v13575_v63 }
 0x550   : > { %v7387_v30 = vadd.f32 %v6799_v7, %v13486_v3  ;;  %v6801_v23 = vpop.f32.mrb[57].mxu1  ;;  %10676 = vmatmul.mubr.f32.gmra.mrb[162].mxu1 %v11244_v51 }
 0x551   : > { %v7534_v6 = vrot.slane %v6801_v23, 1  ;;  %v10555_v0 = vpop.f32.mrb[54].mxu0  ;;  %10678 = vmatprep.mubr.f32.mxu1 %v11245_v46  ;;  %v7791_v16 = vsel %vm2227_vm4, %v7789_v42, %v7790_v22  ;;  %v7793_v4 = vsel %vm2227_vm4, %v7790_v22, %v7792_v1  ;;  %v13786_v42 = vld [vmem:[#allocation3 + $0x138] sm:$0xff] }
 0x552   : > { %v7795_v56 = vrot.slane %v10555_v0, 2  ;;  %v7143_v40 = vpop.f32.mrb[55].mxu0  ;;  %8305 = vmatmul.mubr.f32.gmra.mrb[160].mxu0 %v13777_v26 }
 0x553   : > { %v7535_v3 = vsel %vm1970_vm3, %v7533_v35, %v7534_v6  ;;  %v7794_v20 = vrot.slane %v7143_v40, 2  ;;  %v6805_v57 = vpop.f32.mrb[58].mxu1  ;;  %8309 = vmatprep.mubr.f32.mxu0 %v13575_v63 }
 0x554   : > { %v6806_v15 = vpop.f32.mrb[59].mxu1  ;;  %10679 = vmatmul.mubr.f32.gmra.mrb[164].mxu1 %v13695_v21  ;;  %v7642_v33 = vadd.f32 %v7535_v3, %v7386_v49  ;;  %v13797_v3 = vld [vmem:[#allocation3 + $0x140] sm:$0xff] }
 0x555   : > { %v7536_v7 = vrot.slane %v6806_v15, 1  ;;  %v10558_v23 = vpop.f32.mrb[56].mxu0  ;;  %10681 = vmatprep.mubr.f32.mxu1 %v13704_v44  ;;  %v7796_v1 = vsel %vm2227_vm4, %v7794_v20, %v7795_v56 }
 0x556   : > { %v7153_v22 = vpop.f32.mrb[57].mxu0  ;;  %8310 = vmatmul.mubr.f32.gmra.mrb[162].mxu0 %v13786_v42  ;;  %v13790_v51 = vadd.f32 %v7791_v16, %v7642_v33  ;;  %v7799_v15 = vrot.slane %v10558_v23, 2 }
 0x557   : > { %v7537_v35 = vsel %vm1970_vm3, %v7534_v6, %v7536_v7  ;;  %v7797_v0 = vrot.slane %v7153_v22, 2  ;;  %v6810_v46 = vpop.f32.mrb[60].mxu1  ;;  %8315 = vmatprep.mubr.f32.mxu0 %v13575_v63 }
 0x558   : > { %v7388_v21 = vadd.f32 %v6810_v46, %v13498_v2  ;;  %v6812_v49 = vpop.f32.mrb[61].mxu1  ;;  %10682 = vmatmul.mubr.f32.gmra.mrb[166].mxu1 %v13711_v12  ;;  %v7643_v44 = vadd.f32 %v7537_v35, %v7387_v30 }
 0x559   : > { %v10561_v40 = vpop.f32.mrb[58].mxu0  ;;  %10684 = vmatprep.mubr.f32.mxu1 %v13717_v29  ;;  %v7798_v16 = vsel %vm2227_vm4, %v7795_v56, %v7797_v0  ;;  %v7538_v29 = vrot.slane %v6812_v49, 1  ;;  %v13807_v56 = vld [vmem:[#allocation3 + $0x148] sm:$0xff] }
 0x55a   : > { %v7802_v20 = vrot.slane %v10561_v40, 2  ;;  %v7163_v57 = vpop.f32.mrb[59].mxu0  ;;  %8316 = vmatmul.mubr.f32.gmra.mrb[164].mxu0 %v13797_v3  ;;  %v13801_v6 = vadd.f32 %v7793_v4, %v7643_v44 }
 0x55b   : > { %v7800_v33 = vrot.slane %v7163_v57, 2  ;;  %v6816_v2 = vpop.f32.mrb[62].mxu1  ;;  %8321 = vmatprep.mubr.f32.mxu0 %v13575_v63 }
 0x55c   : > { %v7389_v12 = vadd.f32 %v6816_v2, %v13506_v34  ;;  %v6818_v30 = vpop.f32.mrb[63].mxu1  ;;  %10685 = vmatmul.mubr.f32.gmra.mrb[168].mxu1 %v13723_v43 }
 0x55d   : > { %v7539_v7 = vrot.slane %v6818_v30, 1  ;;  %v10564_v22 = vpop.f32.mrb[60].mxu0  ;;  %10687 = vmatprep.mubr.f32.mxu1 %v13730_v50  ;;  %v13810_v4 = vsel %vm2227_vm4, %v7799_v15, %v7800_v33  ;;  %v13813_v23 = vsel %vm2227_vm4, %v7800_v33, %v7802_v20  ;;  %v7997_v20 = vld [vmem:[#allocation3 + $0x150] sm:$0xff] }
 0x55e   : > { %v7805_v35 = vrot.slane %v10564_v22, 2  ;;  %v7173_v0 = vpop.f32.mrb[61].mxu0  ;;  %8322 = vmatmul.mubr.f32.gmra.mrb[166].mxu0 %v13807_v56 }
 0x55f   : > { %v7540_v34 = vsel %vm1970_vm3, %v7538_v29, %v7539_v7  ;;  %v7804_v43 = vrot.slane %v7173_v0, 2  ;;  %v6822_v46 = vpop.f32.mrb[64].mxu1  ;;  %8326 = vmatprep.mubr.f32.mxu0 %v13575_v63  ;;  %v7998_v0 = vld [vmem:[#allocation3 + $0x158] sm:$0xff] }
 0x560   : > { %v6823_v49 = vpop.f32.mrb[65].mxu1  ;;  %10688 = vmatmul.mubr.f32.gmra.mrb[170].mxu1 %v13737_v47  ;;  %v7644_v50 = vadd.f32 %v7540_v34, %v7388_v21 }
 0x561   : > { %v7541_v44 = vrot.slane %v6823_v49, 1  ;;  %v10567_v40 = vpop.f32.mrb[62].mxu0  ;;  %10690 = vmatprep.mubr.f32.mxu1 %v13745_v25  ;;  %v13821_v57 = vsel %vm2227_vm4, %v7804_v43, %v7805_v35 }
 0x562   : > { %v7183_v15 = vpop.f32.mrb[63].mxu0  ;;  %8327 = vmatmul.mubr.f32.gmra.mrb[168].mxu0 %v7997_v20  ;;  %v13823_v33 = vadd.f32 %v7796_v1, %v7644_v50  ;;  %v7809_v46 = vrot.slane %v10567_v40, 2 }
 0x563   : > { %v7542_v2 = vsel %vm1970_vm3, %v7539_v7, %v7541_v44  ;;  %v7807_v30 = vrot.slane %v7183_v15, 2  ;;  %v6827_v29 = vpop.f32.mrb[66].mxu1  ;;  %8332 = vmatprep.mubr.f32.mxu0 %v13575_v63 }
 0x564   : > { %v7390_v47 = vadd.f32 %v6827_v29, %v13519_v38  ;;  %v6829_v21 = vpop.f32.mrb[67].mxu1  ;;  %10691 = vmatmul.mubr.f32.gmra.mrb[172].mxu1 %v13753_v41  ;;  %v7645_v25 = vadd.f32 %v7542_v2, %v7389_v12 }
 0x565   : > { %v10570_v22 = vpop.f32.mrb[64].mxu0  ;;  %10693 = vmatprep.mubr.f32.mxu1 %v13760_v55  ;;  %v13831_v34 = vsel %vm2227_vm4, %v7805_v35, %v7807_v30  ;;  %v7543_v55 = vrot.slane %v6829_v21, 1  ;;  %v7999_v35 = vld [vmem:[#allocation3 + $0x160] sm:$0xff] }
 0x566   : > { %v7812_v1 = vrot.slane %v10570_v22, 2  ;;  %v7193_v43 = vpop.f32.mrb[65].mxu0  ;;  %8333 = vmatmul.mubr.f32.gmra.mrb[170].mxu0 %v7998_v0  ;;  %v13833_v7 = vadd.f32 %v7798_v16, %v7645_v25  ;;  %v8000_v22 = vld [vmem:[#allocation3 + $0x168] sm:$0xff] }
 0x567   : > { %v7810_v49 = vrot.slane %v7193_v43, 2  ;;  %v6833_v50 = vpop.f32.mrb[68].mxu1  ;;  %8338 = vmatprep.mubr.f32.mxu0 %v13575_v63 }
 0x568   : > { %v7391_v38 = vadd.f32 %v6833_v50, %v13526_v28  ;;  %v6835_v41 = vpop.f32.mrb[69].mxu1  ;;  %10694 = vmatmul.mubr.f32.gmra.mrb[174].mxu1 %v13769_v54 }
 0x569   : > { %v7544_v12 = vrot.slane %v6835_v41, 1  ;;  %v10573_v44 = vpop.f32.mrb[66].mxu0  ;;  %10696 = vmatprep.mubr.f32.mxu1 %v13777_v26  ;;  %v13840_v15 = vsel %vm2227_vm4, %v7809_v46, %v7810_v49  ;;  %v13843_v16 = vsel %vm2227_vm4, %v7810_v49, %v7812_v1  ;;  %v13856_v41 = vld [vmem:[#allocation2] sm:$0xff] }
 0x56a   : > { %v7815_v40 = vrot.slane %v10573_v44, 2  ;;  %v7203_v2 = vpop.f32.mrb[67].mxu0  ;;  %8339 = vmatmul.mubr.f32.gmra.mrb[172].mxu0 %v7999_v35  ;;  %v8001_v44 = vld [vmem:[#allocation3 + $0x170] sm:$0xff] }
 0x56b   : > { %v7545_v28 = vsel %vm1970_vm3, %v7543_v55, %v7544_v12  ;;  %v7814_v30 = vrot.slane %v7203_v2, 2  ;;  %v6839_v29 = vpop.f32.mrb[70].mxu1  ;;  %8343 = vmatprep.mubr.f32.mxu0 %v13575_v63 }
 0x56c   : > { %v6840_v54 = vpop.f32.mrb[71].mxu1  ;;  %10697 = vmatmul.mubr.f32.gmra.mrb[176].mxu1 %v13786_v42  ;;  %v7646_v26 = vadd.f32 %v7545_v28, %v7390_v47 }
 0x56d   : > { %v7546_v21 = vrot.slane %v6840_v54, 1  ;;  %v10576_v25 = vpop.f32.mrb[68].mxu0  ;;  %10699 = vmatprep.mubr.f32.mxu1 %v13797_v3  ;;  %v13850_v1 = vsel %vm2227_vm4, %v7814_v30, %v7815_v40 }
 0x56e   : > { %v7213_v43 = vpop.f32.mrb[69].mxu0  ;;  %8344 = vmatmul.mubr.f32.gmra.mrb[174].mxu0 %v8000_v22  ;;  %v13853_v46 = vadd.f32 %v13810_v4, %v7646_v26  ;;  %v7819_v30 = vrot.slane %v10576_v25, 2 }
 0x56f   : > { %v7547_v49 = vsel %vm1970_vm3, %v7544_v12, %v7546_v21  ;;  %v7817_v63 = vrot.slane %v7213_v43, 2  ;;  %v6844_v50 = vpop.f32.mrb[72].mxu1  ;;  %8349 = vmatprep.mubr.f32.mxu0 %v13856_v41 }
 0x570   : > { %v7392_v42 = vadd.f32 %v6844_v50, %v13538_v59  ;;  %v6846_v3 = vpop.f32.mrb[73].mxu1  ;;  %10700 = vmatmul.mubr.f32.gmra.mrb[178].mxu1 %v13807_v56  ;;  %v7647_v47 = vadd.f32 %v7547_v49, %v7391_v38 }
 0x571   : > { %v10579_v55 = vpop.f32.mrb[70].mxu0  ;;  %10702 = vmatprep.mubr.f32.mxu1 %v7997_v20  ;;  %v13862_v4 = vsel %vm2227_vm4, %v7815_v40, %v7817_v63  ;;  %v7548_v20 = vrot.slane %v6846_v3, 1  ;;  %v8002_v40 = vld [vmem:[#allocation3 + $0x178] sm:$0xff] }
 0x572   : > { %v7822_v2 = vrot.slane %v10579_v55, 2  ;;  %v7223_v12 = vpop.f32.mrb[71].mxu0  ;;  %8350 = vmatmul.mubr.f32.gmra.mrb[176].mxu0 %v8001_v44  ;;  %v13865_v28 = vadd.f32 %v13813_v23, %v7647_v47  ;;  %v8003_v47 = vld [vmem:[#allocation3 + $0x180] sm:$0xff] }
 0x573   : > { %v7820_v29 = vrot.slane %v7223_v12, 2  ;;  %v6850_v54 = vpop.f32.mrb[74].mxu1  ;;  %8355 = vmatprep.mubr.f32.mxu0 %v13856_v41 }
 0x574   : > { %v7393_v59 = vadd.f32 %v6850_v54, %v13546_v48  ;;  %v6852_v56 = vpop.f32.mrb[75].mxu1  ;;  %10703 = vmatmul.mubr.f32.gmra.mrb[180].mxu1 %v7998_v0 }
 0x575   : > { %v7549_v38 = vrot.slane %v6852_v56, 1  ;;  %v10582_v26 = vpop.f32.mrb[72].mxu0  ;;  %10705 = vmatprep.mubr.f32.mxu1 %v7999_v35  ;;  %v13870_v21 = vsel %vm2227_vm4, %v7819_v30, %v7820_v29  ;;  %v13873_v23 = vsel %vm2227_vm4, %v7820_v29, %v7822_v2 }
 0x576   : > { %v7825_v25 = vrot.slane %v10582_v26, 2  ;;  %v7233_v43 = vpop.f32.mrb[73].mxu0  ;;  %8356 = vmatmul.mubr.f32.gmra.mrb[178].mxu0 %v8002_v40 }
 0x577   : > { %v7550_v49 = vsel %vm1970_vm3, %v7548_v20, %v7549_v38  ;;  %v7824_v63 = vrot.slane %v7233_v43, 2  ;;  %v6856_v48 = vpop.f32.mrb[76].mxu1  ;;  %8360 = vmatprep.mubr.f32.mxu0 %v13856_v41  ;;  %v8004_v20 = vld [vmem:[#allocation3 + $0x188] sm:$0xff] }
 0x578   : > { %v6857_v0 = vpop.f32.mrb[77].mxu1  ;;  %10706 = vmatmul.mubr.f32.gmra.mrb[182].mxu1 %v8000_v22  ;;  %v7648_v50 = vadd.f32 %v7550_v49, %v7392_v42 }
 0x579   : > { %v7551_v35 = vrot.slane %v6857_v0, 1  ;;  %v10585_v3 = vpop.f32.mrb[74].mxu0  ;;  %10708 = vmatprep.mubr.f32.mxu1 %v8001_v44  ;;  %v13878_v55 = vsel %vm2227_vm4, %v7824_v63, %v7825_v25 }
 0x57a   : > { %v7243_v2 = vpop.f32.mrb[75].mxu0  ;;  %8361 = vmatmul.mubr.f32.gmra.mrb[180].mxu0 %v8003_v47  ;;  %v13881_v12 = vadd.f32 %v13821_v57, %v7648_v50  ;;  %v7829_v49 = vrot.slane %v10585_v3, 2 }
 0x57b   : > { %v7552_v30 = vsel %vm1970_vm3, %v7549_v38, %v7551_v35  ;;  %v7827_v29 = vrot.slane %v7243_v2, 2  ;;  %v6861_v54 = vpop.f32.mrb[78].mxu1  ;;  %8366 = vmatprep.mubr.f32.mxu0 %v13856_v41 }
 0x57c   : > { %v7394_v22 = vadd.f32 %v6861_v54, %v13562_v13  ;;  %v6863_v42 = vpop.f32.mrb[79].mxu1  ;;  %10709 = vmatmul.mubr.f32.gmra.mrb[184].mxu1 %v8002_v40  ;;  %v7649_v44 = vadd.f32 %v7552_v30, %v7393_v59  ;;  %v8005_v40 = vld [vmem:[#allocation3 + $0x190] sm:$0xff] }
 0x57d   : > { %v10588_v56 = vpop.f32.mrb[76].mxu0  ;;  %10711 = vmatprep.mubr.f32.mxu1 %v8003_v47  ;;  %v13887_v26 = vsel %vm2227_vm4, %v7825_v25, %v7827_v29  ;;  %v7553_v0 = vrot.slane %v6863_v42, 1 }
 0x57e   : > { %v7832_v43 = vrot.slane %v10588_v56, 2  ;;  %v7253_v57 = vpop.f32.mrb[77].mxu0  ;;  %8367 = vmatmul.mubr.f32.gmra.mrb[182].mxu0 %v8004_v20  ;;  %v13890_v38 = vadd.f32 %v13831_v34, %v7649_v44 }
 0x57f   : > { %v7830_v63 = vrot.slane %v7253_v57, 2  ;;  %v6867_v48 = vpop.f32.mrb[80].mxu1  ;;  %8372 = vmatprep.mubr.f32.mxu0 %v13856_v41 }
 0x580   : > { %v7395_v13 = vadd.f32 %v6867_v48, %v13570_v9  ;;  %v6869_v59 = vpop.f32.mrb[81].mxu1  ;;  %10712 = vmatmul.mubr.f32.gmra.mrb[186].mxu1 %v8004_v20 }
 0x581   : > { %v7554_v50 = vrot.slane %v6869_v59, 1  ;;  %v10591_v25 = vpop.f32.mrb[78].mxu0  ;;  %10714 = vmatprep.mubr.f32.mxu1 %v8005_v40  ;;  %v13895_v35 = vsel %vm2227_vm4, %v7829_v49, %v7830_v63  ;;  %v13898_v34 = vsel %vm2227_vm4, %v7830_v63, %v7832_v43 }
 0x582   : > { %v7835_v3 = vrot.slane %v10591_v25, 2  ;;  %v7263_v47 = vpop.f32.mrb[79].mxu0  ;;  %8373 = vmatmul.mubr.f32.gmra.mrb[184].mxu0 %v8005_v40 }
 0x583   : > { %v7555_v2 = vsel %vm1970_vm3, %v7553_v0, %v7554_v50  ;;  %v7834_v30 = vrot.slane %v7263_v47, 2  ;;  %v6873_v9 = vpop.f32.mrb[82].mxu1  ;;  %8377 = vmatprep.mubr.f32.mxu0 %v13856_v41 }
 0x584   : > { %v6874_v29 = vpop.f32.mrb[83].mxu1  ;;  %10715 = vmatmul.mubr.f32.gmra.mrb[188].mxu1 %v13856_v41  ;;  %v7650_v54 = vadd.f32 %v7555_v2, %v7394_v22 }
 0x585   : > { %v7556_v42 = vrot.slane %v6874_v29, 1  ;;  %v10594_v44 = vpop.f32.mrb[80].mxu0  ;;  %10717 = vmatprep.mubr.f32.mxu1 %v13856_v41  ;;  %v13905_v56 = vsel %vm2227_vm4, %v7834_v30, %v7835_v3 }
 0x586   : > { %v7273_v20 = vpop.f32.mrb[81].mxu0  ;;  %8378 = vmatmul.mubr.f32.gmra.mrb[186].mxu0 %v13856_v41  ;;  %v13909_v43 = vadd.f32 %v13840_v15, %v7650_v54 }
 0x587   : > { %v7557_v57 = vsel %vm1970_vm3, %v7554_v50, %v7556_v42  ;;  %v7837_v49 = vrot.slane %v7273_v20, 2  ;;  %v6878_v63 = vpop.f32.mrb[84].mxu1  ;;  %8383 = vmatprep.mubr.f32.mxu0 %v13856_v41  ;;  %v7839_v50 = vrot.slane %v10594_v44, 2 }
 0x588   : > { %v7396_v22 = vadd.f32 %v6878_v63, %v13582_v45  ;;  %v6880_v48 = vpop.f32.mrb[85].mxu1  ;;  %10718 = vmatmul.mubr.f32.gmra.mrb[190].mxu1 %v13856_v41  ;;  %v7651_v59 = vadd.f32 %v7557_v57, %v7395_v13 }
 0x589   : > { %v10597_v40 = vpop.f32.mrb[82].mxu0  ;;  %v13916_v0 = vsel %vm2227_vm4, %v7835_v3, %v7837_v49  ;;  %v7558_v13 = vrot.slane %v6880_v48, 1 }
 0x58a   : > { %v7842_v25 = vrot.slane %v10597_v40, 2  ;;  %v7283_v47 = vpop.f32.mrb[83].mxu0  ;;  %8384 = vmatmul.mubr.f32.gmra.mrb[188].mxu0 %v13856_v41  ;;  %v13920_v15 = vadd.f32 %v13843_v16, %v7651_v59 }
 0x58b   : > { %v7840_v2 = vrot.slane %v7283_v47, 2  ;;  %v6884_v30 = vpop.f32.mrb[86].mxu1  ;;  %8389 = vmatprep.mubr.f32.mxu0 %v13856_v41 }
 0x58c   : > { %v7397_v45 = vadd.f32 %v6884_v30, %v13589_v62  ;;  %v6886_v9 = vpop.f32.mrb[87].mxu1 }
 0x58d   : > { %v7559_v29 = vrot.slane %v6886_v9, 1  ;;  %v10600_v54 = vpop.f32.mrb[84].mxu0  ;;  %v13925_v3 = vsel %vm2227_vm4, %v7839_v50, %v7840_v2  ;;  %v13928_v42 = vsel %vm2227_vm4, %v7840_v2, %v7842_v25 }
 0x58e   : > { %v7845_v20 = vrot.slane %v10600_v54, 2  ;;  %v7293_v16 = vpop.f32.mrb[85].mxu0  ;;  %8390 = vmatmul.mubr.f32.gmra.mrb[190].mxu0 %v13856_v41 }
 0x58f   : > { %v7560_v44 = vsel %vm1970_vm3, %v7558_v13, %v7559_v29  ;;  %v7844_v57 = vrot.slane %v7293_v16, 2  ;;  %v6890_v49 = vpop.f32.mrb[88].mxu1 }
 0x590   : > { %v6891_v63 = vpop.f32.mrb[89].mxu1  ;;  %v7652_v62 = vadd.f32 %v7560_v44, %v7396_v22 }
 0x591   : > { %v7561_v59 = vrot.slane %v6891_v63, 1  ;;  %v10603_v48 = vpop.f32.mrb[86].mxu0  ;;  %v13933_v40 = vsel %vm2227_vm4, %v7844_v57, %v7845_v20 }
 0x592   : > { %v7303_v47 = vpop.f32.mrb[87].mxu0  ;;  %v13936_v50 = vadd.f32 %v13850_v1, %v7652_v62  ;;  %v7849_v49 = vrot.slane %v10603_v48, 2 }
 0x593   : > { %v7562_v25 = vsel %vm1970_vm3, %v7559_v29, %v7561_v59  ;;  %v7847_v2 = vrot.slane %v7303_v47, 2  ;;  %v6895_v30 = vpop.f32.mrb[90].mxu1 }
 0x594   : > { %v7398_v41 = vadd.f32 %v6895_v30, %v13600_v37  ;;  %v6897_v9 = vpop.f32.mrb[91].mxu1  ;;  %v7653_v13 = vadd.f32 %v7562_v25, %v7397_v45 }
 0x595   : > { %v10606_v54 = vpop.f32.mrb[88].mxu0  ;;  %v13941_v22 = vsel %vm2227_vm4, %v7845_v20, %v7847_v2  ;;  %v7563_v59 = vrot.slane %v6897_v9, 1 }
 0x596   : > { %v7852_v16 = vrot.slane %v10606_v54, 2  ;;  %v7313_v44 = vpop.f32.mrb[89].mxu0  ;;  %v13944_v57 = vadd.f32 %v13862_v4, %v7653_v13 }
 0x597   : > { %v7850_v1 = vrot.slane %v7313_v44, 2  ;;  %v6901_v63 = vpop.f32.mrb[92].mxu1 }
 0x598   : > { %v7399_v29 = vadd.f32 %v6901_v63, %v13606_v52  ;;  %v6903_v62 = vpop.f32.mrb[93].mxu1 }
 0x599   : > { %v7564_v47 = vrot.slane %v6903_v62, 1  ;;  %v10609_v37 = vpop.f32.mrb[90].mxu0  ;;  %v13948_v45 = vsel %vm2227_vm4, %v7849_v49, %v7850_v1  ;;  %v13951_v20 = vsel %vm2227_vm4, %v7850_v1, %v7852_v16 }
 0x59a   : > { %v7855_v25 = vrot.slane %v10609_v37, 2  ;;  %v7323_v2 = vpop.f32.mrb[91].mxu0 }
 0x59b   : > { %v7565_v4 = vsel %vm1970_vm3, %v7563_v59, %v7564_v47  ;;  %v7854_v30 = vrot.slane %v7323_v2, 2  ;;  %v6907_v48 = vpop.f32.mrb[94].mxu1 }
 0x59c   : > { %v6908_v13 = vpop.f32.mrb[95].mxu1  ;;  %v7654_v54 = vadd.f32 %v7565_v4, %v7398_v41 }
 0x59d   : > { %v7566_v44 = vrot.slane %v6908_v13, 1  ;;  %v10612_v52 = vpop.f32.mrb[92].mxu0  ;;  %v13955_v9 = vsel %vm2227_vm4, %v7854_v30, %v7855_v25 }
 0x59e   : > { %v7333_v63 = vpop.f32.mrb[93].mxu0  ;;  %v13958_v49 = vadd.f32 %v13870_v21, %v7654_v54  ;;  %v7859_v19 = vrot.slane %v10612_v52, 2 }
 0x59f   : > { %v7567_v16 = vsel %vm1970_vm3, %v7564_v47, %v7566_v44  ;;  %v7857_v1 = vrot.slane %v7333_v63, 2  ;;  %v6912_v62 = vpop.f32.mrb[96].mxu1 }
 0x5a0   : > { %14396 = vst [vmem:[#allocation20_spill] sm:$0xff] %v13958_v49  ;;  %v7400_v37 = vadd.f32 %v6912_v62, %v13616_v27  ;;  %v6914_v59 = vpop.f32.mrb[97].mxu1  ;;  %v7655_v2 = vadd.f32 %v7567_v16, %v7399_v29 }
 0x5a1   : > { %v10615_v48 = vpop.f32.mrb[94].mxu0  ;;  %v13963_v41 = vsel %vm2227_vm4, %v7855_v25, %v7857_v1  ;;  %v7568_v63 = vrot.slane %v6914_v59, 1 }
 0x5a2   : > { %v7862_v4 = vrot.slane %v10615_v48, 2  ;;  %v7343_v13 = vpop.f32.mrb[95].mxu0  ;;  %v13966_v30 = vadd.f32 %v13873_v23, %v7655_v2 }
 0x5a3   : > { %v7860_v21 = vrot.slane %v7343_v13, 2  ;;  %v6918_v54 = vpop.f32.mrb[98].mxu1 }
 0x5a4   : > { %v7401_v47 = vadd.f32 %v6918_v54, %v13623_v61  ;;  %v6920_v44 = vpop.f32.mrb[99].mxu1 }
 0x5a5   : > { %v7569_v49 = vrot.slane %v6920_v44, 1  ;;  %v8124_v27 = vpop.f32.mrb[96].mxu0  ;;  %v13970_v29 = vsel %vm2227_vm4, %v7859_v19, %v7860_v21  ;;  %v13973_v25 = vsel %vm2227_vm4, %v7860_v21, %v7862_v4 }
 0x5a6   : > { %v8732_v16 = vadd.f32 %v8124_v27, %v13764_v11  ;;  %v8126_v1 = vpop.f32.mrb[97].mxu0 }
 0x5a7   : > { %v7570_v23 = vsel %vm1970_vm3, %v7568_v63, %v7569_v49  ;;  %v6924_v52 = vpop.f32.mrb[100].mxu1  ;;  %v8876_v19 = vrot.slane %v8126_v1, 1 }
 0x5a8   : > { %v6925_v62 = vpop.f32.mrb[101].mxu1  ;;  %v7656_v2 = vadd.f32 %v7570_v23, %v7400_v37 }
 0x5a9   : > { %v7571_v48 = vrot.slane %v6925_v62, 1  ;;  %v8130_v61 = vpop.f32.mrb[98].mxu0 }
 0x5aa   : > { %v8733_v59 = vadd.f32 %v8130_v61, %v13773_v39  ;;  %v8132_v13 = vpop.f32.mrb[99].mxu0  ;;  %v13979_v54 = vadd.f32 %v13878_v55, %v7656_v2 }
 0x5ab   : > { %v7572_v4 = vsel %vm1970_vm3, %v7569_v49, %v7571_v48  ;;  %v8877_v21 = vrot.slane %v8132_v13, 1  ;;  %v6929_v44 = vpop.f32.mrb[102].mxu1 }
 0x5ac   : > { %v7402_v11 = vadd.f32 %v6929_v44, %v13634_v18  ;;  %v6931_v27 = vpop.f32.mrb[103].mxu1  ;;  %v7657_v63 = vadd.f32 %v7572_v4, %v7401_v47 }
 0x5ad   : > { %v8878_v52 = vsel %vm1970_vm3, %v8876_v19, %v8877_v21  ;;  %v8136_v37 = vpop.f32.mrb[100].mxu0  ;;  %v7573_v48 = vrot.slane %v6931_v27, 1 }
 0x5ae   : > { %v13984_v23 = vadd.f32 %v8878_v52, %v8732_v16  ;;  %v8137_v62 = vpop.f32.mrb[101].mxu0  ;;  %v13987_v39 = vadd.f32 %v13887_v26, %v7657_v63 }
 0x5af   : > { %v8879_v55 = vrot.slane %v8137_v62, 1  ;;  %v6935_v2 = vpop.f32.mrb[104].mxu1 }
 0x5b0   : > { %v7403_v1 = vadd.f32 %v6935_v2, %v13640_v32  ;;  %v6937_v49 = vpop.f32.mrb[105].mxu1 }
 0x5b1   : > { %v8880_v61 = vsel %vm1970_vm3, %v8877_v21, %v8879_v55  ;;  %v7574_v18 = vrot.slane %v6937_v49, 1  ;;  %v8141_v13 = vpop.f32.mrb[102].mxu0 }
 0x5b2   : > { %v13991_v47 = vadd.f32 %v8880_v61, %v8733_v59  ;;  %v8734_v19 = vadd.f32 %v8141_v13, %v13790_v51  ;;  %v8143_v16 = vpop.f32.mrb[103].mxu0 }
 0x5b3   : > { %v7575_v4 = vsel %vm1970_vm3, %v7573_v48, %v7574_v18  ;;  %v6941_v44 = vpop.f32.mrb[106].mxu1  ;;  %v8881_v21 = vrot.slane %v8143_v16, 1 }
 0x5b4   : > { %v6942_v26 = vpop.f32.mrb[107].mxu1  ;;  %v7658_v63 = vadd.f32 %v7575_v4, %v7402_v11 }
 0x5b5   : > { %v7576_v52 = vrot.slane %v6942_v26, 1  ;;  %v8147_v37 = vpop.f32.mrb[104].mxu0 }
 0x5b6   : > { %v8735_v32 = vadd.f32 %v8147_v37, %v13801_v6  ;;  %v8149_v62 = vpop.f32.mrb[105].mxu0  ;;  %v13997_v27 = vadd.f32 %v13895_v35, %v7658_v63 }
 0x5b7   : > { %v7577_v59 = vsel %vm1970_vm3, %v7574_v18, %v7576_v52  ;;  %v8882_v55 = vrot.slane %v8149_v62, 1  ;;  %v6946_v2 = vpop.f32.mrb[108].mxu1 }
 0x5b8   : > { %v7404_v51 = vadd.f32 %v6946_v2, %v13650_v10  ;;  %v6948_v49 = vpop.f32.mrb[109].mxu1  ;;  %v7659_v48 = vadd.f32 %v7577_v59, %v7403_v1 }
 0x5b9   : > { %v8883_v61 = vsel %vm1970_vm3, %v8881_v21, %v8882_v55  ;;  %v8153_v11 = vpop.f32.mrb[106].mxu0  ;;  %v7578_v26 = vrot.slane %v6948_v49, 1 }
 0x5ba   : > { %v14002_v13 = vadd.f32 %v8883_v61, %v8734_v19  ;;  %v8154_v4 = vpop.f32.mrb[107].mxu0  ;;  %v14005_v6 = vadd.f32 %v13898_v34, %v7659_v48 }
 0x5bb   : > { %v8884_v35 = vrot.slane %v8154_v4, 1  ;;  %v6952_v44 = vpop.f32.mrb[110].mxu1 }
 0x5bc   : > { %v7405_v16 = vadd.f32 %v6952_v44, %v13657_v14  ;;  %v6954_v18 = vpop.f32.mrb[111].mxu1 }
 0x5bd   : > { %v8885_v63 = vsel %vm1970_vm3, %v8882_v55, %v8884_v35  ;;  %v7579_v10 = vrot.slane %v6954_v18, 1  ;;  %v8158_v52 = vpop.f32.mrb[108].mxu0 }
 0x5be   : > { %v14009_v1 = vadd.f32 %v8885_v63, %v8735_v32  ;;  %v8736_v37 = vadd.f32 %v8158_v52, %v13823_v33  ;;  %v8160_v19 = vpop.f32.mrb[109].mxu0 }
 0x5bf   : > { %v7580_v62 = vsel %vm1970_vm3, %v7578_v26, %v7579_v10  ;;  %v6958_v21 = vpop.f32.mrb[112].mxu1  ;;  %v8886_v55 = vrot.slane %v8160_v19, 1 }
 0x5c0   : > { %v6959_v34 = vpop.f32.mrb[113].mxu1  ;;  %v7660_v59 = vadd.f32 %v7580_v62, %v7404_v51 }
 0x5c1   : > { %v7581_v2 = vrot.slane %v6959_v34, 1  ;;  %v8164_v48 = vpop.f32.mrb[110].mxu0 }
 0x5c2   : > { %v8737_v14 = vadd.f32 %v8164_v48, %v13833_v7  ;;  %v8166_v61 = vpop.f32.mrb[111].mxu0  ;;  %v14015_v49 = vadd.f32 %v13905_v56, %v7660_v59 }
 0x5c3   : > { %v7582_v32 = vsel %vm1970_vm3, %v7579_v10, %v7581_v2  ;;  %v8887_v11 = vrot.slane %v8166_v61, 1  ;;  %v6963_v4 = vpop.f32.mrb[114].mxu1 }
 0x5c4   : > { %v7406_v33 = vadd.f32 %v6963_v4, %v13668_v5  ;;  %v6965_v35 = vpop.f32.mrb[115].mxu1  ;;  %v7661_v44 = vadd.f32 %v7582_v32, %v7405_v16 }
 0x5c5   : > { %v8888_v18 = vsel %vm1970_vm3, %v8886_v55, %v8887_v11  ;;  %v8170_v51 = vpop.f32.mrb[112].mxu0  ;;  %v7583_v62 = vrot.slane %v6965_v35, 1 }
 0x5c6   : > { %v14020_v26 = vadd.f32 %v8888_v18, %v8736_v37  ;;  %v8171_v63 = vpop.f32.mrb[113].mxu0  ;;  %v14023_v7 = vadd.f32 %v13916_v0, %v7661_v44 }
 0x5c7   : > { %v8889_v56 = vrot.slane %v8171_v63, 1  ;;  %v6969_v52 = vpop.f32.mrb[116].mxu1 }
 0x5c8   : > { %v7407_v19 = vadd.f32 %v6969_v52, %v13674_v8  ;;  %v6971_v10 = vpop.f32.mrb[117].mxu1 }
 0x5c9   : > { %v8890_v21 = vsel %vm1970_vm3, %v8887_v11, %v8889_v56  ;;  %v7584_v5 = vrot.slane %v6971_v10, 1  ;;  %v8175_v34 = vpop.f32.mrb[114].mxu0 }
 0x5ca   : > { %v14027_v16 = vadd.f32 %v8890_v21, %v8737_v14  ;;  %v8738_v59 = vadd.f32 %v8175_v34, %v13853_v46  ;;  %v8177_v37 = vpop.f32.mrb[115].mxu0 }
 0x5cb   : > { %v7585_v2 = vsel %vm1970_vm3, %v7583_v62, %v7584_v5  ;;  %v6975_v48 = vpop.f32.mrb[118].mxu1  ;;  %v8891_v11 = vrot.slane %v8177_v37, 1 }
 0x5cc   : > { %v6976_v0 = vpop.f32.mrb[119].mxu1  ;;  %v7662_v61 = vadd.f32 %v7585_v2, %v7406_v33 }
 0x5cd   : > { %v7586_v55 = vrot.slane %v6976_v0, 1  ;;  %v8181_v32 = vpop.f32.mrb[116].mxu0 }
 0x5ce   : > { %v8739_v8 = vadd.f32 %v8181_v32, %v13865_v28  ;;  %v8183_v4 = vpop.f32.mrb[117].mxu0  ;;  %v14033_v35 = vadd.f32 %v13925_v3, %v7662_v61 }
 0x5cf   : > { %v7587_v14 = vsel %vm1970_vm3, %v7584_v5, %v7586_v55  ;;  %v8892_v44 = vrot.slane %v8183_v4, 1  ;;  %v6980_v18 = vpop.f32.mrb[120].mxu1 }
 0x5d0   : > { %v7408_v46 = vadd.f32 %v6980_v18, %v13685_v31  ;;  %v6982_v51 = vpop.f32.mrb[121].mxu1  ;;  %v7663_v63 = vadd.f32 %v7587_v14, %v7407_v19 }
 0x5d1   : > { %v8893_v56 = vsel %vm1970_vm3, %v8891_v11, %v8892_v44  ;;  %v8187_v33 = vpop.f32.mrb[118].mxu0  ;;  %v7588_v34 = vrot.slane %v6982_v51, 1 }
 0x5d2   : > { %v14038_v52 = vadd.f32 %v8893_v56, %v8738_v59  ;;  %v8188_v10 = vpop.f32.mrb[119].mxu0  ;;  %v14041_v28 = vadd.f32 %v13928_v42, %v7663_v63 }
 0x5d3   : > { %v8894_v3 = vrot.slane %v8188_v10, 1  ;;  %v6986_v62 = vpop.f32.mrb[122].mxu1 }
 0x5d4   : > { %v7409_v21 = vadd.f32 %v6986_v62, %v13693_v24  ;;  %v6988_v5 = vpop.f32.mrb[123].mxu1 }
 0x5d5   : > { %v8895_v37 = vsel %vm1970_vm3, %v8892_v44, %v8894_v3  ;;  %v7589_v31 = vrot.slane %v6988_v5, 1  ;;  %v8192_v2 = vpop.f32.mrb[120].mxu0 }
 0x5d6   : > { %v14045_v19 = vadd.f32 %v8895_v37, %v8739_v8  ;;  %v8740_v48 = vadd.f32 %v8192_v2, %v13881_v12  ;;  %v8194_v59 = vpop.f32.mrb[121].mxu0 }
 0x5d7   : > { %v7590_v0 = vsel %vm1970_vm3, %v7588_v34, %v7589_v31  ;;  %v6992_v61 = vpop.f32.mrb[124].mxu1  ;;  %v8896_v44 = vrot.slane %v8194_v59, 1 }
 0x5d8   : > { %v6993_v42 = vpop.f32.mrb[125].mxu1  ;;  %v7664_v55 = vadd.f32 %v7590_v0, %v7408_v46 }
 0x5d9   : > { %v7591_v32 = vrot.slane %v6993_v42, 1  ;;  %v8198_v4 = vpop.f32.mrb[122].mxu0 }
 0x5da   : > { %v8741_v24 = vadd.f32 %v8198_v4, %v13890_v38  ;;  %v8200_v11 = vpop.f32.mrb[123].mxu0  ;;  %v14051_v14 = vadd.f32 %v13933_v40, %v7664_v55 }
 0x5db   : > { %v7592_v8 = vsel %vm1970_vm3, %v7589_v31, %v7591_v32  ;;  %v8897_v18 = vrot.slane %v8200_v11, 1  ;;  %v6997_v51 = vpop.f32.mrb[126].mxu1 }
 0x5dc   : > { %v7410_v12 = vadd.f32 %v6997_v51, %v13708_v58  ;;  %v6999_v63 = vpop.f32.mrb[127].mxu1  ;;  %v7665_v56 = vadd.f32 %v7592_v8, %v7409_v21 }
 0x5dd   : > { %v8898_v33 = vsel %vm1970_vm3, %v8896_v44, %v8897_v18  ;;  %v8204_v46 = vpop.f32.mrb[124].mxu0  ;;  %v7593_v37 = vrot.slane %v6999_v63, 1 }
 0x5de   : > { %v14056_v10 = vadd.f32 %v8898_v33, %v8740_v48  ;;  %v8205_v3 = vpop.f32.mrb[125].mxu0  ;;  %v14059_v38 = vadd.f32 %v13941_v22, %v7665_v56 }
 0x5df   : > { %v8899_v40 = vrot.slane %v8205_v3, 1  ;;  %v7003_v62 = vpop.f32.mrb[128].mxu1 }
 0x5e0   : > { %v7411_v5 = vadd.f32 %v7003_v62, %v13715_v60  ;;  %v7005_v34 = vpop.f32.mrb[129].mxu1 }
 0x5e1   : > { %v8900_v31 = vsel %vm1970_vm3, %v8897_v18, %v8899_v40  ;;  %v7594_v58 = vrot.slane %v7005_v34, 1  ;;  %v8209_v2 = vpop.f32.mrb[126].mxu0 }
 0x5e2   : > { %v14063_v21 = vadd.f32 %v8900_v31, %v8741_v24  ;;  %v8742_v59 = vadd.f32 %v8209_v2, %v13909_v43  ;;  %v8211_v48 = vpop.f32.mrb[127].mxu0 }
 0x5e3   : > { %v7595_v0 = vsel %vm1970_vm3, %v7593_v37, %v7594_v58  ;;  %v7009_v61 = vpop.f32.mrb[130].mxu1  ;;  %v8901_v44 = vrot.slane %v8211_v48, 1 }
 0x5e4   : > { %v7010_v22 = vpop.f32.mrb[131].mxu1  ;;  %v7666_v42 = vadd.f32 %v7595_v0, %v7410_v12 }
 0x5e5   : > { %v7596_v55 = vrot.slane %v7010_v22, 1  ;;  %v8215_v32 = vpop.f32.mrb[128].mxu0 }
 0x5e6   : > { %v8743_v60 = vadd.f32 %v8215_v32, %v13920_v15  ;;  %v8217_v4 = vpop.f32.mrb[129].mxu0  ;;  %v14069_v11 = vadd.f32 %v13948_v45, %v7666_v42 }
 0x5e7   : > { %v7597_v24 = vsel %vm1970_vm3, %v7594_v58, %v7596_v55  ;;  %v8902_v8 = vrot.slane %v8217_v4, 1  ;;  %v7014_v18 = vpop.f32.mrb[132].mxu1 }
 0x5e8   : > { %v7412_v43 = vadd.f32 %v7014_v18, %v13727_v17  ;;  %v7016_v51 = vpop.f32.mrb[133].mxu1  ;;  %v7667_v63 = vadd.f32 %v7597_v24, %v7411_v5 }
 0x5e9   : > { %v8903_v56 = vsel %vm1970_vm3, %v8901_v44, %v8902_v8  ;;  %v8221_v12 = vpop.f32.mrb[130].mxu0  ;;  %v7598_v34 = vrot.slane %v7016_v51, 1 }
 0x5ea   : > { %v14074_v33 = vadd.f32 %v8903_v56, %v8742_v59  ;;  %v8222_v46 = vpop.f32.mrb[131].mxu0  ;;  %v14077_v15 = vadd.f32 %v13951_v20, %v7667_v63  ;;  %v14397_v12 = vld [vmem:[#allocation15_spill] sm:$0xff] }
 0x5eb   : > { %v8904_v45 = vrot.slane %v8222_v46, 1  ;;  %v7020_v3 = vpop.f32.mrb[134].mxu1 }
 0x5ec   : > { %v7413_v40 = vadd.f32 %v7020_v3, %v13735_v36  ;;  %v7022_v62 = vpop.f32.mrb[135].mxu1 }
 0x5ed   : > { %v8905_v37 = vsel %vm1970_vm3, %v8902_v8, %v8904_v45  ;;  %v7599_v17 = vrot.slane %v7022_v62, 1  ;;  %v8226_v31 = vpop.f32.mrb[132].mxu0 }
 0x5ee   : > { %v14081_v5 = vadd.f32 %v8905_v37, %v8743_v60  ;;  %v8744_v58 = vadd.f32 %v8226_v31, %v13936_v50  ;;  %v8228_v2 = vpop.f32.mrb[133].mxu0  ;;  %v14398_v37 = vld [vmem:[#allocation20_spill] sm:$0xff] }
 0x5ef   : > { %v7600_v59 = vsel %vm1970_vm3, %v7598_v34, %v7599_v17  ;;  %v7026_v48 = vpop.f32.mrb[136].mxu1  ;;  %v8906_v32 = vrot.slane %v8228_v2, 1 }
 0x5f0   : > { %v7027_v20 = vpop.f32.mrb[137].mxu1  ;;  %v7668_v0 = vadd.f32 %v7600_v59, %v7412_v43 }
 0x5f1   : > { %v7601_v61 = vrot.slane %v7027_v20, 1  ;;  %v8232_v22 = vpop.f32.mrb[134].mxu0 }
 0x5f2   : > { %v8745_v36 = vadd.f32 %v8232_v22, %v13944_v57  ;;  %v8234_v42 = vpop.f32.mrb[135].mxu0  ;;  %v14087_v55 = vadd.f32 %v13955_v9, %v7668_v0 }
 0x5f3   : > { %v7602_v60 = vsel %vm1970_vm3, %v7599_v17, %v7601_v61  ;;  %v8907_v4 = vrot.slane %v8234_v42, 1  ;;  %v7031_v44 = vpop.f32.mrb[138].mxu1 }
 0x5f4   : > { %v7414_v50 = vadd.f32 %v7031_v44, %v13750_v53  ;;  %v7033_v24 = vpop.f32.mrb[139].mxu1  ;;  %v7669_v8 = vadd.f32 %v7602_v60, %v7413_v40 }
 0x5f5   : > { %v8908_v18 = vsel %vm1970_vm3, %v8906_v32, %v8907_v4  ;;  %v8238_v43 = vpop.f32.mrb[136].mxu0  ;;  %v7603_v3 = vrot.slane %v7033_v24, 1 }
 0x5f6   : > { %v14092_v51 = vadd.f32 %v8908_v18, %v8744_v58  ;;  %v8239_v63 = vpop.f32.mrb[137].mxu0  ;;  %v14095_v57 = vadd.f32 %v13963_v41, %v7669_v8 }
 0x5f7   : > { %v8909_v9 = vrot.slane %v8239_v63, 1  ;;  %v7037_v56 = vpop.f32.mrb[140].mxu1 }
 0x5f8   : > { %v7415_v46 = vadd.f32 %v7037_v56, %v14397_v12  ;;  %v7039_v45 = vpop.f32.mrb[141].mxu1 }
 0x5f9   : > { %v8910_v62 = vsel %vm1970_vm3, %v8907_v4, %v8909_v9  ;;  %v7604_v53 = vrot.slane %v7039_v45, 1  ;;  %v8243_v34 = vpop.f32.mrb[138].mxu0  ;;  %v14119_v9 = vld [vmem:[%s14353_s6] ss:$0 sm:$0xff] }
 0x5fa   : > { %v14099_v40 = vadd.f32 %v8910_v62, %v8745_v36  ;;  %v8746_v17 = vadd.f32 %v8243_v34, %v14398_v37  ;;  %v8245_v31 = vpop.f32.mrb[139].mxu0 }
 0x5fb   : > { %v7605_v58 = vsel %vm1970_vm3, %v7603_v3, %v7604_v53  ;;  %v7043_v2 = vpop.f32.mrb[142].mxu1  ;;  %v8911_v42 = vrot.slane %v8245_v31, 1 }
 0x5fc   : > { %v7044_v41 = vpop.f32.mrb[143].mxu1  ;;  %v7670_v59 = vadd.f32 %v7605_v58, %v7414_v50 }
 0x5fd   : > { %v7606_v48 = vrot.slane %v7044_v41, 1  ;;  %v8249_v20 = vpop.f32.mrb[140].mxu0 }
 0x5fe   : > { %v8747_v0 = vadd.f32 %v8249_v20, %v13966_v30  ;;  %v8251_v61 = vpop.f32.mrb[141].mxu0  ;;  %v14105_v22 = vadd.f32 %v13970_v29, %v7670_v59 }
 0x5ff   : > { %v7607_v36 = vsel %vm1970_vm3, %v7604_v53, %v7606_v48  ;;  %v8912_v32 = vrot.slane %v8251_v61, 1  ;;  %v10650_v60 = vpop.f32.mrb[144].mxu1 }
 0x600   : > { %v9133_v4 = vrot.slane %v10650_v60, 2  ;;  %v8461_v44 = vpop.f32.mrb[145].mxu1  ;;  %v7671_v24 = vadd.f32 %v7607_v36, %v7415_v46 }
 0x601   : > { %v8913_v8 = vsel %vm1970_vm3, %v8911_v42, %v8912_v32  ;;  %v9132_v50 = vrot.slane %v8461_v44, 2  ;;  %v8255_v18 = vpop.f32.mrb[142].mxu0 }
 0x602   : > { %v14110_v43 = vadd.f32 %v8913_v8, %v8746_v17  ;;  %v8256_v30 = vpop.f32.mrb[143].mxu0  ;;  %v14113_v29 = vadd.f32 %v13973_v25, %v7671_v24 }
 0x603   : > { %v9134_v63 = vsel %vm2227_vm4, %v9132_v50, %v9133_v4  ;;  %v8914_v56 = vrot.slane %v8256_v30, 1  ;;  %v10653_v12 = vpop.f32.mrb[146].mxu1 }
 0x604   : > { %v9244_v46 = vadd.f32 %v9134_v63, %v13984_v23  ;;  %v8471_v45 = vpop.f32.mrb[147].mxu1  ;;  %v9137_v48 = vrot.slane %v10653_v12, 2 }
 0x605   : > { %v8915_v3 = vsel %vm1970_vm3, %v8912_v32, %v8914_v56  ;;  %v9135_v62 = vrot.slane %v8471_v45, 2  ;;  %v8260_v53 = vpop.f32.mrb[144].mxu0 }
 0x606   : > { %v9347_v25 = vadd.f32 %v14119_v9, %v9244_v46  ;;  %v14126_v34 = vadd.f32 %v8915_v3, %v8747_v0  ;;  %v8748_v37 = vadd.f32 %v8260_v53, %v13979_v54  ;;  %v8262_v17 = vpop.f32.mrb[145].mxu0 }
 0x607   : > { %v9136_v31 = vsel %vm2227_vm4, %v9133_v4, %v9135_v62  ;;  %v10656_v58 = vpop.f32.mrb[148].mxu1  ;;  %v8916_v36 = vrot.slane %v8262_v17, 1 }
 0x608   : > { %v9379_v2 = vmax.f32 %v9347_v25, 0.0  ;;  %v9245_v41 = vadd.f32 %v9136_v31, %v13991_v47  ;;  %v9140_v59 = vrot.slane %v10656_v58, 2  ;;  %v8481_v23 = vpop.f32.mrb[149].mxu1 }
 0x609   : > { %v9138_v20 = vrot.slane %v8481_v23, 2  ;;  %v8266_v61 = vpop.f32.mrb[146].mxu0 }
 0x60a   : > { %9411 = vst [vmem:[%s14131_s9] sm:$0xff] %v9379_v2  ;;  %v9348_v0 = vadd.f32 %v14119_v9, %v9245_v41  ;;  %v8749_v54 = vadd.f32 %v8266_v61, %v13987_v39  ;;  %v8268_v42 = vpop.f32.mrb[147].mxu0 }
 0x60b   : > { %v9139_v32 = vsel %vm2227_vm4, %v9137_v48, %v9138_v20  ;;  %v9141_v47 = vsel %vm2227_vm4, %v9138_v20, %v9140_v59  ;;  %v8917_v60 = vrot.slane %v8268_v42, 1  ;;  %v10659_v4 = vpop.f32.mrb[150].mxu1 }
 0x60c   : > { %v9380_v44 = vmax.f32 %v9348_v0, 0.0  ;;  %v9246_v24 = vadd.f32 %v9139_v32, %v14002_v13  ;;  %v9247_v8 = vadd.f32 %v9141_v47, %v14009_v1  ;;  %v9143_v50 = vrot.slane %v10659_v4, 2  ;;  %v8491_v18 = vpop.f32.mrb[151].mxu1 }
 0x60d   : > { %v8918_v30 = vsel %vm1970_vm3, %v8916_v36, %v8917_v60  ;;  %v9142_v63 = vrot.slane %v8491_v18, 2  ;;  %v8272_v56 = vpop.f32.mrb[148].mxu0 }
 0x60e   : > { %9412 = vst [vmem:[%s14131_s9 + $0x8] sm:$0xff] %v9380_v44  ;;  %v9349_v39 = vadd.f32 %v14119_v9, %v9246_v24  ;;  %v9350_v12 = vadd.f32 %v14119_v9, %v9247_v8  ;;  %v14144_v46 = vadd.f32 %v8918_v30, %v8748_v37  ;;  %v8273_v45 = vpop.f32.mrb[149].mxu0 }
 0x60f   : > { %v9144_v13 = vsel %vm2227_vm4, %v9142_v63, %v9143_v50  ;;  %v8919_v3 = vrot.slane %v8273_v45, 1  ;;  %v10662_v1 = vpop.f32.mrb[152].mxu1 }
 0x610   : > { %v9381_v62 = vmax.f32 %v9349_v39, 0.0  ;;  %v9382_v53 = vmax.f32 %v9350_v12, 0.0  ;;  %v9248_v25 = vadd.f32 %v9144_v13, %v14020_v26  ;;  %v8501_v17 = vpop.f32.mrb[153].mxu1  ;;  %v9147_v36 = vrot.slane %v10662_v1, 2 }
 0x611   : > { %v8920_v31 = vsel %vm1970_vm3, %v8917_v60, %v8919_v3  ;;  %v9145_v58 = vrot.slane %v8501_v17, 2  ;;  %v8277_v2 = vpop.f32.mrb[150].mxu0 }
 0x612   : > { %9413 = vst [vmem:[%s14131_s9 + $0x10] sm:$0xff] %v9381_v62  ;;  %9414 = vst [vmem:[%s14131_s9 + $0x18] sm:$0xff] %v9382_v53  ;;  %v9351_v37 = vadd.f32 %v14119_v9, %v9248_v25  ;;  %v14152_v41 = vadd.f32 %v8920_v31, %v8749_v54  ;;  %v8750_v59 = vadd.f32 %v8277_v2, %v13997_v27  ;;  %v8279_v23 = vpop.f32.mrb[151].mxu0 }
 0x613   : > { %v9146_v48 = vsel %vm2227_vm4, %v9143_v50, %v9145_v58  ;;  %v10665_v20 = vpop.f32.mrb[154].mxu1  ;;  %v8921_v27 = vrot.slane %v8279_v23, 1 }
 0x614   : > { %v9383_v61 = vmax.f32 %v9351_v37, 0.0  ;;  %v9249_v26 = vadd.f32 %v9146_v48, %v14027_v16  ;;  %v9150_v0 = vrot.slane %v10665_v20, 2  ;;  %v8511_v42 = vpop.f32.mrb[155].mxu1 }
 0x615   : > { %v9148_v32 = vrot.slane %v8511_v42, 2  ;;  %v8283_v47 = vpop.f32.mrb[152].mxu0 }
 0x616   : > { %9415 = vst [vmem:[%s14131_s9 + $0x20] sm:$0xff] %v9383_v61  ;;  %v9352_v60 = vadd.f32 %v14119_v9, %v9249_v26  ;;  %v8751_v54 = vadd.f32 %v8283_v47, %v14005_v6  ;;  %v8285_v4 = vpop.f32.mrb[153].mxu0 }
 0x617   : > { %v9149_v44 = vsel %vm2227_vm4, %v9147_v36, %v9148_v32  ;;  %v9151_v24 = vsel %vm2227_vm4, %v9148_v32, %v9150_v0  ;;  %v8922_v8 = vrot.slane %v8285_v4, 1  ;;  %v10668_v50 = vpop.f32.mrb[156].mxu1 }
 0x618   : > { %v9384_v16 = vmax.f32 %v9352_v60, 0.0  ;;  %v9250_v18 = vadd.f32 %v9149_v44, %v14038_v52  ;;  %v9251_v30 = vadd.f32 %v9151_v24, %v14045_v19  ;;  %v9153_v63 = vrot.slane %v10668_v50, 2  ;;  %v8521_v56 = vpop.f32.mrb[157].mxu1 }
 0x619   : > { %v8923_v39 = vsel %vm1970_vm3, %v8921_v27, %v8922_v8  ;;  %v9152_v12 = vrot.slane %v8521_v56, 2  ;;  %v8289_v45 = vpop.f32.mrb[154].mxu0 }
 0x61a   : > { %9416 = vst [vmem:[%s14131_s9 + $0x28] sm:$0xff] %v9384_v16  ;;  %v9353_v6 = vadd.f32 %v14119_v9, %v9250_v18  ;;  %v9354_v13 = vadd.f32 %v14119_v9, %v9251_v30  ;;  %v14168_v3 = vadd.f32 %v8923_v39, %v8750_v59  ;;  %v8290_v1 = vpop.f32.mrb[155].mxu0 }
 0x61b   : > { %v9154_v52 = vsel %vm2227_vm4, %v9152_v12, %v9153_v63  ;;  %v8924_v62 = vrot.slane %v8290_v1, 1  ;;  %v10671_v19 = vpop.f32.mrb[158].mxu1 }
 0x61c   : > { %v9385_v53 = vmax.f32 %v9353_v6, 0.0  ;;  %v9386_v25 = vmax.f32 %v9354_v13, 0.0  ;;  %v9252_v17 = vadd.f32 %v9154_v52, %v14056_v10  ;;  %v8531_v31 = vpop.f32.mrb[159].mxu1  ;;  %v9157_v32 = vrot.slane %v10671_v19, 2 }
 0x61d   : > { %v8925_v58 = vsel %vm1970_vm3, %v8922_v8, %v8924_v62  ;;  %v9155_v2 = vrot.slane %v8531_v31, 2  ;;  %v8294_v37 = vpop.f32.mrb[156].mxu0 }
 0x61e   : > { %9417 = vst [vmem:[%s14131_s9 + $0x30] sm:$0xff] %v9385_v53  ;;  %9418 = vst [vmem:[%s14131_s9 + $0x38] sm:$0xff] %v9386_v25  ;;  %v9355_v59 = vadd.f32 %v14119_v9, %v9252_v17  ;;  %v14176_v23 = vadd.f32 %v8925_v58, %v8751_v54  ;;  %v8752_v48 = vadd.f32 %v8294_v37, %v14015_v49  ;;  %v8296_v20 = vpop.f32.mrb[157].mxu0 }
 0x61f   : > { %v9156_v61 = vsel %vm2227_vm4, %v9153_v63, %v9155_v2  ;;  %v10674_v26 = vpop.f32.mrb[160].mxu1  ;;  %v8926_v49 = vrot.slane %v8296_v20, 1 }
 0x620   : > { %v9387_v0 = vmax.f32 %v9355_v59, 0.0  ;;  %v9253_v10 = vadd.f32 %v9156_v61, %v14063_v21  ;;  %v9160_v42 = vrot.slane %v10674_v26, 2  ;;  %v8541_v36 = vpop.f32.mrb[161].mxu1 }
 0x621   : > { %v9158_v47 = vrot.slane %v8541_v36, 2  ;;  %v8300_v60 = vpop.f32.mrb[158].mxu0 }
 0x622   : > { %9419 = vst [vmem:[%s14131_s9 + $0x40] sm:$0xff] %v9387_v0  ;;  %v9356_v4 = vadd.f32 %v14119_v9, %v9253_v10  ;;  %v8753_v54 = vadd.f32 %v8300_v60, %v14023_v7  ;;  %v8302_v27 = vpop.f32.mrb[159].mxu0 }
 0x623   : > { %v9159_v44 = vsel %vm2227_vm4, %v9157_v32, %v9158_v47  ;;  %v9161_v24 = vsel %vm2227_vm4, %v9158_v47, %v9160_v42  ;;  %v8927_v8 = vrot.slane %v8302_v27, 1  ;;  %v10677_v50 = vpop.f32.mrb[162].mxu1 }
 0x624   : > { %v9388_v21 = vmax.f32 %v9356_v4, 0.0  ;;  %v9254_v16 = vadd.f32 %v9159_v44, %v14074_v33  ;;  %v9255_v18 = vadd.f32 %v9161_v24, %v14081_v5  ;;  %v9163_v30 = vrot.slane %v10677_v50, 2  ;;  %v8551_v63 = vpop.f32.mrb[163].mxu1 }
 0x625   : > { %v8928_v56 = vsel %vm1970_vm3, %v8926_v49, %v8927_v8  ;;  %v9162_v39 = vrot.slane %v8551_v63, 2  ;;  %v8306_v12 = vpop.f32.mrb[160].mxu0 }
 0x626   : > { %9420 = vst [vmem:[%s14131_s9 + $0x48] sm:$0xff] %v9388_v21  ;;  %v9357_v7 = vadd.f32 %v14119_v9, %v9254_v16  ;;  %v9358_v45 = vadd.f32 %v14119_v9, %v9255_v18  ;;  %v14192_v6 = vadd.f32 %v8928_v56, %v8752_v48  ;;  %v8307_v13 = vpop.f32.mrb[161].mxu0 }
 0x627   : > { %v9164_v33 = vsel %vm2227_vm4, %v9162_v39, %v9163_v30  ;;  %v8929_v1 = vrot.slane %v8307_v13, 1  ;;  %v10680_v5 = vpop.f32.mrb[164].mxu1 }
 0x628   : > { %v9389_v52 = vmax.f32 %v9357_v7, 0.0  ;;  %v9390_v62 = vmax.f32 %v9358_v45, 0.0  ;;  %v9256_v19 = vadd.f32 %v9164_v33, %v14092_v51  ;;  %v8561_v53 = vpop.f32.mrb[165].mxu1  ;;  %v9167_v10 = vrot.slane %v10680_v5, 2 }
 0x629   : > { %v8930_v25 = vsel %vm1970_vm3, %v8927_v8, %v8929_v1  ;;  %v9165_v17 = vrot.slane %v8561_v53, 2  ;;  %v8311_v31 = vpop.f32.mrb[162].mxu0 }
 0x62a   : > { %9421 = vst [vmem:[%s14131_s9 + $0x50] sm:$0xff] %v9389_v52  ;;  %9422 = vst [vmem:[%s14131_s9 + $0x58] sm:$0xff] %v9390_v62  ;;  %v9359_v58 = vadd.f32 %v14119_v9, %v9256_v19  ;;  %v14200_v2 = vadd.f32 %v8930_v25, %v8753_v54  ;;  %v8754_v37 = vadd.f32 %v8311_v31, %v14033_v35  ;;  %v8313_v59 = vpop.f32.mrb[163].mxu0 }
 0x62b   : > { %v9166_v48 = vsel %vm2227_vm4, %v9163_v30, %v9165_v17  ;;  %v10683_v20 = vpop.f32.mrb[166].mxu1  ;;  %v8931_v35 = vrot.slane %v8313_v59, 1 }
 0x62c   : > { %v9391_v61 = vmax.f32 %v9359_v58, 0.0  ;;  %v9257_v51 = vadd.f32 %v9166_v48, %v14099_v40  ;;  %v9170_v26 = vrot.slane %v10683_v20, 2  ;;  %v8571_v0 = vpop.f32.mrb[167].mxu1 }
 0x62d   : > { %v9168_v42 = vrot.slane %v8571_v0, 2  ;;  %v8317_v36 = vpop.f32.mrb[164].mxu0 }
 0x62e   : > { %9423 = vst [vmem:[%s14131_s9 + $0x60] sm:$0xff] %v9391_v61  ;;  %v9360_v32 = vadd.f32 %v14119_v9, %v9257_v51  ;;  %v8755_v47 = vadd.f32 %v8317_v36, %v14041_v28  ;;  %v8319_v60 = vpop.f32.mrb[165].mxu0 }
 0x62f   : > { %v9169_v4 = vsel %vm2227_vm4, %v9167_v10, %v9168_v42  ;;  %v9171_v54 = vsel %vm2227_vm4, %v9168_v42, %v9170_v26  ;;  %v8932_v27 = vrot.slane %v8319_v60, 1  ;;  %v10686_v49 = vpop.f32.mrb[168].mxu1 }
 0x630   : > { %v9392_v40 = vmax.f32 %v9360_v32, 0.0  ;;  %v9258_v44 = vadd.f32 %v9169_v4, %v14110_v43  ;;  %v9259_v24 = vadd.f32 %v9171_v54, %v14126_v34  ;;  %v9173_v8 = vrot.slane %v10686_v49, 2  ;;  %v8581_v50 = vpop.f32.mrb[169].mxu1 }
 0x631   : > { %v8933_v21 = vsel %vm1970_vm3, %v8931_v35, %v8932_v27  ;;  %v9172_v16 = vrot.slane %v8581_v50, 2  ;;  %v8323_v18 = vpop.f32.mrb[166].mxu0 }
 0x632   : > { %9424 = vst [vmem:[%s14131_s9 + $0x68] sm:$0xff] %v9392_v40  ;;  %v9361_v28 = vadd.f32 %v14119_v9, %v9258_v44  ;;  %v9362_v30 = vadd.f32 %v14119_v9, %v9259_v24  ;;  %v14216_v63 = vadd.f32 %v8933_v21, %v8754_v37  ;;  %v8324_v56 = vpop.f32.mrb[167].mxu0 }
 0x633   : > { %v9174_v43 = vsel %vm2227_vm4, %v9172_v16, %v9173_v8  ;;  %v8934_v39 = vrot.slane %v8324_v56, 1  ;;  %v10689_v34 = vpop.f32.mrb[170].mxu1 }
 0x634   : > { %v9393_v12 = vmax.f32 %v9361_v28, 0.0  ;;  %v9394_v7 = vmax.f32 %v9362_v30, 0.0  ;;  %v9260_v45 = vadd.f32 %v9174_v43, %v14144_v46  ;;  %v8591_v13 = vpop.f32.mrb[171].mxu1  ;;  %v9177_v59 = vrot.slane %v10689_v34, 2 }
 0x635   : > { %v8935_v33 = vsel %vm1970_vm3, %v8932_v27, %v8934_v39  ;;  %v9175_v1 = vrot.slane %v8591_v13, 2  ;;  %v8328_v5 = vpop.f32.mrb[168].mxu0 }
 0x636   : > { %9425 = vst [vmem:[%s14131_s9 + $0x70] sm:$0xff] %v9393_v12  ;;  %9426 = vst [vmem:[%s14131_s9 + $0x78] sm:$0xff] %v9394_v7  ;;  %v9363_v52 = vadd.f32 %v14119_v9, %v9260_v45  ;;  %v14224_v62 = vadd.f32 %v8935_v33, %v8755_v47  ;;  %v8756_v19 = vadd.f32 %v8328_v5, %v14051_v14  ;;  %v8330_v53 = vpop.f32.mrb[169].mxu0 }
 0x637   : > { %v9176_v25 = vsel %vm2227_vm4, %v9173_v8, %v9175_v1  ;;  %v10692_v17 = vpop.f32.mrb[172].mxu1  ;;  %v8936_v14 = vrot.slane %v8330_v53, 1 }
 0x638   : > { %v9395_v31 = vmax.f32 %v9363_v52, 0.0  ;;  %v9261_v46 = vadd.f32 %v9176_v25, %v14152_v41  ;;  %v9180_v58 = vrot.slane %v10692_v17, 2  ;;  %v8601_v37 = vpop.f32.mrb[173].mxu1 }
 0x639   : > { %v9178_v48 = vrot.slane %v8601_v37, 2  ;;  %v8334_v20 = vpop.f32.mrb[170].mxu0 }
 0x63a   : > { %9427 = vst [vmem:[%s14131_s9 + $0x80] sm:$0xff] %v9395_v31  ;;  %v9364_v61 = vadd.f32 %v14119_v9, %v9261_v46  ;;  %v8757_v51 = vadd.f32 %v8334_v20, %v14059_v38  ;;  %v8336_v26 = vpop.f32.mrb[171].mxu0 }
 0x63b   : > { %v9179_v0 = vsel %vm2227_vm4, %v9177_v59, %v9178_v48  ;;  %v9181_v10 = vsel %vm2227_vm4, %v9178_v48, %v9180_v58  ;;  %v8937_v42 = vrot.slane %v8336_v26, 1  ;;  %v10695_v36 = vpop.f32.mrb[174].mxu1 }
 0x63c   : > { %v9396_v41 = vmax.f32 %v9364_v61, 0.0  ;;  %v9262_v32 = vadd.f32 %v9179_v0, %v14168_v3  ;;  %v9263_v47 = vadd.f32 %v9181_v10, %v14176_v23  ;;  %v9183_v60 = vrot.slane %v10695_v36, 2  ;;  %v8611_v35 = vpop.f32.mrb[175].mxu1 }
 0x63d   : > { %v8938_v4 = vsel %vm1970_vm3, %v8936_v14, %v8937_v42  ;;  %v9182_v54 = vrot.slane %v8611_v35, 2  ;;  %v8340_v27 = vpop.f32.mrb[172].mxu0 }
 0x63e   : > { %9428 = vst [vmem:[%s14131_s9 + $0x88] sm:$0xff] %v9396_v41  ;;  %v9365_v38 = vadd.f32 %v14119_v9, %v9262_v32  ;;  %v9366_v49 = vadd.f32 %v14119_v9, %v9263_v47  ;;  %v9012_v40 = vadd.f32 %v8938_v4, %v8756_v19  ;;  %v8341_v44 = vpop.f32.mrb[173].mxu0 }
 0x63f   : > { %v9184_v24 = vsel %vm2227_vm4, %v9182_v54, %v9183_v60  ;;  %v8939_v3 = vrot.slane %v8341_v44, 1  ;;  %v10698_v8 = vpop.f32.mrb[176].mxu1 }
 0x640   : > { %v9397_v23 = vmax.f32 %v9365_v38, 0.0  ;;  %v9398_v50 = vmax.f32 %v9366_v49, 0.0  ;;  %v9264_v21 = vadd.f32 %v9184_v24, %v14192_v6  ;;  %v8621_v16 = vpop.f32.mrb[177].mxu1  ;;  %v9187_v1 = vrot.slane %v10698_v8, 2 }
 0x641   : > { %v8940_v18 = vsel %vm1970_vm3, %v8937_v42, %v8939_v3  ;;  %v9185_v28 = vrot.slane %v8621_v16, 2  ;;  %v8345_v30 = vpop.f32.mrb[174].mxu0 }
 0x642   : > { %9429 = vst [vmem:[%s14131_s9 + $0x90] sm:$0xff] %v9397_v23  ;;  %9430 = vst [vmem:[%s14131_s9 + $0x98] sm:$0xff] %v9398_v50  ;;  %v9367_v56 = vadd.f32 %v14119_v9, %v9264_v21  ;;  %v9013_v43 = vadd.f32 %v8940_v18, %v8757_v51  ;;  %v8758_v39 = vadd.f32 %v8345_v30, %v14069_v11  ;;  %v8347_v34 = vpop.f32.mrb[175].mxu0 }
 0x643   : > { %v9186_v12 = vsel %vm2227_vm4, %v9183_v60, %v9185_v28  ;;  %v10701_v7 = vpop.f32.mrb[178].mxu1  ;;  %v8941_v11 = vrot.slane %v8347_v34, 1 }
 0x644   : > { %v9399_v45 = vmax.f32 %v9367_v56, 0.0  ;;  %v9265_v6 = vadd.f32 %v9186_v12, %v14200_v2  ;;  %v9190_v13 = vrot.slane %v10701_v7, 2  ;;  %v8631_v33 = vpop.f32.mrb[179].mxu1 }
 0x645   : > { %v9188_v5 = vrot.slane %v8631_v33, 2  ;;  %v8351_v52 = vpop.f32.mrb[176].mxu0 }
 0x646   : > { %9431 = vst [vmem:[%s14131_s9 + $0xa0] sm:$0xff] %v9399_v45  ;;  %v9368_v19 = vadd.f32 %v14119_v9, %v9265_v6  ;;  %v8759_v53 = vadd.f32 %v8351_v52, %v14077_v15  ;;  %v8353_v25 = vpop.f32.mrb[177].mxu0 }
 0x647   : > { %v9189_v17 = vsel %vm2227_vm4, %v9187_v1, %v9188_v5  ;;  %v9191_v31 = vsel %vm2227_vm4, %v9188_v5, %v9190_v13  ;;  %v8942_v46 = vrot.slane %v8353_v25, 1  ;;  %v10704_v58 = vpop.f32.mrb[180].mxu1 }
 0x648   : > { %v9400_v2 = vmax.f32 %v9368_v19, 0.0  ;;  %v9266_v37 = vadd.f32 %v9189_v17, %v14216_v63  ;;  %v9267_v59 = vadd.f32 %v9191_v31, %v14224_v62  ;;  %v9193_v48 = vrot.slane %v10704_v58, 2  ;;  %v8641_v20 = vpop.f32.mrb[181].mxu1 }
 0x649   : > { %v8943_v61 = vsel %vm1970_vm3, %v8941_v11, %v8942_v46  ;;  %v9192_v51 = vrot.slane %v8641_v20, 2  ;;  %v8357_v26 = vpop.f32.mrb[178].mxu0 }
 0x64a   : > { %9432 = vst [vmem:[%s14131_s9 + $0xa8] sm:$0xff] %v9400_v2  ;;  %v9369_v15 = vadd.f32 %v14119_v9, %v9266_v37  ;;  %v9370_v14 = vadd.f32 %v14119_v9, %v9267_v59  ;;  %v9014_v0 = vadd.f32 %v8943_v61, %v8758_v39  ;;  %v8358_v10 = vpop.f32.mrb[179].mxu0 }
 0x64b   : > { %v9194_v42 = vsel %vm2227_vm4, %v9192_v51, %v9193_v48  ;;  %v8944_v63 = vrot.slane %v8358_v10, 1  ;;  %v10707_v36 = vpop.f32.mrb[182].mxu1 }
 0x64c   : > { %v9401_v62 = vmax.f32 %v9369_v15, 0.0  ;;  %v9402_v41 = vmax.f32 %v9370_v14, 0.0  ;;  %v9268_v32 = vadd.f32 %v9194_v42, %v9012_v40  ;;  %v8651_v47 = vpop.f32.mrb[183].mxu1  ;;  %v9197_v50 = vrot.slane %v10707_v36, 2 }
 0x64d   : > { %v8945_v60 = vsel %vm1970_vm3, %v8942_v46, %v8944_v63  ;;  %v9195_v35 = vrot.slane %v8651_v47, 2  ;;  %v8362_v4 = vpop.f32.mrb[180].mxu0 }
 0x64e   : > { %9433 = vst [vmem:[%s14131_s9 + $0xb0] sm:$0xff] %v9401_v62  ;;  %9434 = vst [vmem:[%s14131_s9 + $0xb8] sm:$0xff] %v9402_v41  ;;  %v9371_v54 = vadd.f32 %v14119_v9, %v9268_v32  ;;  %v9015_v27 = vadd.f32 %v8945_v60, %v8759_v53  ;;  %v8760_v38 = vadd.f32 %v8362_v4, %v14087_v55  ;;  %v8364_v49 = vpop.f32.mrb[181].mxu0 }
 0x64f   : > { %v9196_v44 = vsel %vm2227_vm4, %v9193_v48, %v9195_v35  ;;  %v10710_v24 = vpop.f32.mrb[184].mxu1  ;;  %v8946_v56 = vrot.slane %v8364_v49, 1 }
 0x650   : > { %v9403_v3 = vmax.f32 %v9371_v54, 0.0  ;;  %v9269_v8 = vadd.f32 %v9196_v44, %v9013_v43  ;;  %v9200_v40 = vrot.slane %v10710_v24, 2  ;;  %v8661_v23 = vpop.f32.mrb[185].mxu1 }
 0x651   : > { %v9198_v21 = vrot.slane %v8661_v23, 2  ;;  %v8368_v16 = vpop.f32.mrb[182].mxu0 }
 0x652   : > { %9435 = vst [vmem:[%s14131_s9 + $0xc0] sm:$0xff] %v9403_v3  ;;  %v9372_v18 = vadd.f32 %v14119_v9, %v9269_v8  ;;  %v8761_v28 = vadd.f32 %v8368_v16, %v14095_v57  ;;  %v8370_v30 = vpop.f32.mrb[183].mxu0 }
 0x653   : > { %v9199_v55 = vsel %vm2227_vm4, %v9197_v50, %v9198_v21  ;;  %v9201_v39 = vsel %vm2227_vm4, %v9198_v21, %v9200_v40  ;;  %v8947_v34 = vrot.slane %v8370_v30, 1  ;;  %v10713_v12 = vpop.f32.mrb[186].mxu1 }
 0x654   : > { %v9404_v43 = vmax.f32 %v9372_v18, 0.0  ;;  %v9270_v7 = vadd.f32 %v9199_v55, %v9014_v0  ;;  %v9271_v45 = vadd.f32 %v9201_v39, %v9015_v27  ;;  %v9203_v6 = vrot.slane %v10713_v12, 2  ;;  %v8671_v13 = vpop.f32.mrb[187].mxu1 }
 0x655   : > { %v8948_v33 = vsel %vm1970_vm3, %v8946_v56, %v8947_v34  ;;  %v9202_v1 = vrot.slane %v8671_v13, 2  ;;  %v8374_v5 = vpop.f32.mrb[184].mxu0 }
 0x656   : > { %9436 = vst [vmem:[%s14131_s9 + $0xc8] sm:$0xff] %v9404_v43  ;;  %v9373_v57 = vadd.f32 %v14119_v9, %v9270_v7  ;;  %v9374_v52 = vadd.f32 %v14119_v9, %v9271_v45  ;;  %v9016_v19 = vadd.f32 %v8948_v33, %v8760_v38  ;;  %v8375_v53 = vpop.f32.mrb[185].mxu0 }
 0x657   : > { %v9204_v25 = vsel %vm2227_vm4, %v9202_v1, %v9203_v6  ;;  %v8949_v11 = vrot.slane %v8375_v53, 1  ;;  %v10716_v17 = vpop.f32.mrb[188].mxu1 }
 0x658   : > { %v9405_v31 = vmax.f32 %v9373_v57, 0.0  ;;  %v9406_v46 = vmax.f32 %v9374_v52, 0.0  ;;  %v9272_v58 = vadd.f32 %v9204_v25, %v9016_v19  ;;  %v8681_v2 = vpop.f32.mrb[189].mxu1  ;;  %v9207_v15 = vrot.slane %v10716_v17, 2 }
 0x659   : > { %v8950_v37 = vsel %vm1970_vm3, %v8947_v34, %v8949_v11  ;;  %v9205_v59 = vrot.slane %v8681_v2, 2  ;;  %v8379_v48 = vpop.f32.mrb[186].mxu0 }
 0x65a   : > { %9437 = vst [vmem:[%s14131_s9 + $0xd0] sm:$0xff] %v9405_v31  ;;  %9438 = vst [vmem:[%s14131_s9 + $0xd8] sm:$0xff] %v9406_v46  ;;  %v9375_v20 = vadd.f32 %v14119_v9, %v9272_v58  ;;  %v9017_v61 = vadd.f32 %v8950_v37, %v8761_v28  ;;  %v8762_v51 = vadd.f32 %v8379_v48, %v14105_v22  ;;  %v8381_v26 = vpop.f32.mrb[187].mxu0 }
 0x65b   : > { %v9206_v14 = vsel %vm2227_vm4, %v9203_v6, %v9205_v59  ;;  %v10719_v0 = vpop.f32.mrb[190].mxu1  ;;  %v8951_v35 = vrot.slane %v8381_v26, 1 }
 0x65c   : > { %v9407_v10 = vmax.f32 %v9375_v20, 0.0  ;;  %v9273_v42 = vadd.f32 %v9206_v14, %v9017_v61  ;;  %v9210_v63 = vrot.slane %v10719_v0, 2  ;;  %v8691_v36 = vpop.f32.mrb[191].mxu1 }
 0x65d   : > { %v8385_v62 = vpop.f32.mrb[188].mxu0  ;;  %v9208_v41 = vrot.slane %v8691_v36, 2 }
 0x65e   : > { %9439 = vst [vmem:[%s14131_s9 + $0xe0] sm:$0xff] %v9407_v10  ;;  %v9376_v32 = vadd.f32 %v14119_v9, %v9273_v42  ;;  %v8763_v47 = vadd.f32 %v8385_v62, %v14113_v29  ;;  %v8387_v60 = vpop.f32.mrb[189].mxu0 }
 0x65f   : > { %v8952_v22 = vrot.slane %v8387_v60, 1  ;;  %v9209_v4 = vsel %vm2227_vm4, %v9207_v15, %v9208_v41  ;;  %v9211_v54 = vsel %vm2227_vm4, %v9208_v41, %v9210_v63 }
 0x660   : > { %v9408_v27 = vmax.f32 %v9376_v32, 0.0 }
 0x661   : > { %v8953_v38 = vsel %vm1970_vm3, %v8951_v35, %v8952_v22  ;;  %v8391_v49 = vpop.f32.mrb[190].mxu0 }
 0x662   : > { %9440 = vst [vmem:[%s14131_s9 + $0xe8] sm:$0xff] %v9408_v27  ;;  %v9018_v44 = vadd.f32 %v8953_v38, %v8762_v51  ;;  %v8392_v24 = vpop.f32.mrb[191].mxu0 }
 0x663   : > { %v8954_v29 = vrot.slane %v8392_v24, 1 }
 0x664   : > { %v9274_v3 = vadd.f32 %v9209_v4, %v9018_v44 }
 0x665   : > { %v8955_v8 = vsel %vm1970_vm3, %v8952_v22, %v8954_v29 }
 0x666   : > { %v9377_v40 = vadd.f32 %v14119_v9, %v9274_v3  ;;  %v9019_v23 = vadd.f32 %v8955_v8, %v8763_v47 }
 0x668   : > { %v9409_v50 = vmax.f32 %v9377_v40, 0.0  ;;  %v9275_v21 = vadd.f32 %v9211_v54, %v9019_v23 }
 0x66a   : > { %9441 = vst [vmem:[%s14131_s9 + $0xf0] sm:$0xff] %v9409_v50  ;;  %v9378_v16 = vadd.f32 %v14119_v9, %v9275_v21 }
 0x66c   : > { %v9410_v18 = vmax.f32 %v9378_v16, 0.0 }
 0x66e   : > { %9442 = vst [vmem:[%s14131_s9 + $0xf8] sm:$0xff] %v9410_v18 }
 0x66f   : > { %11316 = shalt.err (!%p11313_p11)
}
 0x670   : > { %s11317_s21 = scalar_lea.hbm %s14299_s18, 4096  ;;  %s11321_s29 = scalar_lea.hbm %s14354_s7, 8192 }
 0x671   : > { %p11318_p13 = scmp.ne.s32.totalorder %s14299_s18, %s11317_s21  ;;  %p11322_p6 = scmp.lt.u32.totalorder %s14299_s18, %s14354_s7 }
 0x672   : > { %p11323_p9 = scmp.lt.u32.totalorder %s11321_s29, %s11317_s21  ;;  %p11325_p12 = scmp.lt.u32.totalorder %s11317_s21, %s14299_s18 }
 0x673   : > { %p11319_p5 = pnand %p11318_p13, %p14399_p1 }
 0x674   : > { %p11324_p10 = por %p11323_p9, %p11322_p6 }
 0x675   : > { %p11320_p0 = pneg %p11319_p5 }
 0x676   : > { %p11326_p2 = por %p11325_p12, %p11324_p10 }
 0x678   : > { %p11327_p3 = pnand %p11326_p2, %p11320_p0 }
 0x67a   : > { %11330 = shalt.err (!%p11327_p3)
}
 0x67b   : > { %s11382_s15 = smov 128   ;;  %s11383_s19 = smov 8  }
 0x67c   : > { %11136 = dma.vmem_to_hbm [thread:$0]  (%p14399_p1), %s14301_s10, 4096, %s14299_s18, %s14306_s16, %s11382_s15, %s11382_s15, %s11383_s19  }
 0x67d PF: > { %p11153_p4 = scmp.ge.s32.totalorder %s11373_s27, 2  ;;  %s9472_s13 = sand.u32 1, %s11361_s24  }
 0x67e   : > { %p14400_p7 = scmp.ne.s32.totalorder %s14361_s12, 0  ;;  %s9473_s28 = scalar_lea.sflag [#allocation7], %s9472_s13 }
 0x680   : > { %p11146_p8 = pnand %p11153_p4, %p14400_p7 }
 0x682   : > { %11356 = dma.done.wait (!%p11146_p8), %s9473_s28, 4096  }
 0x683   : > { %11358 = vsyncadd (!%p11146_p8), %s9473_s28, 4294963200  ;;  %s14401_s14 = sld [smem:[#allocation14_spill]]  ;;  %p19_p11 = scmp.ge.s32.totalorder %s11449_s30, 4  }
 0x684   : > { %s14402_s24 = smov %s11365_s25  ;;  %s14403_s25 = smov %s11369_s26 }
 0x685   : > { %s14405_s27 = smov %s11449_s30  ;;  %21 = sbr.rel (!%p19_p11) target bundleno = 5 (0x5), region = 103 }
 0x689   : > { %s14404_s26 = smov %s14401_s14 }
 0x68c   :  { %9478 = vsyncpa [#allocation6], 1 }
 0x68d   :  { %9480 = vsyncpa [#allocation6 + $0x1], 1 }
 0x68e   :  { %9481 = vsyncpa [#allocation9], 1 }
 0x68f   :  { %9482 = vsyncpa [#allocation7], 1 }
 0x690   :  { %9484 = vsyncpa [#allocation7 + $0x1], 1 }

</bundles_post_ra>
